<compile_context>
chip_gen: v7x
topology: tpu7x:2x2x1
jax: 0.10.0
libtpu: 0.0.40
codegen_flags: <defaults>
</compile_context>

<pallas_src>
import math

import jax
import jax.numpy as jnp
from jax.experimental import pallas as pl
from jax.experimental.pallas import tpu as pltpu


# ---------------------------------------------------------------------------
# Fused Decoder-forward kernel: one batch tile per grid step
# ---------------------------------------------------------------------------
def decoder_kernel(enc_ref,     # (Bb, T-1, E)   encoder outputs
                   y_ref,       # (T-1, Bb, 1)   y_history, time-major
                   w1hc_ref,    # (2D, E) attn layer-1 weight, [hidden; cell] rows
                   w1e_ref,     # (E, E)  attn layer-1 weight, encoder rows
                   b1_ref,      # (1, E)
                   w2_ref,      # (1, E)  attn layer-2 weight (torch layout)
                   wih_ref,     # (1, 4D) LSTM W_ih (input size = 1), transposed
                   whh_ref,     # (D, 4D) LSTM W_hh, transposed
                   blstm_ref,   # (1, 4D) b_ih + b_hh
                   wfc_c_ref,   # (1, E)  fc weight, context part
                   wfc_y_ref,   # (1, 1)  fc weight, y part
                   bfc_ref,     # (1, 1)
                   wfin_h_ref,  # (1, D)  fc_final weight, hidden part
                   wfin_c_ref,  # (1, E)  fc_final weight, context part
                   bfin_ref,    # (1, 1)
                   out_ref):    # (Bb, 1)
    Bb, Tm1, E = enc_ref.shape
    D = whh_ref.shape[0]

    enc = enc_ref[...]                                        # (Bb, Tm1, E)
    w1hc = w1hc_ref[...]                                      # (2D, E)
    w2 = w2_ref[...]                                          # (1, E)
    wih = wih_ref[...]                                        # (1, 4D)
    whh = whh_ref[...]                                        # (D, 4D)

    # ---- loop-invariant hoists -------------------------------------------
    # Encoder contribution to attention layer 1 (bias folded in); constant
    # across t.  (The reshape keeps the matmul 2-D for the MXU; see review
    # note - if a bundle dump shows a relayout here, pass enc pre-flattened.)
    e1 = (jnp.dot(enc.reshape(Bb * Tm1, E), w1e_ref[...],
                  preferred_element_type=jnp.float32)
          + b1_ref[...]).reshape(Bb, Tm1, E)                  # (Bb, Tm1, E)

    # enc projected through the fc context weight:
    #   enc_fc[b, t] = enc[b, t, :] . wfc_c  -> replaces per-step ctx build.
    enc_fc = jnp.sum(enc * wfc_c_ref[...], axis=-1)           # (Bb, Tm1)

    # Hoisted broadcasts (the unrolled fori_loop would re-emit them per step).
    blstm_b = jnp.broadcast_to(blstm_ref[...], (Bb, 4 * D))   # (Bb, 4D)
    bfc_b = jnp.broadcast_to(bfc_ref[...], (Bb, 1))           # (Bb, 1)
    wfc_y = wfc_y_ref[...]                                    # (1, 1)

    def sigmoid(x):
        # tanh-based logistic: single EUP op, no divide, no inf intermediate.
        return 0.5 * (jnp.tanh(0.5 * x) + 1.0)

    def step(t, carry):
        h, c, _ = carry                                       # (Bb,D),(Bb,D),(Bb,Tm1)

        # --- additive attention over the T-1 encoder positions -------------
        hc_in = jnp.concatenate([h, c], axis=-1)              # (Bb, 2D) lane-dense
        hc = jnp.dot(hc_in, w1hc,
                     preferred_element_type=jnp.float32)      # (Bb, E)
        z = jnp.tanh(e1 + hc[:, None, :])                     # (Bb, Tm1, E)
        # attn-layer-2 bias dropped: softmax is shift invariant.
        scores = jnp.sum(z * w2, axis=-1)                     # (Bb, Tm1)
        m = jnp.max(scores, axis=-1, keepdims=True)
        ex = jnp.exp(scores - m)
        attn = ex * pl.reciprocal(jnp.sum(ex, axis=-1, keepdims=True),
                                  approx=False)               # (Bb, Tm1)

        # --- y_tilde = fc(cat(context, y_t)) without building context ------
        #     ctx . wfc_c == sum_t attn_t * (enc_t . wfc_c) == attn . enc_fc
        y_t = y_ref[t]                                        # (Bb, 1)
        y_tilde = (jnp.sum(attn * enc_fc, axis=-1, keepdims=True)
                   + y_t * wfc_y + bfc_b)                     # (Bb, 1)

        # --- single-step LSTM cell (input size = out_feats = 1) -------------
        gates = (y_tilde * wih
                 + jnp.dot(h, whh, preferred_element_type=jnp.float32)
                 + blstm_b)                                   # (Bb, 4D)
        i = sigmoid(gates[:, 0 * D:1 * D])
        f = sigmoid(gates[:, 1 * D:2 * D])
        g = jnp.tanh(gates[:, 2 * D:3 * D])
        o = sigmoid(gates[:, 3 * D:4 * D])
        c_new = f * c + i * g
        h_new = o * jnp.tanh(c_new)
        return h_new, c_new, attn

    h0 = jnp.zeros((Bb, D), jnp.float32)
    c0 = jnp.zeros((Bb, D), jnp.float32)
    a0 = jnp.zeros((Bb, Tm1), jnp.float32)
    # Full unroll: latency-bound recurrence, Tm1 is small; if a bundle dump
    # ever shows spills dominating, drop to unroll=2 or 4.
    h, _, attn = jax.lax.fori_loop(0, Tm1, step, (h0, c0, a0), unroll=True)

    # Materialize the context once, only for fc_final(cat(hidden, context)).
    ctx = jnp.sum(attn[:, :, None] * enc_ref[...], axis=1)    # (Bb, E)
    out_ref[...] = (jnp.sum(h * wfin_h_ref[...], axis=-1, keepdims=True)
                    + jnp.sum(ctx * wfin_c_ref[...], axis=-1, keepdims=True)
                    + bfin_ref[...])


# ---------------------------------------------------------------------------
# Wrapper.  Default batch_block = B (grid=1): right choice for single-TC
# v5e/v6e at these sizes.  Pass batch_block = B//2 on v7x if the per-tile work
# justifies the megacore split.
# ---------------------------------------------------------------------------
def decoder_forward(params, input_encoded, y_history, *, batch_block=None):
    B, Tm1, E = input_encoded.shape
    D = params["whh"].shape[0]
    out_feats = y_history.shape[-1]
    assert out_feats == 1  # module default; see TODO in init_params
    if batch_block is None:
        batch_block = B
    assert B % batch_block == 0

    y_k = jnp.transpose(y_history, (1, 0, 2))                 # (Tm1, B, 1)
    # Merge the hidden/cell rows of attn layer-1 once (one K=2D MXU pass).
    w1hc = jnp.concatenate([params["w1h"], params["w1c"]], axis=0)  # (2D, E)

    def full(shape):
        return pl.BlockSpec(shape, lambda b: (0,) * len(shape))

    in_specs = [
        pl.BlockSpec((batch_block, Tm1, E), lambda b: (b, 0, 0)),   # enc
        pl.BlockSpec((Tm1, batch_block, 1), lambda b: (0, b, 0)),   # y_history
        full((2 * D, E)), full((E, E)), full((1, E)),                # attn L1
        full((1, E)),                                                # attn L2 w
        full((1, 4 * D)), full((D, 4 * D)), full((1, 4 * D)),        # LSTM
        full((1, E)), full((1, 1)), full((1, 1)),                    # fc
        full((1, D)), full((1, E)), full((1, 1)),                    # fc_final
    ]
    out_specs = pl.BlockSpec((batch_block, 1), lambda b: (b, 0))

    return pl.pallas_call(
        decoder_kernel,
        grid=(B // batch_block,),
        in_specs=in_specs,
        out_specs=out_specs,
        out_shape=jax.ShapeDtypeStruct((B, 1), jnp.float32),
        compiler_params=pltpu.CompilerParams(
            dimension_semantics=("parallel",)),
    )(input_encoded, y_k,
      w1hc, params["w1e"], params["b1"], params["w2"],
      params["wih"], params["whh"], params["blstm"],
      params["wfc_c"], params["wfc_y"], params["bfc"],
      params["wfin_h"], params["wfin_c"], params["bfin"])


# ---------------------------------------------------------------------------
# Parameter init (mirrors torch default init; fc.weight ~ normal_())
# ---------------------------------------------------------------------------
def init_params(key, enc_hidden, dec_hidden, out_feats=1):
    # TODO(synk): out_feats > 1 would need true (B,out)@(out,.) matmuls for the
    # fc / LSTM-input paths; the module's default out_feats=1 is implemented.
    E, D = enc_hidden, dec_hidden
    ks = jax.random.split(key, 16)

    def unif(k, shape, fan_in):
        b = 1.0 / math.sqrt(fan_in)
        return jax.random.uniform(k, shape, jnp.float32, -b, b)

    p = {}
    # attn layer 1: Linear(2D+E, E), split by input group, stored (in, out)
    p["w1h"] = unif(ks[0], (D, E), 2 * D + E)
    p["w1c"] = unif(ks[1], (D, E), 2 * D + E)
    p["w1e"] = unif(ks[2], (E, E), 2 * D + E)
    p["b1"] = unif(ks[3], (1, E), 2 * D + E)
    # attn layer 2: Linear(E, 1), torch layout (1, E); b2 only used by the
    # reference (softmax shift invariance makes it a no-op in the kernel).
    p["w2"] = unif(ks[4], (1, E), E)
    p["b2"] = unif(ks[5], (1, 1), E)
    # LSTM(input=out_feats, hidden=D); gate order i, f, g, o; stored (in, out)
    p["wih"] = unif(ks[6], (out_feats, 4 * D), D)
    p["whh"] = unif(ks[7], (D, 4 * D), D)
    p["blstm"] = unif(ks[8], (1, 4 * D), D) + unif(ks[9], (1, 4 * D), D)
    # fc: Linear(E + out_feats, out_feats); weight.normal_() as in the module
    p["wfc_c"] = jax.random.normal(ks[10], (1, E), jnp.float32)
    p["wfc_y"] = jax.random.normal(ks[11], (1, out_feats), jnp.float32)
    p["bfc"] = unif(ks[12], (1, out_feats), E + out_feats)
    # fc_final: Linear(D + E, out_feats)
    p["wfin_h"] = unif(ks[13], (1, D), D + E)
    p["wfin_c"] = unif(ks[14], (1, E), D + E)
    p["bfin"] = unif(ks[15], (1, out_feats), D + E)
    return p


# ---------------------------------------------------------------------------
# Pure-JAX reference mirroring the PyTorch Decoder.forward
# ---------------------------------------------------------------------------
def reference(params, input_encoded, y_history):
    B, Tm1, E = input_encoded.shape
    D = params["whh"].shape[0]
    w1 = jnp.concatenate([params["w1h"], params["w1c"], params["w1e"]], axis=0)
    wfc = jnp.concatenate([params["wfc_c"], params["wfc_y"]], axis=1)
    wfin = jnp.concatenate([params["wfin_h"], params["wfin_c"]], axis=1)

    def sigmoid(x):
        return 1.0 / (1.0 + jnp.exp(-x))

    h = jnp.zeros((B, D), jnp.float32)
    c = jnp.zeros((B, D), jnp.float32)
    ctx = jnp.zeros((B, E), jnp.float32)
    for t in range(Tm1):
        x = jnp.concatenate(
            [jnp.broadcast_to(h[:, None, :], (B, Tm1, D)),
             jnp.broadcast_to(c[:, None, :], (B, Tm1, D)),
             input_encoded], axis=2)
        z = jnp.tanh(x.reshape(B * Tm1, 2 * D + E) @ w1 + params["b1"])
        scores = (z @ params["w2"].T + params["b2"]).reshape(B, Tm1)
        attn = jax.nn.softmax(scores, axis=1)
        ctx = jnp.einsum("bt,bte->be", attn, input_encoded)
        y_t = y_history[:, t]                                  # (B, 1)
        y_tilde = jnp.concatenate([ctx, y_t], axis=1) @ wfc.T + params["bfc"]
        gates = y_tilde @ params["wih"] + h @ params["whh"] + params["blstm"]
        i = sigmoid(gates[:, :D])
        f = sigmoid(gates[:, D:2 * D])
        g = jnp.tanh(gates[:, 2 * D:3 * D])
        o = sigmoid(gates[:, 3 * D:])
        c = f * c + i * g
        h = o * jnp.tanh(c)
    return jnp.concatenate([h, ctx], axis=1) @ wfin.T + params["bfin"]


if __name__ == "__main__":
    # batch, T (so T-1 = 8 decoder steps), encoder hidden, decoder hidden
    B, T, E, D = 16, 9, 64, 64
    Tm1 = T - 1

    key = jax.random.PRNGKey(0)
    kp, ke, ky = jax.random.split(key, 3)
    params = init_params(kp, E, D)
    input_encoded = jax.random.normal(ke, (B, Tm1, E), jnp.float32)
    y_history = jax.random.normal(ky, (B, Tm1, 1), jnp.float32)

    # Default batch_block = B -> grid=1 (single-TC v5e/v6e default).
    out = decoder_forward(params, input_encoded, y_history)
    out = jax.block_until_ready(out)

    ref = reference(params, input_encoded, y_history)
    assert out.shape == (B, 1)
    assert jnp.allclose(out, ref, atol=1e-4, rtol=1e-4), \
        float(jnp.max(jnp.abs(out - ref)))

    print("KERNEL_OK")
</pallas_src>

<mosaic_0001>
module attributes {stable_mosaic.version = 11 : i64} {
  func.func @decoder_kernel(%arg0: i32, %arg1: memref<16x8x64xf32, #tpu.memory_space<vmem>>, %arg2: memref<8x16x1xf32, #tpu.memory_space<vmem>>, %arg3: memref<128x64xf32, #tpu.memory_space<vmem>>, %arg4: memref<64x64xf32, #tpu.memory_space<vmem>>, %arg5: memref<1x64xf32, #tpu.memory_space<vmem>>, %arg6: memref<1x64xf32, #tpu.memory_space<vmem>>, %arg7: memref<1x256xf32, #tpu.memory_space<vmem>>, %arg8: memref<64x256xf32, #tpu.memory_space<vmem>>, %arg9: memref<1x256xf32, #tpu.memory_space<vmem>>, %arg10: memref<1x64xf32, #tpu.memory_space<vmem>>, %arg11: memref<1x1xf32, #tpu.memory_space<vmem>>, %arg12: memref<1x1xf32, #tpu.memory_space<vmem>>, %arg13: memref<1x64xf32, #tpu.memory_space<vmem>>, %arg14: memref<1x64xf32, #tpu.memory_space<vmem>>, %arg15: memref<1x1xf32, #tpu.memory_space<vmem>>, %arg16: memref<16x1xf32, #tpu.memory_space<vmem>>) attributes {dimension_semantics = [#tpu.dimension_semantics<parallel>], iteration_bounds = array<i64: 1>, scalar_prefetch = 0 : i64, scratch_operands = 0 : i64, tpu.core_type = #tpu.core_type<tc>, window_params = [{transform_indices = @transform_0, window_bounds = array<i64: 16, 8, 64>}, {transform_indices = @transform_1, window_bounds = array<i64: 8, 16, 1>}, {pipeline_mode = #tpu.pipeline_mode<synchronous>, transform_indices = @transform_2, window_bounds = array<i64: 128, 64>}, {pipeline_mode = #tpu.pipeline_mode<synchronous>, transform_indices = @transform_3, window_bounds = array<i64: 64, 64>}, {pipeline_mode = #tpu.pipeline_mode<synchronous>, transform_indices = @transform_4, window_bounds = array<i64: 1, 64>}, {pipeline_mode = #tpu.pipeline_mode<synchronous>, transform_indices = @transform_5, window_bounds = array<i64: 1, 64>}, {pipeline_mode = #tpu.pipeline_mode<synchronous>, transform_indices = @transform_6, window_bounds = array<i64: 1, 256>}, {pipeline_mode = #tpu.pipeline_mode<synchronous>, transform_indices = @transform_7, window_bounds = array<i64: 64, 256>}, {pipeline_mode = #tpu.pipeline_mode<synchronous>, transform_indices = @transform_8, window_bounds = array<i64: 1, 256>}, {pipeline_mode = #tpu.pipeline_mode<synchronous>, transform_indices = @transform_9, window_bounds = array<i64: 1, 64>}, {pipeline_mode = #tpu.pipeline_mode<synchronous>, transform_indices = @transform_10, window_bounds = array<i64: 1, 1>}, {pipeline_mode = #tpu.pipeline_mode<synchronous>, transform_indices = @transform_11, window_bounds = array<i64: 1, 1>}, {pipeline_mode = #tpu.pipeline_mode<synchronous>, transform_indices = @transform_12, window_bounds = array<i64: 1, 64>}, {pipeline_mode = #tpu.pipeline_mode<synchronous>, transform_indices = @transform_13, window_bounds = array<i64: 1, 64>}, {pipeline_mode = #tpu.pipeline_mode<synchronous>, transform_indices = @transform_14, window_bounds = array<i64: 1, 1>}, {transform_indices = @transform_15, window_bounds = array<i64: 16, 1>}]} {
    %c0 = arith.constant 0 : index
    %c0_0 = arith.constant 0 : index
    %c0_1 = arith.constant 0 : index
    %0 = vector.load %arg1[%c0, %c0_0, %c0_1] : memref<16x8x64xf32, #tpu.memory_space<vmem>>, vector<16x8x64xf32>
    %c0_2 = arith.constant 0 : index
    %c0_3 = arith.constant 0 : index
    %1 = vector.load %arg3[%c0_2, %c0_3] : memref<128x64xf32, #tpu.memory_space<vmem>>, vector<128x64xf32>
    %c0_4 = arith.constant 0 : index
    %c0_5 = arith.constant 0 : index
    %2 = vector.load %arg6[%c0_4, %c0_5] : memref<1x64xf32, #tpu.memory_space<vmem>>, vector<1x64xf32>
    %c0_6 = arith.constant 0 : index
    %c0_7 = arith.constant 0 : index
    %3 = vector.load %arg7[%c0_6, %c0_7] : memref<1x256xf32, #tpu.memory_space<vmem>>, vector<1x256xf32>
    %c0_8 = arith.constant 0 : index
    %c0_9 = arith.constant 0 : index
    %4 = vector.load %arg8[%c0_8, %c0_9] : memref<64x256xf32, #tpu.memory_space<vmem>>, vector<64x256xf32>
    %5 = vector.shape_cast %0 : vector<16x8x64xf32> to vector<128x64xf32>
    %c0_10 = arith.constant 0 : index
    %c0_11 = arith.constant 0 : index
    %6 = vector.load %arg4[%c0_10, %c0_11] : memref<64x64xf32, #tpu.memory_space<vmem>>, vector<64x64xf32>
    %cst = arith.constant dense<0.000000e+00> : vector<128x64xf32>
    %7 = tpu.matmul %5, %6, %cst {dimension_numbers = #tpu.dot_dimension_numbers<[1], [0], [0], [1], [0, 0, 1, 1], [], []>} : vector<128x64xf32>, vector<64x64xf32>, vector<128x64xf32> -> vector<128x64xf32>
    %c0_12 = arith.constant 0 : index
    %c0_13 = arith.constant 0 : index
    %8 = vector.load %arg5[%c0_12, %c0_13] : memref<1x64xf32, #tpu.memory_space<vmem>>, vector<1x64xf32>
    %9 = vector.broadcast %8 : vector<1x64xf32> to vector<128x64xf32>
    %10 = arith.addf %7, %9 : vector<128x64xf32>
    %11 = vector.shape_cast %10 : vector<128x64xf32> to vector<16x8x64xf32>
    %c0_14 = arith.constant 0 : index
    %c0_15 = arith.constant 0 : index
    %12 = vector.load %arg10[%c0_14, %c0_15] : memref<1x64xf32, #tpu.memory_space<vmem>>, vector<1x64xf32>
    %13 = vector.shape_cast %12 : vector<1x64xf32> to vector<1x1x64xf32>
    %14 = vector.broadcast %13 : vector<1x1x64xf32> to vector<16x8x64xf32>
    %15 = arith.mulf %0, %14 : vector<16x8x64xf32>
    %cst_16 = arith.constant dense<0.000000e+00> : vector<16x8xf32>
    %16 = vector.multi_reduction <add>, %15, %cst_16 [2] : vector<16x8x64xf32> to vector<16x8xf32>
    %c0_17 = arith.constant 0 : index
    %c0_18 = arith.constant 0 : index
    %17 = vector.load %arg9[%c0_17, %c0_18] : memref<1x256xf32, #tpu.memory_space<vmem>>, vector<1x256xf32>
    %18 = vector.shape_cast %17 : vector<1x256xf32> to vector<1x256xf32>
    %19 = vector.broadcast %18 : vector<1x256xf32> to vector<16x256xf32>
    %c0_19 = arith.constant 0 : index
    %c0_20 = arith.constant 0 : index
    %20 = vector.load %arg12[%c0_19, %c0_20] : memref<1x1xf32, #tpu.memory_space<vmem>>, vector<1x1xf32>
    %21 = vector.shape_cast %20 : vector<1x1xf32> to vector<1x1xf32>
    %22 = vector.broadcast %21 : vector<1x1xf32> to vector<16x1xf32>
    %c0_21 = arith.constant 0 : index
    %c0_22 = arith.constant 0 : index
    %23 = vector.load %arg11[%c0_21, %c0_22] : memref<1x1xf32, #tpu.memory_space<vmem>>, vector<1x1xf32>
    %cst_23 = arith.constant 0.000000e+00 : f32
    %24 = vector.broadcast %cst_23 : f32 to vector<16x64xf32>
    %cst_24 = arith.constant 0.000000e+00 : f32
    %25 = vector.broadcast %cst_24 : f32 to vector<16x64xf32>
    %cst_25 = arith.constant 0.000000e+00 : f32
    %26 = vector.broadcast %cst_25 : f32 to vector<16x8xf32>
    %c0_i32 = arith.constant 0 : i32
    %27 = tpu.concatenate %24, %25 in 1 : vector<16x64xf32>, vector<16x64xf32> -> vector<16x128xf32>
    %cst_26 = arith.constant dense<0.000000e+00> : vector<16x64xf32>
    %28 = tpu.matmul %27, %1, %cst_26 {dimension_numbers = #tpu.dot_dimension_numbers<[1], [0], [0], [1], [0, 0, 1, 1], [], []>} : vector<16x128xf32>, vector<128x64xf32>, vector<16x64xf32> -> vector<16x64xf32>
    %29 = vector.shape_cast %28 : vector<16x64xf32> to vector<16x1x64xf32>
    %30 = vector.broadcast %29 : vector<16x1x64xf32> to vector<16x8x64xf32>
    %31 = arith.addf %11, %30 : vector<16x8x64xf32>
    %32 = math.tanh %31 : vector<16x8x64xf32>
    %33 = vector.shape_cast %2 : vector<1x64xf32> to vector<1x1x64xf32>
    %34 = vector.broadcast %33 : vector<1x1x64xf32> to vector<16x8x64xf32>
    %35 = arith.mulf %32, %34 : vector<16x8x64xf32>
    %cst_27 = arith.constant dense<0.000000e+00> : vector<16x8xf32>
    %36 = vector.multi_reduction <add>, %35, %cst_27 [2] : vector<16x8x64xf32> to vector<16x8xf32>
    %cst_28 = arith.constant dense<0xFF800000> : vector<16xf32>
    %37 = vector.multi_reduction <maximumf>, %36, %cst_28 [1] : vector<16x8xf32> to vector<16xf32>
    %38 = vector.shape_cast %37 : vector<16xf32> to vector<16x1xf32>
    %39 = vector.broadcast %38 : vector<16x1xf32> to vector<16x8xf32>
    %40 = arith.subf %36, %39 : vector<16x8xf32>
    %41 = math.exp %40 : vector<16x8xf32>
    %cst_29 = arith.constant dense<0.000000e+00> : vector<16xf32>
    %42 = vector.multi_reduction <add>, %41, %cst_29 [1] : vector<16x8xf32> to vector<16xf32>
    %43 = vector.shape_cast %42 : vector<16xf32> to vector<16x1xf32>
    %44 = tpu.reciprocal %43 : vector<16x1xf32> -> vector<16x1xf32>
    %45 = vector.broadcast %44 : vector<16x1xf32> to vector<16x8xf32>
    %46 = arith.mulf %41, %45 : vector<16x8xf32>
    %47 = arith.index_cast %c0_i32 : i32 to index
    %c0_30 = arith.constant 0 : index
    %c0_31 = arith.constant 0 : index
    %48 = vector.load %arg2[%47, %c0_30, %c0_31] : memref<8x16x1xf32, #tpu.memory_space<vmem>>, vector<1x16x1xf32>
    %49 = vector.shape_cast %48 : vector<1x16x1xf32> to vector<16x1xf32>
    %50 = arith.mulf %46, %16 : vector<16x8xf32>
    %cst_32 = arith.constant dense<0.000000e+00> : vector<16xf32>
    %51 = vector.multi_reduction <add>, %50, %cst_32 [1] : vector<16x8xf32> to vector<16xf32>
    %52 = vector.shape_cast %51 : vector<16xf32> to vector<16x1xf32>
    %53 = vector.broadcast %23 : vector<1x1xf32> to vector<16x1xf32>
    %54 = arith.mulf %49, %53 : vector<16x1xf32>
    %55 = arith.addf %52, %54 : vector<16x1xf32>
    %56 = arith.addf %55, %22 : vector<16x1xf32>
    %57 = vector.broadcast %56 : vector<16x1xf32> to vector<16x256xf32>
    %58 = vector.broadcast %3 : vector<1x256xf32> to vector<16x256xf32>
    %59 = arith.mulf %57, %58 : vector<16x256xf32>
    %cst_33 = arith.constant dense<0.000000e+00> : vector<16x256xf32>
    %60 = tpu.matmul %24, %4, %cst_33 {dimension_numbers = #tpu.dot_dimension_numbers<[1], [0], [0], [1], [0, 0, 1, 1], [], []>} : vector<16x64xf32>, vector<64x256xf32>, vector<16x256xf32> -> vector<16x256xf32>
    %61 = arith.addf %59, %60 : vector<16x256xf32>
    %62 = arith.addf %61, %19 : vector<16x256xf32>
    %63 = vector.extract_strided_slice %62 {offsets = [0, 0], sizes = [16, 64], strides = [1, 1]} : vector<16x256xf32> to vector<16x64xf32>
    %cst_34 = arith.constant 5.000000e-01 : f32
    %64 = vector.broadcast %cst_34 : f32 to vector<16x64xf32>
    %65 = arith.mulf %64, %63 : vector<16x64xf32>
    %66 = math.tanh %65 : vector<16x64xf32>
    %cst_35 = arith.constant 1.000000e+00 : f32
    %67 = vector.broadcast %cst_35 : f32 to vector<16x64xf32>
    %68 = arith.addf %66, %67 : vector<16x64xf32>
    %cst_36 = arith.constant 5.000000e-01 : f32
    %69 = vector.broadcast %cst_36 : f32 to vector<16x64xf32>
    %70 = arith.mulf %69, %68 : vector<16x64xf32>
    %71 = vector.extract_strided_slice %62 {offsets = [0, 64], sizes = [16, 64], strides = [1, 1]} : vector<16x256xf32> to vector<16x64xf32>
    %cst_37 = arith.constant 5.000000e-01 : f32
    %72 = vector.broadcast %cst_37 : f32 to vector<16x64xf32>
    %73 = arith.mulf %72, %71 : vector<16x64xf32>
    %74 = math.tanh %73 : vector<16x64xf32>
    %cst_38 = arith.constant 1.000000e+00 : f32
    %75 = vector.broadcast %cst_38 : f32 to vector<16x64xf32>
    %76 = arith.addf %74, %75 : vector<16x64xf32>
    %cst_39 = arith.constant 5.000000e-01 : f32
    %77 = vector.broadcast %cst_39 : f32 to vector<16x64xf32>
    %78 = arith.mulf %77, %76 : vector<16x64xf32>
    %79 = vector.extract_strided_slice %62 {offsets = [0, 128], sizes = [16, 64], strides = [1, 1]} : vector<16x256xf32> to vector<16x64xf32>
    %80 = math.tanh %79 : vector<16x64xf32>
    %81 = vector.extract_strided_slice %62 {offsets = [0, 192], sizes = [16, 64], strides = [1, 1]} : vector<16x256xf32> to vector<16x64xf32>
    %cst_40 = arith.constant 5.000000e-01 : f32
    %82 = vector.broadcast %cst_40 : f32 to vector<16x64xf32>
    %83 = arith.mulf %82, %81 : vector<16x64xf32>
    %84 = math.tanh %83 : vector<16x64xf32>
    %cst_41 = arith.constant 1.000000e+00 : f32
    %85 = vector.broadcast %cst_41 : f32 to vector<16x64xf32>
    %86 = arith.addf %84, %85 : vector<16x64xf32>
    %cst_42 = arith.constant 5.000000e-01 : f32
    %87 = vector.broadcast %cst_42 : f32 to vector<16x64xf32>
    %88 = arith.mulf %87, %86 : vector<16x64xf32>
    %89 = arith.mulf %78, %25 : vector<16x64xf32>
    %90 = arith.mulf %70, %80 : vector<16x64xf32>
    %91 = arith.addf %89, %90 : vector<16x64xf32>
    %92 = math.tanh %91 : vector<16x64xf32>
    %93 = arith.mulf %88, %92 : vector<16x64xf32>
    %c1_i32 = arith.constant 1 : i32
    %94 = tpu.concatenate %93, %91 in 1 : vector<16x64xf32>, vector<16x64xf32> -> vector<16x128xf32>
    %cst_43 = arith.constant dense<0.000000e+00> : vector<16x64xf32>
    %95 = tpu.matmul %94, %1, %cst_43 {dimension_numbers = #tpu.dot_dimension_numbers<[1], [0], [0], [1], [0, 0, 1, 1], [], []>} : vector<16x128xf32>, vector<128x64xf32>, vector<16x64xf32> -> vector<16x64xf32>
    %96 = vector.shape_cast %95 : vector<16x64xf32> to vector<16x1x64xf32>
    %97 = vector.broadcast %96 : vector<16x1x64xf32> to vector<16x8x64xf32>
    %98 = arith.addf %11, %97 : vector<16x8x64xf32>
    %99 = math.tanh %98 : vector<16x8x64xf32>
    %100 = vector.shape_cast %2 : vector<1x64xf32> to vector<1x1x64xf32>
    %101 = vector.broadcast %100 : vector<1x1x64xf32> to vector<16x8x64xf32>
    %102 = arith.mulf %99, %101 : vector<16x8x64xf32>
    %cst_44 = arith.constant dense<0.000000e+00> : vector<16x8xf32>
    %103 = vector.multi_reduction <add>, %102, %cst_44 [2] : vector<16x8x64xf32> to vector<16x8xf32>
    %cst_45 = arith.constant dense<0xFF800000> : vector<16xf32>
    %104 = vector.multi_reduction <maximumf>, %103, %cst_45 [1] : vector<16x8xf32> to vector<16xf32>
    %105 = vector.shape_cast %104 : vector<16xf32> to vector<16x1xf32>
    %106 = vector.broadcast %105 : vector<16x1xf32> to vector<16x8xf32>
    %107 = arith.subf %103, %106 : vector<16x8xf32>
    %108 = math.exp %107 : vector<16x8xf32>
    %cst_46 = arith.constant dense<0.000000e+00> : vector<16xf32>
    %109 = vector.multi_reduction <add>, %108, %cst_46 [1] : vector<16x8xf32> to vector<16xf32>
    %110 = vector.shape_cast %109 : vector<16xf32> to vector<16x1xf32>
    %111 = tpu.reciprocal %110 : vector<16x1xf32> -> vector<16x1xf32>
    %112 = vector.broadcast %111 : vector<16x1xf32> to vector<16x8xf32>
    %113 = arith.mulf %108, %112 : vector<16x8xf32>
    %114 = arith.index_cast %c1_i32 : i32 to index
    %c0_47 = arith.constant 0 : index
    %c0_48 = arith.constant 0 : index
    %115 = vector.load %arg2[%114, %c0_47, %c0_48] : memref<8x16x1xf32, #tpu.memory_space<vmem>>, vector<1x16x1xf32>
    %116 = vector.shape_cast %115 : vector<1x16x1xf32> to vector<16x1xf32>
    %117 = arith.mulf %113, %16 : vector<16x8xf32>
    %cst_49 = arith.constant dense<0.000000e+00> : vector<16xf32>
    %118 = vector.multi_reduction <add>, %117, %cst_49 [1] : vector<16x8xf32> to vector<16xf32>
    %119 = vector.shape_cast %118 : vector<16xf32> to vector<16x1xf32>
    %120 = vector.broadcast %23 : vector<1x1xf32> to vector<16x1xf32>
    %121 = arith.mulf %116, %120 : vector<16x1xf32>
    %122 = arith.addf %119, %121 : vector<16x1xf32>
    %123 = arith.addf %122, %22 : vector<16x1xf32>
    %124 = vector.broadcast %123 : vector<16x1xf32> to vector<16x256xf32>
    %125 = vector.broadcast %3 : vector<1x256xf32> to vector<16x256xf32>
    %126 = arith.mulf %124, %125 : vector<16x256xf32>
    %cst_50 = arith.constant dense<0.000000e+00> : vector<16x256xf32>
    %127 = tpu.matmul %93, %4, %cst_50 {dimension_numbers = #tpu.dot_dimension_numbers<[1], [0], [0], [1], [0, 0, 1, 1], [], []>} : vector<16x64xf32>, vector<64x256xf32>, vector<16x256xf32> -> vector<16x256xf32>
    %128 = arith.addf %126, %127 : vector<16x256xf32>
    %129 = arith.addf %128, %19 : vector<16x256xf32>
    %130 = vector.extract_strided_slice %129 {offsets = [0, 0], sizes = [16, 64], strides = [1, 1]} : vector<16x256xf32> to vector<16x64xf32>
    %cst_51 = arith.constant 5.000000e-01 : f32
    %131 = vector.broadcast %cst_51 : f32 to vector<16x64xf32>
    %132 = arith.mulf %131, %130 : vector<16x64xf32>
    %133 = math.tanh %132 : vector<16x64xf32>
    %cst_52 = arith.constant 1.000000e+00 : f32
    %134 = vector.broadcast %cst_52 : f32 to vector<16x64xf32>
    %135 = arith.addf %133, %134 : vector<16x64xf32>
    %cst_53 = arith.constant 5.000000e-01 : f32
    %136 = vector.broadcast %cst_53 : f32 to vector<16x64xf32>
    %137 = arith.mulf %136, %135 : vector<16x64xf32>
    %138 = vector.extract_strided_slice %129 {offsets = [0, 64], sizes = [16, 64], strides = [1, 1]} : vector<16x256xf32> to vector<16x64xf32>
    %cst_54 = arith.constant 5.000000e-01 : f32
    %139 = vector.broadcast %cst_54 : f32 to vector<16x64xf32>
    %140 = arith.mulf %139, %138 : vector<16x64xf32>
    %141 = math.tanh %140 : vector<16x64xf32>
    %cst_55 = arith.constant 1.000000e+00 : f32
    %142 = vector.broadcast %cst_55 : f32 to vector<16x64xf32>
    %143 = arith.addf %141, %142 : vector<16x64xf32>
    %cst_56 = arith.constant 5.000000e-01 : f32
    %144 = vector.broadcast %cst_56 : f32 to vector<16x64xf32>
    %145 = arith.mulf %144, %143 : vector<16x64xf32>
    %146 = vector.extract_strided_slice %129 {offsets = [0, 128], sizes = [16, 64], strides = [1, 1]} : vector<16x256xf32> to vector<16x64xf32>
    %147 = math.tanh %146 : vector<16x64xf32>
    %148 = vector.extract_strided_slice %129 {offsets = [0, 192], sizes = [16, 64], strides = [1, 1]} : vector<16x256xf32> to vector<16x64xf32>
    %cst_57 = arith.constant 5.000000e-01 : f32
    %149 = vector.broadcast %cst_57 : f32 to vector<16x64xf32>
    %150 = arith.mulf %149, %148 : vector<16x64xf32>
    %151 = math.tanh %150 : vector<16x64xf32>
    %cst_58 = arith.constant 1.000000e+00 : f32
    %152 = vector.broadcast %cst_58 : f32 to vector<16x64xf32>
    %153 = arith.addf %151, %152 : vector<16x64xf32>
    %cst_59 = arith.constant 5.000000e-01 : f32
    %154 = vector.broadcast %cst_59 : f32 to vector<16x64xf32>
    %155 = arith.mulf %154, %153 : vector<16x64xf32>
    %156 = arith.mulf %145, %91 : vector<16x64xf32>
    %157 = arith.mulf %137, %147 : vector<16x64xf32>
    %158 = arith.addf %156, %157 : vector<16x64xf32>
    %159 = math.tanh %158 : vector<16x64xf32>
    %160 = arith.mulf %155, %159 : vector<16x64xf32>
    %c2_i32 = arith.constant 2 : i32
    %161 = tpu.concatenate %160, %158 in 1 : vector<16x64xf32>, vector<16x64xf32> -> vector<16x128xf32>
    %cst_60 = arith.constant dense<0.000000e+00> : vector<16x64xf32>
    %162 = tpu.matmul %161, %1, %cst_60 {dimension_numbers = #tpu.dot_dimension_numbers<[1], [0], [0], [1], [0, 0, 1, 1], [], []>} : vector<16x128xf32>, vector<128x64xf32>, vector<16x64xf32> -> vector<16x64xf32>
    %163 = vector.shape_cast %162 : vector<16x64xf32> to vector<16x1x64xf32>
    %164 = vector.broadcast %163 : vector<16x1x64xf32> to vector<16x8x64xf32>
    %165 = arith.addf %11, %164 : vector<16x8x64xf32>
    %166 = math.tanh %165 : vector<16x8x64xf32>
    %167 = vector.shape_cast %2 : vector<1x64xf32> to vector<1x1x64xf32>
    %168 = vector.broadcast %167 : vector<1x1x64xf32> to vector<16x8x64xf32>
    %169 = arith.mulf %166, %168 : vector<16x8x64xf32>
    %cst_61 = arith.constant dense<0.000000e+00> : vector<16x8xf32>
    %170 = vector.multi_reduction <add>, %169, %cst_61 [2] : vector<16x8x64xf32> to vector<16x8xf32>
    %cst_62 = arith.constant dense<0xFF800000> : vector<16xf32>
    %171 = vector.multi_reduction <maximumf>, %170, %cst_62 [1] : vector<16x8xf32> to vector<16xf32>
    %172 = vector.shape_cast %171 : vector<16xf32> to vector<16x1xf32>
    %173 = vector.broadcast %172 : vector<16x1xf32> to vector<16x8xf32>
    %174 = arith.subf %170, %173 : vector<16x8xf32>
    %175 = math.exp %174 : vector<16x8xf32>
    %cst_63 = arith.constant dense<0.000000e+00> : vector<16xf32>
    %176 = vector.multi_reduction <add>, %175, %cst_63 [1] : vector<16x8xf32> to vector<16xf32>
    %177 = vector.shape_cast %176 : vector<16xf32> to vector<16x1xf32>
    %178 = tpu.reciprocal %177 : vector<16x1xf32> -> vector<16x1xf32>
    %179 = vector.broadcast %178 : vector<16x1xf32> to vector<16x8xf32>
    %180 = arith.mulf %175, %179 : vector<16x8xf32>
    %181 = arith.index_cast %c2_i32 : i32 to index
    %c0_64 = arith.constant 0 : index
    %c0_65 = arith.constant 0 : index
    %182 = vector.load %arg2[%181, %c0_64, %c0_65] : memref<8x16x1xf32, #tpu.memory_space<vmem>>, vector<1x16x1xf32>
    %183 = vector.shape_cast %182 : vector<1x16x1xf32> to vector<16x1xf32>
    %184 = arith.mulf %180, %16 : vector<16x8xf32>
    %cst_66 = arith.constant dense<0.000000e+00> : vector<16xf32>
    %185 = vector.multi_reduction <add>, %184, %cst_66 [1] : vector<16x8xf32> to vector<16xf32>
    %186 = vector.shape_cast %185 : vector<16xf32> to vector<16x1xf32>
    %187 = vector.broadcast %23 : vector<1x1xf32> to vector<16x1xf32>
    %188 = arith.mulf %183, %187 : vector<16x1xf32>
    %189 = arith.addf %186, %188 : vector<16x1xf32>
    %190 = arith.addf %189, %22 : vector<16x1xf32>
    %191 = vector.broadcast %190 : vector<16x1xf32> to vector<16x256xf32>
    %192 = vector.broadcast %3 : vector<1x256xf32> to vector<16x256xf32>
    %193 = arith.mulf %191, %192 : vector<16x256xf32>
    %cst_67 = arith.constant dense<0.000000e+00> : vector<16x256xf32>
    %194 = tpu.matmul %160, %4, %cst_67 {dimension_numbers = #tpu.dot_dimension_numbers<[1], [0], [0], [1], [0, 0, 1, 1], [], []>} : vector<16x64xf32>, vector<64x256xf32>, vector<16x256xf32> -> vector<16x256xf32>
    %195 = arith.addf %193, %194 : vector<16x256xf32>
    %196 = arith.addf %195, %19 : vector<16x256xf32>
    %197 = vector.extract_strided_slice %196 {offsets = [0, 0], sizes = [16, 64], strides = [1, 1]} : vector<16x256xf32> to vector<16x64xf32>
    %cst_68 = arith.constant 5.000000e-01 : f32
    %198 = vector.broadcast %cst_68 : f32 to vector<16x64xf32>
    %199 = arith.mulf %198, %197 : vector<16x64xf32>
    %200 = math.tanh %199 : vector<16x64xf32>
    %cst_69 = arith.constant 1.000000e+00 : f32
    %201 = vector.broadcast %cst_69 : f32 to vector<16x64xf32>
    %202 = arith.addf %200, %201 : vector<16x64xf32>
    %cst_70 = arith.constant 5.000000e-01 : f32
    %203 = vector.broadcast %cst_70 : f32 to vector<16x64xf32>
    %204 = arith.mulf %203, %202 : vector<16x64xf32>
    %205 = vector.extract_strided_slice %196 {offsets = [0, 64], sizes = [16, 64], strides = [1, 1]} : vector<16x256xf32> to vector<16x64xf32>
    %cst_71 = arith.constant 5.000000e-01 : f32
    %206 = vector.broadcast %cst_71 : f32 to vector<16x64xf32>
    %207 = arith.mulf %206, %205 : vector<16x64xf32>
    %208 = math.tanh %207 : vector<16x64xf32>
    %cst_72 = arith.constant 1.000000e+00 : f32
    %209 = vector.broadcast %cst_72 : f32 to vector<16x64xf32>
    %210 = arith.addf %208, %209 : vector<16x64xf32>
    %cst_73 = arith.constant 5.000000e-01 : f32
    %211 = vector.broadcast %cst_73 : f32 to vector<16x64xf32>
    %212 = arith.mulf %211, %210 : vector<16x64xf32>
    %213 = vector.extract_strided_slice %196 {offsets = [0, 128], sizes = [16, 64], strides = [1, 1]} : vector<16x256xf32> to vector<16x64xf32>
    %214 = math.tanh %213 : vector<16x64xf32>
    %215 = vector.extract_strided_slice %196 {offsets = [0, 192], sizes = [16, 64], strides = [1, 1]} : vector<16x256xf32> to vector<16x64xf32>
    %cst_74 = arith.constant 5.000000e-01 : f32
    %216 = vector.broadcast %cst_74 : f32 to vector<16x64xf32>
    %217 = arith.mulf %216, %215 : vector<16x64xf32>
    %218 = math.tanh %217 : vector<16x64xf32>
    %cst_75 = arith.constant 1.000000e+00 : f32
    %219 = vector.broadcast %cst_75 : f32 to vector<16x64xf32>
    %220 = arith.addf %218, %219 : vector<16x64xf32>
    %cst_76 = arith.constant 5.000000e-01 : f32
    %221 = vector.broadcast %cst_76 : f32 to vector<16x64xf32>
    %222 = arith.mulf %221, %220 : vector<16x64xf32>
    %223 = arith.mulf %212, %158 : vector<16x64xf32>
    %224 = arith.mulf %204, %214 : vector<16x64xf32>
    %225 = arith.addf %223, %224 : vector<16x64xf32>
    %226 = math.tanh %225 : vector<16x64xf32>
    %227 = arith.mulf %222, %226 : vector<16x64xf32>
    %c3_i32 = arith.constant 3 : i32
    %228 = tpu.concatenate %227, %225 in 1 : vector<16x64xf32>, vector<16x64xf32> -> vector<16x128xf32>
    %cst_77 = arith.constant dense<0.000000e+00> : vector<16x64xf32>
    %229 = tpu.matmul %228, %1, %cst_77 {dimension_numbers = #tpu.dot_dimension_numbers<[1], [0], [0], [1], [0, 0, 1, 1], [], []>} : vector<16x128xf32>, vector<128x64xf32>, vector<16x64xf32> -> vector<16x64xf32>
    %230 = vector.shape_cast %229 : vector<16x64xf32> to vector<16x1x64xf32>
    %231 = vector.broadcast %230 : vector<16x1x64xf32> to vector<16x8x64xf32>
    %232 = arith.addf %11, %231 : vector<16x8x64xf32>
    %233 = math.tanh %232 : vector<16x8x64xf32>
    %234 = vector.shape_cast %2 : vector<1x64xf32> to vector<1x1x64xf32>
    %235 = vector.broadcast %234 : vector<1x1x64xf32> to vector<16x8x64xf32>
    %236 = arith.mulf %233, %235 : vector<16x8x64xf32>
    %cst_78 = arith.constant dense<0.000000e+00> : vector<16x8xf32>
    %237 = vector.multi_reduction <add>, %236, %cst_78 [2] : vector<16x8x64xf32> to vector<16x8xf32>
    %cst_79 = arith.constant dense<0xFF800000> : vector<16xf32>
    %238 = vector.multi_reduction <maximumf>, %237, %cst_79 [1] : vector<16x8xf32> to vector<16xf32>
    %239 = vector.shape_cast %238 : vector<16xf32> to vector<16x1xf32>
    %240 = vector.broadcast %239 : vector<16x1xf32> to vector<16x8xf32>
    %241 = arith.subf %237, %240 : vector<16x8xf32>
    %242 = math.exp %241 : vector<16x8xf32>
    %cst_80 = arith.constant dense<0.000000e+00> : vector<16xf32>
    %243 = vector.multi_reduction <add>, %242, %cst_80 [1] : vector<16x8xf32> to vector<16xf32>
    %244 = vector.shape_cast %243 : vector<16xf32> to vector<16x1xf32>
    %245 = tpu.reciprocal %244 : vector<16x1xf32> -> vector<16x1xf32>
    %246 = vector.broadcast %245 : vector<16x1xf32> to vector<16x8xf32>
    %247 = arith.mulf %242, %246 : vector<16x8xf32>
    %248 = arith.index_cast %c3_i32 : i32 to index
    %c0_81 = arith.constant 0 : index
    %c0_82 = arith.constant 0 : index
    %249 = vector.load %arg2[%248, %c0_81, %c0_82] : memref<8x16x1xf32, #tpu.memory_space<vmem>>, vector<1x16x1xf32>
    %250 = vector.shape_cast %249 : vector<1x16x1xf32> to vector<16x1xf32>
    %251 = arith.mulf %247, %16 : vector<16x8xf32>
    %cst_83 = arith.constant dense<0.000000e+00> : vector<16xf32>
    %252 = vector.multi_reduction <add>, %251, %cst_83 [1] : vector<16x8xf32> to vector<16xf32>
    %253 = vector.shape_cast %252 : vector<16xf32> to vector<16x1xf32>
    %254 = vector.broadcast %23 : vector<1x1xf32> to vector<16x1xf32>
    %255 = arith.mulf %250, %254 : vector<16x1xf32>
    %256 = arith.addf %253, %255 : vector<16x1xf32>
    %257 = arith.addf %256, %22 : vector<16x1xf32>
    %258 = vector.broadcast %257 : vector<16x1xf32> to vector<16x256xf32>
    %259 = vector.broadcast %3 : vector<1x256xf32> to vector<16x256xf32>
    %260 = arith.mulf %258, %259 : vector<16x256xf32>
    %cst_84 = arith.constant dense<0.000000e+00> : vector<16x256xf32>
    %261 = tpu.matmul %227, %4, %cst_84 {dimension_numbers = #tpu.dot_dimension_numbers<[1], [0], [0], [1], [0, 0, 1, 1], [], []>} : vector<16x64xf32>, vector<64x256xf32>, vector<16x256xf32> -> vector<16x256xf32>
    %262 = arith.addf %260, %261 : vector<16x256xf32>
    %263 = arith.addf %262, %19 : vector<16x256xf32>
    %264 = vector.extract_strided_slice %263 {offsets = [0, 0], sizes = [16, 64], strides = [1, 1]} : vector<16x256xf32> to vector<16x64xf32>
    %cst_85 = arith.constant 5.000000e-01 : f32
    %265 = vector.broadcast %cst_85 : f32 to vector<16x64xf32>
    %266 = arith.mulf %265, %264 : vector<16x64xf32>
    %267 = math.tanh %266 : vector<16x64xf32>
    %cst_86 = arith.constant 1.000000e+00 : f32
    %268 = vector.broadcast %cst_86 : f32 to vector<16x64xf32>
    %269 = arith.addf %267, %268 : vector<16x64xf32>
    %cst_87 = arith.constant 5.000000e-01 : f32
    %270 = vector.broadcast %cst_87 : f32 to vector<16x64xf32>
    %271 = arith.mulf %270, %269 : vector<16x64xf32>
    %272 = vector.extract_strided_slice %263 {offsets = [0, 64], sizes = [16, 64], strides = [1, 1]} : vector<16x256xf32> to vector<16x64xf32>
    %cst_88 = arith.constant 5.000000e-01 : f32
    %273 = vector.broadcast %cst_88 : f32 to vector<16x64xf32>
    %274 = arith.mulf %273, %272 : vector<16x64xf32>
    %275 = math.tanh %274 : vector<16x64xf32>
    %cst_89 = arith.constant 1.000000e+00 : f32
    %276 = vector.broadcast %cst_89 : f32 to vector<16x64xf32>
    %277 = arith.addf %275, %276 : vector<16x64xf32>
    %cst_90 = arith.constant 5.000000e-01 : f32
    %278 = vector.broadcast %cst_90 : f32 to vector<16x64xf32>
    %279 = arith.mulf %278, %277 : vector<16x64xf32>
    %280 = vector.extract_strided_slice %263 {offsets = [0, 128], sizes = [16, 64], strides = [1, 1]} : vector<16x256xf32> to vector<16x64xf32>
    %281 = math.tanh %280 : vector<16x64xf32>
    %282 = vector.extract_strided_slice %263 {offsets = [0, 192], sizes = [16, 64], strides = [1, 1]} : vector<16x256xf32> to vector<16x64xf32>
    %cst_91 = arith.constant 5.000000e-01 : f32
    %283 = vector.broadcast %cst_91 : f32 to vector<16x64xf32>
    %284 = arith.mulf %283, %282 : vector<16x64xf32>
    %285 = math.tanh %284 : vector<16x64xf32>
    %cst_92 = arith.constant 1.000000e+00 : f32
    %286 = vector.broadcast %cst_92 : f32 to vector<16x64xf32>
    %287 = arith.addf %285, %286 : vector<16x64xf32>
    %cst_93 = arith.constant 5.000000e-01 : f32
    %288 = vector.broadcast %cst_93 : f32 to vector<16x64xf32>
    %289 = arith.mulf %288, %287 : vector<16x64xf32>
    %290 = arith.mulf %279, %225 : vector<16x64xf32>
    %291 = arith.mulf %271, %281 : vector<16x64xf32>
    %292 = arith.addf %290, %291 : vector<16x64xf32>
    %293 = math.tanh %292 : vector<16x64xf32>
    %294 = arith.mulf %289, %293 : vector<16x64xf32>
    %c4_i32 = arith.constant 4 : i32
    %295 = tpu.concatenate %294, %292 in 1 : vector<16x64xf32>, vector<16x64xf32> -> vector<16x128xf32>
    %cst_94 = arith.constant dense<0.000000e+00> : vector<16x64xf32>
    %296 = tpu.matmul %295, %1, %cst_94 {dimension_numbers = #tpu.dot_dimension_numbers<[1], [0], [0], [1], [0, 0, 1, 1], [], []>} : vector<16x128xf32>, vector<128x64xf32>, vector<16x64xf32> -> vector<16x64xf32>
    %297 = vector.shape_cast %296 : vector<16x64xf32> to vector<16x1x64xf32>
    %298 = vector.broadcast %297 : vector<16x1x64xf32> to vector<16x8x64xf32>
    %299 = arith.addf %11, %298 : vector<16x8x64xf32>
    %300 = math.tanh %299 : vector<16x8x64xf32>
    %301 = vector.shape_cast %2 : vector<1x64xf32> to vector<1x1x64xf32>
    %302 = vector.broadcast %301 : vector<1x1x64xf32> to vector<16x8x64xf32>
    %303 = arith.mulf %300, %302 : vector<16x8x64xf32>
    %cst_95 = arith.constant dense<0.000000e+00> : vector<16x8xf32>
    %304 = vector.multi_reduction <add>, %303, %cst_95 [2] : vector<16x8x64xf32> to vector<16x8xf32>
    %cst_96 = arith.constant dense<0xFF800000> : vector<16xf32>
    %305 = vector.multi_reduction <maximumf>, %304, %cst_96 [1] : vector<16x8xf32> to vector<16xf32>
    %306 = vector.shape_cast %305 : vector<16xf32> to vector<16x1xf32>
    %307 = vector.broadcast %306 : vector<16x1xf32> to vector<16x8xf32>
    %308 = arith.subf %304, %307 : vector<16x8xf32>
    %309 = math.exp %308 : vector<16x8xf32>
    %cst_97 = arith.constant dense<0.000000e+00> : vector<16xf32>
    %310 = vector.multi_reduction <add>, %309, %cst_97 [1] : vector<16x8xf32> to vector<16xf32>
    %311 = vector.shape_cast %310 : vector<16xf32> to vector<16x1xf32>
    %312 = tpu.reciprocal %311 : vector<16x1xf32> -> vector<16x1xf32>
    %313 = vector.broadcast %312 : vector<16x1xf32> to vector<16x8xf32>
    %314 = arith.mulf %309, %313 : vector<16x8xf32>
    %315 = arith.index_cast %c4_i32 : i32 to index
    %c0_98 = arith.constant 0 : index
    %c0_99 = arith.constant 0 : index
    %316 = vector.load %arg2[%315, %c0_98, %c0_99] : memref<8x16x1xf32, #tpu.memory_space<vmem>>, vector<1x16x1xf32>
    %317 = vector.shape_cast %316 : vector<1x16x1xf32> to vector<16x1xf32>
    %318 = arith.mulf %314, %16 : vector<16x8xf32>
    %cst_100 = arith.constant dense<0.000000e+00> : vector<16xf32>
    %319 = vector.multi_reduction <add>, %318, %cst_100 [1] : vector<16x8xf32> to vector<16xf32>
    %320 = vector.shape_cast %319 : vector<16xf32> to vector<16x1xf32>
    %321 = vector.broadcast %23 : vector<1x1xf32> to vector<16x1xf32>
    %322 = arith.mulf %317, %321 : vector<16x1xf32>
    %323 = arith.addf %320, %322 : vector<16x1xf32>
    %324 = arith.addf %323, %22 : vector<16x1xf32>
    %325 = vector.broadcast %324 : vector<16x1xf32> to vector<16x256xf32>
    %326 = vector.broadcast %3 : vector<1x256xf32> to vector<16x256xf32>
    %327 = arith.mulf %325, %326 : vector<16x256xf32>
    %cst_101 = arith.constant dense<0.000000e+00> : vector<16x256xf32>
    %328 = tpu.matmul %294, %4, %cst_101 {dimension_numbers = #tpu.dot_dimension_numbers<[1], [0], [0], [1], [0, 0, 1, 1], [], []>} : vector<16x64xf32>, vector<64x256xf32>, vector<16x256xf32> -> vector<16x256xf32>
    %329 = arith.addf %327, %328 : vector<16x256xf32>
    %330 = arith.addf %329, %19 : vector<16x256xf32>
    %331 = vector.extract_strided_slice %330 {offsets = [0, 0], sizes = [16, 64], strides = [1, 1]} : vector<16x256xf32> to vector<16x64xf32>
    %cst_102 = arith.constant 5.000000e-01 : f32
    %332 = vector.broadcast %cst_102 : f32 to vector<16x64xf32>
    %333 = arith.mulf %332, %331 : vector<16x64xf32>
    %334 = math.tanh %333 : vector<16x64xf32>
    %cst_103 = arith.constant 1.000000e+00 : f32
    %335 = vector.broadcast %cst_103 : f32 to vector<16x64xf32>
    %336 = arith.addf %334, %335 : vector<16x64xf32>
    %cst_104 = arith.constant 5.000000e-01 : f32
    %337 = vector.broadcast %cst_104 : f32 to vector<16x64xf32>
    %338 = arith.mulf %337, %336 : vector<16x64xf32>
    %339 = vector.extract_strided_slice %330 {offsets = [0, 64], sizes = [16, 64], strides = [1, 1]} : vector<16x256xf32> to vector<16x64xf32>
    %cst_105 = arith.constant 5.000000e-01 : f32
    %340 = vector.broadcast %cst_105 : f32 to vector<16x64xf32>
    %341 = arith.mulf %340, %339 : vector<16x64xf32>
    %342 = math.tanh %341 : vector<16x64xf32>
    %cst_106 = arith.constant 1.000000e+00 : f32
    %343 = vector.broadcast %cst_106 : f32 to vector<16x64xf32>
    %344 = arith.addf %342, %343 : vector<16x64xf32>
    %cst_107 = arith.constant 5.000000e-01 : f32
    %345 = vector.broadcast %cst_107 : f32 to vector<16x64xf32>
    %346 = arith.mulf %345, %344 : vector<16x64xf32>
    %347 = vector.extract_strided_slice %330 {offsets = [0, 128], sizes = [16, 64], strides = [1, 1]} : vector<16x256xf32> to vector<16x64xf32>
    %348 = math.tanh %347 : vector<16x64xf32>
    %349 = vector.extract_strided_slice %330 {offsets = [0, 192], sizes = [16, 64], strides = [1, 1]} : vector<16x256xf32> to vector<16x64xf32>
    %cst_108 = arith.constant 5.000000e-01 : f32
    %350 = vector.broadcast %cst_108 : f32 to vector<16x64xf32>
    %351 = arith.mulf %350, %349 : vector<16x64xf32>
    %352 = math.tanh %351 : vector<16x64xf32>
    %cst_109 = arith.constant 1.000000e+00 : f32
    %353 = vector.broadcast %cst_109 : f32 to vector<16x64xf32>
    %354 = arith.addf %352, %353 : vector<16x64xf32>
    %cst_110 = arith.constant 5.000000e-01 : f32
    %355 = vector.broadcast %cst_110 : f32 to vector<16x64xf32>
    %356 = arith.mulf %355, %354 : vector<16x64xf32>
    %357 = arith.mulf %346, %292 : vector<16x64xf32>
    %358 = arith.mulf %338, %348 : vector<16x64xf32>
    %359 = arith.addf %357, %358 : vector<16x64xf32>
    %360 = math.tanh %359 : vector<16x64xf32>
    %361 = arith.mulf %356, %360 : vector<16x64xf32>
    %c5_i32 = arith.constant 5 : i32
    %362 = tpu.concatenate %361, %359 in 1 : vector<16x64xf32>, vector<16x64xf32> -> vector<16x128xf32>
    %cst_111 = arith.constant dense<0.000000e+00> : vector<16x64xf32>
    %363 = tpu.matmul %362, %1, %cst_111 {dimension_numbers = #tpu.dot_dimension_numbers<[1], [0], [0], [1], [0, 0, 1, 1], [], []>} : vector<16x128xf32>, vector<128x64xf32>, vector<16x64xf32> -> vector<16x64xf32>
    %364 = vector.shape_cast %363 : vector<16x64xf32> to vector<16x1x64xf32>
    %365 = vector.broadcast %364 : vector<16x1x64xf32> to vector<16x8x64xf32>
    %366 = arith.addf %11, %365 : vector<16x8x64xf32>
    %367 = math.tanh %366 : vector<16x8x64xf32>
    %368 = vector.shape_cast %2 : vector<1x64xf32> to vector<1x1x64xf32>
    %369 = vector.broadcast %368 : vector<1x1x64xf32> to vector<16x8x64xf32>
    %370 = arith.mulf %367, %369 : vector<16x8x64xf32>
    %cst_112 = arith.constant dense<0.000000e+00> : vector<16x8xf32>
    %371 = vector.multi_reduction <add>, %370, %cst_112 [2] : vector<16x8x64xf32> to vector<16x8xf32>
    %cst_113 = arith.constant dense<0xFF800000> : vector<16xf32>
    %372 = vector.multi_reduction <maximumf>, %371, %cst_113 [1] : vector<16x8xf32> to vector<16xf32>
    %373 = vector.shape_cast %372 : vector<16xf32> to vector<16x1xf32>
    %374 = vector.broadcast %373 : vector<16x1xf32> to vector<16x8xf32>
    %375 = arith.subf %371, %374 : vector<16x8xf32>
    %376 = math.exp %375 : vector<16x8xf32>
    %cst_114 = arith.constant dense<0.000000e+00> : vector<16xf32>
    %377 = vector.multi_reduction <add>, %376, %cst_114 [1] : vector<16x8xf32> to vector<16xf32>
    %378 = vector.shape_cast %377 : vector<16xf32> to vector<16x1xf32>
    %379 = tpu.reciprocal %378 : vector<16x1xf32> -> vector<16x1xf32>
    %380 = vector.broadcast %379 : vector<16x1xf32> to vector<16x8xf32>
    %381 = arith.mulf %376, %380 : vector<16x8xf32>
    %382 = arith.index_cast %c5_i32 : i32 to index
    %c0_115 = arith.constant 0 : index
    %c0_116 = arith.constant 0 : index
    %383 = vector.load %arg2[%382, %c0_115, %c0_116] : memref<8x16x1xf32, #tpu.memory_space<vmem>>, vector<1x16x1xf32>
    %384 = vector.shape_cast %383 : vector<1x16x1xf32> to vector<16x1xf32>
    %385 = arith.mulf %381, %16 : vector<16x8xf32>
    %cst_117 = arith.constant dense<0.000000e+00> : vector<16xf32>
    %386 = vector.multi_reduction <add>, %385, %cst_117 [1] : vector<16x8xf32> to vector<16xf32>
    %387 = vector.shape_cast %386 : vector<16xf32> to vector<16x1xf32>
    %388 = vector.broadcast %23 : vector<1x1xf32> to vector<16x1xf32>
    %389 = arith.mulf %384, %388 : vector<16x1xf32>
    %390 = arith.addf %387, %389 : vector<16x1xf32>
    %391 = arith.addf %390, %22 : vector<16x1xf32>
    %392 = vector.broadcast %391 : vector<16x1xf32> to vector<16x256xf32>
    %393 = vector.broadcast %3 : vector<1x256xf32> to vector<16x256xf32>
    %394 = arith.mulf %392, %393 : vector<16x256xf32>
    %cst_118 = arith.constant dense<0.000000e+00> : vector<16x256xf32>
    %395 = tpu.matmul %361, %4, %cst_118 {dimension_numbers = #tpu.dot_dimension_numbers<[1], [0], [0], [1], [0, 0, 1, 1], [], []>} : vector<16x64xf32>, vector<64x256xf32>, vector<16x256xf32> -> vector<16x256xf32>
    %396 = arith.addf %394, %395 : vector<16x256xf32>
    %397 = arith.addf %396, %19 : vector<16x256xf32>
    %398 = vector.extract_strided_slice %397 {offsets = [0, 0], sizes = [16, 64], strides = [1, 1]} : vector<16x256xf32> to vector<16x64xf32>
    %cst_119 = arith.constant 5.000000e-01 : f32
    %399 = vector.broadcast %cst_119 : f32 to vector<16x64xf32>
    %400 = arith.mulf %399, %398 : vector<16x64xf32>
    %401 = math.tanh %400 : vector<16x64xf32>
    %cst_120 = arith.constant 1.000000e+00 : f32
    %402 = vector.broadcast %cst_120 : f32 to vector<16x64xf32>
    %403 = arith.addf %401, %402 : vector<16x64xf32>
    %cst_121 = arith.constant 5.000000e-01 : f32
    %404 = vector.broadcast %cst_121 : f32 to vector<16x64xf32>
    %405 = arith.mulf %404, %403 : vector<16x64xf32>
    %406 = vector.extract_strided_slice %397 {offsets = [0, 64], sizes = [16, 64], strides = [1, 1]} : vector<16x256xf32> to vector<16x64xf32>
    %cst_122 = arith.constant 5.000000e-01 : f32
    %407 = vector.broadcast %cst_122 : f32 to vector<16x64xf32>
    %408 = arith.mulf %407, %406 : vector<16x64xf32>
    %409 = math.tanh %408 : vector<16x64xf32>
    %cst_123 = arith.constant 1.000000e+00 : f32
    %410 = vector.broadcast %cst_123 : f32 to vector<16x64xf32>
    %411 = arith.addf %409, %410 : vector<16x64xf32>
    %cst_124 = arith.constant 5.000000e-01 : f32
    %412 = vector.broadcast %cst_124 : f32 to vector<16x64xf32>
    %413 = arith.mulf %412, %411 : vector<16x64xf32>
    %414 = vector.extract_strided_slice %397 {offsets = [0, 128], sizes = [16, 64], strides = [1, 1]} : vector<16x256xf32> to vector<16x64xf32>
    %415 = math.tanh %414 : vector<16x64xf32>
    %416 = vector.extract_strided_slice %397 {offsets = [0, 192], sizes = [16, 64], strides = [1, 1]} : vector<16x256xf32> to vector<16x64xf32>
    %cst_125 = arith.constant 5.000000e-01 : f32
    %417 = vector.broadcast %cst_125 : f32 to vector<16x64xf32>
    %418 = arith.mulf %417, %416 : vector<16x64xf32>
    %419 = math.tanh %418 : vector<16x64xf32>
    %cst_126 = arith.constant 1.000000e+00 : f32
    %420 = vector.broadcast %cst_126 : f32 to vector<16x64xf32>
    %421 = arith.addf %419, %420 : vector<16x64xf32>
    %cst_127 = arith.constant 5.000000e-01 : f32
    %422 = vector.broadcast %cst_127 : f32 to vector<16x64xf32>
    %423 = arith.mulf %422, %421 : vector<16x64xf32>
    %424 = arith.mulf %413, %359 : vector<16x64xf32>
    %425 = arith.mulf %405, %415 : vector<16x64xf32>
    %426 = arith.addf %424, %425 : vector<16x64xf32>
    %427 = math.tanh %426 : vector<16x64xf32>
    %428 = arith.mulf %423, %427 : vector<16x64xf32>
    %c6_i32 = arith.constant 6 : i32
    %429 = tpu.concatenate %428, %426 in 1 : vector<16x64xf32>, vector<16x64xf32> -> vector<16x128xf32>
    %cst_128 = arith.constant dense<0.000000e+00> : vector<16x64xf32>
    %430 = tpu.matmul %429, %1, %cst_128 {dimension_numbers = #tpu.dot_dimension_numbers<[1], [0], [0], [1], [0, 0, 1, 1], [], []>} : vector<16x128xf32>, vector<128x64xf32>, vector<16x64xf32> -> vector<16x64xf32>
    %431 = vector.shape_cast %430 : vector<16x64xf32> to vector<16x1x64xf32>
    %432 = vector.broadcast %431 : vector<16x1x64xf32> to vector<16x8x64xf32>
    %433 = arith.addf %11, %432 : vector<16x8x64xf32>
    %434 = math.tanh %433 : vector<16x8x64xf32>
    %435 = vector.shape_cast %2 : vector<1x64xf32> to vector<1x1x64xf32>
    %436 = vector.broadcast %435 : vector<1x1x64xf32> to vector<16x8x64xf32>
    %437 = arith.mulf %434, %436 : vector<16x8x64xf32>
    %cst_129 = arith.constant dense<0.000000e+00> : vector<16x8xf32>
    %438 = vector.multi_reduction <add>, %437, %cst_129 [2] : vector<16x8x64xf32> to vector<16x8xf32>
    %cst_130 = arith.constant dense<0xFF800000> : vector<16xf32>
    %439 = vector.multi_reduction <maximumf>, %438, %cst_130 [1] : vector<16x8xf32> to vector<16xf32>
    %440 = vector.shape_cast %439 : vector<16xf32> to vector<16x1xf32>
    %441 = vector.broadcast %440 : vector<16x1xf32> to vector<16x8xf32>
    %442 = arith.subf %438, %441 : vector<16x8xf32>
    %443 = math.exp %442 : vector<16x8xf32>
    %cst_131 = arith.constant dense<0.000000e+00> : vector<16xf32>
    %444 = vector.multi_reduction <add>, %443, %cst_131 [1] : vector<16x8xf32> to vector<16xf32>
    %445 = vector.shape_cast %444 : vector<16xf32> to vector<16x1xf32>
    %446 = tpu.reciprocal %445 : vector<16x1xf32> -> vector<16x1xf32>
    %447 = vector.broadcast %446 : vector<16x1xf32> to vector<16x8xf32>
    %448 = arith.mulf %443, %447 : vector<16x8xf32>
    %449 = arith.index_cast %c6_i32 : i32 to index
    %c0_132 = arith.constant 0 : index
    %c0_133 = arith.constant 0 : index
    %450 = vector.load %arg2[%449, %c0_132, %c0_133] : memref<8x16x1xf32, #tpu.memory_space<vmem>>, vector<1x16x1xf32>
    %451 = vector.shape_cast %450 : vector<1x16x1xf32> to vector<16x1xf32>
    %452 = arith.mulf %448, %16 : vector<16x8xf32>
    %cst_134 = arith.constant dense<0.000000e+00> : vector<16xf32>
    %453 = vector.multi_reduction <add>, %452, %cst_134 [1] : vector<16x8xf32> to vector<16xf32>
    %454 = vector.shape_cast %453 : vector<16xf32> to vector<16x1xf32>
    %455 = vector.broadcast %23 : vector<1x1xf32> to vector<16x1xf32>
    %456 = arith.mulf %451, %455 : vector<16x1xf32>
    %457 = arith.addf %454, %456 : vector<16x1xf32>
    %458 = arith.addf %457, %22 : vector<16x1xf32>
    %459 = vector.broadcast %458 : vector<16x1xf32> to vector<16x256xf32>
    %460 = vector.broadcast %3 : vector<1x256xf32> to vector<16x256xf32>
    %461 = arith.mulf %459, %460 : vector<16x256xf32>
    %cst_135 = arith.constant dense<0.000000e+00> : vector<16x256xf32>
    %462 = tpu.matmul %428, %4, %cst_135 {dimension_numbers = #tpu.dot_dimension_numbers<[1], [0], [0], [1], [0, 0, 1, 1], [], []>} : vector<16x64xf32>, vector<64x256xf32>, vector<16x256xf32> -> vector<16x256xf32>
    %463 = arith.addf %461, %462 : vector<16x256xf32>
    %464 = arith.addf %463, %19 : vector<16x256xf32>
    %465 = vector.extract_strided_slice %464 {offsets = [0, 0], sizes = [16, 64], strides = [1, 1]} : vector<16x256xf32> to vector<16x64xf32>
    %cst_136 = arith.constant 5.000000e-01 : f32
    %466 = vector.broadcast %cst_136 : f32 to vector<16x64xf32>
    %467 = arith.mulf %466, %465 : vector<16x64xf32>
    %468 = math.tanh %467 : vector<16x64xf32>
    %cst_137 = arith.constant 1.000000e+00 : f32
    %469 = vector.broadcast %cst_137 : f32 to vector<16x64xf32>
    %470 = arith.addf %468, %469 : vector<16x64xf32>
    %cst_138 = arith.constant 5.000000e-01 : f32
    %471 = vector.broadcast %cst_138 : f32 to vector<16x64xf32>
    %472 = arith.mulf %471, %470 : vector<16x64xf32>
    %473 = vector.extract_strided_slice %464 {offsets = [0, 64], sizes = [16, 64], strides = [1, 1]} : vector<16x256xf32> to vector<16x64xf32>
    %cst_139 = arith.constant 5.000000e-01 : f32
    %474 = vector.broadcast %cst_139 : f32 to vector<16x64xf32>
    %475 = arith.mulf %474, %473 : vector<16x64xf32>
    %476 = math.tanh %475 : vector<16x64xf32>
    %cst_140 = arith.constant 1.000000e+00 : f32
    %477 = vector.broadcast %cst_140 : f32 to vector<16x64xf32>
    %478 = arith.addf %476, %477 : vector<16x64xf32>
    %cst_141 = arith.constant 5.000000e-01 : f32
    %479 = vector.broadcast %cst_141 : f32 to vector<16x64xf32>
    %480 = arith.mulf %479, %478 : vector<16x64xf32>
    %481 = vector.extract_strided_slice %464 {offsets = [0, 128], sizes = [16, 64], strides = [1, 1]} : vector<16x256xf32> to vector<16x64xf32>
    %482 = math.tanh %481 : vector<16x64xf32>
    %483 = vector.extract_strided_slice %464 {offsets = [0, 192], sizes = [16, 64], strides = [1, 1]} : vector<16x256xf32> to vector<16x64xf32>
    %cst_142 = arith.constant 5.000000e-01 : f32
    %484 = vector.broadcast %cst_142 : f32 to vector<16x64xf32>
    %485 = arith.mulf %484, %483 : vector<16x64xf32>
    %486 = math.tanh %485 : vector<16x64xf32>
    %cst_143 = arith.constant 1.000000e+00 : f32
    %487 = vector.broadcast %cst_143 : f32 to vector<16x64xf32>
    %488 = arith.addf %486, %487 : vector<16x64xf32>
    %cst_144 = arith.constant 5.000000e-01 : f32
    %489 = vector.broadcast %cst_144 : f32 to vector<16x64xf32>
    %490 = arith.mulf %489, %488 : vector<16x64xf32>
    %491 = arith.mulf %480, %426 : vector<16x64xf32>
    %492 = arith.mulf %472, %482 : vector<16x64xf32>
    %493 = arith.addf %491, %492 : vector<16x64xf32>
    %494 = math.tanh %493 : vector<16x64xf32>
    %495 = arith.mulf %490, %494 : vector<16x64xf32>
    %c7_i32 = arith.constant 7 : i32
    %496 = tpu.concatenate %495, %493 in 1 : vector<16x64xf32>, vector<16x64xf32> -> vector<16x128xf32>
    %cst_145 = arith.constant dense<0.000000e+00> : vector<16x64xf32>
    %497 = tpu.matmul %496, %1, %cst_145 {dimension_numbers = #tpu.dot_dimension_numbers<[1], [0], [0], [1], [0, 0, 1, 1], [], []>} : vector<16x128xf32>, vector<128x64xf32>, vector<16x64xf32> -> vector<16x64xf32>
    %498 = vector.shape_cast %497 : vector<16x64xf32> to vector<16x1x64xf32>
    %499 = vector.broadcast %498 : vector<16x1x64xf32> to vector<16x8x64xf32>
    %500 = arith.addf %11, %499 : vector<16x8x64xf32>
    %501 = math.tanh %500 : vector<16x8x64xf32>
    %502 = vector.shape_cast %2 : vector<1x64xf32> to vector<1x1x64xf32>
    %503 = vector.broadcast %502 : vector<1x1x64xf32> to vector<16x8x64xf32>
    %504 = arith.mulf %501, %503 : vector<16x8x64xf32>
    %cst_146 = arith.constant dense<0.000000e+00> : vector<16x8xf32>
    %505 = vector.multi_reduction <add>, %504, %cst_146 [2] : vector<16x8x64xf32> to vector<16x8xf32>
    %cst_147 = arith.constant dense<0xFF800000> : vector<16xf32>
    %506 = vector.multi_reduction <maximumf>, %505, %cst_147 [1] : vector<16x8xf32> to vector<16xf32>
    %507 = vector.shape_cast %506 : vector<16xf32> to vector<16x1xf32>
    %508 = vector.broadcast %507 : vector<16x1xf32> to vector<16x8xf32>
    %509 = arith.subf %505, %508 : vector<16x8xf32>
    %510 = math.exp %509 : vector<16x8xf32>
    %cst_148 = arith.constant dense<0.000000e+00> : vector<16xf32>
    %511 = vector.multi_reduction <add>, %510, %cst_148 [1] : vector<16x8xf32> to vector<16xf32>
    %512 = vector.shape_cast %511 : vector<16xf32> to vector<16x1xf32>
    %513 = tpu.reciprocal %512 : vector<16x1xf32> -> vector<16x1xf32>
    %514 = vector.broadcast %513 : vector<16x1xf32> to vector<16x8xf32>
    %515 = arith.mulf %510, %514 : vector<16x8xf32>
    %516 = arith.index_cast %c7_i32 : i32 to index
    %c0_149 = arith.constant 0 : index
    %c0_150 = arith.constant 0 : index
    %517 = vector.load %arg2[%516, %c0_149, %c0_150] : memref<8x16x1xf32, #tpu.memory_space<vmem>>, vector<1x16x1xf32>
    %518 = vector.shape_cast %517 : vector<1x16x1xf32> to vector<16x1xf32>
    %519 = arith.mulf %515, %16 : vector<16x8xf32>
    %cst_151 = arith.constant dense<0.000000e+00> : vector<16xf32>
    %520 = vector.multi_reduction <add>, %519, %cst_151 [1] : vector<16x8xf32> to vector<16xf32>
    %521 = vector.shape_cast %520 : vector<16xf32> to vector<16x1xf32>
    %522 = vector.broadcast %23 : vector<1x1xf32> to vector<16x1xf32>
    %523 = arith.mulf %518, %522 : vector<16x1xf32>
    %524 = arith.addf %521, %523 : vector<16x1xf32>
    %525 = arith.addf %524, %22 : vector<16x1xf32>
    %526 = vector.broadcast %525 : vector<16x1xf32> to vector<16x256xf32>
    %527 = vector.broadcast %3 : vector<1x256xf32> to vector<16x256xf32>
    %528 = arith.mulf %526, %527 : vector<16x256xf32>
    %cst_152 = arith.constant dense<0.000000e+00> : vector<16x256xf32>
    %529 = tpu.matmul %495, %4, %cst_152 {dimension_numbers = #tpu.dot_dimension_numbers<[1], [0], [0], [1], [0, 0, 1, 1], [], []>} : vector<16x64xf32>, vector<64x256xf32>, vector<16x256xf32> -> vector<16x256xf32>
    %530 = arith.addf %528, %529 : vector<16x256xf32>
    %531 = arith.addf %530, %19 : vector<16x256xf32>
    %532 = vector.extract_strided_slice %531 {offsets = [0, 0], sizes = [16, 64], strides = [1, 1]} : vector<16x256xf32> to vector<16x64xf32>
    %cst_153 = arith.constant 5.000000e-01 : f32
    %533 = vector.broadcast %cst_153 : f32 to vector<16x64xf32>
    %534 = arith.mulf %533, %532 : vector<16x64xf32>
    %535 = math.tanh %534 : vector<16x64xf32>
    %cst_154 = arith.constant 1.000000e+00 : f32
    %536 = vector.broadcast %cst_154 : f32 to vector<16x64xf32>
    %537 = arith.addf %535, %536 : vector<16x64xf32>
    %cst_155 = arith.constant 5.000000e-01 : f32
    %538 = vector.broadcast %cst_155 : f32 to vector<16x64xf32>
    %539 = arith.mulf %538, %537 : vector<16x64xf32>
    %540 = vector.extract_strided_slice %531 {offsets = [0, 64], sizes = [16, 64], strides = [1, 1]} : vector<16x256xf32> to vector<16x64xf32>
    %cst_156 = arith.constant 5.000000e-01 : f32
    %541 = vector.broadcast %cst_156 : f32 to vector<16x64xf32>
    %542 = arith.mulf %541, %540 : vector<16x64xf32>
    %543 = math.tanh %542 : vector<16x64xf32>
    %cst_157 = arith.constant 1.000000e+00 : f32
    %544 = vector.broadcast %cst_157 : f32 to vector<16x64xf32>
    %545 = arith.addf %543, %544 : vector<16x64xf32>
    %cst_158 = arith.constant 5.000000e-01 : f32
    %546 = vector.broadcast %cst_158 : f32 to vector<16x64xf32>
    %547 = arith.mulf %546, %545 : vector<16x64xf32>
    %548 = vector.extract_strided_slice %531 {offsets = [0, 128], sizes = [16, 64], strides = [1, 1]} : vector<16x256xf32> to vector<16x64xf32>
    %549 = math.tanh %548 : vector<16x64xf32>
    %550 = vector.extract_strided_slice %531 {offsets = [0, 192], sizes = [16, 64], strides = [1, 1]} : vector<16x256xf32> to vector<16x64xf32>
    %cst_159 = arith.constant 5.000000e-01 : f32
    %551 = vector.broadcast %cst_159 : f32 to vector<16x64xf32>
    %552 = arith.mulf %551, %550 : vector<16x64xf32>
    %553 = math.tanh %552 : vector<16x64xf32>
    %cst_160 = arith.constant 1.000000e+00 : f32
    %554 = vector.broadcast %cst_160 : f32 to vector<16x64xf32>
    %555 = arith.addf %553, %554 : vector<16x64xf32>
    %cst_161 = arith.constant 5.000000e-01 : f32
    %556 = vector.broadcast %cst_161 : f32 to vector<16x64xf32>
    %557 = arith.mulf %556, %555 : vector<16x64xf32>
    %558 = arith.mulf %547, %493 : vector<16x64xf32>
    %559 = arith.mulf %539, %549 : vector<16x64xf32>
    %560 = arith.addf %558, %559 : vector<16x64xf32>
    %561 = math.tanh %560 : vector<16x64xf32>
    %562 = arith.mulf %557, %561 : vector<16x64xf32>
    %c8_i32 = arith.constant 8 : i32
    %563 = vector.shape_cast %515 : vector<16x8xf32> to vector<16x8x1xf32>
    %c0_162 = arith.constant 0 : index
    %c0_163 = arith.constant 0 : index
    %c0_164 = arith.constant 0 : index
    %564 = vector.load %arg1[%c0_162, %c0_163, %c0_164] : memref<16x8x64xf32, #tpu.memory_space<vmem>>, vector<16x8x64xf32>
    %565 = vector.broadcast %563 : vector<16x8x1xf32> to vector<16x8x64xf32>
    %566 = arith.mulf %565, %564 : vector<16x8x64xf32>
    %cst_165 = arith.constant dense<0.000000e+00> : vector<16x64xf32>
    %567 = vector.multi_reduction <add>, %566, %cst_165 [1] : vector<16x8x64xf32> to vector<16x64xf32>
    %c0_166 = arith.constant 0 : index
    %c0_167 = arith.constant 0 : index
    %568 = vector.load %arg13[%c0_166, %c0_167] : memref<1x64xf32, #tpu.memory_space<vmem>>, vector<1x64xf32>
    %569 = vector.broadcast %568 : vector<1x64xf32> to vector<16x64xf32>
    %570 = arith.mulf %562, %569 : vector<16x64xf32>
    %cst_168 = arith.constant dense<0.000000e+00> : vector<16xf32>
    %571 = vector.multi_reduction <add>, %570, %cst_168 [1] : vector<16x64xf32> to vector<16xf32>
    %572 = vector.shape_cast %571 : vector<16xf32> to vector<16x1xf32>
    %c0_169 = arith.constant 0 : index
    %c0_170 = arith.constant 0 : index
    %573 = vector.load %arg14[%c0_169, %c0_170] : memref<1x64xf32, #tpu.memory_space<vmem>>, vector<1x64xf32>
    %574 = vector.broadcast %573 : vector<1x64xf32> to vector<16x64xf32>
    %575 = arith.mulf %567, %574 : vector<16x64xf32>
    %cst_171 = arith.constant dense<0.000000e+00> : vector<16xf32>
    %576 = vector.multi_reduction <add>, %575, %cst_171 [1] : vector<16x64xf32> to vector<16xf32>
    %577 = vector.shape_cast %576 : vector<16xf32> to vector<16x1xf32>
    %578 = arith.addf %572, %577 : vector<16x1xf32>
    %c0_172 = arith.constant 0 : index
    %c0_173 = arith.constant 0 : index
    %579 = vector.load %arg15[%c0_172, %c0_173] : memref<1x1xf32, #tpu.memory_space<vmem>>, vector<1x1xf32>
    %580 = vector.broadcast %579 : vector<1x1xf32> to vector<16x1xf32>
    %581 = arith.addf %578, %580 : vector<16x1xf32>
    %c0_174 = arith.constant 0 : index
    %c0_175 = arith.constant 0 : index
    %582 = vector.load %arg16[%c0_174, %c0_175] : memref<16x1xf32, #tpu.memory_space<vmem>>, vector<16x1xf32>
    tpu.vector_store %arg16[%c0_174, %c0_175], %581 {strides = array<i32>} : memref<16x1xf32, #tpu.memory_space<vmem>>, vector<16x1xf32>,
    return
  }
  func.func @transform_0(%arg0: i32) -> (i32, i32, i32) {
    %c0_i32 = arith.constant 0 : i32
    %c0_i32_0 = arith.constant 0 : i32
    %c0_i32_1 = arith.constant 0 : i32
    return %arg0, %c0_i32, %c0_i32_0 : i32, i32, i32
  }
  func.func @transform_1(%arg0: i32) -> (i32, i32, i32) {
    %c0_i32 = arith.constant 0 : i32
    %c0_i32_0 = arith.constant 0 : i32
    %c0_i32_1 = arith.constant 0 : i32
    return %c0_i32, %arg0, %c0_i32_0 : i32, i32, i32
  }
  func.func @transform_2(%arg0: i32) -> (i32, i32) {
    %c0_i32 = arith.constant 0 : i32
    %c0_i32_0 = arith.constant 0 : i32
    %c0_i32_1 = arith.constant 0 : i32
    return %c0_i32, %c0_i32_0 : i32, i32
  }
  func.func @transform_3(%arg0: i32) -> (i32, i32) {
    %c0_i32 = arith.constant 0 : i32
    %c0_i32_0 = arith.constant 0 : i32
    %c0_i32_1 = arith.constant 0 : i32
    return %c0_i32, %c0_i32_0 : i32, i32
  }
  func.func @transform_4(%arg0: i32) -> (i32, i32) {
    %c0_i32 = arith.constant 0 : i32
    %c0_i32_0 = arith.constant 0 : i32
    %c0_i32_1 = arith.constant 0 : i32
    return %c0_i32, %c0_i32_0 : i32, i32
  }
  func.func @transform_5(%arg0: i32) -> (i32, i32) {
    %c0_i32 = arith.constant 0 : i32
    %c0_i32_0 = arith.constant 0 : i32
    %c0_i32_1 = arith.constant 0 : i32
    return %c0_i32, %c0_i32_0 : i32, i32
  }
  func.func @transform_6(%arg0: i32) -> (i32, i32) {
    %c0_i32 = arith.constant 0 : i32
    %c0_i32_0 = arith.constant 0 : i32
    %c0_i32_1 = arith.constant 0 : i32
    return %c0_i32, %c0_i32_0 : i32, i32
  }
  func.func @transform_7(%arg0: i32) -> (i32, i32) {
    %c0_i32 = arith.constant 0 : i32
    %c0_i32_0 = arith.constant 0 : i32
    %c0_i32_1 = arith.constant 0 : i32
    return %c0_i32, %c0_i32_0 : i32, i32
  }
  func.func @transform_8(%arg0: i32) -> (i32, i32) {
    %c0_i32 = arith.constant 0 : i32
    %c0_i32_0 = arith.constant 0 : i32
    %c0_i32_1 = arith.constant 0 : i32
    return %c0_i32, %c0_i32_0 : i32, i32
  }
  func.func @transform_9(%arg0: i32) -> (i32, i32) {
    %c0_i32 = arith.constant 0 : i32
    %c0_i32_0 = arith.constant 0 : i32
    %c0_i32_1 = arith.constant 0 : i32
    return %c0_i32, %c0_i32_0 : i32, i32
  }
  func.func @transform_10(%arg0: i32) -> (i32, i32) {
    %c0_i32 = arith.constant 0 : i32
    %c0_i32_0 = arith.constant 0 : i32
    %c0_i32_1 = arith.constant 0 : i32
    return %c0_i32, %c0_i32_0 : i32, i32
  }
  func.func @transform_11(%arg0: i32) -> (i32, i32) {
    %c0_i32 = arith.constant 0 : i32
    %c0_i32_0 = arith.constant 0 : i32
    %c0_i32_1 = arith.constant 0 : i32
    return %c0_i32, %c0_i32_0 : i32, i32
  }
  func.func @transform_12(%arg0: i32) -> (i32, i32) {
    %c0_i32 = arith.constant 0 : i32
    %c0_i32_0 = arith.constant 0 : i32
    %c0_i32_1 = arith.constant 0 : i32
    return %c0_i32, %c0_i32_0 : i32, i32
  }
  func.func @transform_13(%arg0: i32) -> (i32, i32) {
    %c0_i32 = arith.constant 0 : i32
    %c0_i32_0 = arith.constant 0 : i32
    %c0_i32_1 = arith.constant 0 : i32
    return %c0_i32, %c0_i32_0 : i32, i32
  }
  func.func @transform_14(%arg0: i32) -> (i32, i32) {
    %c0_i32 = arith.constant 0 : i32
    %c0_i32_0 = arith.constant 0 : i32
    %c0_i32_1 = arith.constant 0 : i32
    return %c0_i32, %c0_i32_0 : i32, i32
  }
  func.func @transform_15(%arg0: i32) -> (i32, i32) {
    %c0_i32 = arith.constant 0 : i32
    %c0_i32_0 = arith.constant 0 : i32
    return %arg0, %c0_i32 : i32, i32
  }
}

</mosaic_0001>

<bundles_post_ra>
// kernel: tpu_custom_call.1
= control target key start
LH: loop header
LB: loop body
LE: loop exit
PB: predicated region body
PF: predicated region fallthrough
CT: control target
= control target key end

     0   :  { %s15769_s0 = inlined_call_operand.vmem [shape: f32[16,8,64], index: 0, kind: input, shape index: {}]   ;;  %s15770_s1 = inlined_call_operand.vmem [shape: f32[8,16,1], index: 1, kind: input, shape index: {}]   ;;  %s15771_s2 = inlined_call_operand.vmem [shape: f32[128,64], index: 2, kind: input, shape index: {}]   ;;  %s15772_s3 = inlined_call_operand.hbm [shape: f32[64,64], index: 3, kind: input, shape index: {}]   ;;  %s15773_s4 = inlined_call_operand.vmem [shape: f32[1,64], index: 4, kind: input, shape index: {}]   ;;  %s15774_s5 = inlined_call_operand.vmem [shape: f32[1,64], index: 5, kind: input, shape index: {}]   ;;  %s15775_s6 = inlined_call_operand.vmem [shape: f32[1,256], index: 6, kind: input, shape index: {}]   ;;  %s15776_s7 = inlined_call_operand.vmem [shape: f32[64,256], index: 7, kind: input, shape index: {}]   ;;  %s15777_s8 = inlined_call_operand.vmem [shape: f32[1,256], index: 8, kind: input, shape index: {}]   ;;  %s15778_s9 = inlined_call_operand.vmem [shape: f32[1,64], index: 9, kind: input, shape index: {}]   ;;  %s15779_s10 = inlined_call_operand.<no memory space> [shape: f32[1,1], index: 10, kind: input, shape index: {}]   ;;  %s15780_s12 = inlined_call_operand.vmem [shape: f32[1,64], index: 12, kind: input, shape index: {}]   ;;  %s15781_s13 = inlined_call_operand.vmem [shape: f32[1,64], index: 13, kind: input, shape index: {}]   ;;  %s15782_s15 = inlined_call_operand.vmem [shape: f32[16,1], index: 15, kind: output, shape index: {}]   ;;  %s15783_s11 = inlined_call_operand.<no memory space> [shape: f32[1,1], index: 11, kind: input, shape index: {}]   ;;  %s15784_s14 = inlined_call_operand.<no memory space> [shape: f32[1,1], index: 14, kind: input, shape index: {}]  }
   0x1   :  { %v20_v0 = vstv %s15779_s10  ;;  %v22_v1 = vstv %s15783_s11  ;;  %v24_v2 = vstv %s15784_s14 }
   0x2   :  { %21 = vst [vmem:[#allocation2] sm:$0x1] %v20_v0  ;;  %23 = vst [vmem:[#allocation3] sm:$0x1] %v22_v1 }
   0x3   :  { %25 = vst [vmem:[#allocation4] sm:$0x1] %v24_v2 }
   0x4   :  { %26 = vsyncpa [#allocation6], 0  ;;  %s11706_s24 = smov [#allocation5]   ;;  %s11682_s28 = scalar_lea.hbm %s15772_s3, 1024 }
   0x5   :  { %s38_s25 = sshll.u32 %s11706_s24, 4  ;;  %p11683_p0 = scmp.ne.s32.totalorder %s15772_s3, %s11682_s28  ;;  %s39_s25 = int_to_ptr.vmem [resolvable:$true] %s38_s25 }
   0x6   :  { %p11686_p1 = scmp.lt.u32.totalorder %s11682_s28, %s15772_s3 }
   0x8   :  { %p11688_p2 = pnand %p11686_p1, %p11683_p0 }
   0xa   :  { %11691 = shalt.err (!%p11688_p2)
}
   0xb   :  { %s11692_s14 = scalar_lea.vmem %s39_s25, 1024  ;;  %p11697_p4 = scmp.lt.s32.totalorder %s39_s25, %s39_s25 }
   0xc   :  { %p11693_p3 = scmp.ne.s32.totalorder %s39_s25, %s11692_s14  ;;  %p11698_p5 = scmp.lt.s32.totalorder %s11692_s14, %s11692_s14 }
   0xe   :  { %p11699_p6 = por %p11698_p5, %p11697_p4 }
  0x10   :  { %p11700_p7 = pnand %p11699_p6, %p11693_p3 }
  0x12   :  { %11703 = shalt.err (!%p11700_p7)
}
  0x13   :  { %s11707_s16 = smov 128   ;;  %s11708_s17 = smov 8  }
  0x14   :  { %44 = dma.hbm_to_vmem [thread:$0]  %s15772_s3, 1024, %s39_s25, [#allocation6], %s11707_s16, %s11707_s16, %s11708_s17  }
  0x15   :  { %11704 = dma.done.wait [#allocation6], 1024  }
  0x16   :  { %11705 = vsyncadd [#allocation6], 4294966272  ;;  %v15785_v3 = vmov 0.0   ;;  %v120_v4 = vld [vmem:[#allocation5] sm:$0xff]  ;;  %v121_v5 = vld [vmem:[#allocation5 + $0x8] sm:$0xff]  ;;  %vm135_vm0 = vcmask 523264   ;;  %v15787_v60 = vlaneseq }
  0x17   :  { %10316 = vmatprep.mubr.f32.mxu1 %v15785_v3  ;;  %v86_v6 = vld [vmem:[%s15771_s2] sm:$0xff]  ;;  %v10564_v7 = vpack.c.bf16 %v121_v5, %v120_v4  ;;  %v87_v8 = vld [vmem:[%s15771_s2 + $0x8] sm:$0xff]  ;;  %v122_v9 = vld [vmem:[#allocation5 + $0x10] sm:$0xff]  ;;  %v11710_v61 = vmov 1966171168   ;;  %vm859_vm1 = vcmask 1041409  }
  0x18   :  { %v123_v10 = vld [vmem:[#allocation5 + $0x18] sm:$0xff]  ;;  %v11821_v11 = vpack.c.bf16 %v87_v8, %v86_v6  ;;  %v88_v13 = vld [vmem:[%s15771_s2 + $0x10] sm:$0xff]  ;;  %v124_v15 = vld [vmem:[#allocation5 + $0x20] sm:$0xff]  ;;  %v499_v62 = vunpack.c.l.s4 %v11710_v61  ;;  %v12032_v1 = vshrl.u32 %v15787_v60, 7  ;;  %vm861_vm2 = vcmask 1042434  }
  0x19   :  { %v10568_v12 = vpack.c.bf16 %v123_v10, %v122_v9  ;;  %v89_v14 = vld [vmem:[%s15771_s2 + $0x18] sm:$0xff]  ;;  %10565 = vmatprep.subr.bf16.mxu0 %v10564_v7  ;;  %v125_v17 = vld [vmem:[#allocation5 + $0x28] sm:$0xff]  ;;  %v90_v18 = vld [vmem:[%s15771_s2 + $0x20] sm:$0xff]  ;;  %vm863_vm3 = vcmask 1043459   ;;  %vm865_vm4 = vcmask 1044484   ;;  %vm867_vm5 = vcmask 1045509  }
  0x1a   :  { %15944 = vst [vmem:[#allocation8_spill] sm:$0xff] %v11821_v11  ;;  %v11829_v16 = vpack.c.bf16 %v89_v14, %v88_v13  ;;  %v91_v19 = vld [vmem:[%s15771_s2 + $0x28] sm:$0xff]  ;;  %10581 = vmatprep.subr.bf16.mxu1 %v11821_v11  ;;  %10567 = vmatpush3.bf16.msra.mxu0 %v10564_v7  ;;  %v10572_v20 = vpack.c.bf16 %v125_v17, %v124_v15  ;;  %v11842_v21 = vld [vmem:[%s15769_s0] sm:$0xff]  ;;  %v126_v23 = vld [vmem:[#allocation5 + $0x30] sm:$0xff]  ;;  %v500_v2 = vunpack.c.0.s8 %v499_v62  ;;  %vm869_vm6 = vcmask 1046534  }
  0x1b   :  { %10583 = vmatpush3.bf16.msra.mxu1 %v11821_v11  ;;  %10569 = vmatprep.subr.bf16.mxu0 %v10568_v12  ;;  %v11845_v22 = vpack.c.bf16 %v91_v19, %v90_v18  ;;  %v127_v24 = vld [vmem:[#allocation5 + $0x38] sm:$0xff]  ;;  %v92_v25 = vld [vmem:[%s15771_s2 + $0x30] sm:$0xff]  ;;  %v95_v30 = vld [vmem:[%s15771_s2 + $0x48] sm:$0xff]  ;;  %v12045_v18 = vsub.s32 0, %v12032_v1  ;;  %vm871_vm7 = vcmask 1047559   ;;  %vm882_vm8 = vcmask 64512  }
  0x1c   :  { %15945 = vst [vmem:[#allocation9_spill] sm:$0xff] %v11829_v16  ;;  %10585 = vmatprep.subr.bf16.mxu1 %v11829_v16  ;;  %10260 = vmatprep.mubr.msk.f32.mxu0 %vm135_vm0, %v11842_v21  ;;  %v93_v26 = vld [vmem:[%s15771_s2 + $0x38] sm:$0xff]  ;;  %v10576_v27 = vpack.c.bf16 %v127_v24, %v126_v23  ;;  %v94_v29 = vld [vmem:[%s15771_s2 + $0x40] sm:$0xff]  ;;  %v96_v32 = vld [vmem:[%s15771_s2 + $0x50] sm:$0xff]  ;;  %v12039_v6 = vsub.s32 %v500_v2, %v12032_v1  ;;  %vm10016_vm9 = vcmask 7168  }
  0x1d   :  { %15946 = vst [vmem:[#allocation10_spill] sm:$0xff] %v11845_v22  ;;  %v11857_v28 = vpack.c.bf16 %v93_v26, %v92_v25  ;;  %v11867_v31 = vpack.c.bf16 %v95_v30, %v94_v29  ;;  %v97_v33 = vld [vmem:[%s15771_s2 + $0x58] sm:$0xff]  ;;  %v11878_v34 = vld [vmem:[%s15769_s0 + $0x8] sm:$0xff]  ;;  %v11884_v35 = vld [vmem:[%s15769_s0 + $0x10] sm:$0xff] }
  0x1e   :  { %10571 = vmatpush3.bf16.msra.mxu0 %v10568_v12  ;;  %v11887_v36 = vpack.c.bf16 %v97_v33, %v96_v32  ;;  %v98_v37 = vld [vmem:[%s15771_s2 + $0x60] sm:$0xff]  ;;  %v99_v38 = vld [vmem:[%s15771_s2 + $0x68] sm:$0xff]  ;;  %v11902_v39 = vld [vmem:[%s15769_s0 + $0x18] sm:$0xff]  ;;  %15952 = vst [vmem:[#allocation16_spill] sm:$0xff] %v12039_v6 }
  0x1f   :  { %10587 = vmatpush3.bf16.msra.mxu1 %v11829_v16  ;;  %10573 = vmatprep.subr.bf16.mxu0 %v10572_v20  ;;  %15947 = vst [vmem:[#allocation11_spill] sm:$0xff] %v11857_v28  ;;  %15948 = vst [vmem:[#allocation12_spill] sm:$0xff] %v11867_v31  ;;  %v11908_v40 = vld [vmem:[%s15769_s0 + $0x20] sm:$0xff]  ;;  %v11911_v41 = vpack.c.bf16 %v99_v38, %v98_v37  ;;  %v100_v42 = vld [vmem:[%s15771_s2 + $0x70] sm:$0xff] }
  0x20   :  { %10589 = vmatprep.subr.bf16.mxu1 %v11845_v22  ;;  %15949 = vst [vmem:[#allocation13_spill] sm:$0xff] %v11887_v36  ;;  %v101_v43 = vld [vmem:[%s15771_s2 + $0x78] sm:$0xff]  ;;  %v11926_v44 = vld [vmem:[%s15769_s0 + $0x28] sm:$0xff]  ;;  %v11932_v45 = vld [vmem:[%s15769_s0 + $0x30] sm:$0xff] }
  0x21   :  { %15950 = vst [vmem:[#allocation14_spill] sm:$0xff] %v11911_v41  ;;  %v11935_v46 = vpack.c.bf16 %v101_v43, %v100_v42  ;;  %v11944_v47 = vld [vmem:[%s15769_s0 + $0x38] sm:$0xff]  ;;  %v11950_v48 = vld [vmem:[%s15769_s0 + $0x40] sm:$0xff]  ;;  %v11960_v49 = vld [vmem:[%s15769_s0 + $0x48] sm:$0xff] }
  0x22   :  { %10575 = vmatpush3.bf16.msra.mxu0 %v10572_v20  ;;  %v11966_v50 = vld [vmem:[%s15769_s0 + $0x50] sm:$0xff]  ;;  %v11977_v51 = vld [vmem:[%s15769_s0 + $0x58] sm:$0xff]  ;;  %v11982_v52 = vld [vmem:[%s15769_s0 + $0x60] sm:$0xff] }
  0x23   :  { %10591 = vmatpush3.bf16.msra.mxu1 %v11845_v22  ;;  %10577 = vmatprep.subr.bf16.mxu0 %v10576_v27  ;;  %15951 = vst [vmem:[#allocation15_spill] sm:$0xff] %v11935_v46  ;;  %v11993_v53 = vld [vmem:[%s15769_s0 + $0x68] sm:$0xff]  ;;  %v11998_v54 = vld [vmem:[%s15769_s0 + $0x70] sm:$0xff]  ;;  %v12009_v55 = vld [vmem:[%s15769_s0 + $0x78] sm:$0xff] }
  0x24   :  { %10593 = vmatprep.subr.bf16.mxu1 %v11857_v28  ;;  %v12050_v24 = vld [vmem:[%s15773_s4] ss:$0 sm:$0xff] }
  0x26   :  { %10579 = vmatpush3.bf16.msra.mxu0 %v10576_v27 }
  0x27   :  { %10595 = vmatpush3.bf16.msra.mxu1 %v11857_v28 }
  0x28   :  { %10597 = vmatprep.subr.bf16.mxu1 %v11867_v31 }
  0x29   :  { %10261 = vmatmul.mubr.msk.f32.vlgmr.msra.gmra.mrb[0].mxu0 %vm135_vm0, %v11878_v34 }
  0x2a   :  { %10263 = vmatprep.mubr.msk.f32.mxu0 %vm135_vm0, %v11884_v35 }
  0x2b   :  { %10599 = vmatpush3.bf16.msra.mxu1 %v11867_v31 }
  0x2c   :  { %10601 = vmatprep.subr.bf16.mxu1 %v11887_v36 }
  0x2d   :  { %10264 = vmatmul.mubr.msk.f32.gmra.mrb[2].mxu0 %vm135_vm0, %v11902_v39 }
  0x2e   :  { %10266 = vmatprep.mubr.msk.f32.mxu0 %vm135_vm0, %v11908_v40 }
  0x2f   :  { %10603 = vmatpush3.bf16.msra.mxu1 %v11887_v36 }
  0x30   :  { %10605 = vmatprep.subr.bf16.mxu1 %v11911_v41 }
  0x31   :  { %10267 = vmatmul.mubr.msk.f32.gmra.mrb[4].mxu0 %vm135_vm0, %v11926_v44 }
  0x32   :  { %10269 = vmatprep.mubr.msk.f32.mxu0 %vm135_vm0, %v11932_v45 }
  0x33   :  { %10607 = vmatpush3.bf16.msra.mxu1 %v11911_v41 }
  0x34   :  { %10609 = vmatprep.subr.bf16.mxu1 %v11935_v46 }
  0x35   :  { %10270 = vmatmul.mubr.msk.f32.gmra.mrb[6].mxu0 %vm135_vm0, %v11944_v47 }
  0x36   :  { %10272 = vmatprep.mubr.msk.f32.mxu0 %vm135_vm0, %v11950_v48 }
  0x37   :  { %10611 = vmatpush3.bf16.msra.mxu1 %v11935_v46 }
  0x38   :  { %10629 = vmatprep.subr.bf16.mxu1 %v11821_v11 }
  0x39   :  { %10273 = vmatmul.mubr.msk.f32.gmra.mrb[8].mxu0 %vm135_vm0, %v11960_v49 }
  0x3a   :  { %10317 = vmatmul.mubr.f32.vlgmr.msra.gmra.mrb[0].mxu1 %v15785_v3  ;;  %10275 = vmatprep.mubr.msk.f32.mxu0 %vm135_vm0, %v11966_v50 }
  0x3b   :  { %10631 = vmatpush3.bf16.msra.mxu1 %v11821_v11 }
  0x3c   :  { %10633 = vmatprep.subr.bf16.mxu1 %v11829_v16 }
  0x3d   :  { %10276 = vmatmul.mubr.msk.f32.gmra.mrb[10].mxu0 %vm135_vm0, %v11977_v51 }
  0x3e   :  { %10278 = vmatprep.mubr.msk.f32.mxu0 %vm135_vm0, %v11982_v52 }
  0x3f   :  { %10635 = vmatpush3.bf16.msra.mxu1 %v11829_v16 }
  0x40   :  { %10637 = vmatprep.subr.bf16.mxu1 %v11845_v22 }
  0x41   :  { %10279 = vmatmul.mubr.msk.f32.gmra.mrb[12].mxu0 %vm135_vm0, %v11993_v53 }
  0x42   :  { %10281 = vmatprep.mubr.msk.f32.mxu0 %vm135_vm0, %v11998_v54 }
  0x43   :  { %10639 = vmatpush3.bf16.msra.mxu1 %v11845_v22 }
  0x44   :  { %10641 = vmatprep.subr.bf16.mxu1 %v11857_v28 }
  0x45   :  { %10282 = vmatmul.mubr.msk.f32.gmra.mrb[14].mxu0 %vm135_vm0, %v12009_v55 }
  0x46   :  { %1541 = vmatprep.mubr.f32.mxu0 %v15785_v3 }
  0x47   :  { %10643 = vmatpush3.bf16.msra.mxu1 %v11857_v28 }
  0x48   :  { %10645 = vmatprep.subr.bf16.mxu1 %v11867_v31 }
  0x4b   :  { %10647 = vmatpush3.bf16.msra.mxu1 %v11867_v31 }
  0x4c   :  { %10649 = vmatprep.subr.bf16.mxu1 %v11887_v36 }
  0x4f   :  { %10651 = vmatpush3.bf16.msra.mxu1 %v11887_v36 }
  0x50   :  { %10653 = vmatprep.subr.bf16.mxu1 %v11911_v41 }
  0x53   :  { %10655 = vmatpush3.bf16.msra.mxu1 %v11911_v41 }
  0x54   :  { %10657 = vmatprep.subr.bf16.mxu1 %v11935_v46 }
  0x57   :  { %10659 = vmatpush3.bf16.msra.mxu1 %v11935_v46 }
  0xfc   :  { %v12025_v56 = vpop.f32.mrb[0].mxu0 }
  0xfd   :  { %v250_v57 = vpop.f32.mrb[1].mxu0 }
  0xfe   :  { %v12058_v33 = vadd.f32 %v12050_v24, %v250_v57 }
 0x100   :  { %v12027_v58 = vpop.f32.mrb[2].mxu0  ;;  %15953 = vst [vmem:[#allocation17_spill] sm:$0xff] %v12058_v33 }
 0x101   :  { %v260_v59 = vpop.f32.mrb[3].mxu0 }
 0x102   :  { %v12067_v2 = vadd.f32 %v12050_v24, %v260_v59 }
 0x104   :  { %v12029_v63 = vpop.f32.mrb[4].mxu0  ;;  %15954 = vst [vmem:[#allocation18_spill] sm:$0xff] %v12067_v2 }
 0x105   :  { %v270_v0 = vpop.f32.mrb[5].mxu0 }
 0x108   :  { %v12034_v4 = vpop.f32.mrb[6].mxu0 }
 0x109   :  { %v12036_v5 = vpop.f32.mrb[7].mxu0 }
 0x10c   :  { %v10274_v7 = vpop.f32.mrb[8].mxu0 }
 0x10d   :  { %v10318_v8 = vpop.f32.mrb[0].mxu1  ;;  %v290_v9 = vpop.f32.mrb[9].mxu0 }
 0x10e   :  { %v486_v10 = vpop.f32.mrb[1].mxu1  ;;  %v553_v13 = vrot.slane %v10318_v8, %v12039_v6  ;;  %v546_v37 = vcombine.high %v10318_v8, %v10318_v8 }
 0x10f   :  { %v504_v12 = vrot.slane %v486_v10, %v12039_v6  ;;  %v497_v19 = vcombine.high %v486_v10, %v486_v10 }
 0x110   :  { %v10277_v14 = vpop.f32.mrb[10].mxu0  ;;  %v561_v20 = vcombine.high %v553_v13, %v553_v13  ;;  %v569_v25 = vrot.slane %v553_v13, %v12039_v6  ;;  %v12074_v13 = vadd.f32 %v12050_v24, %v290_v9 }
 0x111   :  { %v520_v15 = vrot.slane %v504_v12, %v12039_v6  ;;  %v300_v17 = vpop.f32.mrb[11].mxu0  ;;  %v511_v29 = vrot.slane %v497_v19, %v12039_v6  ;;  %v512_v30 = vcombine.high %v504_v12, %v504_v12 }
 0x112   :  { %v583_v38 = vrot.slane %v561_v20, %v12039_v6  ;;  %v591_v43 = vcombine.high %v569_v25, %v569_v25  ;;  %v630_v12 = vrot.slane %v569_v25, %v12045_v18  ;;  %15955 = vst [vmem:[#allocation19_spill] sm:$0xff] %v12074_v13  ;;  %v12084_v25 = vadd.f32 %v10274_v7, %v12050_v24 }
 0x113   :  { %v542_v26 = vcombine.high %v520_v15, %v520_v15  ;;  %v598_v32 = vrot.slane %v520_v15, %v12045_v18  ;;  %v527_v57 = vrot.slane %v511_v29, %v12039_v6  ;;  %v534_v8 = vrot.slane %v512_v30, %v12039_v6 }
 0x114   :  { %v10280_v23 = vpop.f32.mrb[12].mxu0  ;;  %v560_v15 = vrot.slane %v546_v37, %v12039_v6  ;;  %v634_v19 = vrot.slane %v583_v38, %v12045_v18  ;;  %v638_v20 = vrot.slane %v591_v43, %v12045_v18  ;;  %15957 = vst [vmem:[#allocation21_spill] sm:$0xff] %v12084_v25  ;;  %v683_v3 = vadd.f32 %v630_v12, %v12074_v13 }
 0x115   :  { %v12053_v27 = vpop.f32.mrb[13].mxu0  ;;  %v606_v61 = vrot.slane %v542_v26, %v12045_v18  ;;  %v675_v10 = vadd.f32 %v598_v32, %v12058_v33  ;;  %v12081_v26 = vadd.f32 %v12050_v24, %v300_v17  ;;  %v513_v32 = vcombine.high %v511_v29, %v511_v29 }
 0x116   :  { %v544_v30 = vcombine.high %v534_v8, %v534_v8  ;;  %v614_v9 = vrot.slane %v527_v57, %v12045_v18  ;;  %v562_v37 = vcombine.high %v560_v15, %v560_v15  ;;  %v593_v60 = vcombine.high %v583_v38, %v583_v38 }
 0x117   :  { %10973 = vtanh.f32 %v675_v10  ;;  %v677_v59 = vadd.f32 %v606_v61, %v12067_v2  ;;  %15956 = vst [vmem:[#allocation20_spill] sm:$0xff] %v12081_v26  ;;  %v602_v10 = vrot.slane %v534_v8, %v12045_v18  ;;  %v684_v43 = vadd.f32 %v634_v19, %v12084_v25 }
 0x118   :  { %v12061_v42 = vpop.f32.mrb[14].mxu0  ;;  %v12091_v61 = vadd.f32 %v12050_v24, %v270_v0  ;;  %v685_v17 = vadd.f32 %v638_v20, %v12081_v26  ;;  %v12096_v7 = vadd.f32 %v12025_v56, %v12050_v24  ;;  %v12099_v29 = vadd.f32 %v10277_v14, %v12050_v24  ;;  %v12112_v56 = vld [vmem:[%s15774_s5] ss:$0 sm:$0xff] }
 0x119   :  { %v12064_v62 = vpop.f32.mrb[15].mxu0  ;;  %10975 = vtanh.f32 %v677_v59  ;;  %v541_v12 = vrot.slane %v513_v32, %v12039_v6  ;;  %v610_v38 = vrot.slane %v544_v30, %v12045_v18  ;;  %v12105_v0 = vrot.slane %v562_v37, %v12039_v6 }
 0x11a   :  { %15958 = vst [vmem:[#allocation22_spill] sm:$0xff] %v12091_v61  ;;  %15959 = vst [vmem:[#allocation23_spill] sm:$0xff] %v12096_v7  ;;  %v679_v8 = vadd.f32 %v614_v9, %v12091_v61  ;;  %10977 = vtanh.f32 %v683_v3  ;;  %v642_v19 = vrot.slane %v593_v60, %v12045_v18  ;;  %v676_v20 = vadd.f32 %v602_v10, %v12096_v7 }
 0x11b   :  { %15960 = vst [vmem:[#allocation24_spill] sm:$0xff] %v12099_v29  ;;  %10979 = vtanh.f32 %v684_v43  ;;  %v12116_v14 = vadd.f32 %v12027_v58, %v12050_v24  ;;  %v543_v3 = vcombine.high %v527_v57, %v527_v57  ;;  %v618_v32 = vrot.slane %v541_v12, %v12045_v18 }
 0x11c   :  { %10981 = vtanh.f32 %v685_v17  ;;  %v650_v9 = vrot.slane %v12105_v0, %v12045_v18  ;;  %v12124_v37 = vadd.f32 %v10280_v23, %v12050_v24  ;;  %v686_v58 = vadd.f32 %v642_v19, %v12099_v29 }
 0x11d   :  { %15961 = vst [vmem:[#allocation25_spill] sm:$0xff] %v12116_v14  ;;  %v678_v30 = vadd.f32 %v610_v38, %v12116_v14  ;;  %10983 = vtanh.f32 %v679_v8  ;;  %v12129_v10 = vadd.f32 %v12029_v63, %v12050_v24  ;;  %v576_v43 = vrot.slane %v560_v15, %v12039_v6 }
 0x11e   :  { %10985 = vtanh.f32 %v676_v20  ;;  %15962 = vst [vmem:[#allocation26_spill] sm:$0xff] %v12124_v37  ;;  %v545_v38 = vcombine.high %v541_v12, %v541_v12  ;;  %v622_v8 = vrot.slane %v543_v3, %v12045_v18  ;;  %v12137_v23 = vadd.f32 %v12050_v24, %v12053_v27 }
 0x11f   :  { %15963 = vst [vmem:[#allocation27_spill] sm:$0xff] %v12129_v10  ;;  %v680_v20 = vadd.f32 %v618_v32, %v12129_v10  ;;  %10987 = vtanh.f32 %v678_v30  ;;  %v688_v63 = vadd.f32 %v650_v9, %v12124_v37  ;;  %v646_v12 = vrot.slane %v576_v43, %v12045_v18 }
 0x120   :  { %15964 = vst [vmem:[#allocation28_spill] sm:$0xff] %v12137_v23  ;;  %10989 = vtanh.f32 %v686_v58  ;;  %v626_v27 = vrot.slane %v545_v38, %v12045_v18  ;;  %v594_v38 = vcombine.high %v12105_v0, %v12105_v0  ;;  %v12296_v33 = vsub.s32 7, %v12032_v1 }
 0x121   :  { %v10974_v59 = vpop.eup %10973  ;;  %10991 = vtanh.f32 %v680_v20 }
 0x122   :  { %v713_v60 = vmul.f32 %v10974_v59, %v12112_v56  ;;  %v12142_v59 = vadd.f32 %v12050_v24, %v12036_v5  ;;  %v12152_v5 = vadd.f32 %v12050_v24, %v12064_v62  ;;  %10993 = vtanh.f32 %v688_v63 }
 0x123   :  { %v10976_v17 = vpop.eup %10975 }
 0x124   :  { %v729_v57 = vsel %vm135_vm0, %v713_v60, 0.0  ;;  %v10978_v19 = vpop.eup %10977  ;;  %15965 = vst [vmem:[#allocation29_spill] sm:$0xff] %v12142_v59  ;;  %v592_v60 = vcombine.high %v576_v43, %v576_v43  ;;  %v715_v32 = vmul.f32 %v10976_v17, %v12112_v56  ;;  %v681_v58 = vadd.f32 %v622_v8, %v12142_v59  ;;  %15966 = vst [vmem:[#allocation30_spill] sm:$0xff] %v12152_v5 }
 0x125   :  { %730 = vadd.xlane.f32.xlu0 %v729_v57  ;;  %v10980_v15 = vpop.eup %10979  ;;  %v721_v3 = vmul.f32 %v10978_v19, %v12112_v56  ;;  %v687_v43 = vadd.f32 %v646_v12, %v12137_v23  ;;  %v12158_v17 = vadd.f32 %v12034_v4, %v12050_v24  ;;  %v12169_v4 = vadd.f32 %v12061_v42, %v12050_v24 }
 0x126   :  { %v10982_v30 = vpop.eup %10981  ;;  %v722_v9 = vmul.f32 %v10980_v15, %v12112_v56  ;;  %v654_v15 = vrot.slane %v592_v60, %v12045_v18  ;;  %v735_v63 = vsel %vm135_vm0, %v715_v32, 0.0  ;;  %10995 = vtanh.f32 %v681_v58 }
 0x127   :  { %v753_v57 = vsel %vm135_vm0, %v721_v3, 0.0  ;;  %v10984_v19 = vpop.eup %10983  ;;  %15967 = vst [vmem:[#allocation31_spill] sm:$0xff] %v12158_v17  ;;  %v723_v20 = vmul.f32 %v10982_v30, %v12112_v56  ;;  %v682_v12 = vadd.f32 %v626_v27, %v12158_v17  ;;  %15968 = vst [vmem:[#allocation32_spill] sm:$0xff] %v12169_v4  ;;  %10997 = vtanh.f32 %v687_v43 }
 0x128   :  { %754 = vadd.xlane.f32.xlu1 %v753_v57  ;;  %v756_v8 = vsel %vm135_vm0, %v722_v9, 0.0  ;;  %v10986_v62 = vpop.eup %10985  ;;  %v717_v0 = vmul.f32 %v10984_v19, %v12112_v56  ;;  %v689_v3 = vadd.f32 %v654_v15, %v12152_v5  ;;  %v658_v30 = vrot.slane %v594_v38, %v12045_v18 }
 0x129   :  { %757 = vadd.xlane.f32.xlu0 %v756_v8  ;;  %v10988_v9 = vpop.eup %10987  ;;  %v759_v60 = vsel %vm135_vm0, %v723_v20, 0.0  ;;  %v714_v32 = vmul.f32 %v10986_v62, %v12112_v56  ;;  %10999 = vtanh.f32 %v682_v12 }
 0x12a   :  { %v10990_v57 = vpop.eup %10989  ;;  %v690_v27 = vadd.f32 %v658_v30, %v12169_v4  ;;  %v741_v24 = vsel %vm135_vm0, %v717_v0, 0.0  ;;  %v716_v42 = vmul.f32 %v10988_v9, %v12112_v56  ;;  %11001 = vtanh.f32 %v689_v3 }
 0x12b   :  { %v10992_v58 = vpop.eup %10991  ;;  %v732_v43 = vsel %vm135_vm0, %v714_v32, 0.0  ;;  %v724_v19 = vmul.f32 %v10990_v57, %v12112_v56 }
 0x12c   :  { %736 = vadd.xlane.f32.xlu1 %v735_v63  ;;  %v10994_v38 = vpop.eup %10993  ;;  %11003 = vtanh.f32 %v690_v27  ;;  %v738_v8 = vsel %vm135_vm0, %v716_v42, 0.0  ;;  %v718_v20 = vmul.f32 %v10992_v58, %v12112_v56 }
 0x12d   :  { %760 = vadd.xlane.f32.xlu0 %v759_v60  ;;  %v762_v15 = vsel %vm135_vm0, %v724_v19, 0.0  ;;  %v726_v63 = vmul.f32 %v10994_v38, %v12112_v56 }
 0x12e   :  { %v744_v0 = vsel %vm135_vm0, %v718_v20, 0.0 }
 0x12f   :  { %v768_v30 = vsel %vm135_vm0, %v726_v63, 0.0  ;;  %v15969_v63 = vlaneseq }
 0x130   :  { %742 = vadd.xlane.f32.xlu1 %v741_v24  ;;  %v10996_v62 = vpop.eup %10995 }
 0x131   :  { %733 = vadd.xlane.f32.xlu0 %v732_v43  ;;  %v10998_v12 = vpop.eup %10997  ;;  %v719_v3 = vmul.f32 %v10996_v62, %v12112_v56 }
 0x132   :  { %v725_v60 = vmul.f32 %v10998_v12, %v12112_v56  ;;  %v794_v12 = vand.u32 127, %v15969_v63 }
 0x133   :  { %v11000_v9 = vpop.eup %10999  ;;  %v747_v57 = vsel %vm135_vm0, %v719_v3, 0.0 }
 0x134   :  { %739 = vadd.xlane.f32.xlu1 %v738_v8  ;;  %v11002_v32 = vpop.eup %11001  ;;  %v720_v27 = vmul.f32 %v11000_v9, %v12112_v56  ;;  %v765_v42 = vsel %vm135_vm0, %v725_v60, 0.0 }
 0x135   :  { %763 = vadd.xlane.f32.xlu0 %v762_v15  ;;  %v727_v58 = vmul.f32 %v11002_v32, %v12112_v56 }
 0x136   :  { %v11004_v24 = vpop.eup %11003  ;;  %v750_v43 = vsel %vm135_vm0, %v720_v27, 0.0 }
 0x137   :  { %v728_v19 = vmul.f32 %v11004_v24, %v12112_v56  ;;  %v771_v38 = vsel %vm135_vm0, %v727_v58, 0.0  ;;  %v12209_v56 = vsub.s32 %v794_v12, %v12032_v1 }
 0x138   :  { %745 = vadd.xlane.f32.xlu1 %v744_v0 }
 0x139   :  { %769 = vadd.xlane.f32.xlu0 %v768_v30  ;;  %v774_v8 = vsel %vm135_vm0, %v728_v19, 0.0 }
 0x13c   :  { %748 = vadd.xlane.f32.xlu1 %v747_v57 }
 0x13d   :  { %766 = vadd.xlane.f32.xlu0 %v765_v42 }
 0x140   :  { %751 = vadd.xlane.f32.xlu1 %v750_v43 }
 0x141   :  { %772 = vadd.xlane.f32.xlu0 %v771_v38 }
 0x144   :  { %775 = vadd.xlane.f32.xlu1 %v774_v8 }
 0x1b2   :  { %v12197_v20 = vpop.xlane.xlu0 %730 }
 0x1b3   :  { %v798_v32 = vrot.slane %v12197_v20, %v12209_v56 }
 0x1b5   :  { %v12199_v62 = vpop.xlane.xlu1 %754 }
 0x1b6   :  { %v12201_v15 = vpop.xlane.xlu0 %757  ;;  %v830_v12 = vrot.slane %v12199_v62, %v12209_v56 }
 0x1b7   :  { %v834_v19 = vrot.slane %v12201_v15, %v12209_v56 }
 0x1b9   :  { %v12204_v0 = vpop.xlane.xlu1 %736  ;;  %v873_v4 = vsel %vm859_vm1, %v834_v19, %v830_v12 }
 0x1ba   :  { %v12206_v3 = vpop.xlane.xlu0 %760  ;;  %v806_v42 = vrot.slane %v12204_v0, %v12209_v56 }
 0x1bb   :  { %v838_v63 = vrot.slane %v12206_v3, %v12209_v56 }
 0x1bd   :  { %v12211_v9 = vpop.xlane.xlu1 %742  ;;  %v874_v37 = vsel %vm861_vm2, %v838_v63, %v873_v4 }
 0x1be   :  { %v12213_v30 = vpop.xlane.xlu0 %733 }
 0x1bf   :  { %v802_v60 = vrot.slane %v12213_v30, %v12209_v56 }
 0x1c1   :  { %v12219_v57 = vpop.xlane.xlu1 %739  ;;  %v860_v27 = vsel %vm859_vm1, %v802_v60, %v798_v32 }
 0x1c2   :  { %v12222_v24 = vpop.xlane.xlu0 %763  ;;  %v862_v58 = vsel %vm861_vm2, %v806_v42, %v860_v27  ;;  %v810_v38 = vrot.slane %v12219_v57, %v12209_v56  ;;  %v814_v27 = vrot.slane %v12211_v9, %v12209_v56 }
 0x1c3   :  { %v842_v60 = vrot.slane %v12222_v24, %v12209_v56 }
 0x1c4   :  { %v864_v32 = vsel %vm863_vm3, %v810_v38, %v862_v58 }
 0x1c5   :  { %v746_v43 = vpop.xlane.xlu1 %745  ;;  %v866_v58 = vsel %vm865_vm4, %v814_v27, %v864_v32  ;;  %v875_v38 = vsel %vm863_vm3, %v842_v60, %v874_v37 }
 0x1c6   :  { %v12231_v8 = vpop.xlane.xlu0 %769  ;;  %v818_v5 = vrot.slane %v746_v43, %v12209_v56 }
 0x1c7   :  { %v850_v12 = vrot.slane %v12231_v8, %v12209_v56 }
 0x1c8   :  { %v868_v4 = vsel %vm867_vm5, %v818_v5, %v866_v58 }
 0x1c9   :  { %v749_v42 = vpop.xlane.xlu1 %748 }
 0x1ca   :  { %v12244_v17 = vpop.xlane.xlu0 %766  ;;  %v822_v59 = vrot.slane %v749_v42, %v12209_v56 }
 0x1cb   :  { %v846_v29 = vrot.slane %v12244_v17, %v12209_v56 }
 0x1cc   :  { %v870_v61 = vsel %vm869_vm6, %v822_v59, %v868_v4  ;;  %v11711_v59 = vmov 0   ;;  %v12279_v4 = vsub.s32 3, %v12032_v1 }
 0x1cd   :  { %v752_v10 = vpop.xlane.xlu1 %751  ;;  %v876_v19 = vsel %vm865_vm4, %v846_v29, %v875_v38  ;;  %10972 = vset.pattern.permute.xlu1 %v11711_v59  ;;  %10971 = vset.pattern.permute.xlu0 %v11711_v59 }
 0x1ce   :  { %v826_v2 = vrot.slane %v752_v10, %v12209_v56  ;;  %v12257_v63 = vpop.xlane.xlu0 %772  ;;  %v877_v29 = vsel %vm867_vm5, %v850_v12, %v876_v19  ;;  %v12276_v19 = vsub.s32 5, %v12032_v1 }
 0x1cf   :  { %v854_v37 = vrot.slane %v12257_v63, %v12209_v56 }
 0x1d0   :  { %v872_v60 = vsel %vm871_vm7, %v826_v2, %v870_v61  ;;  %v12270_v2 = vsub.s32 1, %v12032_v1  ;;  %v12273_v61 = vsub.s32 2, %v12032_v1 }
 0x1d1   :  { %v776_v32 = vpop.xlane.xlu1 %775  ;;  %v883_v27 = vsel %vm882_vm8, %v872_v60, -inf  ;;  %v878_v38 = vsel %vm869_vm6, %v854_v37, %v877_v29  ;;  %v12285_v29 = vsub.s32 6, %v12032_v1 }
 0x1d2   :  { %v858_v14 = vrot.slane %v776_v32, %v12209_v56  ;;  %884 = vmax.xlane.f32.xlu0 %v883_v27 }
 0x1d4   :  { %v879_v5 = vsel %vm871_vm7, %v858_v14, %v878_v38 }
 0x1d5   :  { %v886_v58 = vsel %vm882_vm8, %v879_v5, -inf }
 0x1d6   :  { %887 = vmax.xlane.f32.xlu1 %v886_v58  ;;  %v12291_v58 = vsub.s32 4, %v12032_v1 }
 0x25f   :  { %v885_v12 = vpop.xlane.xlu0 %884 }
 0x260   :  { %v894_v14 = vrot.slane %v885_v12, %v12045_v18  ;;  %v898_v37 = vrot.slane %v885_v12, %v12270_v2  ;;  %v902_v60 = vrot.slane %v885_v12, %v12273_v61  ;;  %v914_v27 = vrot.slane %v885_v12, %v12276_v19 }
 0x261   :  { %v906_v59 = vrot.slane %v885_v12, %v12279_v4  ;;  %v918_v23 = vrot.slane %v885_v12, %v12285_v29  ;;  %v910_v6 = vrot.slane %v885_v12, %v12291_v58 }
 0x262   :  { %v972_v38 = vsub.f32 %v12213_v30, %v898_v37  ;;  %v971_v5 = vsub.f32 %v12197_v20, %v894_v14  ;;  %v973_v7 = vsub.f32 %v12204_v0, %v902_v60  ;;  %v976_v26 = vsub.f32 %v746_v43, %v914_v27 }
 0x263   :  { %v974_v20 = vsub.f32 %v12219_v57, %v906_v59  ;;  %v922_v14 = vrot.slane %v885_v12, %v12296_v33  ;;  %v12302_v37 = vpop.xlane.xlu1 %887  ;;  %v977_v60 = vsub.f32 %v749_v42, %v918_v23  ;;  %v975_v27 = vsub.f32 %v12211_v9, %v910_v6 }
 0x264   :  { %v989_v25 = vmul.f32 1.442695, %v972_v38  ;;  %v987_v13 = vmul.f32 1.442695, %v971_v5  ;;  %v991_v30 = vmul.f32 1.442695, %v973_v7  ;;  %v926_v1 = vrot.slane %v12302_v37, %v12045_v18 }
 0x265   :  { %v997_v0 = vmul.f32 1.442695, %v976_v26  ;;  %v993_v43 = vmul.f32 1.442695, %v974_v20  ;;  %v999_v7 = vmul.f32 1.442695, %v977_v60  ;;  %v978_v57 = vsub.f32 %v752_v10, %v922_v14 }
 0x266   :  { %11005 = vpow2.f32 %v989_v25  ;;  %v954_v25 = vrot.slane %v12302_v37, %v12296_v33  ;;  %v930_v12 = vrot.slane %v12302_v37, %v12270_v2  ;;  %v979_v26 = vsub.f32 %v12199_v62, %v926_v1 }
 0x267   :  { %11007 = vpow2.f32 %v987_v13  ;;  %v995_v13 = vmul.f32 1.442695, %v975_v27  ;;  %v1001_v23 = vmul.f32 1.442695, %v978_v57  ;;  %v934_v6 = vrot.slane %v12302_v37, %v12273_v61 }
 0x268   :  { %11009 = vpow2.f32 %v991_v30  ;;  %v986_v42 = vsub.f32 %v776_v32, %v954_v25  ;;  %v1003_v10 = vmul.f32 1.442695, %v979_v26  ;;  %v980_v9 = vsub.f32 %v12201_v15, %v930_v12 }
 0x269   :  { %11011 = vpow2.f32 %v997_v0  ;;  %v938_v30 = vrot.slane %v12302_v37, %v12279_v4  ;;  %v981_v14 = vsub.f32 %v12206_v3, %v934_v6  ;;  %v942_v60 = vrot.slane %v12302_v37, %v12291_v58 }
 0x26a   :  { %11013 = vpow2.f32 %v993_v43  ;;  %v1017_v62 = vmul.f32 1.442695, %v986_v42  ;;  %v1005_v20 = vmul.f32 1.442695, %v980_v9  ;;  %v946_v3 = vrot.slane %v12302_v37, %v12276_v19 }
 0x26b   :  { %11015 = vpow2.f32 %v999_v7  ;;  %v1007_v1 = vmul.f32 1.442695, %v981_v14  ;;  %v982_v43 = vsub.f32 %v12222_v24, %v938_v30  ;;  %v983_v57 = vsub.f32 %v12244_v17, %v942_v60  ;;  %v12379_v30 = vld [vmem:[%s15778_s9] ss:$0 sm:$0xff] }
 0x26c   :  { %11017 = vpow2.f32 %v995_v13  ;;  %v950_v24 = vrot.slane %v12302_v37, %v12285_v29  ;;  %v338_v60 = vmul.f32 %v12379_v30, %v11884_v35 }
 0x26d   :  { %11019 = vpow2.f32 %v1001_v23  ;;  %v1009_v7 = vmul.f32 1.442695, %v982_v43  ;;  %v1011_v26 = vmul.f32 1.442695, %v983_v57  ;;  %v984_v23 = vsub.f32 %v12231_v8, %v946_v3 }
 0x26e   :  { %11021 = vpow2.f32 %v1003_v10  ;;  %v985_v6 = vsub.f32 %v12257_v63, %v950_v24  ;;  %v345_v43 = vmul.f32 %v12379_v30, %v11960_v49  ;;  %v344_v57 = vmul.f32 %v12379_v30, %v11950_v48 }
 0x26f   :  { %11023 = vpow2.f32 %v1017_v62  ;;  %v1013_v17 = vmul.f32 1.442695, %v984_v23 }
 0x270   :  { %v12312_v38 = vpop.eup %11005  ;;  %11025 = vpow2.f32 %v1005_v20  ;;  %v1015_v37 = vmul.f32 1.442695, %v985_v6  ;;  %v336_v20 = vmul.f32 %v12379_v30, %v11842_v21  ;;  %v379_v3 = vsel %vm135_vm0, %v345_v43, 0.0 }
 0x271   :  { %v12314_v5 = vpop.eup %11007  ;;  %1039 = vperm.xlu1 %10972, %v12312_v38   ;;  %11027 = vpow2.f32 %v1007_v1  ;;  %v358_v1 = vsel %vm135_vm0, %v338_v60, 0.0  ;;  %v376_v35 = vsel %vm135_vm0, %v344_v57, 0.0 }
 0x272   :  { %1036 = vperm.xlu0 %10971, %v12314_v5   ;;  %v12321_v59 = vpop.eup %11009  ;;  %11029 = vpow2.f32 %v1009_v7  ;;  %v352_v14 = vsel %vm135_vm0, %v336_v20, 0.0  ;;  %v337_v7 = vmul.f32 %v12379_v30, %v11878_v34 }
 0x273   :  { %v12323_v32 = vpop.eup %11011  ;;  %11031 = vpow2.f32 %v1011_v26 }
 0x274   :  { %v12330_v0 = vpop.eup %11013  ;;  %11033 = vpow2.f32 %v1013_v17  ;;  %v355_v21 = vsel %vm135_vm0, %v337_v7, 0.0 }
 0x275   :  { %1042 = vperm.xlu1 %10972, %v12321_v59   ;;  %v12332_v15 = vpop.eup %11015  ;;  %11035 = vpow2.f32 %v1015_v37 }
 0x276   :  { %1051 = vperm.xlu0 %10971, %v12323_v32   ;;  %v12339_v27 = vpop.eup %11017 }
 0x277   :  { %v12341_v25 = vpop.eup %11019 }
 0x278   :  { %v12348_v12 = vpop.eup %11021 }
 0x279   :  { %1045 = vperm.xlu1 %10972, %v12330_v0   ;;  %v12350_v13 = vpop.eup %11023 }
 0x27a   :  { %1054 = vperm.xlu0 %10971, %v12332_v15   ;;  %v12357_v42 = vpop.eup %11025 }
 0x27b   :  { %v12361_v10 = vpop.eup %11027 }
 0x27c   :  { %v12364_v9 = vpop.eup %11029 }
 0x27d   :  { %1048 = vperm.xlu1 %10972, %v12339_v27   ;;  %v12367_v8 = vpop.eup %11031 }
 0x27e   :  { %1057 = vperm.xlu0 %10971, %v12341_v25   ;;  %v12370_v62 = vpop.eup %11033 }
 0x27f   :  { %v12373_v63 = vpop.eup %11035 }
 0x281   :  { %1060 = vperm.xlu1 %10972, %v12348_v12  }
 0x282   :  { %1081 = vperm.xlu0 %10971, %v12350_v13  }
 0x285   :  { %1063 = vperm.xlu1 %10972, %v12357_v42  }
 0x289   :  { %1066 = vperm.xlu1 %10972, %v12361_v10  }
 0x28d   :  { %1069 = vperm.xlu1 %10972, %v12364_v9  }
 0x291   :  { %1072 = vperm.xlu1 %10972, %v12367_v8  }
 0x295   :  { %1075 = vperm.xlu1 %10972, %v12370_v62  }
 0x299   :  { %1078 = vperm.xlu1 %10972, %v12373_v63  }
 0x2a1   :  { %353 = vadd.xlane.f32.xlu0 %v352_v14 }
 0x2a5   :  { %359 = vadd.xlane.f32.xlu0 %v358_v1 }
 0x2a9   :  { %380 = vadd.xlane.f32.xlu0 %v379_v3 }
 0x2bd   :  { %356 = vadd.xlane.f32.xlu1 %v355_v21 }
 0x2c1   :  { %377 = vadd.xlane.f32.xlu1 %v376_v35 }
 0x2f0   :  { %v1040_v24 = vpop.permute.xlu1 %1039 }
 0x2f1   :  { %v1037_v26 = vpop.permute.xlu0 %1036  ;;  %v1090_v17 = vrot.slane %v1040_v24, %v12209_v56 }
 0x2f2   :  { %v1086_v6 = vrot.slane %v1037_v26, %v12209_v56 }
 0x2f4   :  { %v1043_v23 = vpop.permute.xlu1 %1042  ;;  %v1147_v48 = vsel %vm859_vm1, %v1090_v17, %v1086_v6  ;;  %v339_v6 = vmul.f32 %v12379_v30, %v11902_v39 }
 0x2f5   :  { %v1052_v49 = vpop.permute.xlu0 %1051  ;;  %v1094_v34 = vrot.slane %v1043_v23, %v12209_v56 }
 0x2f6   :  { %v1106_v7 = vrot.slane %v1052_v49, %v12209_v56 }
 0x2f7   :  { %v1148_v1 = vsel %vm861_vm2, %v1094_v34, %v1147_v48 }
 0x2f8   :  { %v1046_v37 = vpop.permute.xlu1 %1045 }
 0x2f9   :  { %v1055_v20 = vpop.permute.xlu0 %1054  ;;  %v1098_v14 = vrot.slane %v1046_v37, %v12209_v56 }
 0x2fa   :  { %v1110_v57 = vrot.slane %v1055_v20, %v12209_v56  ;;  %v361_v20 = vsel %vm135_vm0, %v339_v6, 0.0  ;;  %v351_v6 = vmul.f32 %v12379_v30, %v12009_v55 }
 0x2fb   :  { %v1149_v21 = vsel %vm863_vm3, %v1098_v14, %v1148_v1  ;;  %v340_v14 = vmul.f32 %v12379_v30, %v11908_v40  ;;  %v341_v1 = vmul.f32 %v12379_v30, %v11926_v44  ;;  %v343_v40 = vmul.f32 %v12379_v30, %v11944_v47 }
 0x2fc   :  { %v1049_v60 = vpop.permute.xlu1 %1048 }
 0x2fd   :  { %v1102_v43 = vrot.slane %v1049_v60, %v12209_v56  ;;  %v1058_v3 = vpop.permute.xlu0 %1057  ;;  %v364_v60 = vsel %vm135_vm0, %v340_v14, 0.0  ;;  %v367_v39 = vsel %vm135_vm0, %v341_v1, 0.0 }
 0x2fe   :  { %v1114_v24 = vrot.slane %v1058_v3, %v12209_v56  ;;  %v342_v3 = vmul.f32 %v12379_v30, %v11932_v45  ;;  %v373_v45 = vsel %vm135_vm0, %v343_v40, 0.0  ;;  %v347_v40 = vmul.f32 %v12379_v30, %v11977_v51 }
 0x2ff   :  { %v1150_v35 = vsel %vm865_vm4, %v1102_v43, %v1149_v21 }
 0x300   :  { %v1061_v26 = vpop.permute.xlu1 %1060  ;;  %v1151_v23 = vsel %vm867_vm5, %v1106_v7, %v1150_v35  ;;  %v370_v21 = vsel %vm135_vm0, %v342_v3, 0.0 }
 0x301   :  { %v1152_v17 = vsel %vm869_vm6, %v1110_v57, %v1151_v23  ;;  %v1118_v44 = vrot.slane %v1061_v26, %v12209_v56 }
 0x302   :  { %v1153_v37 = vsel %vm871_vm7, %v1114_v24, %v1152_v17 }
 0x303   :  { %v1163_v49 = vsel %vm882_vm8, %v1153_v37, 0.0 }
 0x304   :  { %v1064_v34 = vpop.permute.xlu1 %1063  ;;  %1164 = vadd.xlane.f32.xlu1 %v1163_v49  ;;  %v1082_v49 = vpop.permute.xlu0 %1081 }
 0x305   :  { %v1122_v57 = vrot.slane %v1064_v34, %v12209_v56  ;;  %v1146_v1 = vrot.slane %v1082_v49, %v12209_v56 }
 0x307   :  { %v1154_v37 = vsel %vm859_vm1, %v1122_v57, %v1118_v44  ;;  %v385_v57 = vsel %vm135_vm0, %v347_v40, 0.0  ;;  %v349_v44 = vmul.f32 %v12379_v30, %v11993_v53 }
 0x308   :  { %v1067_v48 = vpop.permute.xlu1 %1066  ;;  %362 = vadd.xlane.f32.xlu1 %v361_v20 }
 0x309   :  { %v1126_v35 = vrot.slane %v1067_v48, %v12209_v56 }
 0x30b   :  { %v1155_v34 = vsel %vm861_vm2, %v1126_v35, %v1154_v37  ;;  %v348_v35 = vmul.f32 %v12379_v30, %v11982_v52 }
 0x30c   :  { %v1070_v43 = vpop.permute.xlu1 %1069  ;;  %365 = vadd.xlane.f32.xlu1 %v364_v60  ;;  %v397_v60 = vsel %vm135_vm0, %v351_v6, 0.0 }
 0x30d   :  { %v1130_v24 = vrot.slane %v1070_v43, %v12209_v56 }
 0x30f   :  { %v1156_v26 = vsel %vm863_vm3, %v1130_v24, %v1155_v34  ;;  %v391_v24 = vsel %vm135_vm0, %v349_v44, 0.0 }
 0x310   :  { %v1073_v7 = vpop.permute.xlu1 %1072  ;;  %368 = vadd.xlane.f32.xlu1 %v367_v39  ;;  %v346_v39 = vmul.f32 %v12379_v30, %v11966_v50  ;;  %v388_v50 = vsel %vm135_vm0, %v348_v35, 0.0 }
 0x311   :  { %v1134_v17 = vrot.slane %v1073_v7, %v12209_v56 }
 0x313   :  { %v1157_v14 = vsel %vm865_vm4, %v1134_v17, %v1156_v26 }
 0x314   :  { %v1076_v23 = vpop.permute.xlu1 %1075  ;;  %371 = vadd.xlane.f32.xlu1 %v370_v21  ;;  %v382_v21 = vsel %vm135_vm0, %v346_v39, 0.0 }
 0x315   :  { %v1138_v47 = vrot.slane %v1076_v23, %v12209_v56  ;;  %v350_v23 = vmul.f32 %v12379_v30, %v11998_v54 }
 0x317   :  { %v1158_v55 = vsel %vm867_vm5, %v1138_v47, %v1157_v14  ;;  %v394_v51 = vsel %vm135_vm0, %v350_v23, 0.0 }
 0x318   :  { %v1079_v20 = vpop.permute.xlu1 %1078  ;;  %374 = vadd.xlane.f32.xlu1 %v373_v45 }
 0x319   :  { %v1142_v48 = vrot.slane %v1079_v20, %v12209_v56 }
 0x31b   :  { %v1159_v43 = vsel %vm869_vm6, %v1142_v48, %v1158_v55 }
 0x31c   :  { %v1160_v3 = vsel %vm871_vm7, %v1146_v1, %v1159_v43  ;;  %398 = vadd.xlane.f32.xlu1 %v397_v60 }
 0x31d   :  { %v1166_v7 = vsel %vm882_vm8, %v1160_v3, 0.0 }
 0x31e   :  { %1167 = vadd.xlane.f32.xlu0 %v1166_v7 }
 0x322   :  { %383 = vadd.xlane.f32.xlu0 %v382_v21 }
 0x326   :  { %386 = vadd.xlane.f32.xlu0 %v385_v57 }
 0x32a   :  { %389 = vadd.xlane.f32.xlu0 %v388_v50 }
 0x32e   :  { %392 = vadd.xlane.f32.xlu0 %v391_v24  ;;  %v12465_v6 = vpop.xlane.xlu0 %353 }
 0x332   :  { %395 = vadd.xlane.f32.xlu0 %v394_v51  ;;  %v12476_v14 = vpop.xlane.xlu0 %359 }
 0x336   :  { %v12486_v39 = vpop.xlane.xlu0 %380 }
 0x34a   :  { %v12461_v17 = vpop.xlane.xlu1 %356 }
 0x34e   :  { %v12463_v45 = vpop.xlane.xlu1 %377 }
 0x391   :  { %v1165_v52 = vpop.xlane.xlu1 %1164 }
 0x392   :  { %11037 = vrcp.f32 %v1165_v52 }
 0x395   :  { %v12467_v53 = vpop.xlane.xlu1 %362 }
 0x399   :  { %v12482_v43 = vpop.xlane.xlu1 %365 }
 0x39c   :  { %v11038_v37 = vpop.eup %11037 }
 0x39d   :  { %v1180_v47 = vrot.slane %v11038_v37, %v12270_v2  ;;  %v1176_v49 = vrot.slane %v11038_v37, %v12045_v18  ;;  %v1188_v54 = vrot.slane %v11038_v37, %v12279_v4  ;;  %v1184_v30 = vrot.slane %v11038_v37, %v12273_v61  ;;  %v12490_v21 = vpop.xlane.xlu1 %368 }
 0x39e   :  { %v1192_v20 = vrot.slane %v11038_v37, %v12291_v58  ;;  %v1196_v7 = vrot.slane %v11038_v37, %v12276_v19  ;;  %v1200_v40 = vrot.slane %v11038_v37, %v12285_v29 }
 0x39f   :  { %v1254_v34 = vmul.f32 %v12312_v38, %v1180_v47  ;;  %v1253_v26 = vmul.f32 %v12314_v5, %v1176_v49  ;;  %v1256_v1 = vmul.f32 %v12330_v0, %v1188_v54  ;;  %v1255_v55 = vmul.f32 %v12321_v59, %v1184_v30 }
 0x3a0   :  { %v1257_v3 = vmul.f32 %v12339_v27, %v1192_v20  ;;  %v1258_v0 = vmul.f32 %v12323_v32, %v1196_v7  ;;  %v1259_v50 = vmul.f32 %v12332_v15, %v1200_v40  ;;  %v1204_v47 = vrot.slane %v11038_v37, %v12296_v33 }
 0x3a1   :  { %v1272_v48 = vmul.f32 %v1254_v34, %v12461_v17  ;;  %v1271_v60 = vmul.f32 %v1253_v26, %v12465_v6  ;;  %v1274_v38 = vmul.f32 %v1256_v1, %v12467_v53  ;;  %v1273_v5 = vmul.f32 %v1255_v55, %v12476_v14  ;;  %v12497_v27 = vpop.xlane.xlu1 %371 }
 0x3a2   :  { %v1275_v59 = vmul.f32 %v1257_v3, %v12482_v43  ;;  %v1276_v35 = vmul.f32 %v1258_v0, %v12490_v21  ;;  %v1277_v44 = vmul.f32 %v1259_v50, %v12497_v27  ;;  %v1260_v37 = vmul.f32 %v12341_v25, %v1204_v47 }
 0x3a3   :  { %1307 = vperm.xlu1 %10972, %v1272_v48   ;;  %1304 = vperm.xlu0 %10971, %v1271_v60  }
 0x3a5   :  { %v12511_v34 = vpop.xlane.xlu1 %374 }
 0x3a7   :  { %1313 = vperm.xlu0 %10971, %v1274_v38   ;;  %1310 = vperm.xlu1 %10972, %v1273_v5  }
 0x3a9   :  { %v12525_v3 = vpop.xlane.xlu1 %398 }
 0x3aa   :  { %15970 = vst [vmem:[#allocation33_spill] sm:$0xff] %v12525_v3 }
 0x3ab   :  { %1316 = vperm.xlu0 %10971, %v1275_v59   ;;  %v1168_v57 = vpop.xlane.xlu0 %1167 }
 0x3ac   :  { %11039 = vrcp.f32 %v1168_v57 }
 0x3af   :  { %1319 = vperm.xlu0 %10971, %v1276_v35   ;;  %v12500_v24 = vpop.xlane.xlu0 %383 }
 0x3b3   :  { %1322 = vperm.xlu0 %10971, %v1277_v44   ;;  %v12508_v54 = vpop.xlane.xlu0 %386  ;;  %v105_v44 = vld [vmem:[%s15776_s7 + $0x8] sm:$0xff] }
 0x3b6   :  { %v11040_v23 = vpop.eup %11039 }
 0x3b7   :  { %v1212_v32 = vrot.slane %v11040_v23, %v12270_v2  ;;  %v1208_v51 = vrot.slane %v11040_v23, %v12045_v18  ;;  %v1216_v52 = vrot.slane %v11040_v23, %v12273_v61  ;;  %v1236_v30 = vrot.slane %v11040_v23, %v12296_v33  ;;  %v12523_v5 = vpop.xlane.xlu0 %389 }
 0x3b8   :  { %v1220_v60 = vrot.slane %v11040_v23, %v12279_v4  ;;  %v1224_v38 = vrot.slane %v11040_v23, %v12291_v58  ;;  %v1228_v59 = vrot.slane %v11040_v23, %v12276_v19  ;;  %v1232_v40 = vrot.slane %v11040_v23, %v12285_v29  ;;  %v104_v23 = vld [vmem:[%s15776_s7] sm:$0xff] }
 0x3b9   :  { %v1262_v49 = vmul.f32 %v12357_v42, %v1212_v32  ;;  %v1261_v15 = vmul.f32 %v12348_v12, %v1208_v51  ;;  %v1263_v48 = vmul.f32 %v12361_v10, %v1216_v52  ;;  %v1278_v12 = vmul.f32 %v1260_v37, %v12511_v34  ;;  %v109_v51 = vld [vmem:[%s15776_s7 + $0x28] sm:$0xff]  ;;  %v111_v52 = vld [vmem:[%s15776_s7 + $0x38] sm:$0xff]  ;;  %v112_v37 = vld [vmem:[%s15776_s7 + $0x40] sm:$0xff] }
 0x3ba   :  { %v1268_v1 = vmul.f32 %v12350_v13, %v1236_v30  ;;  %v1264_v55 = vmul.f32 %v12364_v9, %v1220_v60  ;;  %v1265_v7 = vmul.f32 %v12367_v8, %v1224_v38  ;;  %v1266_v0 = vmul.f32 %v12370_v62, %v1228_v59  ;;  %v107_v62 = vld [vmem:[%s15776_s7 + $0x18] sm:$0xff]  ;;  %v110_v30 = vld [vmem:[%s15776_s7 + $0x30] sm:$0xff] }
 0x3bb   :  { %v1280_v26 = vmul.f32 %v1262_v49, %v12486_v39  ;;  %v1279_v20 = vmul.f32 %v1261_v15, %v12463_v45  ;;  %v1281_v42 = vmul.f32 %v1263_v48, %v12500_v24  ;;  %v12531_v13 = vpop.xlane.xlu0 %392  ;;  %v1267_v8 = vmul.f32 %v12373_v63, %v1232_v40  ;;  %v106_v63 = vld [vmem:[%s15776_s7 + $0x10] sm:$0xff]  ;;  %v108_v15 = vld [vmem:[%s15776_s7 + $0x20] sm:$0xff] }
 0x3bc   :  { %v1286_v25 = vmul.f32 %v1268_v1, %v12525_v3  ;;  %v1282_v10 = vmul.f32 %v1264_v55, %v12508_v54  ;;  %v1283_v9 = vmul.f32 %v1265_v7, %v12523_v5  ;;  %v1284_v57 = vmul.f32 %v1266_v0, %v12531_v13  ;;  %v119_v1 = vld [vmem:[%s15776_s7 + $0x78] sm:$0xff] }
 0x3bd   :  { %1331 = vperm.xlu1 %10972, %v1280_v26   ;;  %1328 = vperm.xlu0 %10971, %v1279_v20   ;;  %v12550_v32 = vpack.c.bf16 %v107_v62, %v105_v44  ;;  %v12561_v47 = vpack.c.bf16 %v106_v63, %v104_v23  ;;  %v12563_v49 = vpack.c.bf16 %v111_v52, %v109_v51  ;;  %v113_v26 = vld [vmem:[%s15776_s7 + $0x48] sm:$0xff]  ;;  %v115_v20 = vld [vmem:[%s15776_s7 + $0x58] sm:$0xff]  ;;  %v15979_v59 = vmov 0.0  }
 0x3be   :  { %v12580_v48 = vpack.c.bf16 %v110_v30, %v108_v15  ;;  %v12583_v60 = vpack.c.bf16 %v115_v20, %v113_v26 }
 0x3bf   :  { %v12537_v35 = vpop.xlane.xlu0 %395  ;;  %15971 = vst [vmem:[#allocation34_spill] sm:$0xff] %v12550_v32  ;;  %15972 = vst [vmem:[#allocation35_spill] sm:$0xff] %v12561_v47  ;;  %10613 = vmatprep.subr.bf16.mxu0 %v12550_v32  ;;  %10709 = vmatprep.subr.bf16.mxu1 %v12550_v32 }
 0x3c0   :  { %v1285_v50 = vmul.f32 %v1267_v8, %v12537_v35  ;;  %15973 = vst [vmem:[#allocation36_spill] sm:$0xff] %v12563_v49  ;;  %10615 = vmatpush1.bf16.msra.mxu0 %v12561_v47  ;;  %15974 = vst [vmem:[#allocation37_spill] sm:$0xff] %v12580_v48 }
 0x3c1   :  { %1325 = vperm.xlu0 %10971, %v1278_v12   ;;  %1334 = vperm.xlu1 %10972, %v1281_v42   ;;  %15975 = vst [vmem:[#allocation38_spill] sm:$0xff] %v12583_v60  ;;  %v114_v12 = vld [vmem:[%s15776_s7 + $0x50] sm:$0xff]  ;;  %v117_v42 = vld [vmem:[%s15776_s7 + $0x68] sm:$0xff] }
 0x3c2   :  { %10617 = vmatprep.subr.bf16.mxu0 %v12563_v49  ;;  %v12598_v55 = vpack.c.bf16 %v114_v12, %v112_v37  ;;  %v12601_v38 = vpack.c.bf16 %v119_v1, %v117_v42 }
 0x3c4   :  { %10619 = vmatpush1.bf16.msra.mxu0 %v12580_v48  ;;  %15976 = vst [vmem:[#allocation39_spill] sm:$0xff] %v12598_v55  ;;  %15977 = vst [vmem:[#allocation40_spill] sm:$0xff] %v12601_v38 }
 0x3c5   :  { %1349 = vperm.xlu0 %10971, %v1286_v25   ;;  %1337 = vperm.xlu1 %10972, %v1282_v10   ;;  %v116_v25 = vld [vmem:[%s15776_s7 + $0x60] sm:$0xff]  ;;  %v118_v10 = vld [vmem:[%s15776_s7 + $0x70] sm:$0xff] }
 0x3c6   :  { %10621 = vmatprep.subr.bf16.mxu0 %v12583_v60  ;;  %v12610_v7 = vpack.c.bf16 %v118_v10, %v116_v25 }
 0x3c8   :  { %10623 = vmatpush1.bf16.msra.mxu0 %v12598_v55  ;;  %15978 = vst [vmem:[#allocation41_spill] sm:$0xff] %v12610_v7 }
 0x3c9   :  { %1340 = vperm.xlu1 %10972, %v1283_v9   ;;  %10625 = vmatprep.subr.bf16.mxu0 %v12601_v38 }
 0x3cc   :  { %10627 = vmatpush1.bf16.msra.mxu0 %v12610_v7 }
 0x3cd   :  { %1343 = vperm.xlu1 %10972, %v1284_v57   ;;  %10661 = vmatprep.subr.bf16.mxu0 %v12550_v32 }
 0x3cf   :  { %1542 = vmatmul.mubr.f32.vlgmr.msra.gmra.mrb[16].mxu0 %v15979_v59 }
 0x3d0   :  { %1547 = vmatprep.mubr.f32.mxu0 %v15979_v59  ;;  %10663 = vmatpush1.bf16.msra.mxu0 %v12561_v47 }
 0x3d1   :  { %1346 = vperm.xlu1 %10972, %v1285_v50   ;;  %10665 = vmatprep.subr.bf16.mxu0 %v12563_v49 }
 0x3d3   :  { %1548 = vmatmul.mubr.f32.gmra.mrb[18].mxu0 %v15979_v59 }
 0x3d4   :  { %10667 = vmatpush1.bf16.msra.mxu0 %v12580_v48  ;;  %2698 = vmatprep.mubr.f32.mxu0 %v15979_v59 }
 0x3d5   :  { %10669 = vmatprep.subr.bf16.mxu0 %v12583_v60 }
 0x3d8   :  { %10671 = vmatpush1.bf16.msra.mxu0 %v12598_v55 }
 0x3d9   :  { %10673 = vmatprep.subr.bf16.mxu0 %v12601_v38 }
 0x3dc   :  { %10675 = vmatpush1.bf16.msra.mxu0 %v12610_v7 }
 0x3dd   :  { %10677 = vmatprep.subr.bf16.mxu0 %v11821_v11 }
 0x422   :  { %v1305_v9 = vpop.permute.xlu0 %1304  ;;  %v1308_v57 = vpop.permute.xlu1 %1307 }
 0x423   :  { %v1358_v44 = vrot.slane %v1308_v57, %v12209_v56  ;;  %v1354_v62 = vrot.slane %v1305_v9, %v12209_v56 }
 0x425   :  { %v1415_v51 = vsel %vm859_vm1, %v1358_v44, %v1354_v62 }
 0x426   :  { %v1314_v0 = vpop.permute.xlu0 %1313  ;;  %v1311_v50 = vpop.permute.xlu1 %1310 }
 0x427   :  { %v1362_v23 = vrot.slane %v1311_v50, %v12209_v56  ;;  %v1366_v52 = vrot.slane %v1314_v0, %v12209_v56 }
 0x429   :  { %v1416_v15 = vsel %vm861_vm2, %v1362_v23, %v1415_v51 }
 0x42a   :  { %v1317_v40 = vpop.permute.xlu0 %1316  ;;  %v1417_v42 = vsel %vm863_vm3, %v1366_v52, %v1416_v15 }
 0x42b   :  { %v1370_v30 = vrot.slane %v1317_v40, %v12209_v56 }
 0x42d   :  { %v1418_v1 = vsel %vm865_vm4, %v1370_v30, %v1417_v42 }
 0x42e   :  { %v1320_v8 = vpop.permute.xlu0 %1319 }
 0x42f   :  { %v1374_v37 = vrot.slane %v1320_v8, %v12209_v56 }
 0x431   :  { %v1419_v0 = vsel %vm867_vm5, %v1374_v37, %v1418_v1 }
 0x432   :  { %v1323_v63 = vpop.permute.xlu0 %1322 }
 0x433   :  { %v1378_v12 = vrot.slane %v1323_v63, %v12209_v56 }
 0x435   :  { %v1420_v57 = vsel %vm869_vm6, %v1378_v12, %v1419_v0 }
 0x43c   :  { %v1332_v26 = vpop.permute.xlu1 %1331  ;;  %v1329_v20 = vpop.permute.xlu0 %1328 }
 0x43d   :  { %v1390_v62 = vrot.slane %v1332_v26, %v12209_v56  ;;  %v1386_v23 = vrot.slane %v1329_v20, %v12209_v56 }
 0x43f   :  { %v1422_v30 = vsel %vm859_vm1, %v1390_v62, %v1386_v23  ;;  %v10042_v62 = vld [vmem:[#allocation3] ss:$0 sm:$0xff] }
 0x440   :  { %v1335_v25 = vpop.permute.xlu1 %1334  ;;  %v1326_v10 = vpop.permute.xlu0 %1325 }
 0x441   :  { %v1382_v9 = vrot.slane %v1326_v10, %v12209_v56  ;;  %v1394_v63 = vrot.slane %v1335_v25, %v12209_v56 }
 0x443   :  { %v1421_v40 = vsel %vm871_vm7, %v1382_v9, %v1420_v57  ;;  %v1423_v12 = vsel %vm861_vm2, %v1394_v63, %v1422_v30 }
 0x444   :  { %v1338_v50 = vpop.permute.xlu1 %1337  ;;  %v1431_v44 = vsel %vm882_vm8, %v1421_v40, 0.0  ;;  %v1350_v42 = vpop.permute.xlu0 %1349 }
 0x445   :  { %1432 = vadd.xlane.f32.xlu1 %v1431_v44  ;;  %v1398_v51 = vrot.slane %v1338_v50, %v12209_v56  ;;  %v1414_v25 = vrot.slane %v1350_v42, %v12209_v56  ;;  %v10044_v50 = vld [vmem:[#allocation2] ss:$0 sm:$0xff] }
 0x446   :  { %v1269_v44 = vld [vmem:[%s15770_s1] sm:$0xff] }
 0x447   :  { %v1424_v1 = vsel %vm863_vm3, %v1398_v51, %v1423_v12 }
 0x448   :  { %v1341_v8 = vpop.permute.xlu1 %1340 }
 0x449   :  { %v1402_v15 = vrot.slane %v1341_v8, %v12209_v56  ;;  %v1443_v8 = vmul.f32 %v10044_v50, %v1269_v44 }
 0x44b   :  { %v1425_v26 = vsel %vm865_vm4, %v1402_v15, %v1424_v1  ;;  %v1270_v15 = vld [vmem:[%s15770_s1 + $0x8] sm:$0xff] }
 0x44c   :  { %v1344_v52 = vpop.permute.xlu1 %1343  ;;  %v1444_v30 = vmul.f32 %v10044_v50, %v1270_v15 }
 0x44d   :  { %v1406_v37 = vrot.slane %v1344_v52, %v12209_v56 }
 0x44f   :  { %v1426_v9 = vsel %vm867_vm5, %v1406_v37, %v1425_v26 }
 0x450   :  { %v1347_v10 = vpop.permute.xlu1 %1346 }
 0x451   :  { %v1410_v20 = vrot.slane %v1347_v10, %v12209_v56 }
 0x453   :  { %v1427_v0 = vsel %vm869_vm6, %v1410_v20, %v1426_v9  ;;  %v103_v20 = vld [vmem:[%s15775_s6] sm:$0x3]  ;;  %s11712_s6 = smov 64  }
 0x454   :  { %v1428_v57 = vsel %vm871_vm7, %v1414_v25, %v1427_v0  ;;  %v12669_v25 = vrot.slane %v103_v20, %v12045_v18  ;;  %v12672_v9 = vrot.slane %v103_v20, %v12270_v2  ;;  %v400_v0 = vld [vmem:[%s15777_s8] sm:$0x3] }
 0x455   :  { %v1434_v40 = vsel %vm882_vm8, %v1428_v57, 0.0 }
 0x456   :  { %1435 = vadd.xlane.f32.xlu0 %v1434_v40  ;;  %15980 = vst [vmem:[#allocation42_spill] sm:$0xff] %v12669_v25  ;;  %15981 = vst [vmem:[#allocation43_spill] sm:$0xff] %v12672_v9  ;;  %v12678_v40 = vrot.slane %v400_v0, %v12045_v18 }
 0x458   :  { %15982 = vst [vmem:[#allocation44_spill] sm:$0xff] %v12678_v40 }
 0x4a2   :  { %v1543_v52 = vpop.f32.mrb[16].mxu0 }
 0x4a3   :  { %v1545_v37 = vpop.f32.mrb[17].mxu0 }
 0x4a6   :  { %v1549_v10 = vpop.f32.mrb[18].mxu0 }
 0x4a7   :  { %v1551_v26 = vpop.f32.mrb[19].mxu0 }
 0x4d2   :  { %v1433_v23 = vpop.xlane.xlu1 %1432 }
 0x4d3   :  { %v1445_v63 = vadd.f32 %v1443_v8, %v1433_v23  ;;  %v12684_v23 = vrot.slane %v400_v0, %v12270_v2 }
 0x4d5   :  { %v1447_v51 = vadd.f32 %v10042_v62, %v1445_v63  ;;  %15983 = vst [vmem:[#allocation45_spill] sm:$0xff] %v12684_v23 }
 0x4d7   :  { %1451 = vperm.xlu0 %10971, %v1447_v51  }
 0x4e3   :  { %v1436_v12 = vpop.xlane.xlu0 %1435 }
 0x4e4   :  { %v1446_v42 = vadd.f32 %v1444_v30, %v1436_v12 }
 0x4e6   :  { %v1448_v1 = vadd.f32 %v10042_v62, %v1446_v42 }
 0x4e8   :  { %1456 = vperm.xlu1 %10972, %v1448_v1  }
 0x556   :  { %v1452_v57 = vpop.permute.xlu0 %1451 }
 0x557   :  { %v1470_v50 = vmul.f32 %v12669_v25, %v1452_v57  ;;  %v1471_v44 = vmul.f32 %v12672_v9, %v1452_v57 }
 0x559   :  { %v1554_v8 = vadd.f32 %v1543_v52, %v1470_v50  ;;  %v1555_v63 = vadd.f32 %v1545_v37, %v1471_v44 }
 0x55b   :  { %v1558_v62 = vadd.f32 %v1554_v8, %v12678_v40  ;;  %v1559_v15 = vadd.f32 %v1555_v63, %v12684_v23 }
 0x55d   :  { %v1562_v51 = vmul.f32 0.5, %v1558_v62 }
 0x55f   :  { %11041 = vtanh.f32 %v1562_v51 }
 0x560   :  { %11043 = vtanh.f32 %v1559_v15 }
 0x567   :  { %v1457_v30 = vpop.permute.xlu1 %1456 }
 0x568   :  { %v1472_v12 = vmul.f32 %v12669_v25, %v1457_v30  ;;  %v1473_v42 = vmul.f32 %v12672_v9, %v1457_v30 }
 0x569   :  { %v11042_v1 = vpop.eup %11041 }
 0x56a   :  { %v1566_v20 = vadd.f32 1.0, %v11042_v1  ;;  %v1556_v57 = vadd.f32 %v1549_v10, %v1472_v12  ;;  %v1557_v50 = vadd.f32 %v1551_v26, %v1473_v42  ;;  %v11044_v0 = vpop.eup %11043  ;;  %v1572_v10 = vmul.f32 0.5, %v1559_v15 }
 0x56c   :  { %v1560_v52 = vadd.f32 %v1556_v57, %v12678_v40  ;;  %v1568_v8 = vmul.f32 0.5, %v1566_v20  ;;  %v1561_v44 = vadd.f32 %v1557_v50, %v12684_v23 }
 0x56e   :  { %v1563_v3 = vmul.f32 0.5, %v1560_v52  ;;  %v1582_v37 = vmul.f32 %v11044_v0, %v1568_v8  ;;  %v1580_v26 = vmul.f32 0.0, %v1568_v8  ;;  %v1573_v20 = vmul.f32 0.5, %v1561_v44 }
 0x570   :  { %11045 = vtanh.f32 %v1563_v3  ;;  %1586 = vrot.lane.b32.xlu1 %v1582_v37, %s11712_s6 }
 0x571   :  { %11047 = vtanh.f32 %v1561_v44 }
 0x572   :  { %11049 = vtanh.f32 %v1572_v10 }
 0x57a   :  { %v11046_v62 = vpop.eup %11045 }
 0x57b   :  { %v1567_v63 = vadd.f32 1.0, %v11046_v62  ;;  %v11048_v30 = vpop.eup %11047 }
 0x57c   :  { %v11050_v3 = vpop.eup %11049 }
 0x57d   :  { %v1569_v51 = vmul.f32 0.5, %v1567_v63  ;;  %v1576_v57 = vadd.f32 1.0, %v11050_v3 }
 0x57f   :  { %v1583_v1 = vmul.f32 %v11048_v30, %v1569_v51  ;;  %v1578_v52 = vmul.f32 0.5, %v1576_v57  ;;  %v1581_v37 = vmul.f32 0.0, %v1569_v51 }
 0x581   :  { %1588 = vrot.lane.b32.xlu0 %v1583_v1, %s11712_s6 }
 0x5e2   :  { %v1587_v12 = vpop.permute.xlu1 %1586 }
 0x5e3   :  { %v12693_v42 = vadd.f32 %v1587_v12, %v1580_v26 }
 0x5e5   :  { %15984 = vst [vmem:[#allocation46_spill] sm:$0xff] %v12693_v42  ;;  %11051 = vtanh.f32 %v12693_v42 }
 0x5e6   :  { %11053 = vtanh.f32 %v1573_v20 }
 0x5ef   :  { %v11052_v50 = vpop.eup %11051 }
 0x5f0   :  { %v1596_v0 = vmul.f32 %v11052_v50, %v1578_v52  ;;  %v11054_v15 = vpop.eup %11053 }
 0x5f1   :  { %v1577_v8 = vadd.f32 1.0, %v11054_v15 }
 0x5f2   :  { %1600 = vrot.lane.b32.xlu1 %v1596_v0, %s11712_s6 }
 0x5f3   :  { %v1589_v62 = vpop.permute.xlu0 %1588  ;;  %v1579_v30 = vmul.f32 0.5, %v1577_v8 }
 0x5f4   :  { %v12697_v63 = vadd.f32 %v1589_v62, %v1581_v37  ;;  %v15990_v37 = vld [vmem:[#allocation16_spill] sm:$0xff] }
 0x5f6   :  { %15985 = vst [vmem:[#allocation47_spill] sm:$0xff] %v12697_v63  ;;  %11055 = vtanh.f32 %v12697_v63 }
 0x600   :  { %v11056_v1 = vpop.eup %11055 }
 0x601   :  { %v1597_v10 = vmul.f32 %v11056_v1, %v1579_v30 }
 0x603   :  { %1602 = vrot.lane.b32.xlu0 %v1597_v10, %s11712_s6 }
 0x664   :  { %v1601_v44 = vpop.permute.xlu1 %1600 }
 0x665   :  { %10047 = vmatmul.mubr.msk.f32.vlgmr.msra.gmra.mrb[20].mxu0 %vm135_vm0, %v1601_v44  ;;  %v1606_v26 = vsel %vm135_vm0, %v1601_v44, %v12693_v42 }
 0x666   :  { %10351 = vmatprep.mubr.f32.mxu1 %v1606_v26  ;;  %2704 = vmatprep.mubr.f32.mxu0 %v15979_v59 }
 0x667   :  { %10679 = vmatpush3.bf16.msra.mxu0 %v11821_v11 }
 0x668   :  { %10681 = vmatprep.subr.bf16.mxu0 %v11829_v16 }
 0x66b   :  { %10683 = vmatpush3.bf16.msra.mxu0 %v11829_v16 }
 0x66c   :  { %10685 = vmatprep.subr.bf16.mxu0 %v11845_v22 }
 0x66f   :  { %10687 = vmatpush3.bf16.msra.mxu0 %v11845_v22  ;;  %v15998_v22 = vld [vmem:[#allocation22_spill] sm:$0xff] }
 0x670   :  { %10689 = vmatprep.subr.bf16.mxu0 %v11857_v28 }
 0x673   :  { %10691 = vmatpush3.bf16.msra.mxu0 %v11857_v28  ;;  %v15994_v28 = vld [vmem:[#allocation28_spill] sm:$0xff] }
 0x674   :  { %10693 = vmatprep.subr.bf16.mxu0 %v11867_v31 }
 0x675   :  { %v1603_v51 = vpop.permute.xlu0 %1602 }
 0x676   :  { %10048 = vmatmul.mubr.msk.f32.gmra.mrb[22].mxu0 %vm135_vm0, %v1603_v51  ;;  %v1607_v12 = vsel %vm135_vm0, %v1603_v51, %v12697_v63 }
 0x677   :  { %10352 = vmatmul.mubr.f32.vlgmr.msra.gmra.mrb[2].mxu1 %v1607_v12  ;;  %10695 = vmatpush3.bf16.msra.mxu0 %v11867_v31  ;;  %v15992_v31 = vld [vmem:[#allocation21_spill] sm:$0xff] }
 0x678   :  { %10711 = vmatpush1.bf16.msra.mxu1 %v12561_v47  ;;  %10697 = vmatprep.subr.bf16.mxu0 %v11887_v36 }
 0x679   :  { %10713 = vmatprep.subr.bf16.mxu1 %v12563_v49  ;;  %3855 = vmatprep.mubr.f32.mxu1 %v15979_v59 }
 0x67b   :  { %10699 = vmatpush3.bf16.msra.mxu0 %v11887_v36  ;;  %v15991_v36 = vld [vmem:[#allocation19_spill] sm:$0xff] }
 0x67c   :  { %10715 = vmatpush1.bf16.msra.mxu1 %v12580_v48  ;;  %10701 = vmatprep.subr.bf16.mxu0 %v11911_v41 }
 0x67d   :  { %10717 = vmatprep.subr.bf16.mxu1 %v12583_v60 }
 0x67f   :  { %10703 = vmatpush3.bf16.msra.mxu0 %v11911_v41 }
 0x680   :  { %10719 = vmatpush1.bf16.msra.mxu1 %v12598_v55  ;;  %10705 = vmatprep.subr.bf16.mxu0 %v11935_v46  ;;  %v15993_v55 = vld [vmem:[#allocation20_spill] sm:$0xff] }
 0x681   :  { %10721 = vmatprep.subr.bf16.mxu1 %v12601_v38 }
 0x683   :  { %10707 = vmatpush3.bf16.msra.mxu0 %v11935_v46 }
 0x684   :  { %10723 = vmatpush1.bf16.msra.mxu1 %v12610_v7  ;;  %10757 = vmatprep.subr.bf16.mxu0 %v12550_v32 }
 0x685   :  { %10725 = vmatprep.subr.bf16.mxu1 %v11821_v11 }
 0x738   :  { %v12733_v3 = vpop.f32.mrb[20].mxu0 }
 0x739   :  { %15986 = vst [vmem:[#allocation48_spill] sm:$0xff] %v12733_v3  ;;  %v12735_v20 = vpop.f32.mrb[21].mxu0 }
 0x73a   :  { %15987 = vst [vmem:[#allocation49_spill] sm:$0xff] %v12735_v20 }
 0x749   :  { %v12737_v57 = vpop.f32.mrb[22].mxu0 }
 0x74a   :  { %15988 = vst [vmem:[#allocation50_spill] sm:$0xff] %v12737_v57  ;;  %v10353_v52 = vpop.f32.mrb[2].mxu1  ;;  %v12739_v50 = vpop.f32.mrb[23].mxu0 }
 0x74b   :  { %15989 = vst [vmem:[#allocation51_spill] sm:$0xff] %v12739_v50  ;;  %v1734_v0 = vcombine.high %v10353_v52, %v10353_v52  ;;  %v1741_v62 = vrot.slane %v10353_v52, %v15990_v37  ;;  %v1674_v15 = vpop.f32.mrb[3].mxu1 }
 0x74c   :  { %v1685_v8 = vcombine.high %v1674_v15, %v1674_v15  ;;  %v1692_v30 = vrot.slane %v1674_v15, %v15990_v37 }
 0x74d   :  { %v1748_v1 = vrot.slane %v1734_v0, %v15990_v37  ;;  %v1749_v10 = vcombine.high %v1741_v62, %v1741_v62  ;;  %v1757_v44 = vrot.slane %v1741_v62, %v15990_v37 }
 0x74e   :  { %v1700_v26 = vcombine.high %v1692_v30, %v1692_v30  ;;  %v1699_v52 = vrot.slane %v1685_v8, %v15990_v37  ;;  %v1708_v15 = vrot.slane %v1692_v30, %v15990_v37 }
 0x74f   :  { %v12746_v51 = vrot.slane %v1748_v1, %v15990_v37  ;;  %v1771_v12 = vrot.slane %v1749_v10, %v15990_v37  ;;  %v1779_v32 = vcombine.high %v1757_v44, %v1757_v44  ;;  %v1818_v46 = vrot.slane %v1757_v44, %v12045_v18 }
 0x750   :  { %v1722_v38 = vrot.slane %v1700_v26, %v15990_v37  ;;  %v1701_v44 = vcombine.high %v1699_v52, %v1699_v52  ;;  %v1715_v8 = vrot.slane %v1699_v52, %v15990_v37  ;;  %v1730_v30 = vcombine.high %v1708_v15, %v1708_v15 }
 0x751   :  { %v1822_v41 = vrot.slane %v1771_v12, %v12045_v18  ;;  %v1826_v0 = vrot.slane %v1779_v32, %v12045_v18  ;;  %v1834_v62 = vrot.slane %v12746_v51, %v12045_v18  ;;  %v1871_v7 = vadd.f32 %v1818_v46, %v15991_v36 }
 0x752   :  { %v1732_v32 = vcombine.high %v1722_v38, %v1722_v38  ;;  %v1786_v49 = vrot.slane %v1708_v15, %v12045_v18  ;;  %v1729_v46 = vrot.slane %v1701_v44, %v15990_v37  ;;  %v1790_v26 = vrot.slane %v1722_v38, %v12045_v18 }
 0x753   :  { %v1872_v10 = vadd.f32 %v1822_v41, %v15992_v31  ;;  %v1873_v60 = vadd.f32 %v1826_v0, %v15993_v55  ;;  %11057 = vtanh.f32 %v1871_v7  ;;  %v1875_v48 = vadd.f32 %v1834_v62, %v15994_v28  ;;  %v15995_v62 = vld [vmem:[#allocation17_spill] sm:$0xff]  ;;  %v15996_v28 = vld [vmem:[#allocation23_spill] sm:$0xff] }
 0x754   :  { %v1798_v41 = vrot.slane %v1732_v32, %v12045_v18  ;;  %v1750_v31 = vcombine.high %v1748_v1, %v1748_v1  ;;  %v1781_v0 = vcombine.high %v1771_v12, %v1771_v12  ;;  %v1802_v7 = vrot.slane %v1715_v8, %v12045_v18 }
 0x755   :  { %11059 = vtanh.f32 %v1872_v10  ;;  %v1794_v52 = vrot.slane %v1730_v30, %v12045_v18  ;;  %v1863_v10 = vadd.f32 %v1786_v49, %v15995_v62  ;;  %v1864_v55 = vadd.f32 %v1790_v26, %v15996_v28  ;;  %v12779_v49 = vld [vmem:[%s15774_s5] ss:$0 sm:$0xff] }
 0x756   :  { %11061 = vtanh.f32 %v1873_v60  ;;  %v15997_v60 = vld [vmem:[#allocation25_spill] sm:$0xff]  ;;  %v1731_v15 = vcombine.high %v1715_v8, %v1715_v8  ;;  %v1806_v44 = vrot.slane %v1729_v46, %v12045_v18  ;;  %v1867_v38 = vadd.f32 %v1802_v7, %v15998_v22  ;;  %v16000_v7 = vld [vmem:[#allocation27_spill] sm:$0xff] }
 0x757   :  { %11063 = vtanh.f32 %v1875_v48  ;;  %v1866_v36 = vadd.f32 %v1798_v41, %v15997_v60  ;;  %v1778_v1 = vrot.slane %v1750_v31, %v15990_v37  ;;  %v1830_v12 = vrot.slane %v1781_v0, %v12045_v18  ;;  %v15999_v48 = vld [vmem:[#allocation18_spill] sm:$0xff] }
 0x758   :  { %11065 = vtanh.f32 %v1863_v10  ;;  %v1865_v47 = vadd.f32 %v1794_v52, %v15999_v48  ;;  %v1733_v26 = vcombine.high %v1729_v46, %v1729_v46  ;;  %v1810_v41 = vrot.slane %v1731_v15, %v12045_v18  ;;  %v16001_v48 = vld [vmem:[#allocation24_spill] sm:$0xff]  ;;  %v16003_v60 = vld [vmem:[#allocation26_spill] sm:$0xff] }
 0x759   :  { %11067 = vtanh.f32 %v1864_v55  ;;  %v1868_v10 = vadd.f32 %v1806_v44, %v16000_v7  ;;  %v1838_v52 = vrot.slane %v1778_v1, %v12045_v18  ;;  %v1874_v22 = vadd.f32 %v1830_v12, %v16001_v48 }
 0x75a   :  { %11069 = vtanh.f32 %v1866_v36  ;;  %v1780_v36 = vcombine.high %v12746_v51, %v12746_v51 }
 0x75b   :  { %11071 = vtanh.f32 %v1867_v38  ;;  %v1782_v38 = vcombine.high %v1778_v1, %v1778_v1  ;;  %v1876_v28 = vadd.f32 %v1838_v52, %v16003_v60 }
 0x75c   :  { %11073 = vtanh.f32 %v1865_v47  ;;  %v1842_v51 = vrot.slane %v1780_v36, %v12045_v18 }
 0x75d   :  { %v11058_v32 = vpop.eup %11057  ;;  %11075 = vtanh.f32 %v1868_v10  ;;  %v1846_v1 = vrot.slane %v1782_v38, %v12045_v18  ;;  %v16006_v38 = vld [vmem:[#allocation32_spill] sm:$0xff] }
 0x75e   :  { %v1903_v8 = vmul.f32 %v12779_v49, %v11058_v32  ;;  %v1814_v32 = vrot.slane %v1733_v26, %v12045_v18  ;;  %11077 = vtanh.f32 %v1874_v22  ;;  %v16004_v26 = vld [vmem:[#allocation31_spill] sm:$0xff] }
 0x75f   :  { %v11060_v30 = vpop.eup %11059  ;;  %v1878_v60 = vadd.f32 %v1846_v1, %v16006_v38 }
 0x760   :  { %v11062_v31 = vpop.eup %11061  ;;  %v1935_v0 = vsel %vm135_vm0, %v1903_v8, 0.0  ;;  %v1904_v55 = vmul.f32 %v12779_v49, %v11060_v30  ;;  %v16002_v8 = vld [vmem:[#allocation29_spill] sm:$0xff] }
 0x761   :  { %1936 = vadd.xlane.f32.xlu1 %v1935_v0  ;;  %v1905_v15 = vmul.f32 %v12779_v49, %v11062_v31  ;;  %v11064_v44 = vpop.eup %11063  ;;  %v1869_v7 = vadd.f32 %v1810_v41, %v16002_v8 }
 0x762   :  { %v1938_v46 = vsel %vm135_vm0, %v1904_v55, 0.0  ;;  %v11066_v30 = vpop.eup %11065  ;;  %v1907_v31 = vmul.f32 %v12779_v49, %v11064_v44  ;;  %v1870_v55 = vadd.f32 %v1814_v32, %v16004_v26 }
 0x763   :  { %1939 = vadd.xlane.f32.xlu0 %v1938_v46  ;;  %v1895_v47 = vmul.f32 %v12779_v49, %v11066_v30  ;;  %v1941_v12 = vsel %vm135_vm0, %v1905_v15, 0.0  ;;  %v11068_v0 = vpop.eup %11067  ;;  %11079 = vtanh.f32 %v1869_v7  ;;  %v16005_v46 = vld [vmem:[#allocation30_spill] sm:$0xff] }
 0x764   :  { %v11070_v41 = vpop.eup %11069  ;;  %v1877_v52 = vadd.f32 %v1842_v51, %v16005_v46  ;;  %11081 = vtanh.f32 %v1876_v28  ;;  %v1947_v15 = vsel %vm135_vm0, %v1907_v31, 0.0  ;;  %v1896_v44 = vmul.f32 %v12779_v49, %v11068_v0 }
 0x765   :  { %v1911_v10 = vsel %vm135_vm0, %v1895_v47, 0.0  ;;  %v11072_v36 = vpop.eup %11071  ;;  %11083 = vtanh.f32 %v1870_v55  ;;  %v1898_v32 = vmul.f32 %v12779_v49, %v11070_v41 }
 0x766   :  { %1912 = vadd.xlane.f32.xlu1 %v1911_v10  ;;  %v1899_v22 = vmul.f32 %v12779_v49, %v11072_v36  ;;  %v11074_v30 = vpop.eup %11073  ;;  %11085 = vtanh.f32 %v1877_v52  ;;  %v1914_v28 = vsel %vm135_vm0, %v1896_v44, 0.0 }
 0x767   :  { %1942 = vadd.xlane.f32.xlu0 %v1941_v12  ;;  %v11076_v47 = vpop.eup %11075  ;;  %v1897_v51 = vmul.f32 %v12779_v49, %v11074_v30  ;;  %11087 = vtanh.f32 %v1878_v60  ;;  %v1920_v31 = vsel %vm135_vm0, %v1898_v32, 0.0 }
 0x768   :  { %v1923_v7 = vsel %vm135_vm0, %v1899_v22, 0.0  ;;  %v11078_v12 = vpop.eup %11077  ;;  %v1900_v0 = vmul.f32 %v12779_v49, %v11076_v47 }
 0x769   :  { %v1917_v55 = vsel %vm135_vm0, %v1897_v51, 0.0  ;;  %v1906_v41 = vmul.f32 %v12779_v49, %v11078_v12 }
 0x76a   :  { %1924 = vadd.xlane.f32.xlu1 %v1923_v7  ;;  %v1926_v36 = vsel %vm135_vm0, %v1900_v0, 0.0 }
 0x76b   :  { %1948 = vadd.xlane.f32.xlu0 %v1947_v15  ;;  %v1944_v60 = vsel %vm135_vm0, %v1906_v41, 0.0 }
 0x76d   :  { %v11080_v1 = vpop.eup %11079 }
 0x76e   :  { %1921 = vadd.xlane.f32.xlu1 %v1920_v31  ;;  %v11082_v10 = vpop.eup %11081  ;;  %v1901_v52 = vmul.f32 %v12779_v49, %v11080_v1 }
 0x76f   :  { %1915 = vadd.xlane.f32.xlu0 %v1914_v28  ;;  %v11084_v22 = vpop.eup %11083  ;;  %v1908_v15 = vmul.f32 %v12779_v49, %v11082_v10 }
 0x770   :  { %v11086_v44 = vpop.eup %11085  ;;  %v1929_v30 = vsel %vm135_vm0, %v1901_v52, 0.0  ;;  %v1902_v7 = vmul.f32 %v12779_v49, %v11084_v22 }
 0x771   :  { %v11088_v32 = vpop.eup %11087  ;;  %v1950_v47 = vsel %vm135_vm0, %v1908_v15, 0.0  ;;  %v1909_v28 = vmul.f32 %v12779_v49, %v11086_v44 }
 0x772   :  { %1927 = vadd.xlane.f32.xlu1 %v1926_v36  ;;  %v1932_v51 = vsel %vm135_vm0, %v1902_v7, 0.0  ;;  %v1910_v12 = vmul.f32 %v12779_v49, %v11088_v32 }
 0x773   :  { %1918 = vadd.xlane.f32.xlu0 %v1917_v55  ;;  %v1953_v31 = vsel %vm135_vm0, %v1909_v28, 0.0 }
 0x774   :  { %v1956_v0 = vsel %vm135_vm0, %v1910_v12, 0.0 }
 0x776   :  { %1930 = vadd.xlane.f32.xlu1 %v1929_v30 }
 0x777   :  { %1945 = vadd.xlane.f32.xlu0 %v1944_v60 }
 0x77a   :  { %1933 = vadd.xlane.f32.xlu1 %v1932_v51 }
 0x77b   :  { %1951 = vadd.xlane.f32.xlu0 %v1950_v47 }
 0x77e   :  { %1957 = vadd.xlane.f32.xlu1 %v1956_v0 }
 0x77f   :  { %1954 = vadd.xlane.f32.xlu0 %v1953_v31 }
 0x7ee   :  { %v1937_v1 = vpop.xlane.xlu1 %1936 }
 0x7f0   :  { %v1940_v55 = vpop.xlane.xlu0 %1939 }
 0x7f1   :  { %v2014_v12 = vrot.slane %v1940_v55, %v12209_v56 }
 0x7f3   :  { %v12827_v10 = vpop.xlane.xlu1 %1912 }
 0x7f4   :  { %v1943_v41 = vpop.xlane.xlu0 %1942  ;;  %v1978_v15 = vrot.slane %v12827_v10, %v12209_v56 }
 0x7f5   :  { %v2018_v38 = vrot.slane %v1943_v41, %v12209_v56 }
 0x7f7   :  { %v12831_v52 = vpop.xlane.xlu1 %1924 }
 0x7f8   :  { %v12829_v36 = vpop.xlane.xlu0 %1948  ;;  %v1994_v28 = vrot.slane %v12831_v52, %v12209_v56 }
 0x7fb   :  { %v12835_v60 = vpop.xlane.xlu1 %1921 }
 0x7fc   :  { %v12833_v22 = vpop.xlane.xlu0 %1915  ;;  %v1990_v7 = vrot.slane %v12835_v60, %v12209_v56 }
 0x7fd   :  { %v1982_v49 = vrot.slane %v12833_v22, %v12209_v56 }
 0x7ff   :  { %v2039_v32 = vsel %vm859_vm1, %v1982_v49, %v1978_v15  ;;  %v12848_v47 = vpop.xlane.xlu1 %1927  ;;  %v2010_v49 = vrot.slane %v1937_v1, %v12209_v56 }
 0x800   :  { %v12841_v44 = vpop.xlane.xlu0 %1918  ;;  %v1998_v46 = vrot.slane %v12848_v47, %v12209_v56 }
 0x801   :  { %v1986_v30 = vrot.slane %v12841_v44, %v12209_v56 }
 0x803   :  { %v2040_v51 = vsel %vm861_vm2, %v1986_v30, %v2039_v32  ;;  %v12860_v15 = vpop.xlane.xlu1 %1930  ;;  %v2046_v32 = vsel %vm859_vm1, %v2014_v12, %v2010_v49 }
 0x804   :  { %v2041_v31 = vsel %vm863_vm3, %v1990_v7, %v2040_v51  ;;  %v1946_v0 = vpop.xlane.xlu0 %1945  ;;  %v2002_v7 = vrot.slane %v12860_v15, %v12209_v56  ;;  %v2047_v48 = vsel %vm861_vm2, %v2018_v38, %v2046_v32 }
 0x805   :  { %v2042_v26 = vsel %vm865_vm4, %v1994_v28, %v2041_v31  ;;  %v2022_v8 = vrot.slane %v1946_v0, %v12209_v56 }
 0x806   :  { %v2043_v30 = vsel %vm867_vm5, %v1998_v46, %v2042_v26  ;;  %v2026_v26 = vrot.slane %v12829_v36, %v12209_v56 }
 0x807   :  { %v2048_v62 = vsel %vm863_vm3, %v2022_v8, %v2047_v48  ;;  %v12871_v28 = vpop.xlane.xlu1 %1933  ;;  %v2044_v37 = vsel %vm869_vm6, %v2002_v7, %v2043_v30 }
 0x808   :  { %v12867_v51 = vpop.xlane.xlu0 %1951  ;;  %v2006_v46 = vrot.slane %v12871_v28, %v12209_v56  ;;  %v2049_v8 = vsel %vm865_vm4, %v2026_v26, %v2048_v62 }
 0x809   :  { %v2030_v31 = vrot.slane %v12867_v51, %v12209_v56 }
 0x80a   :  { %v2045_v49 = vsel %vm871_vm7, %v2006_v46, %v2044_v37 }
 0x80b   :  { %v12886_v38 = vpop.xlane.xlu1 %1957  ;;  %v2055_v32 = vsel %vm882_vm8, %v2045_v49, -inf  ;;  %v2050_v30 = vsel %vm867_vm5, %v2030_v31, %v2049_v8 }
 0x80c   :  { %v12880_v12 = vpop.xlane.xlu0 %1954  ;;  %v2038_v7 = vrot.slane %v12886_v38, %v12209_v56  ;;  %2056 = vmax.xlane.f32.xlu0 %v2055_v32 }
 0x80d   :  { %v2034_v48 = vrot.slane %v12880_v12, %v12209_v56 }
 0x80f   :  { %v2051_v16 = vsel %vm869_vm6, %v2034_v48, %v2050_v30 }
 0x810   :  { %v2052_v11 = vsel %vm871_vm7, %v2038_v7, %v2051_v16 }
 0x811   :  { %v2058_v37 = vsel %vm882_vm8, %v2052_v11, -inf }
 0x812   :  { %2059 = vmax.xlane.f32.xlu1 %v2058_v37 }
 0x899   :  { %v2057_v49 = vpop.xlane.xlu0 %2056 }
 0x89a   :  { %v2066_v11 = vrot.slane %v2057_v49, %v12045_v18  ;;  %v2078_v63 = vrot.slane %v2057_v49, %v12279_v4  ;;  %v2070_v23 = vrot.slane %v2057_v49, %v12270_v2 }
 0x89c   :  { %v2143_v50 = vsub.f32 %v12827_v10, %v2066_v11  ;;  %v2086_v10 = vrot.slane %v2057_v49, %v12276_v19 }
 0x89f   :  { %v12895_v46 = vpop.xlane.xlu1 %2059 }
 0x8a0   :  { %v2102_v62 = vrot.slane %v12895_v46, %v12270_v2  ;;  %v2106_v26 = vrot.slane %v12895_v46, %v12273_v61  ;;  %v2098_v31 = vrot.slane %v12895_v46, %v12045_v18  ;;  %v2110_v48 = vrot.slane %v12895_v46, %v12279_v4 }
 0x8a1   :  { %v2114_v7 = vrot.slane %v12895_v46, %v12291_v58 }
 0x8a2   :  { %v2152_v8 = vsub.f32 %v1940_v55, %v2102_v62  ;;  %v2153_v16 = vsub.f32 %v1943_v41, %v2106_v26  ;;  %v2151_v30 = vsub.f32 %v1937_v1, %v2098_v31  ;;  %v2154_v37 = vsub.f32 %v1946_v0, %v2110_v48 }
 0x8a3   :  { %v2155_v55 = vsub.f32 %v12829_v36, %v2114_v7  ;;  %v2082_v62 = vrot.slane %v2057_v49, %v12291_v58  ;;  %v2159_v1 = vmul.f32 1.442695, %v2143_v50  ;;  %v2146_v26 = vsub.f32 %v12835_v60, %v2078_v63 }
 0x8a4   :  { %v2177_v32 = vmul.f32 1.442695, %v2152_v8  ;;  %v2179_v59 = vmul.f32 1.442695, %v2153_v16  ;;  %v2175_v42 = vmul.f32 1.442695, %v2151_v30  ;;  %v2074_v0 = vrot.slane %v2057_v49, %v12273_v61 }
 0x8a5   :  { %v2181_v41 = vmul.f32 1.442695, %v2154_v37  ;;  %v2144_v31 = vsub.f32 %v12833_v22, %v2070_v23  ;;  %v2183_v48 = vmul.f32 1.442695, %v2155_v55  ;;  %v2147_v36 = vsub.f32 %v12831_v52, %v2082_v62 }
 0x8a6   :  { %11089 = vpow2.f32 %v2177_v32  ;;  %v2118_v63 = vrot.slane %v12895_v46, %v12276_v19  ;;  %v2090_v22 = vrot.slane %v2057_v49, %v12285_v29  ;;  %v2148_v16 = vsub.f32 %v12848_v47, %v2086_v10 }
 0x8a7   :  { %11091 = vpow2.f32 %v2179_v59  ;;  %v2165_v59 = vmul.f32 1.442695, %v2146_v26  ;;  %v2161_v50 = vmul.f32 1.442695, %v2144_v31  ;;  %v2167_v60 = vmul.f32 1.442695, %v2147_v36 }
 0x8a8   :  { %11093 = vpow2.f32 %v2175_v42  ;;  %v2145_v42 = vsub.f32 %v12841_v44, %v2074_v0  ;;  %v2122_v52 = vrot.slane %v12895_v46, %v12285_v29  ;;  %v2156_v44 = vsub.f32 %v12867_v51, %v2118_v63 }
 0x8a9   :  { %11095 = vpow2.f32 %v2181_v41  ;;  %v2094_v7 = vrot.slane %v2057_v49, %v12296_v33  ;;  %v2149_v37 = vsub.f32 %v12860_v15, %v2090_v22  ;;  %v2169_v47 = vmul.f32 1.442695, %v2148_v16 }
 0x8aa   :  { %11097 = vpow2.f32 %v2159_v1  ;;  %v2163_v32 = vmul.f32 1.442695, %v2145_v42  ;;  %v2157_v55 = vsub.f32 %v12880_v12, %v2122_v52  ;;  %v2185_v41 = vmul.f32 1.442695, %v2156_v44 }
 0x8ab   :  { %11099 = vpow2.f32 %v2183_v48  ;;  %v2150_v1 = vsub.f32 %v12871_v28, %v2094_v7  ;;  %v2171_v26 = vmul.f32 1.442695, %v2149_v37  ;;  %v2126_v15 = vrot.slane %v12895_v46, %v12296_v33 }
 0x8ac   :  { %11101 = vpow2.f32 %v2165_v59  ;;  %v2187_v49 = vmul.f32 1.442695, %v2157_v55 }
 0x8ad   :  { %11103 = vpow2.f32 %v2161_v50  ;;  %v2173_v31 = vmul.f32 1.442695, %v2150_v1  ;;  %v2158_v48 = vsub.f32 %v12886_v38, %v2126_v15 }
 0x8ae   :  { %11105 = vpow2.f32 %v2167_v60 }
 0x8af   :  { %11107 = vpow2.f32 %v2163_v32  ;;  %v2189_v10 = vmul.f32 1.442695, %v2158_v48 }
 0x8b0   :  { %v12916_v8 = vpop.eup %11089  ;;  %11109 = vpow2.f32 %v2169_v47 }
 0x8b1   :  { %2235 = vperm.xlu1 %10972, %v12916_v8   ;;  %v12924_v23 = vpop.eup %11091  ;;  %11111 = vpow2.f32 %v2185_v41 }
 0x8b2   :  { %v12932_v11 = vpop.eup %11093  ;;  %11113 = vpow2.f32 %v2171_v26 }
 0x8b3   :  { %v12934_v30 = vpop.eup %11095  ;;  %2232 = vperm.xlu0 %10971, %v12932_v11   ;;  %11115 = vpow2.f32 %v2187_v49 }
 0x8b4   :  { %v12941_v62 = vpop.eup %11097  ;;  %11117 = vpow2.f32 %v2173_v31 }
 0x8b5   :  { %2238 = vperm.xlu1 %10972, %v12924_v23   ;;  %v12943_v51 = vpop.eup %11099  ;;  %11119 = vpow2.f32 %v2189_v10 }
 0x8b6   :  { %v12950_v0 = vpop.eup %11101 }
 0x8b7   :  { %2208 = vperm.xlu0 %10971, %v12941_v62   ;;  %v12952_v12 = vpop.eup %11103 }
 0x8b8   :  { %v12957_v28 = vpop.eup %11105 }
 0x8b9   :  { %2241 = vperm.xlu1 %10972, %v12934_v30   ;;  %v12959_v46 = vpop.eup %11107 }
 0x8ba   :  { %v12963_v59 = vpop.eup %11109 }
 0x8bb   :  { %2217 = vperm.xlu0 %10971, %v12950_v0   ;;  %v12965_v36 = vpop.eup %11111 }
 0x8bc   :  { %v12969_v38 = vpop.eup %11113 }
 0x8bd   :  { %2244 = vperm.xlu1 %10972, %v12943_v51   ;;  %v12971_v42 = vpop.eup %11115 }
 0x8be   :  { %v12975_v50 = vpop.eup %11117 }
 0x8bf   :  { %2220 = vperm.xlu0 %10971, %v12957_v28   ;;  %v12978_v63 = vpop.eup %11119 }
 0x8c1   :  { %2211 = vperm.xlu1 %10972, %v12952_v12  }
 0x8c3   :  { %2223 = vperm.xlu0 %10971, %v12963_v59  }
 0x8c5   :  { %2214 = vperm.xlu1 %10972, %v12959_v46  }
 0x8c7   :  { %2226 = vperm.xlu0 %10971, %v12969_v38  }
 0x8c9   :  { %2247 = vperm.xlu1 %10972, %v12965_v36  }
 0x8cb   :  { %2229 = vperm.xlu0 %10971, %v12975_v50  }
 0x8cd   :  { %2250 = vperm.xlu1 %10972, %v12971_v42  }
 0x8cf   :  { %2253 = vperm.xlu0 %10971, %v12978_v63  }
 0x930   :  { %v2236_v22 = vpop.permute.xlu1 %2235 }
 0x931   :  { %v2294_v20 = vrot.slane %v2236_v22, %v12209_v56 }
 0x932   :  { %v2233_v16 = vpop.permute.xlu0 %2232 }
 0x934   :  { %v2239_v60 = vpop.permute.xlu1 %2238 }
 0x936   :  { %v2209_v52 = vpop.permute.xlu0 %2208 }
 0x937   :  { %v2258_v41 = vrot.slane %v2209_v52, %v12209_v56  ;;  %v2290_v52 = vrot.slane %v2233_v16, %v12209_v56 }
 0x938   :  { %v2242_v32 = vpop.permute.xlu1 %2241 }
 0x93a   :  { %v2218_v7 = vpop.permute.xlu0 %2217 }
 0x93b   :  { %v2270_v15 = vrot.slane %v2218_v7, %v12209_v56  ;;  %v2298_v7 = vrot.slane %v2239_v60, %v12209_v56 }
 0x93c   :  { %v2245_v44 = vpop.permute.xlu1 %2244 }
 0x93e   :  { %v2221_v55 = vpop.permute.xlu0 %2220 }
 0x93f   :  { %v2274_v31 = vrot.slane %v2221_v55, %v12209_v56 }
 0x940   :  { %v2212_v37 = vpop.permute.xlu1 %2211 }
 0x941   :  { %v2262_v47 = vrot.slane %v2212_v37, %v12209_v56 }
 0x942   :  { %v2224_v48 = vpop.permute.xlu0 %2223 }
 0x943   :  { %v2319_v49 = vsel %vm859_vm1, %v2262_v47, %v2258_v41  ;;  %v2302_v47 = vrot.slane %v2242_v32, %v12209_v56 }
 0x944   :  { %v2215_v1 = vpop.permute.xlu1 %2214 }
 0x945   :  { %v2266_v26 = vrot.slane %v2215_v1, %v12209_v56  ;;  %v2278_v1 = vrot.slane %v2224_v48, %v12209_v56 }
 0x946   :  { %v2227_v3 = vpop.permute.xlu0 %2226 }
 0x947   :  { %v2320_v10 = vsel %vm861_vm2, %v2266_v26, %v2319_v49  ;;  %v2306_v26 = vrot.slane %v2245_v44, %v12209_v56 }
 0x948   :  { %v2321_v57 = vsel %vm863_vm3, %v2270_v15, %v2320_v10  ;;  %v2248_v40 = vpop.permute.xlu1 %2247  ;;  %v2282_v15 = vrot.slane %v2227_v3, %v12209_v56 }
 0x949   :  { %v2322_v37 = vsel %vm865_vm4, %v2274_v31, %v2321_v57  ;;  %v2326_v57 = vsel %vm859_vm1, %v2294_v20, %v2290_v52  ;;  %v2310_v22 = vrot.slane %v2248_v40, %v12209_v56 }
 0x94a   :  { %v2323_v41 = vsel %vm867_vm5, %v2278_v1, %v2322_v37  ;;  %v2327_v16 = vsel %vm861_vm2, %v2298_v7, %v2326_v57  ;;  %v2230_v49 = vpop.permute.xlu0 %2229 }
 0x94b   :  { %v2324_v60 = vsel %vm869_vm6, %v2282_v15, %v2323_v41  ;;  %v2328_v32 = vsel %vm863_vm3, %v2302_v47, %v2327_v16  ;;  %v2286_v48 = vrot.slane %v2230_v49, %v12209_v56 }
 0x94c   :  { %v2251_v55 = vpop.permute.xlu1 %2250  ;;  %v2329_v10 = vsel %vm865_vm4, %v2306_v26, %v2328_v32 }
 0x94d   :  { %v2314_v31 = vrot.slane %v2251_v55, %v12209_v56  ;;  %v2330_v44 = vsel %vm867_vm5, %v2310_v22, %v2329_v10  ;;  %v2325_v3 = vsel %vm871_vm7, %v2286_v48, %v2324_v60 }
 0x94e   :  { %v2254_v20 = vpop.permute.xlu0 %2253  ;;  %v2335_v40 = vsel %vm882_vm8, %v2325_v3, 0.0 }
 0x94f   :  { %v2331_v37 = vsel %vm869_vm6, %v2314_v31, %v2330_v44  ;;  %v2318_v52 = vrot.slane %v2254_v20, %v12209_v56  ;;  %2336 = vadd.xlane.f32.xlu1 %v2335_v40 }
 0x951   :  { %v2332_v1 = vsel %vm871_vm7, %v2318_v52, %v2331_v37 }
 0x952   :  { %v2338_v7 = vsel %vm882_vm8, %v2332_v1, 0.0 }
 0x953   :  { %2339 = vadd.xlane.f32.xlu0 %v2338_v7 }
 0x9dc   :  { %v2337_v47 = vpop.xlane.xlu1 %2336 }
 0x9dd   :  { %11121 = vrcp.f32 %v2337_v47 }
 0x9e0   :  { %v2340_v55 = vpop.xlane.xlu0 %2339 }
 0x9e1   :  { %11123 = vrcp.f32 %v2340_v55 }
 0x9e7   :  { %v11122_v41 = vpop.eup %11121 }
 0x9e8   :  { %v2348_v15 = vrot.slane %v11122_v41, %v12045_v18  ;;  %v2360_v32 = vrot.slane %v11122_v41, %v12279_v4  ;;  %v2368_v52 = vrot.slane %v11122_v41, %v12276_v19  ;;  %v2372_v55 = vrot.slane %v11122_v41, %v12285_v29 }
 0x9ea   :  { %v2425_v60 = vmul.f32 %v12941_v62, %v2348_v15  ;;  %v2428_v20 = vmul.f32 %v12950_v0, %v2360_v32 }
 0x9eb   :  { %v11124_v26 = vpop.eup %11123 }
 0x9ec   :  { %v2384_v57 = vrot.slane %v11124_v26, %v12270_v2  ;;  %v2380_v22 = vrot.slane %v11124_v26, %v12045_v18  ;;  %v2388_v16 = vrot.slane %v11124_v26, %v12273_v61  ;;  %v2392_v3 = vrot.slane %v11124_v26, %v12279_v4 }
 0x9ed   :  { %v2444_v62 = vmul.f32 %v2425_v60, %v12465_v6  ;;  %v2396_v37 = vrot.slane %v11124_v26, %v12291_v58  ;;  %v2447_v0 = vmul.f32 %v2428_v20, %v12467_v53  ;;  %v2431_v60 = vmul.f32 %v12969_v38, %v2372_v55 }
 0x9ee   :  { %v2434_v49 = vmul.f32 %v12916_v8, %v2384_v57  ;;  %v2433_v31 = vmul.f32 %v12932_v11, %v2380_v22  ;;  %v2435_v44 = vmul.f32 %v12924_v23, %v2388_v16  ;;  %v2364_v8 = vrot.slane %v11122_v41, %v12291_v58 }
 0x9ef   :  { %v2436_v40 = vmul.f32 %v12934_v30, %v2392_v3  ;;  %v2352_v23 = vrot.slane %v11122_v41, %v12270_v2  ;;  %v2437_v7 = vmul.f32 %v12943_v51, %v2396_v37  ;;  %v2356_v30 = vrot.slane %v11122_v41, %v12273_v61 }
 0x9f0   :  { %v2453_v48 = vmul.f32 %v2434_v49, %v12486_v39  ;;  %v2452_v10 = vmul.f32 %v2433_v31, %v12463_v45  ;;  %v2454_v11 = vmul.f32 %v2435_v44, %v12500_v24  ;;  %v2429_v47 = vmul.f32 %v12957_v28, %v2364_v8  ;;  %v16007_v8 = vld [vmem:[#allocation33_spill] sm:$0xff] }
 0x9f1   :  { %v2455_v1 = vmul.f32 %v2436_v40, %v12508_v54  ;;  %v2456_v15 = vmul.f32 %v2437_v7, %v12523_v5  ;;  %v2426_v22 = vmul.f32 %v12952_v12, %v2352_v23  ;;  %v2430_v16 = vmul.f32 %v12963_v59, %v2368_v52 }
 0x9f2   :  { %2504 = vperm.xlu1 %10972, %v2453_v48   ;;  %2501 = vperm.xlu0 %10971, %v2452_v10   ;;  %v2448_v57 = vmul.f32 %v2429_v47, %v12482_v43  ;;  %v2427_v51 = vmul.f32 %v12959_v46, %v2356_v30  ;;  %v2376_v28 = vrot.slane %v11122_v41, %v12296_v33 }
 0x9f3   :  { %v2445_v49 = vmul.f32 %v2426_v22, %v12461_v17  ;;  %v2449_v31 = vmul.f32 %v2430_v16, %v12490_v21  ;;  %v2400_v32 = vrot.slane %v11124_v26, %v12276_v19  ;;  %v2450_v48 = vmul.f32 %v2431_v60, %v12497_v27 }
 0x9f4   :  { %v2446_v12 = vmul.f32 %v2427_v51, %v12476_v14  ;;  %v2432_v59 = vmul.f32 %v12975_v50, %v2376_v28  ;;  %v2404_v41 = vrot.slane %v11124_v26, %v12285_v29  ;;  %v2408_v10 = vrot.slane %v11124_v26, %v12296_v33 }
 0x9f5   :  { %v2438_v46 = vmul.f32 %v12965_v36, %v2400_v32 }
 0x9f6   :  { %2507 = vperm.xlu1 %10972, %v2454_v11   ;;  %2477 = vperm.xlu0 %10971, %v2444_v62   ;;  %v2451_v44 = vmul.f32 %v2432_v59, %v12511_v34  ;;  %v2439_v3 = vmul.f32 %v12971_v42, %v2404_v41  ;;  %v2440_v20 = vmul.f32 %v12978_v63, %v2408_v10 }
 0x9f7   :  { %v2457_v38 = vmul.f32 %v2438_v46, %v12531_v13 }
 0x9f8   :  { %v2458_v50 = vmul.f32 %v2439_v3, %v12537_v35  ;;  %v2459_v36 = vmul.f32 %v2440_v20, %v16007_v8 }
 0x9fa   :  { %2510 = vperm.xlu1 %10972, %v2455_v1   ;;  %2486 = vperm.xlu0 %10971, %v2447_v0  }
 0x9fe   :  { %2513 = vperm.xlu1 %10972, %v2456_v15   ;;  %2489 = vperm.xlu0 %10971, %v2448_v57  }
 0xa02   :  { %2480 = vperm.xlu1 %10972, %v2445_v49   ;;  %2492 = vperm.xlu0 %10971, %v2449_v31  }
 0xa06   :  { %2483 = vperm.xlu1 %10972, %v2446_v12   ;;  %2495 = vperm.xlu0 %10971, %v2450_v48  }
 0xa0a   :  { %2516 = vperm.xlu1 %10972, %v2457_v38   ;;  %2498 = vperm.xlu0 %10971, %v2451_v44  }
 0xa0e   :  { %2519 = vperm.xlu1 %10972, %v2458_v50   ;;  %2522 = vperm.xlu0 %10971, %v2459_v36  }
 0xa71   :  { %v2505_v11 = vpop.permute.xlu1 %2504  ;;  %v2502_v26 = vpop.permute.xlu0 %2501 }
 0xa72   :  { %v2563_v15 = vrot.slane %v2505_v11, %v12209_v56  ;;  %v2559_v57 = vrot.slane %v2502_v26, %v12209_v56 }
 0xa74   :  { %v2595_v38 = vsel %vm859_vm1, %v2563_v15, %v2559_v57 }
 0xa75   :  { %v2508_v62 = vpop.permute.xlu1 %2507  ;;  %v2478_v40 = vpop.permute.xlu0 %2477 }
 0xa76   :  { %v2527_v7 = vrot.slane %v2478_v40, %v12209_v56  ;;  %v2567_v51 = vrot.slane %v2508_v62, %v12209_v56 }
 0xa78   :  { %v2596_v20 = vsel %vm861_vm2, %v2567_v51, %v2595_v38  ;;  %v16010_v38 = vld [vmem:[#allocation44_spill] sm:$0xff] }
 0xa79   :  { %v2511_v37 = vpop.permute.xlu1 %2510  ;;  %v2487_v23 = vpop.permute.xlu0 %2486 }
 0xa7a   :  { %v2539_v22 = vrot.slane %v2487_v23, %v12209_v56  ;;  %v2571_v31 = vrot.slane %v2511_v37, %v12209_v56 }
 0xa7c   :  { %v2597_v36 = vsel %vm863_vm3, %v2571_v31, %v2596_v20 }
 0xa7d   :  { %v2514_v52 = vpop.permute.xlu1 %2513  ;;  %v2490_v1 = vpop.permute.xlu0 %2489 }
 0xa7e   :  { %v2543_v28 = vrot.slane %v2490_v1, %v12209_v56  ;;  %v2575_v48 = vrot.slane %v2514_v52, %v12209_v56 }
 0xa80   :  { %v2598_v40 = vsel %vm865_vm4, %v2575_v48, %v2597_v36  ;;  %v16011_v36 = vld [vmem:[#allocation50_spill] sm:$0xff] }
 0xa81   :  { %v2481_v0 = vpop.permute.xlu1 %2480  ;;  %v2493_v42 = vpop.permute.xlu0 %2492 }
 0xa82   :  { %v2531_v63 = vrot.slane %v2481_v0, %v12209_v56  ;;  %v2547_v60 = vrot.slane %v2493_v42, %v12209_v56 }
 0xa84   :  { %v2588_v16 = vsel %vm859_vm1, %v2531_v63, %v2527_v7  ;;  %v10045_v7 = vld [vmem:[%s15770_s1 + $0x10] sm:$0xff] }
 0xa85   :  { %v2484_v47 = vpop.permute.xlu1 %2483  ;;  %v2496_v30 = vpop.permute.xlu0 %2495 }
 0xa86   :  { %v2535_v55 = vrot.slane %v2484_v47, %v12209_v56  ;;  %v2551_v46 = vrot.slane %v2496_v30, %v12209_v56  ;;  %v11646_v47 = vld [vmem:[#allocation2] ss:$0 sm:$0xff] }
 0xa87   :  { %v2610_v30 = vmul.f32 %v11646_v47, %v10045_v7 }
 0xa88   :  { %v2589_v49 = vsel %vm861_vm2, %v2535_v55, %v2588_v16  ;;  %v10046_v55 = vld [vmem:[%s15770_s1 + $0x18] sm:$0xff]  ;;  %v11647_v16 = vld [vmem:[#allocation3] ss:$0 sm:$0xff] }
 0xa89   :  { %v2590_v32 = vsel %vm863_vm3, %v2539_v22, %v2589_v49  ;;  %v2517_v12 = vpop.permute.xlu1 %2516  ;;  %v2499_v59 = vpop.permute.xlu0 %2498  ;;  %v2611_v22 = vmul.f32 %v11646_v47, %v10046_v55 }
 0xa8a   :  { %v2555_v41 = vrot.slane %v2499_v59, %v12209_v56  ;;  %v2591_v10 = vsel %vm865_vm4, %v2543_v28, %v2590_v32  ;;  %v2579_v44 = vrot.slane %v2517_v12, %v12209_v56  ;;  %v16008_v59 = vld [vmem:[#allocation48_spill] sm:$0xff] }
 0xa8b   :  { %v2592_v3 = vsel %vm867_vm5, %v2547_v60, %v2591_v10 }
 0xa8c   :  { %v2593_v50 = vsel %vm869_vm6, %v2551_v46, %v2592_v3  ;;  %v2599_v1 = vsel %vm867_vm5, %v2579_v44, %v2598_v40  ;;  %v16009_v46 = vld [vmem:[#allocation49_spill] sm:$0xff]  ;;  %v16013_v40 = vld [vmem:[#allocation51_spill] sm:$0xff] }
 0xa8d   :  { %v2520_v11 = vpop.permute.xlu1 %2519  ;;  %v2523_v26 = vpop.permute.xlu0 %2522  ;;  %v2594_v62 = vsel %vm871_vm7, %v2555_v41, %v2593_v50 }
 0xa8e   :  { %v2583_v37 = vrot.slane %v2520_v11, %v12209_v56  ;;  %v2587_v23 = vrot.slane %v2523_v26, %v12209_v56  ;;  %v2604_v52 = vsel %vm882_vm8, %v2594_v62, 0.0  ;;  %v16012_v26 = vld [vmem:[#allocation45_spill] sm:$0xff] }
 0xa8f   :  { %2605 = vadd.xlane.f32.xlu1 %v2604_v52 }
 0xa90   :  { %v2600_v0 = vsel %vm869_vm6, %v2583_v37, %v2599_v1 }
 0xa91   :  { %v2601_v42 = vsel %vm871_vm7, %v2587_v23, %v2600_v0 }
 0xa92   :  { %v2607_v63 = vsel %vm882_vm8, %v2601_v42, 0.0 }
 0xa93   :  { %2608 = vadd.xlane.f32.xlu0 %v2607_v63 }
 0xb1c   :  { %v2606_v15 = vpop.xlane.xlu1 %2605 }
 0xb1d   :  { %v2612_v57 = vadd.f32 %v2610_v30, %v2606_v15 }
 0xb1f   :  { %v2614_v51 = vadd.f32 %v11647_v16, %v2612_v57 }
 0xb20   :  { %v2609_v28 = vpop.xlane.xlu0 %2608 }
 0xb21   :  { %v2613_v49 = vadd.f32 %v2611_v22, %v2609_v28  ;;  %2618 = vperm.xlu0 %10971, %v2614_v51   ;;  %v16014_v28 = vld [vmem:[#allocation46_spill] sm:$0xff] }
 0xb23   :  { %v2615_v31 = vadd.f32 %v11647_v16, %v2613_v49 }
 0xb25   :  { %2623 = vperm.xlu1 %10972, %v2615_v31  }
 0xba0   :  { %v2619_v60 = vpop.permute.xlu0 %2618 }
 0xba1   :  { %v2626_v32 = vmul.f32 %v2619_v60, %v12669_v25  ;;  %v2627_v12 = vmul.f32 %v2619_v60, %v12672_v9 }
 0xba3   :  { %v2711_v48 = vadd.f32 %v16008_v59, %v2626_v32  ;;  %v2712_v41 = vadd.f32 %v16009_v46, %v2627_v12  ;;  %v16016_v32 = vld [vmem:[#allocation47_spill] sm:$0xff] }
 0xba4   :  { %v2624_v10 = vpop.permute.xlu1 %2623 }
 0xba5   :  { %v2715_v44 = vadd.f32 %v2711_v48, %v16010_v38  ;;  %v2628_v3 = vmul.f32 %v2624_v10, %v12669_v25  ;;  %v2629_v20 = vmul.f32 %v2624_v10, %v12672_v9  ;;  %v2716_v62 = vadd.f32 %v2712_v41, %v16012_v26 }
 0xba7   :  { %v2719_v50 = vmul.f32 0.5, %v2715_v44  ;;  %v2713_v11 = vadd.f32 %v16011_v36, %v2628_v3  ;;  %v2714_v37 = vadd.f32 %v16013_v40, %v2629_v20  ;;  %v2729_v16 = vmul.f32 0.5, %v2716_v62 }
 0xba9   :  { %11125 = vtanh.f32 %v2719_v50  ;;  %v2717_v23 = vadd.f32 %v2713_v11, %v16010_v38  ;;  %v2718_v1 = vadd.f32 %v2714_v37, %v16012_v26 }
 0xbaa   :  { %11127 = vtanh.f32 %v2716_v62 }
 0xbab   :  { %v2720_v52 = vmul.f32 0.5, %v2717_v23  ;;  %v2730_v51 = vmul.f32 0.5, %v2718_v1  ;;  %v16018_v23 = vmov 0.0  }
 0xbad   :  { %11129 = vtanh.f32 %v2720_v52  ;;  %v16019_v52 = vld [vmem:[#allocation8_spill] sm:$0xff] }
 0xbae   :  { %11131 = vtanh.f32 %v2718_v1 }
 0xbaf   :  { %11133 = vtanh.f32 %v2729_v16  ;;  %v16029_v16 = vld [vmem:[#allocation40_spill] sm:$0xff] }
 0xbb0   :  { %11135 = vtanh.f32 %v2730_v51  ;;  %v16030_v51 = vld [vmem:[#allocation41_spill] sm:$0xff] }
 0xbb3   :  { %v11126_v0 = vpop.eup %11125 }
 0xbb4   :  { %v2723_v42 = vadd.f32 1.0, %v11126_v0  ;;  %v11128_v63 = vpop.eup %11127  ;;  %v16020_v0 = vld [vmem:[#allocation9_spill] sm:$0xff] }
 0xbb6   :  { %v2725_v7 = vmul.f32 0.5, %v2723_v42 }
 0xbb7   :  { %v11130_v47 = vpop.eup %11129 }
 0xbb8   :  { %v2739_v30 = vmul.f32 %v11128_v63, %v2725_v7  ;;  %v2724_v55 = vadd.f32 1.0, %v11130_v47  ;;  %v11132_v57 = vpop.eup %11131  ;;  %v2737_v49 = vmul.f32 %v2725_v7, %v16014_v28  ;;  %v16021_v63 = vld [vmem:[#allocation35_spill] sm:$0xff]  ;;  %v16022_v7 = vld [vmem:[#allocation10_spill] sm:$0xff]  ;;  %v16023_v47 = vld [vmem:[#allocation36_spill] sm:$0xff] }
 0xbb9   :  { %v11134_v48 = vpop.eup %11133  ;;  %v16031_v28 = vld [vmem:[#allocation13_spill] sm:$0xff] }
 0xbba   :  { %2743 = vrot.lane.b32.xlu1 %v2739_v30, %s11712_s6  ;;  %v2726_v15 = vmul.f32 0.5, %v2724_v55  ;;  %v2733_v41 = vadd.f32 1.0, %v11134_v48  ;;  %v11136_v10 = vpop.eup %11135  ;;  %v16024_v30 = vld [vmem:[#allocation37_spill] sm:$0xff]  ;;  %v16025_v55 = vld [vmem:[#allocation11_spill] sm:$0xff] }
 0xbbb   :  { %v2734_v3 = vadd.f32 1.0, %v11136_v10 }
 0xbbc   :  { %v2740_v22 = vmul.f32 %v11132_v57, %v2726_v15  ;;  %v2738_v12 = vmul.f32 %v2726_v15, %v16016_v32  ;;  %v2735_v44 = vmul.f32 0.5, %v2733_v41  ;;  %v16026_v15 = vld [vmem:[#allocation38_spill] sm:$0xff]  ;;  %v16027_v57 = vld [vmem:[#allocation39_spill] sm:$0xff] }
 0xbbd   :  { %v2736_v36 = vmul.f32 0.5, %v2734_v3  ;;  %v16034_v32 = vld [vmem:[#allocation34_spill] sm:$0xff]  ;;  %v16039_v3 = vld [vmem:[#allocation16_spill] sm:$0xff] }
 0xbbe   :  { %2745 = vrot.lane.b32.xlu0 %v2740_v22, %s11712_s6  ;;  %v16028_v22 = vld [vmem:[#allocation12_spill] sm:$0xff] }
 0xc2c   :  { %v2744_v31 = vpop.permute.xlu1 %2743 }
 0xc2d   :  { %v13114_v60 = vadd.f32 %v2744_v31, %v2737_v49  ;;  %v16032_v49 = vld [vmem:[#allocation14_spill] sm:$0xff]  ;;  %v16033_v31 = vld [vmem:[#allocation15_spill] sm:$0xff] }
 0xc2f   :  { %16015 = vst [vmem:[#allocation33_spill] sm:$0xff] %v13114_v60  ;;  %11137 = vtanh.f32 %v13114_v60 }
 0xc30   :  { %v2746_v59 = vpop.permute.xlu0 %2745 }
 0xc31   :  { %v13118_v46 = vadd.f32 %v2746_v59, %v2738_v12 }
 0xc33   :  { %16017 = vst [vmem:[#allocation48_spill] sm:$0xff] %v13118_v46  ;;  %11139 = vtanh.f32 %v13118_v46 }
 0xc39   :  { %v11138_v20 = vpop.eup %11137 }
 0xc3a   :  { %v2753_v50 = vmul.f32 %v11138_v20, %v2735_v44 }
 0xc3c   :  { %2757 = vrot.lane.b32.xlu1 %v2753_v50, %s11712_s6 }
 0xc3d   :  { %v11140_v11 = vpop.eup %11139 }
 0xc3e   :  { %v2754_v62 = vmul.f32 %v11140_v11, %v2736_v36 }
 0xc40   :  { %2759 = vrot.lane.b32.xlu0 %v2754_v62, %s11712_s6 }
 0xcae   :  { %v2758_v40 = vpop.permute.xlu1 %2757 }
 0xcaf   :  { %10051 = vmatmul.mubr.msk.f32.vlgmr.msra.gmra.mrb[4].mxu1 %vm135_vm0, %v2758_v40  ;;  %v2763_v37 = vsel %vm135_vm0, %v2758_v40, %v13114_v60 }
 0xcb0   :  { %10386 = vmatprep.mubr.f32.mxu0 %v2763_v37  ;;  %3861 = vmatprep.mubr.f32.mxu1 %v16018_v23 }
 0xcb1   :  { %10727 = vmatpush3.bf16.msra.mxu1 %v16019_v52 }
 0xcb2   :  { %v2760_v1 = vpop.permute.xlu0 %2759  ;;  %10729 = vmatprep.subr.bf16.mxu1 %v16020_v0 }
 0xcb3   :  { %v2764_v42 = vsel %vm135_vm0, %v2760_v1, %v13118_v46  ;;  %10052 = vmatmul.mubr.msk.f32.gmra.mrb[6].mxu1 %vm135_vm0, %v2760_v1 }
 0xcb4   :  { %10387 = vmatmul.mubr.f32.vlgmr.msra.gmra.mrb[24].mxu0 %v2764_v42 }
 0xcb5   :  { %10731 = vmatpush3.bf16.msra.mxu1 %v16020_v0  ;;  %10759 = vmatpush1.bf16.msra.mxu0 %v16021_v63  ;;  %v16047_v63 = vld [vmem:[#allocation22_spill] sm:$0xff] }
 0xcb6   :  { %10733 = vmatprep.subr.bf16.mxu1 %v16022_v7  ;;  %10761 = vmatprep.subr.bf16.mxu0 %v16023_v47 }
 0xcb7   :  { %5012 = vmatprep.mubr.f32.mxu0 %v16018_v23 }
 0xcb9   :  { %10735 = vmatpush3.bf16.msra.mxu1 %v16022_v7  ;;  %10763 = vmatpush1.bf16.msra.mxu0 %v16024_v30 }
 0xcba   :  { %10737 = vmatprep.subr.bf16.mxu1 %v16025_v55  ;;  %10765 = vmatprep.subr.bf16.mxu0 %v16026_v15  ;;  %v16042_v15 = vld [vmem:[#allocation20_spill] sm:$0xff] }
 0xcbd   :  { %10739 = vmatpush3.bf16.msra.mxu1 %v16025_v55  ;;  %10767 = vmatpush1.bf16.msra.mxu0 %v16027_v57  ;;  %v16041_v57 = vld [vmem:[#allocation21_spill] sm:$0xff] }
 0xcbe   :  { %10741 = vmatprep.subr.bf16.mxu1 %v16028_v22  ;;  %10769 = vmatprep.subr.bf16.mxu0 %v16029_v16 }
 0xcc1   :  { %10743 = vmatpush3.bf16.msra.mxu1 %v16028_v22  ;;  %10771 = vmatpush1.bf16.msra.mxu0 %v16030_v51 }
 0xcc2   :  { %10745 = vmatprep.subr.bf16.mxu1 %v16031_v28  ;;  %10773 = vmatprep.subr.bf16.mxu0 %v16019_v52 }
 0xcc5   :  { %10747 = vmatpush3.bf16.msra.mxu1 %v16031_v28 }
 0xcc6   :  { %10749 = vmatprep.subr.bf16.mxu1 %v16032_v49 }
 0xcc9   :  { %10751 = vmatpush3.bf16.msra.mxu1 %v16032_v49 }
 0xcca   :  { %10753 = vmatprep.subr.bf16.mxu1 %v16033_v31 }
 0xccd   :  { %10755 = vmatpush3.bf16.msra.mxu1 %v16033_v31 }
 0xcce   :  { %10805 = vmatprep.subr.bf16.mxu1 %v16034_v32 }
 0xd82   :  { %v13155_v12 = vpop.f32.mrb[4].mxu1 }
 0xd83   :  { %16035 = vst [vmem:[#allocation49_spill] sm:$0xff] %v13155_v12  ;;  %v13157_v59 = vpop.f32.mrb[5].mxu1 }
 0xd84   :  { %16036 = vst [vmem:[#allocation50_spill] sm:$0xff] %v13157_v59 }
 0xd86   :  { %v13159_v48 = vpop.f32.mrb[6].mxu1 }
 0xd87   :  { %16037 = vst [vmem:[#allocation51_spill] sm:$0xff] %v13159_v48  ;;  %v10388_v41 = vpop.f32.mrb[24].mxu0  ;;  %v13161_v10 = vpop.f32.mrb[7].mxu1 }
 0xd88   :  { %16038 = vst [vmem:[#allocation46_spill] sm:$0xff] %v13161_v10  ;;  %v2891_v44 = vcombine.high %v10388_v41, %v10388_v41  ;;  %v2898_v20 = vrot.slane %v10388_v41, %v16039_v3  ;;  %v2831_v50 = vpop.f32.mrb[25].mxu0 }
 0xd89   :  { %v2849_v36 = vrot.slane %v2831_v50, %v16039_v3  ;;  %v2842_v37 = vcombine.high %v2831_v50, %v2831_v50  ;;  %v16040_v50 = vld [vmem:[#allocation19_spill] sm:$0xff] }
 0xd8a   :  { %v2905_v11 = vrot.slane %v2891_v44, %v16039_v3  ;;  %v2906_v62 = vcombine.high %v2898_v20, %v2898_v20  ;;  %v2914_v40 = vrot.slane %v2898_v20, %v16039_v3 }
 0xd8b   :  { %v2857_v1 = vcombine.high %v2849_v36, %v2849_v36  ;;  %v2856_v28 = vrot.slane %v2842_v37, %v16039_v3  ;;  %v2865_v51 = vrot.slane %v2849_v36, %v16039_v3  ;;  %v16043_v37 = vld [vmem:[#allocation28_spill] sm:$0xff] }
 0xd8c   :  { %v13168_v42 = vrot.slane %v2905_v11, %v16039_v3  ;;  %v2928_v32 = vrot.slane %v2906_v62, %v16039_v3  ;;  %v2936_v31 = vcombine.high %v2914_v40, %v2914_v40  ;;  %v2975_v49 = vrot.slane %v2914_v40, %v12045_v18 }
 0xd8d   :  { %v2879_v22 = vrot.slane %v2857_v1, %v16039_v3  ;;  %v2858_v40 = vcombine.high %v2856_v28, %v2856_v28  ;;  %v2872_v30 = vrot.slane %v2856_v28, %v16039_v3  ;;  %v2887_v36 = vcombine.high %v2865_v51, %v2865_v51 }
 0xd8e   :  { %v2979_v41 = vrot.slane %v2928_v32, %v12045_v18  ;;  %v2983_v44 = vrot.slane %v2936_v31, %v12045_v18  ;;  %v2991_v20 = vrot.slane %v13168_v42, %v12045_v18  ;;  %v3028_v16 = vadd.f32 %v2975_v49, %v16040_v50 }
 0xd8f   :  { %v2889_v31 = vcombine.high %v2879_v22, %v2879_v22  ;;  %v2943_v7 = vrot.slane %v2865_v51, %v12045_v18  ;;  %v2947_v49 = vrot.slane %v2879_v22, %v12045_v18  ;;  %v2907_v50 = vcombine.high %v2905_v11, %v2905_v11 }
 0xd90   :  { %v3029_v62 = vadd.f32 %v2979_v41, %v16041_v57  ;;  %v3030_v55 = vadd.f32 %v2983_v44, %v16042_v15  ;;  %11141 = vtanh.f32 %v3028_v16  ;;  %v3032_v47 = vadd.f32 %v2991_v20, %v16043_v37  ;;  %v16044_v20 = vld [vmem:[#allocation17_spill] sm:$0xff]  ;;  %v16045_v37 = vld [vmem:[#allocation23_spill] sm:$0xff] }
 0xd91   :  { %v2955_v1 = vrot.slane %v2889_v31, %v12045_v18  ;;  %v2938_v41 = vcombine.high %v2928_v32, %v2928_v32  ;;  %v2886_v44 = vrot.slane %v2858_v40, %v16039_v3  ;;  %v2959_v16 = vrot.slane %v2872_v30, %v12045_v18  ;;  %v16046_v57 = vld [vmem:[#allocation25_spill] sm:$0xff] }
 0xd92   :  { %11143 = vtanh.f32 %v3029_v62  ;;  %v2951_v28 = vrot.slane %v2887_v36, %v12045_v18  ;;  %v3020_v62 = vadd.f32 %v2943_v7, %v16044_v20  ;;  %v3021_v15 = vadd.f32 %v2947_v49, %v16045_v37  ;;  %v13201_v7 = vld [vmem:[%s15774_s5] ss:$0 sm:$0xff] }
 0xd93   :  { %11145 = vtanh.f32 %v3030_v55  ;;  %v2888_v55 = vcombine.high %v2872_v30, %v2872_v30  ;;  %v3023_v51 = vadd.f32 %v2955_v1, %v16046_v57  ;;  %v2963_v22 = vrot.slane %v2886_v44, %v12045_v18 }
 0xd94   :  { %11147 = vtanh.f32 %v3032_v47  ;;  %v3024_v31 = vadd.f32 %v2959_v16, %v16047_v63  ;;  %v2935_v11 = vrot.slane %v2907_v50, %v16039_v3  ;;  %v2987_v40 = vrot.slane %v2938_v41, %v12045_v18  ;;  %v16048_v47 = vld [vmem:[#allocation18_spill] sm:$0xff]  ;;  %v16050_v63 = vld [vmem:[#allocation24_spill] sm:$0xff] }
 0xd95   :  { %11149 = vtanh.f32 %v3020_v62  ;;  %v3022_v0 = vadd.f32 %v2951_v28, %v16048_v47  ;;  %v2890_v49 = vcombine.high %v2886_v44, %v2886_v44  ;;  %v2967_v1 = vrot.slane %v2888_v55, %v12045_v18  ;;  %v16049_v62 = vld [vmem:[#allocation27_spill] sm:$0xff] }
 0xd96   :  { %11151 = vtanh.f32 %v3021_v15  ;;  %v3025_v50 = vadd.f32 %v2963_v22, %v16049_v62  ;;  %v2937_v28 = vcombine.high %v13168_v42, %v13168_v42  ;;  %v2995_v47 = vrot.slane %v2935_v11, %v12045_v18  ;;  %v16052_v62 = vld [vmem:[#allocation26_spill] sm:$0xff] }
 0xd97   :  { %11153 = vtanh.f32 %v3023_v51  ;;  %v2939_v22 = vcombine.high %v2935_v11, %v2935_v11 }
 0xd98   :  { %11155 = vtanh.f32 %v3024_v31  ;;  %v2971_v31 = vrot.slane %v2890_v49, %v12045_v18  ;;  %v2999_v42 = vrot.slane %v2937_v28, %v12045_v18  ;;  %v3033_v57 = vadd.f32 %v2995_v47, %v16052_v62  ;;  %v16053_v49 = vld [vmem:[#allocation31_spill] sm:$0xff] }
 0xd99   :  { %11157 = vtanh.f32 %v3022_v0  ;;  %v3003_v11 = vrot.slane %v2939_v22, %v12045_v18  ;;  %v16055_v22 = vld [vmem:[#allocation32_spill] sm:$0xff] }
 0xd9a   :  { %v11142_v32 = vpop.eup %11141  ;;  %11159 = vtanh.f32 %v3025_v50  ;;  %v16054_v50 = vld [vmem:[#allocation30_spill] sm:$0xff] }
 0xd9b   :  { %v3060_v30 = vmul.f32 %v13201_v7, %v11142_v32  ;;  %v3031_v32 = vadd.f32 %v2987_v40, %v16050_v63  ;;  %v3034_v28 = vadd.f32 %v2999_v42, %v16054_v50 }
 0xd9c   :  { %v11144_v36 = vpop.eup %11143 }
 0xd9d   :  { %v11146_v16 = vpop.eup %11145  ;;  %v3092_v41 = vsel %vm135_vm0, %v3060_v30, 0.0  ;;  %v3061_v15 = vmul.f32 %v13201_v7, %v11144_v36  ;;  %v16051_v30 = vld [vmem:[#allocation29_spill] sm:$0xff]  ;;  %11161 = vtanh.f32 %v3031_v32 }
 0xd9e   :  { %3093 = vadd.xlane.f32.xlu1 %v3092_v41  ;;  %v3062_v55 = vmul.f32 %v13201_v7, %v11146_v16  ;;  %v11148_v51 = vpop.eup %11147  ;;  %v3026_v36 = vadd.f32 %v2967_v1, %v16051_v30 }
 0xd9f   :  { %v3095_v44 = vsel %vm135_vm0, %v3061_v15, 0.0  ;;  %v11150_v40 = vpop.eup %11149  ;;  %v3064_v41 = vmul.f32 %v13201_v7, %v11148_v51 }
 0xda0   :  { %3096 = vadd.xlane.f32.xlu0 %v3095_v44  ;;  %v3098_v0 = vsel %vm135_vm0, %v3062_v55, 0.0  ;;  %v11152_v15 = vpop.eup %11151  ;;  %v3052_v16 = vmul.f32 %v13201_v7, %v11150_v40  ;;  %v3027_v44 = vadd.f32 %v2971_v31, %v16053_v49  ;;  %11163 = vtanh.f32 %v3026_v36 }
 0xda1   :  { %v11154_v1 = vpop.eup %11153  ;;  %11165 = vtanh.f32 %v3033_v57  ;;  %v3104_v55 = vsel %vm135_vm0, %v3064_v41, 0.0  ;;  %v3053_v51 = vmul.f32 %v13201_v7, %v11152_v15 }
 0xda2   :  { %v3068_v47 = vsel %vm135_vm0, %v3052_v16, 0.0  ;;  %v11156_v32 = vpop.eup %11155  ;;  %11167 = vtanh.f32 %v3027_v44  ;;  %v3055_v57 = vmul.f32 %v13201_v7, %v11154_v1 }
 0xda3   :  { %3069 = vadd.xlane.f32.xlu1 %v3068_v47  ;;  %v11158_v62 = vpop.eup %11157  ;;  %v3056_v40 = vmul.f32 %v13201_v7, %v11156_v32  ;;  %11169 = vtanh.f32 %v3034_v28  ;;  %v3071_v42 = vsel %vm135_vm0, %v3053_v51, 0.0 }
 0xda4   :  { %3099 = vadd.xlane.f32.xlu0 %v3098_v0  ;;  %v3035_v0 = vadd.f32 %v3003_v11, %v16055_v22  ;;  %v11160_v36 = vpop.eup %11159  ;;  %v3054_v41 = vmul.f32 %v13201_v7, %v11158_v62  ;;  %v3077_v15 = vsel %vm135_vm0, %v3055_v57, 0.0 }
 0xda5   :  { %v3080_v31 = vsel %vm135_vm0, %v3056_v40, 0.0  ;;  %v3057_v47 = vmul.f32 %v13201_v7, %v11160_v36 }
 0xda6   :  { %11171 = vtanh.f32 %v3035_v0  ;;  %v3074_v44 = vsel %vm135_vm0, %v3054_v41, 0.0 }
 0xda7   :  { %3081 = vadd.xlane.f32.xlu1 %v3080_v31  ;;  %v11162_v16 = vpop.eup %11161  ;;  %v3083_v32 = vsel %vm135_vm0, %v3057_v47, 0.0 }
 0xda8   :  { %3105 = vadd.xlane.f32.xlu0 %v3104_v55  ;;  %v3063_v28 = vmul.f32 %v13201_v7, %v11162_v16 }
 0xdaa   :  { %v11164_v11 = vpop.eup %11163  ;;  %v3101_v51 = vsel %vm135_vm0, %v3063_v28, 0.0 }
 0xdab   :  { %3078 = vadd.xlane.f32.xlu1 %v3077_v15  ;;  %v11166_v1 = vpop.eup %11165  ;;  %v3058_v55 = vmul.f32 %v13201_v7, %v11164_v11 }
 0xdac   :  { %3072 = vadd.xlane.f32.xlu0 %v3071_v42  ;;  %v11168_v62 = vpop.eup %11167  ;;  %v3065_v40 = vmul.f32 %v13201_v7, %v11166_v1 }
 0xdad   :  { %v11170_v0 = vpop.eup %11169  ;;  %v3086_v31 = vsel %vm135_vm0, %v3058_v55, 0.0  ;;  %v3059_v57 = vmul.f32 %v13201_v7, %v11168_v62 }
 0xdae   :  { %v3107_v42 = vsel %vm135_vm0, %v3065_v40, 0.0  ;;  %v3066_v41 = vmul.f32 %v13201_v7, %v11170_v0 }
 0xdaf   :  { %3084 = vadd.xlane.f32.xlu1 %v3083_v32  ;;  %v3089_v16 = vsel %vm135_vm0, %v3059_v57, 0.0 }
 0xdb0   :  { %3075 = vadd.xlane.f32.xlu0 %v3074_v44  ;;  %v11172_v36 = vpop.eup %11171  ;;  %v3110_v47 = vsel %vm135_vm0, %v3066_v41, 0.0 }
 0xdb1   :  { %v3067_v15 = vmul.f32 %v13201_v7, %v11172_v36 }
 0xdb3   :  { %3087 = vadd.xlane.f32.xlu1 %v3086_v31  ;;  %v3113_v11 = vsel %vm135_vm0, %v3067_v15, 0.0 }
 0xdb4   :  { %3102 = vadd.xlane.f32.xlu0 %v3101_v51 }
 0xdb7   :  { %3090 = vadd.xlane.f32.xlu1 %v3089_v16 }
 0xdb8   :  { %3108 = vadd.xlane.f32.xlu0 %v3107_v42 }
 0xdbb   :  { %3114 = vadd.xlane.f32.xlu1 %v3113_v11 }
 0xdbc   :  { %3111 = vadd.xlane.f32.xlu0 %v3110_v47 }
 0xe2b   :  { %v3094_v28 = vpop.xlane.xlu1 %3093 }
 0xe2c   :  { %v3167_v30 = vrot.slane %v3094_v28, %v12209_v56 }
 0xe2d   :  { %v3097_v44 = vpop.xlane.xlu0 %3096 }
 0xe2e   :  { %v3171_v47 = vrot.slane %v3097_v44, %v12209_v56 }
 0xe30   :  { %v3070_v32 = vpop.xlane.xlu1 %3069 }
 0xe31   :  { %v3100_v1 = vpop.xlane.xlu0 %3099  ;;  %v3135_v0 = vrot.slane %v3070_v32, %v12209_v56 }
 0xe32   :  { %v3175_v50 = vrot.slane %v3100_v1, %v12209_v56 }
 0xe34   :  { %v13251_v62 = vpop.xlane.xlu1 %3081 }
 0xe35   :  { %v13249_v55 = vpop.xlane.xlu0 %3105  ;;  %v3151_v41 = vrot.slane %v13251_v62, %v12209_v56 }
 0xe36   :  { %v3183_v20 = vrot.slane %v13249_v55, %v12209_v56 }
 0xe38   :  { %v3079_v40 = vpop.xlane.xlu1 %3078 }
 0xe39   :  { %v13253_v51 = vpop.xlane.xlu0 %3072  ;;  %v3147_v36 = vrot.slane %v3079_v40, %v12209_v56 }
 0xe3a   :  { %v3139_v7 = vrot.slane %v13253_v51, %v12209_v56 }
 0xe3c   :  { %v3196_v42 = vsel %vm859_vm1, %v3139_v7, %v3135_v0  ;;  %v13266_v16 = vpop.xlane.xlu1 %3084 }
 0xe3d   :  { %v13258_v31 = vpop.xlane.xlu0 %3075  ;;  %v3155_v7 = vrot.slane %v13266_v16, %v12209_v56 }
 0xe3e   :  { %v3143_v57 = vrot.slane %v13258_v31, %v12209_v56 }
 0xe40   :  { %v3197_v15 = vsel %vm861_vm2, %v3143_v57, %v3196_v42  ;;  %v13277_v63 = vpop.xlane.xlu1 %3087  ;;  %v3203_v57 = vsel %vm859_vm1, %v3171_v47, %v3167_v30 }
 0xe41   :  { %v3198_v11 = vsel %vm863_vm3, %v3147_v36, %v3197_v15  ;;  %v3103_v22 = vpop.xlane.xlu0 %3102  ;;  %v3204_v15 = vsel %vm861_vm2, %v3175_v50, %v3203_v57 }
 0xe42   :  { %v3199_v49 = vsel %vm865_vm4, %v3151_v41, %v3198_v11  ;;  %v3179_v0 = vrot.slane %v3103_v22, %v12209_v56  ;;  %v3159_v41 = vrot.slane %v13277_v63, %v12209_v56 }
 0xe43   :  { %v3200_v36 = vsel %vm867_vm5, %v3155_v7, %v3199_v49 }
 0xe44   :  { %v3205_v11 = vsel %vm863_vm3, %v3179_v0, %v3204_v15  ;;  %v13291_v3 = vpop.xlane.xlu1 %3090  ;;  %v3201_v30 = vsel %vm869_vm6, %v3159_v41, %v3200_v36 }
 0xe45   :  { %v13280_v42 = vpop.xlane.xlu0 %3108  ;;  %v3163_v49 = vrot.slane %v13291_v3, %v12209_v56  ;;  %v3206_v7 = vsel %vm865_vm4, %v3183_v20, %v3205_v11 }
 0xe46   :  { %v3187_v37 = vrot.slane %v13280_v42, %v12209_v56 }
 0xe47   :  { %v3202_v0 = vsel %vm871_vm7, %v3163_v49, %v3201_v30 }
 0xe48   :  { %v3207_v57 = vsel %vm867_vm5, %v3187_v37, %v3206_v7  ;;  %v13303_v15 = vpop.xlane.xlu1 %3114  ;;  %v3212_v52 = vsel %vm882_vm8, %v3202_v0, -inf }
 0xe49   :  { %v13296_v47 = vpop.xlane.xlu0 %3111  ;;  %v3195_v41 = vrot.slane %v13303_v15, %v12209_v56  ;;  %3213 = vmax.xlane.f32.xlu0 %v3212_v52 }
 0xe4a   :  { %v3191_v50 = vrot.slane %v13296_v47, %v12209_v56 }
 0xe4c   :  { %v3208_v36 = vsel %vm869_vm6, %v3191_v50, %v3207_v57 }
 0xe4d   :  { %v3209_v23 = vsel %vm871_vm7, %v3195_v41, %v3208_v36 }
 0xe4e   :  { %v3215_v46 = vsel %vm882_vm8, %v3209_v23, -inf }
 0xe4f   :  { %3216 = vmax.xlane.f32.xlu1 %v3215_v46 }
 0xed6   :  { %v3214_v20 = vpop.xlane.xlu0 %3213 }
 0xed7   :  { %v3223_v49 = vrot.slane %v3214_v20, %v12045_v18  ;;  %v3235_v0 = vrot.slane %v3214_v20, %v12279_v4  ;;  %v3239_v60 = vrot.slane %v3214_v20, %v12291_v58 }
 0xed9   :  { %v3300_v23 = vsub.f32 %v3070_v32, %v3223_v49  ;;  %v3303_v10 = vsub.f32 %v3079_v40, %v3235_v0  ;;  %v3304_v32 = vsub.f32 %v13251_v62, %v3239_v60  ;;  %v3247_v49 = vrot.slane %v3214_v20, %v12285_v29 }
 0xedb   :  { %v3316_v26 = vmul.f32 1.442695, %v3300_v23 }
 0xedc   :  { %v13311_v11 = vpop.xlane.xlu1 %3216 }
 0xedd   :  { %v3255_v37 = vrot.slane %v13311_v11, %v12045_v18  ;;  %v3259_v30 = vrot.slane %v13311_v11, %v12270_v2  ;;  %v3263_v50 = vrot.slane %v13311_v11, %v12273_v61  ;;  %v3267_v46 = vrot.slane %v13311_v11, %v12279_v4 }
 0xede   :  { %v3271_v48 = vrot.slane %v13311_v11, %v12291_v58 }
 0xedf   :  { %v3308_v52 = vsub.f32 %v3094_v28, %v3255_v37  ;;  %v3309_v7 = vsub.f32 %v3097_v44, %v3259_v30  ;;  %v3310_v57 = vsub.f32 %v3100_v1, %v3263_v50  ;;  %v3311_v38 = vsub.f32 %v3103_v22, %v3267_v46 }
 0xee0   :  { %v3243_v28 = vrot.slane %v3214_v20, %v12276_v19  ;;  %v3322_v37 = vmul.f32 1.442695, %v3303_v10  ;;  %v3227_v1 = vrot.slane %v3214_v20, %v12270_v2  ;;  %v3312_v30 = vsub.f32 %v13249_v55, %v3271_v48 }
 0xee1   :  { %v3332_v36 = vmul.f32 1.442695, %v3308_v52  ;;  %v3334_v41 = vmul.f32 1.442695, %v3309_v7  ;;  %v3336_v44 = vmul.f32 1.442695, %v3310_v57  ;;  %v3231_v52 = vrot.slane %v3214_v20, %v12273_v61 }
 0xee2   :  { %v3338_v40 = vmul.f32 1.442695, %v3311_v38  ;;  %v3305_v50 = vsub.f32 %v13266_v16, %v3243_v28  ;;  %v3324_v22 = vmul.f32 1.442695, %v3304_v32  ;;  %v3301_v7 = vsub.f32 %v13253_v51, %v3227_v1 }
 0xee3   :  { %11173 = vpow2.f32 %v3332_v36  ;;  %v3340_v60 = vmul.f32 1.442695, %v3312_v30  ;;  %v3251_v38 = vrot.slane %v3214_v20, %v12296_v33  ;;  %v3306_v48 = vsub.f32 %v13277_v63, %v3247_v49 }
 0xee4   :  { %11175 = vpow2.f32 %v3334_v41  ;;  %v3326_v55 = vmul.f32 1.442695, %v3305_v50  ;;  %v3302_v62 = vsub.f32 %v13258_v31, %v3231_v52  ;;  %v3318_v16 = vmul.f32 1.442695, %v3301_v7 }
 0xee5   :  { %11177 = vpow2.f32 %v3316_v26  ;;  %v3275_v51 = vrot.slane %v13311_v11, %v12276_v19  ;;  %v3307_v20 = vsub.f32 %v13291_v3, %v3251_v38  ;;  %v3328_v63 = vmul.f32 1.442695, %v3306_v48 }
 0xee6   :  { %11179 = vpow2.f32 %v3336_v44  ;;  %v3283_v46 = vrot.slane %v13311_v11, %v12296_v33  ;;  %v3320_v31 = vmul.f32 1.442695, %v3302_v62  ;;  %v3279_v57 = vrot.slane %v13311_v11, %v12285_v29 }
 0xee7   :  { %11181 = vpow2.f32 %v3322_v37  ;;  %v3313_v36 = vsub.f32 %v13280_v42, %v3275_v51  ;;  %v3330_v3 = vmul.f32 1.442695, %v3307_v20 }
 0xee8   :  { %11183 = vpow2.f32 %v3338_v40  ;;  %v3315_v28 = vsub.f32 %v13303_v15, %v3283_v46  ;;  %v3314_v32 = vsub.f32 %v13296_v47, %v3279_v57 }
 0xee9   :  { %11185 = vpow2.f32 %v3324_v22  ;;  %v3342_v37 = vmul.f32 1.442695, %v3313_v36 }
 0xeea   :  { %11187 = vpow2.f32 %v3340_v60  ;;  %v3346_v42 = vmul.f32 1.442695, %v3315_v28  ;;  %v3344_v30 = vmul.f32 1.442695, %v3314_v32 }
 0xeeb   :  { %11189 = vpow2.f32 %v3326_v55 }
 0xeec   :  { %11191 = vpow2.f32 %v3318_v16 }
 0xeed   :  { %v13334_v26 = vpop.eup %11173  ;;  %11193 = vpow2.f32 %v3328_v63 }
 0xeee   :  { %v13336_v10 = vpop.eup %11175  ;;  %3389 = vperm.xlu0 %10971, %v13334_v26   ;;  %11195 = vpow2.f32 %v3320_v31 }
 0xeef   :  { %3392 = vperm.xlu1 %10972, %v13336_v10   ;;  %v13345_v0 = vpop.eup %11177  ;;  %11197 = vpow2.f32 %v3330_v3 }
 0xef0   :  { %v13347_v23 = vpop.eup %11179  ;;  %11199 = vpow2.f32 %v3342_v37 }
 0xef1   :  { %v13357_v41 = vpop.eup %11181  ;;  %11201 = vpow2.f32 %v3346_v42 }
 0xef2   :  { %3365 = vperm.xlu0 %10971, %v13345_v0   ;;  %v13359_v44 = vpop.eup %11183  ;;  %11203 = vpow2.f32 %v3344_v30 }
 0xef3   :  { %3395 = vperm.xlu1 %10972, %v13347_v23   ;;  %v13365_v1 = vpop.eup %11185 }
 0xef4   :  { %v13367_v11 = vpop.eup %11187 }
 0xef5   :  { %v13371_v40 = vpop.eup %11189 }
 0xef6   :  { %3374 = vperm.xlu0 %10971, %v13357_v41   ;;  %v13373_v15 = vpop.eup %11191 }
 0xef7   :  { %3398 = vperm.xlu1 %10972, %v13359_v44   ;;  %v13377_v47 = vpop.eup %11193 }
 0xef8   :  { %v13379_v49 = vpop.eup %11195 }
 0xef9   :  { %v13383_v50 = vpop.eup %11197 }
 0xefa   :  { %3377 = vperm.xlu0 %10971, %v13365_v1   ;;  %v13385_v22 = vpop.eup %11199 }
 0xefb   :  { %3401 = vperm.xlu1 %10972, %v13367_v11   ;;  %v13389_v52 = vpop.eup %11201 }
 0xefc   :  { %v13391_v7 = vpop.eup %11203 }
 0xefe   :  { %3380 = vperm.xlu0 %10971, %v13371_v40  }
 0xeff   :  { %3368 = vperm.xlu1 %10972, %v13373_v15  }
 0xf02   :  { %3383 = vperm.xlu0 %10971, %v13377_v47  }
 0xf03   :  { %3371 = vperm.xlu1 %10972, %v13379_v49  }
 0xf06   :  { %3386 = vperm.xlu0 %10971, %v13383_v50  }
 0xf07   :  { %3404 = vperm.xlu1 %10972, %v13385_v22  }
 0xf0a   :  { %3410 = vperm.xlu0 %10971, %v13389_v52  }
 0xf0b   :  { %3407 = vperm.xlu1 %10972, %v13391_v7  }
 0xf6d   :  { %v3390_v60 = vpop.permute.xlu0 %3389 }
 0xf6e   :  { %v3393_v38 = vpop.permute.xlu1 %3392  ;;  %v3447_v37 = vrot.slane %v3390_v60, %v12209_v56 }
 0xf6f   :  { %v3451_v32 = vrot.slane %v3393_v38, %v12209_v56 }
 0xf71   :  { %v3366_v48 = vpop.permute.xlu0 %3365 }
 0xf72   :  { %v3396_v55 = vpop.permute.xlu1 %3395  ;;  %v3415_v36 = vrot.slane %v3366_v48, %v12209_v56 }
 0xf73   :  { %v3455_v59 = vrot.slane %v3396_v55, %v12209_v56 }
 0xf75   :  { %v3375_v62 = vpop.permute.xlu0 %3374 }
 0xf76   :  { %v3399_v16 = vpop.permute.xlu1 %3398  ;;  %v3427_v42 = vrot.slane %v3375_v62, %v12209_v56 }
 0xf77   :  { %v3459_v48 = vrot.slane %v3399_v16, %v12209_v56 }
 0xf79   :  { %v3378_v51 = vpop.permute.xlu0 %3377 }
 0xf7a   :  { %v3402_v20 = vpop.permute.xlu1 %3401  ;;  %v3431_v12 = vrot.slane %v3378_v51, %v12209_v56  ;;  %v3483_v51 = vsel %vm859_vm1, %v3451_v32, %v3447_v37 }
 0xf7b   :  { %v3463_v62 = vrot.slane %v3402_v20, %v12209_v56  ;;  %v3484_v16 = vsel %vm861_vm2, %v3455_v59, %v3483_v51 }
 0xf7d   :  { %v3381_v63 = vpop.permute.xlu0 %3380 }
 0xf7e   :  { %v3369_v46 = vpop.permute.xlu1 %3368  ;;  %v3435_v25 = vrot.slane %v3381_v63, %v12209_v56 }
 0xf7f   :  { %v3419_v31 = vrot.slane %v3369_v46, %v12209_v56 }
 0xf81   :  { %v3384_v57 = vpop.permute.xlu0 %3383  ;;  %v3476_v30 = vsel %vm859_vm1, %v3419_v31, %v3415_v36 }
 0xf82   :  { %v3372_v3 = vpop.permute.xlu1 %3371  ;;  %v3439_v31 = vrot.slane %v3384_v57, %v12209_v56 }
 0xf83   :  { %v3423_v28 = vrot.slane %v3372_v3, %v12209_v56 }
 0xf85   :  { %v3477_v46 = vsel %vm861_vm2, %v3423_v28, %v3476_v30  ;;  %v3387_v9 = vpop.permute.xlu0 %3386  ;;  %v3485_v30 = vsel %vm863_vm3, %v3459_v48, %v3484_v16 }
 0xf86   :  { %v3478_v3 = vsel %vm863_vm3, %v3427_v42, %v3477_v46  ;;  %v3405_v38 = vpop.permute.xlu1 %3404  ;;  %v3443_v60 = vrot.slane %v3387_v9, %v12209_v56 }
 0xf87   :  { %v3479_v55 = vsel %vm865_vm4, %v3431_v12, %v3478_v3  ;;  %v3467_v36 = vrot.slane %v3405_v38, %v12209_v56  ;;  %v3486_v12 = vsel %vm865_vm4, %v3463_v62, %v3485_v30 }
 0xf88   :  { %v3480_v28 = vsel %vm867_vm5, %v3435_v25, %v3479_v55 }
 0xf89   :  { %v3411_v63 = vpop.permute.xlu0 %3410  ;;  %v3481_v42 = vsel %vm869_vm6, %v3439_v31, %v3480_v28  ;;  %v3487_v25 = vsel %vm867_vm5, %v3467_v36, %v3486_v12 }
 0xf8a   :  { %v3408_v9 = vpop.permute.xlu1 %3407  ;;  %v3475_v20 = vrot.slane %v3411_v63, %v12209_v56  ;;  %v3482_v57 = vsel %vm871_vm7, %v3443_v60, %v3481_v42 }
 0xf8b   :  { %v3471_v32 = vrot.slane %v3408_v9, %v12209_v56  ;;  %v3492_v37 = vsel %vm882_vm8, %v3482_v57, 0.0 }
 0xf8c   :  { %3493 = vadd.xlane.f32.xlu1 %v3492_v37 }
 0xf8d   :  { %v3488_v59 = vsel %vm869_vm6, %v3471_v32, %v3487_v25 }
 0xf8e   :  { %v3489_v46 = vsel %vm871_vm7, %v3475_v20, %v3488_v59 }
 0xf8f   :  { %v3495_v48 = vsel %vm882_vm8, %v3489_v46, 0.0 }
 0xf90   :  { %3496 = vadd.xlane.f32.xlu0 %v3495_v48 }
0x1019   :  { %v3494_v3 = vpop.xlane.xlu1 %3493 }
0x101a   :  { %11205 = vrcp.f32 %v3494_v3 }
0x101d   :  { %v3497_v38 = vpop.xlane.xlu0 %3496 }
0x101e   :  { %11207 = vrcp.f32 %v3497_v38 }
0x1024   :  { %v11206_v60 = vpop.eup %11205 }
0x1025   :  { %v3505_v31 = vrot.slane %v11206_v60, %v12045_v18  ;;  %v3517_v42 = vrot.slane %v11206_v60, %v12279_v4  ;;  %v3525_v25 = vrot.slane %v11206_v60, %v12276_v19  ;;  %v3529_v3 = vrot.slane %v11206_v60, %v12285_v29 }
0x1027   :  { %v3582_v63 = vmul.f32 %v13345_v0, %v3505_v31  ;;  %v3585_v12 = vmul.f32 %v13357_v41, %v3517_v42 }
0x1028   :  { %v11208_v62 = vpop.eup %11207 }
0x1029   :  { %v3541_v55 = vrot.slane %v11208_v62, %v12270_v2  ;;  %v3537_v51 = vrot.slane %v11208_v62, %v12045_v18  ;;  %v3545_v36 = vrot.slane %v11208_v62, %v12273_v61  ;;  %v3549_v57 = vrot.slane %v11208_v62, %v12279_v4 }
0x102a   :  { %v3601_v0 = vmul.f32 %v3582_v63, %v12465_v6  ;;  %v3553_v37 = vrot.slane %v11208_v62, %v12291_v58  ;;  %v3604_v41 = vmul.f32 %v3585_v12, %v12467_v53  ;;  %v3557_v63 = vrot.slane %v11208_v62, %v12276_v19 }
0x102b   :  { %v3591_v28 = vmul.f32 %v13336_v10, %v3541_v55  ;;  %v3590_v16 = vmul.f32 %v13334_v26, %v3537_v51  ;;  %v3592_v20 = vmul.f32 %v13347_v23, %v3545_v36  ;;  %v3521_v10 = vrot.slane %v11206_v60, %v12291_v58 }
0x102c   :  { %v3593_v32 = vmul.f32 %v13359_v44, %v3549_v57  ;;  %v3509_v23 = vrot.slane %v11206_v60, %v12270_v2  ;;  %v3594_v46 = vmul.f32 %v13367_v11, %v3553_v37  ;;  %v3513_v44 = vrot.slane %v11206_v60, %v12273_v61 }
0x102d   :  { %v3610_v30 = vmul.f32 %v3591_v28, %v12486_v39  ;;  %v3609_v9 = vmul.f32 %v3590_v16, %v12463_v45  ;;  %v3611_v26 = vmul.f32 %v3592_v20, %v12500_v24  ;;  %v3586_v48 = vmul.f32 %v13365_v1, %v3521_v10 }
0x102e   :  { %v3612_v59 = vmul.f32 %v3593_v32, %v12508_v54  ;;  %v3613_v38 = vmul.f32 %v3594_v46, %v12523_v5  ;;  %v3583_v55 = vmul.f32 %v13373_v15, %v3509_v23  ;;  %v3587_v51 = vmul.f32 %v13371_v40, %v3525_v25 }
0x102f   :  { %3661 = vperm.xlu1 %10972, %v3610_v30   ;;  %3658 = vperm.xlu0 %10971, %v3609_v9   ;;  %v3605_v31 = vmul.f32 %v3586_v48, %v12482_v43  ;;  %v3584_v11 = vmul.f32 %v13379_v49, %v3513_v44  ;;  %v3533_v1 = vrot.slane %v11206_v60, %v12296_v33 }
0x1030   :  { %v3602_v36 = vmul.f32 %v3583_v55, %v12461_v17  ;;  %v3606_v28 = vmul.f32 %v3587_v51, %v12490_v21  ;;  %v3588_v16 = vmul.f32 %v13377_v47, %v3529_v3  ;;  %v3595_v49 = vmul.f32 %v13385_v22, %v3557_v63 }
0x1031   :  { %v3603_v15 = vmul.f32 %v3584_v11, %v12476_v14  ;;  %v3589_v40 = vmul.f32 %v13383_v50, %v3533_v1  ;;  %v3561_v60 = vrot.slane %v11208_v62, %v12285_v29  ;;  %v3565_v30 = vrot.slane %v11208_v62, %v12296_v33 }
0x1032   :  { %v3607_v42 = vmul.f32 %v3588_v16, %v12497_v27  ;;  %v3614_v47 = vmul.f32 %v3595_v49, %v12531_v13 }
0x1033   :  { %3664 = vperm.xlu1 %10972, %v3611_v26   ;;  %3634 = vperm.xlu0 %10971, %v3601_v0   ;;  %v3608_v9 = vmul.f32 %v3589_v40, %v12511_v34  ;;  %v3596_v20 = vmul.f32 %v13391_v7, %v3561_v60  ;;  %v3597_v57 = vmul.f32 %v13389_v52, %v3565_v30 }
0x1035   :  { %v3615_v50 = vmul.f32 %v3596_v20, %v12537_v35  ;;  %v3616_v22 = vmul.f32 %v3597_v57, %v16007_v8 }
0x1037   :  { %3667 = vperm.xlu1 %10972, %v3612_v59   ;;  %3643 = vperm.xlu0 %10971, %v3604_v41  }
0x103b   :  { %3670 = vperm.xlu1 %10972, %v3613_v38   ;;  %3646 = vperm.xlu0 %10971, %v3605_v31  }
0x103f   :  { %3637 = vperm.xlu1 %10972, %v3602_v36   ;;  %3649 = vperm.xlu0 %10971, %v3606_v28  }
0x1043   :  { %3640 = vperm.xlu1 %10972, %v3603_v15   ;;  %3652 = vperm.xlu0 %10971, %v3607_v42  }
0x1047   :  { %3673 = vperm.xlu1 %10972, %v3614_v47   ;;  %3655 = vperm.xlu0 %10971, %v3608_v9  }
0x104b   :  { %3676 = vperm.xlu1 %10972, %v3615_v50   ;;  %3679 = vperm.xlu0 %10971, %v3616_v22  }
0x10ae   :  { %v3662_v12 = vpop.permute.xlu1 %3661  ;;  %v3659_v62 = vpop.permute.xlu0 %3658 }
0x10af   :  { %v3720_v44 = vrot.slane %v3662_v12, %v12209_v56  ;;  %v3716_v3 = vrot.slane %v3659_v62, %v12209_v56 }
0x10b1   :  { %v3752_v60 = vsel %vm859_vm1, %v3720_v44, %v3716_v3  ;;  %v11650_v3 = vld [vmem:[#allocation3] ss:$0 sm:$0xff] }
0x10b2   :  { %v3665_v10 = vpop.permute.xlu1 %3664  ;;  %v3635_v26 = vpop.permute.xlu0 %3634 }
0x10b3   :  { %v3684_v59 = vrot.slane %v3635_v26, %v12209_v56  ;;  %v3724_v55 = vrot.slane %v3665_v10, %v12209_v56 }
0x10b5   :  { %v3753_v9 = vsel %vm861_vm2, %v3724_v55, %v3752_v60  ;;  %v16060_v60 = vld [vmem:[#allocation44_spill] sm:$0xff] }
0x10b6   :  { %v3668_v0 = vpop.permute.xlu1 %3667  ;;  %v3644_v32 = vpop.permute.xlu0 %3643 }
0x10b7   :  { %v3696_v38 = vrot.slane %v3644_v32, %v12209_v56  ;;  %v3728_v1 = vrot.slane %v3668_v0, %v12209_v56 }
0x10b9   :  { %v3754_v57 = vsel %vm863_vm3, %v3728_v1, %v3753_v9  ;;  %v16056_v1 = vld [vmem:[#allocation42_spill] sm:$0xff] }
0x10ba   :  { %v3671_v37 = vpop.permute.xlu1 %3670  ;;  %v3647_v23 = vpop.permute.xlu0 %3646 }
0x10bb   :  { %v3700_v51 = vrot.slane %v3647_v23, %v12209_v56  ;;  %v3732_v15 = vrot.slane %v3671_v37, %v12209_v56 }
0x10bd   :  { %v3755_v62 = vsel %vm865_vm4, %v3732_v15, %v3754_v57  ;;  %v16061_v57 = vld [vmem:[#allocation51_spill] sm:$0xff] }
0x10be   :  { %v3638_v25 = vpop.permute.xlu1 %3637  ;;  %v3650_v7 = vpop.permute.xlu0 %3649 }
0x10bf   :  { %v3688_v52 = vrot.slane %v3638_v25, %v12209_v56  ;;  %v3704_v36 = vrot.slane %v3650_v7, %v12209_v56  ;;  %v10049_v7 = vld [vmem:[%s15770_s1 + $0x20] sm:$0xff] }
0x10c1   :  { %v3745_v31 = vsel %vm859_vm1, %v3688_v52, %v3684_v59  ;;  %v11649_v52 = vld [vmem:[#allocation2] ss:$0 sm:$0xff] }
0x10c2   :  { %v3641_v41 = vpop.permute.xlu1 %3640  ;;  %v3653_v46 = vpop.permute.xlu0 %3652  ;;  %v3767_v59 = vmul.f32 %v11649_v52, %v10049_v7 }
0x10c3   :  { %v3692_v48 = vrot.slane %v3641_v41, %v12209_v56  ;;  %v3708_v40 = vrot.slane %v3653_v46, %v12209_v56  ;;  %v10050_v41 = vld [vmem:[%s15770_s1 + $0x28] sm:$0xff] }
0x10c4   :  { %v3768_v44 = vmul.f32 %v11649_v52, %v10050_v41 }
0x10c5   :  { %v3746_v11 = vsel %vm861_vm2, %v3692_v48, %v3745_v31 }
0x10c6   :  { %v3747_v28 = vsel %vm863_vm3, %v3696_v38, %v3746_v11  ;;  %v3674_v16 = vpop.permute.xlu1 %3673  ;;  %v3656_v63 = vpop.permute.xlu0 %3655 }
0x10c7   :  { %v3712_v42 = vrot.slane %v3656_v63, %v12209_v56  ;;  %v3748_v49 = vsel %vm865_vm4, %v3700_v51, %v3747_v28  ;;  %v3736_v30 = vrot.slane %v3674_v16, %v12209_v56  ;;  %v16057_v28 = vld [vmem:[#allocation43_spill] sm:$0xff]  ;;  %v16058_v63 = vld [vmem:[#allocation49_spill] sm:$0xff] }
0x10c8   :  { %v3749_v47 = vsel %vm867_vm5, %v3704_v36, %v3748_v49 }
0x10c9   :  { %v3750_v20 = vsel %vm869_vm6, %v3708_v40, %v3749_v47  ;;  %v3756_v32 = vsel %vm867_vm5, %v3736_v30, %v3755_v62  ;;  %v16059_v40 = vld [vmem:[#allocation50_spill] sm:$0xff] }
0x10ca   :  { %v3677_v50 = vpop.permute.xlu1 %3676  ;;  %v3680_v22 = vpop.permute.xlu0 %3679  ;;  %v3751_v12 = vsel %vm871_vm7, %v3712_v42, %v3750_v20  ;;  %v16063_v62 = vld [vmem:[#allocation46_spill] sm:$0xff] }
0x10cb   :  { %v3740_v10 = vrot.slane %v3677_v50, %v12209_v56  ;;  %v3744_v26 = vrot.slane %v3680_v22, %v12209_v56  ;;  %v3761_v0 = vsel %vm882_vm8, %v3751_v12, 0.0  ;;  %v16062_v22 = vld [vmem:[#allocation45_spill] sm:$0xff] }
0x10cc   :  { %3762 = vadd.xlane.f32.xlu1 %v3761_v0 }
0x10cd   :  { %v3757_v37 = vsel %vm869_vm6, %v3740_v10, %v3756_v32 }
0x10ce   :  { %v3758_v23 = vsel %vm871_vm7, %v3744_v26, %v3757_v37 }
0x10cf   :  { %v3764_v25 = vsel %vm882_vm8, %v3758_v23, 0.0 }
0x10d0   :  { %3765 = vadd.xlane.f32.xlu0 %v3764_v25 }
0x1159   :  { %v3763_v46 = vpop.xlane.xlu1 %3762 }
0x115a   :  { %v3769_v48 = vadd.f32 %v3767_v59, %v3763_v46 }
0x115c   :  { %v3771_v38 = vadd.f32 %v11650_v3, %v3769_v48 }
0x115d   :  { %v3766_v31 = vpop.xlane.xlu0 %3765 }
0x115e   :  { %v3770_v55 = vadd.f32 %v3768_v44, %v3766_v31  ;;  %3775 = vperm.xlu0 %10971, %v3771_v38   ;;  %v16064_v31 = vld [vmem:[#allocation33_spill] sm:$0xff] }
0x1160   :  { %v3772_v51 = vadd.f32 %v11650_v3, %v3770_v55 }
0x1162   :  { %3780 = vperm.xlu1 %10972, %v3772_v51  }
0x11dd   :  { %v3776_v11 = vpop.permute.xlu0 %3775 }
0x11de   :  { %v3783_v36 = vmul.f32 %v3776_v11, %v16056_v1  ;;  %v3784_v16 = vmul.f32 %v3776_v11, %v16057_v28 }
0x11e0   :  { %v3868_v15 = vadd.f32 %v16058_v63, %v3783_v36  ;;  %v3869_v42 = vadd.f32 %v16059_v40, %v3784_v16  ;;  %v16066_v36 = vld [vmem:[#allocation48_spill] sm:$0xff] }
0x11e1   :  { %v3781_v49 = vpop.permute.xlu1 %3780 }
0x11e2   :  { %v3872_v30 = vadd.f32 %v3868_v15, %v16060_v60  ;;  %v3785_v47 = vmul.f32 %v3781_v49, %v16056_v1  ;;  %v3786_v9 = vmul.f32 %v3781_v49, %v16057_v28  ;;  %v3873_v12 = vadd.f32 %v3869_v42, %v16062_v22 }
0x11e4   :  { %v3876_v20 = vmul.f32 0.5, %v3872_v30  ;;  %v3870_v50 = vadd.f32 %v16061_v57, %v3785_v47  ;;  %v3871_v10 = vadd.f32 %v16063_v62, %v3786_v9  ;;  %v3886_v3 = vmul.f32 0.5, %v3873_v12 }
0x11e6   :  { %11209 = vtanh.f32 %v3876_v20  ;;  %v3874_v26 = vadd.f32 %v3870_v50, %v16060_v60  ;;  %v3875_v32 = vadd.f32 %v3871_v10, %v16062_v22 }
0x11e7   :  { %11211 = vtanh.f32 %v3873_v12 }
0x11e8   :  { %v3877_v0 = vmul.f32 0.5, %v3874_v26  ;;  %v3887_v38 = vmul.f32 0.5, %v3875_v32  ;;  %v16068_v26 = vmov 0.0  }
0x11ea   :  { %11213 = vtanh.f32 %v3877_v0  ;;  %v16069_v0 = vld [vmem:[#allocation8_spill] sm:$0xff] }
0x11eb   :  { %11215 = vtanh.f32 %v3875_v32 }
0x11ec   :  { %11217 = vtanh.f32 %v3886_v3  ;;  %v16079_v3 = vld [vmem:[#allocation40_spill] sm:$0xff] }
0x11ed   :  { %11219 = vtanh.f32 %v3887_v38  ;;  %v16080_v38 = vld [vmem:[#allocation41_spill] sm:$0xff] }
0x11f0   :  { %v11210_v37 = vpop.eup %11209 }
0x11f1   :  { %v3880_v23 = vadd.f32 1.0, %v11210_v37  ;;  %v11212_v25 = vpop.eup %11211  ;;  %v16070_v37 = vld [vmem:[#allocation9_spill] sm:$0xff] }
0x11f3   :  { %v3882_v7 = vmul.f32 0.5, %v3880_v23 }
0x11f4   :  { %v11214_v52 = vpop.eup %11213 }
0x11f5   :  { %v3896_v59 = vmul.f32 %v11212_v25, %v3882_v7  ;;  %v3881_v41 = vadd.f32 1.0, %v11214_v52  ;;  %v11216_v48 = vpop.eup %11215  ;;  %v3894_v55 = vmul.f32 %v3882_v7, %v16064_v31  ;;  %v16071_v25 = vld [vmem:[#allocation35_spill] sm:$0xff]  ;;  %v16072_v7 = vld [vmem:[#allocation10_spill] sm:$0xff]  ;;  %v16073_v52 = vld [vmem:[#allocation36_spill] sm:$0xff] }
0x11f6   :  { %v11218_v15 = vpop.eup %11217  ;;  %v16081_v31 = vld [vmem:[#allocation13_spill] sm:$0xff] }
0x11f7   :  { %3900 = vrot.lane.b32.xlu1 %v3896_v59, %s11712_s6  ;;  %v3883_v46 = vmul.f32 0.5, %v3881_v41  ;;  %v3890_v42 = vadd.f32 1.0, %v11218_v15  ;;  %v11220_v49 = vpop.eup %11219  ;;  %v16074_v59 = vld [vmem:[#allocation37_spill] sm:$0xff]  ;;  %v16075_v41 = vld [vmem:[#allocation11_spill] sm:$0xff] }
0x11f8   :  { %v3891_v47 = vadd.f32 1.0, %v11220_v49 }
0x11f9   :  { %v3897_v44 = vmul.f32 %v11216_v48, %v3883_v46  ;;  %v3895_v16 = vmul.f32 %v3883_v46, %v16066_v36  ;;  %v3892_v30 = vmul.f32 0.5, %v3890_v42  ;;  %v16076_v46 = vld [vmem:[#allocation38_spill] sm:$0xff]  ;;  %v16077_v48 = vld [vmem:[#allocation39_spill] sm:$0xff] }
0x11fa   :  { %v3893_v57 = vmul.f32 0.5, %v3891_v47  ;;  %v16084_v36 = vld [vmem:[#allocation34_spill] sm:$0xff]  ;;  %v16089_v47 = vld [vmem:[#allocation16_spill] sm:$0xff] }
0x11fb   :  { %3902 = vrot.lane.b32.xlu0 %v3897_v44, %s11712_s6  ;;  %v16078_v44 = vld [vmem:[#allocation12_spill] sm:$0xff] }
0x1269   :  { %v3901_v51 = vpop.permute.xlu1 %3900 }
0x126a   :  { %v13528_v11 = vadd.f32 %v3901_v51, %v3894_v55  ;;  %v16082_v55 = vld [vmem:[#allocation14_spill] sm:$0xff]  ;;  %v16083_v51 = vld [vmem:[#allocation15_spill] sm:$0xff] }
0x126c   :  { %16065 = vst [vmem:[#allocation47_spill] sm:$0xff] %v13528_v11  ;;  %11221 = vtanh.f32 %v13528_v11 }
0x126d   :  { %v3903_v63 = vpop.permute.xlu0 %3902 }
0x126e   :  { %v13532_v40 = vadd.f32 %v3903_v63, %v3895_v16 }
0x1270   :  { %16067 = vst [vmem:[#allocation49_spill] sm:$0xff] %v13532_v40  ;;  %11223 = vtanh.f32 %v13532_v40 }
0x1276   :  { %v11222_v9 = vpop.eup %11221 }
0x1277   :  { %v3910_v20 = vmul.f32 %v11222_v9, %v3892_v30 }
0x1279   :  { %3914 = vrot.lane.b32.xlu1 %v3910_v20, %s11712_s6 }
0x127a   :  { %v11224_v50 = vpop.eup %11223 }
0x127b   :  { %v3911_v12 = vmul.f32 %v11224_v50, %v3893_v57 }
0x127d   :  { %3916 = vrot.lane.b32.xlu0 %v3911_v12, %s11712_s6 }
0x12eb   :  { %v3915_v62 = vpop.permute.xlu1 %3914 }
0x12ec   :  { %10055 = vmatmul.mubr.msk.f32.vlgmr.msra.gmra.mrb[26].mxu0 %vm135_vm0, %v3915_v62  ;;  %v3920_v10 = vsel %vm135_vm0, %v3915_v62, %v13528_v11 }
0x12ed   :  { %10421 = vmatprep.mubr.f32.mxu1 %v3920_v10  ;;  %5018 = vmatprep.mubr.f32.mxu0 %v16068_v26 }
0x12ee   :  { %10775 = vmatpush3.bf16.msra.mxu0 %v16069_v0 }
0x12ef   :  { %v3917_v32 = vpop.permute.xlu0 %3916  ;;  %10777 = vmatprep.subr.bf16.mxu0 %v16070_v37 }
0x12f0   :  { %v3921_v23 = vsel %vm135_vm0, %v3917_v32, %v13532_v40  ;;  %10056 = vmatmul.mubr.msk.f32.gmra.mrb[28].mxu0 %vm135_vm0, %v3917_v32 }
0x12f1   :  { %10422 = vmatmul.mubr.f32.vlgmr.msra.gmra.mrb[8].mxu1 %v3921_v23 }
0x12f2   :  { %10779 = vmatpush3.bf16.msra.mxu0 %v16070_v37  ;;  %10807 = vmatpush1.bf16.msra.mxu1 %v16071_v25  ;;  %v16097_v25 = vld [vmem:[#allocation22_spill] sm:$0xff] }
0x12f3   :  { %10781 = vmatprep.subr.bf16.mxu0 %v16072_v7  ;;  %10809 = vmatprep.subr.bf16.mxu1 %v16073_v52 }
0x12f4   :  { %6169 = vmatprep.mubr.f32.mxu1 %v16068_v26 }
0x12f6   :  { %10783 = vmatpush3.bf16.msra.mxu0 %v16072_v7  ;;  %10811 = vmatpush1.bf16.msra.mxu1 %v16074_v59 }
0x12f7   :  { %10785 = vmatprep.subr.bf16.mxu0 %v16075_v41  ;;  %10813 = vmatprep.subr.bf16.mxu1 %v16076_v46  ;;  %v16092_v46 = vld [vmem:[#allocation20_spill] sm:$0xff] }
0x12fa   :  { %10787 = vmatpush3.bf16.msra.mxu0 %v16075_v41  ;;  %10815 = vmatpush1.bf16.msra.mxu1 %v16077_v48  ;;  %v16091_v48 = vld [vmem:[#allocation21_spill] sm:$0xff] }
0x12fb   :  { %10789 = vmatprep.subr.bf16.mxu0 %v16078_v44  ;;  %10817 = vmatprep.subr.bf16.mxu1 %v16079_v3 }
0x12fe   :  { %10791 = vmatpush3.bf16.msra.mxu0 %v16078_v44  ;;  %10819 = vmatpush1.bf16.msra.mxu1 %v16080_v38 }
0x12ff   :  { %10793 = vmatprep.subr.bf16.mxu0 %v16081_v31  ;;  %10821 = vmatprep.subr.bf16.mxu1 %v16069_v0 }
0x1302   :  { %10795 = vmatpush3.bf16.msra.mxu0 %v16081_v31 }
0x1303   :  { %10797 = vmatprep.subr.bf16.mxu0 %v16082_v55 }
0x1306   :  { %10799 = vmatpush3.bf16.msra.mxu0 %v16082_v55 }
0x1307   :  { %10801 = vmatprep.subr.bf16.mxu0 %v16083_v51 }
0x130a   :  { %10803 = vmatpush3.bf16.msra.mxu0 %v16083_v51 }
0x130b   :  { %10853 = vmatprep.subr.bf16.mxu0 %v16084_v36 }
0x13bf   :  { %v13569_v16 = vpop.f32.mrb[26].mxu0 }
0x13c0   :  { %16085 = vst [vmem:[#allocation50_spill] sm:$0xff] %v13569_v16  ;;  %v13571_v63 = vpop.f32.mrb[27].mxu0 }
0x13c1   :  { %16086 = vst [vmem:[#allocation51_spill] sm:$0xff] %v13571_v63 }
0x13c3   :  { %v13573_v15 = vpop.f32.mrb[28].mxu0 }
0x13c4   :  { %16087 = vst [vmem:[#allocation46_spill] sm:$0xff] %v13573_v15  ;;  %v10423_v42 = vpop.f32.mrb[8].mxu1  ;;  %v13575_v49 = vpop.f32.mrb[29].mxu0 }
0x13c5   :  { %16088 = vst [vmem:[#allocation33_spill] sm:$0xff] %v13575_v49  ;;  %v4048_v30 = vcombine.high %v10423_v42, %v10423_v42  ;;  %v4055_v9 = vrot.slane %v10423_v42, %v16089_v47  ;;  %v3988_v20 = vpop.f32.mrb[9].mxu1 }
0x13c6   :  { %v4006_v57 = vrot.slane %v3988_v20, %v16089_v47  ;;  %v3999_v10 = vcombine.high %v3988_v20, %v3988_v20  ;;  %v16090_v20 = vld [vmem:[#allocation19_spill] sm:$0xff] }
0x13c7   :  { %v4062_v50 = vrot.slane %v4048_v30, %v16089_v47  ;;  %v4063_v12 = vcombine.high %v4055_v9, %v4055_v9  ;;  %v4071_v62 = vrot.slane %v4055_v9, %v16089_v47 }
0x13c8   :  { %v4014_v32 = vcombine.high %v4006_v57, %v4006_v57  ;;  %v4013_v31 = vrot.slane %v3999_v10, %v16089_v47  ;;  %v4022_v38 = vrot.slane %v4006_v57, %v16089_v47  ;;  %v16093_v10 = vld [vmem:[#allocation28_spill] sm:$0xff] }
0x13c9   :  { %v13582_v23 = vrot.slane %v4062_v50, %v16089_v47  ;;  %v4085_v36 = vrot.slane %v4063_v12, %v16089_v47  ;;  %v4093_v51 = vcombine.high %v4071_v62, %v4071_v62  ;;  %v4132_v55 = vrot.slane %v4071_v62, %v12045_v18 }
0x13ca   :  { %v4036_v44 = vrot.slane %v4014_v32, %v16089_v47  ;;  %v4015_v62 = vcombine.high %v4013_v31, %v4013_v31  ;;  %v4029_v59 = vrot.slane %v4013_v31, %v16089_v47  ;;  %v4044_v57 = vcombine.high %v4022_v38, %v4022_v38 }
0x13cb   :  { %v4136_v42 = vrot.slane %v4085_v36, %v12045_v18  ;;  %v4140_v30 = vrot.slane %v4093_v51, %v12045_v18  ;;  %v4148_v9 = vrot.slane %v13582_v23, %v12045_v18  ;;  %v4185_v3 = vadd.f32 %v4132_v55, %v16090_v20 }
0x13cc   :  { %v4046_v51 = vcombine.high %v4036_v44, %v4036_v44  ;;  %v4100_v7 = vrot.slane %v4022_v38, %v12045_v18  ;;  %v4104_v55 = vrot.slane %v4036_v44, %v12045_v18  ;;  %v4064_v20 = vcombine.high %v4062_v50, %v4062_v50 }
0x13cd   :  { %v4186_v12 = vadd.f32 %v4136_v42, %v16091_v48  ;;  %v4187_v41 = vadd.f32 %v4140_v30, %v16092_v46  ;;  %11225 = vtanh.f32 %v4185_v3  ;;  %v4189_v52 = vadd.f32 %v4148_v9, %v16093_v10  ;;  %v16094_v9 = vld [vmem:[#allocation17_spill] sm:$0xff]  ;;  %v16095_v10 = vld [vmem:[#allocation23_spill] sm:$0xff] }
0x13ce   :  { %v4112_v32 = vrot.slane %v4046_v51, %v12045_v18  ;;  %v4095_v42 = vcombine.high %v4085_v36, %v4085_v36  ;;  %v4043_v30 = vrot.slane %v4015_v62, %v16089_v47  ;;  %v4116_v3 = vrot.slane %v4029_v59, %v12045_v18  ;;  %v16096_v48 = vld [vmem:[#allocation25_spill] sm:$0xff] }
0x13cf   :  { %11227 = vtanh.f32 %v4186_v12  ;;  %v4108_v31 = vrot.slane %v4044_v57, %v12045_v18  ;;  %v4177_v12 = vadd.f32 %v4100_v7, %v16094_v9  ;;  %v4178_v46 = vadd.f32 %v4104_v55, %v16095_v10  ;;  %v13615_v7 = vld [vmem:[%s15774_s5] ss:$0 sm:$0xff] }
0x13d0   :  { %11229 = vtanh.f32 %v4187_v41  ;;  %v4045_v41 = vcombine.high %v4029_v59, %v4029_v59  ;;  %v4180_v38 = vadd.f32 %v4112_v32, %v16096_v48  ;;  %v4120_v44 = vrot.slane %v4043_v30, %v12045_v18 }
0x13d1   :  { %11231 = vtanh.f32 %v4189_v52  ;;  %v4181_v51 = vadd.f32 %v4116_v3, %v16097_v25  ;;  %v4092_v50 = vrot.slane %v4064_v20, %v16089_v47  ;;  %v4144_v62 = vrot.slane %v4095_v42, %v12045_v18  ;;  %v16098_v52 = vld [vmem:[#allocation18_spill] sm:$0xff]  ;;  %v16100_v25 = vld [vmem:[#allocation24_spill] sm:$0xff] }
0x13d2   :  { %11233 = vtanh.f32 %v4177_v12  ;;  %v4179_v37 = vadd.f32 %v4108_v31, %v16098_v52  ;;  %v4047_v55 = vcombine.high %v4043_v30, %v4043_v30  ;;  %v4124_v32 = vrot.slane %v4045_v41, %v12045_v18  ;;  %v16099_v12 = vld [vmem:[#allocation27_spill] sm:$0xff] }
0x13d3   :  { %11235 = vtanh.f32 %v4178_v46  ;;  %v4182_v20 = vadd.f32 %v4120_v44, %v16099_v12  ;;  %v4094_v31 = vcombine.high %v13582_v23, %v13582_v23  ;;  %v4152_v52 = vrot.slane %v4092_v50, %v12045_v18  ;;  %v16102_v12 = vld [vmem:[#allocation26_spill] sm:$0xff] }
0x13d4   :  { %11237 = vtanh.f32 %v4180_v38  ;;  %v4096_v44 = vcombine.high %v4092_v50, %v4092_v50 }
0x13d5   :  { %11239 = vtanh.f32 %v4181_v51  ;;  %v4128_v51 = vrot.slane %v4047_v55, %v12045_v18  ;;  %v4156_v23 = vrot.slane %v4094_v31, %v12045_v18  ;;  %v4190_v48 = vadd.f32 %v4152_v52, %v16102_v12  ;;  %v16103_v55 = vld [vmem:[#allocation31_spill] sm:$0xff] }
0x13d6   :  { %11241 = vtanh.f32 %v4179_v37  ;;  %v4160_v50 = vrot.slane %v4096_v44, %v12045_v18  ;;  %v16105_v44 = vld [vmem:[#allocation32_spill] sm:$0xff] }
0x13d7   :  { %v11226_v36 = vpop.eup %11225  ;;  %11243 = vtanh.f32 %v4182_v20  ;;  %v16104_v20 = vld [vmem:[#allocation30_spill] sm:$0xff] }
0x13d8   :  { %v4217_v59 = vmul.f32 %v13615_v7, %v11226_v36  ;;  %v4188_v36 = vadd.f32 %v4144_v62, %v16100_v25  ;;  %v4191_v31 = vadd.f32 %v4156_v23, %v16104_v20 }
0x13d9   :  { %v11228_v57 = vpop.eup %11227 }
0x13da   :  { %v11230_v3 = vpop.eup %11229  ;;  %v4249_v42 = vsel %vm135_vm0, %v4217_v59, 0.0  ;;  %v4218_v46 = vmul.f32 %v13615_v7, %v11228_v57  ;;  %v16101_v59 = vld [vmem:[#allocation29_spill] sm:$0xff]  ;;  %11245 = vtanh.f32 %v4188_v36 }
0x13db   :  { %4250 = vadd.xlane.f32.xlu1 %v4249_v42  ;;  %v4219_v41 = vmul.f32 %v13615_v7, %v11230_v3  ;;  %v11232_v38 = vpop.eup %11231  ;;  %v4183_v57 = vadd.f32 %v4124_v32, %v16101_v59 }
0x13dc   :  { %v4252_v30 = vsel %vm135_vm0, %v4218_v46, 0.0  ;;  %v11234_v62 = vpop.eup %11233  ;;  %v4221_v42 = vmul.f32 %v13615_v7, %v11232_v38 }
0x13dd   :  { %4253 = vadd.xlane.f32.xlu0 %v4252_v30  ;;  %v4255_v37 = vsel %vm135_vm0, %v4219_v41, 0.0  ;;  %v11236_v46 = vpop.eup %11235  ;;  %v4209_v3 = vmul.f32 %v13615_v7, %v11234_v62  ;;  %v4184_v30 = vadd.f32 %v4128_v51, %v16103_v55  ;;  %11247 = vtanh.f32 %v4183_v57 }
0x13de   :  { %v11238_v32 = vpop.eup %11237  ;;  %11249 = vtanh.f32 %v4190_v48  ;;  %v4261_v41 = vsel %vm135_vm0, %v4221_v42, 0.0  ;;  %v4210_v38 = vmul.f32 %v13615_v7, %v11236_v46 }
0x13df   :  { %v4225_v52 = vsel %vm135_vm0, %v4209_v3, 0.0  ;;  %v11240_v36 = vpop.eup %11239  ;;  %11251 = vtanh.f32 %v4184_v30  ;;  %v4212_v48 = vmul.f32 %v13615_v7, %v11238_v32 }
0x13e0   :  { %4226 = vadd.xlane.f32.xlu1 %v4225_v52  ;;  %v11242_v12 = vpop.eup %11241  ;;  %v4213_v62 = vmul.f32 %v13615_v7, %v11240_v36  ;;  %11253 = vtanh.f32 %v4191_v31  ;;  %v4228_v23 = vsel %vm135_vm0, %v4210_v38, 0.0 }
0x13e1   :  { %4256 = vadd.xlane.f32.xlu0 %v4255_v37  ;;  %v4192_v37 = vadd.f32 %v4160_v50, %v16105_v44  ;;  %v11244_v57 = vpop.eup %11243  ;;  %v4211_v42 = vmul.f32 %v13615_v7, %v11242_v12  ;;  %v4234_v46 = vsel %vm135_vm0, %v4212_v48, 0.0 }
0x13e2   :  { %v4237_v51 = vsel %vm135_vm0, %v4213_v62, 0.0  ;;  %v4214_v52 = vmul.f32 %v13615_v7, %v11244_v57 }
0x13e3   :  { %11255 = vtanh.f32 %v4192_v37  ;;  %v4231_v30 = vsel %vm135_vm0, %v4211_v42, 0.0 }
0x13e4   :  { %4238 = vadd.xlane.f32.xlu1 %v4237_v51  ;;  %v11246_v3 = vpop.eup %11245  ;;  %v4240_v36 = vsel %vm135_vm0, %v4214_v52, 0.0 }
0x13e5   :  { %4262 = vadd.xlane.f32.xlu0 %v4261_v41  ;;  %v4220_v31 = vmul.f32 %v13615_v7, %v11246_v3 }
0x13e7   :  { %v11248_v50 = vpop.eup %11247  ;;  %v4258_v38 = vsel %vm135_vm0, %v4220_v31, 0.0 }
0x13e8   :  { %4235 = vadd.xlane.f32.xlu1 %v4234_v46  ;;  %v11250_v32 = vpop.eup %11249  ;;  %v4215_v41 = vmul.f32 %v13615_v7, %v11248_v50 }
0x13e9   :  { %4229 = vadd.xlane.f32.xlu0 %v4228_v23  ;;  %v11252_v12 = vpop.eup %11251  ;;  %v4222_v62 = vmul.f32 %v13615_v7, %v11250_v32 }
0x13ea   :  { %v11254_v37 = vpop.eup %11253  ;;  %v4243_v51 = vsel %vm135_vm0, %v4215_v41, 0.0  ;;  %v4216_v48 = vmul.f32 %v13615_v7, %v11252_v12 }
0x13eb   :  { %v4264_v23 = vsel %vm135_vm0, %v4222_v62, 0.0  ;;  %v4223_v42 = vmul.f32 %v13615_v7, %v11254_v37 }
0x13ec   :  { %4241 = vadd.xlane.f32.xlu1 %v4240_v36  ;;  %v4246_v3 = vsel %vm135_vm0, %v4216_v48, 0.0 }
0x13ed   :  { %4232 = vadd.xlane.f32.xlu0 %v4231_v30  ;;  %v11256_v57 = vpop.eup %11255  ;;  %v4267_v52 = vsel %vm135_vm0, %v4223_v42, 0.0 }
0x13ee   :  { %v4224_v46 = vmul.f32 %v13615_v7, %v11256_v57 }
0x13f0   :  { %4244 = vadd.xlane.f32.xlu1 %v4243_v51  ;;  %v4270_v50 = vsel %vm135_vm0, %v4224_v46, 0.0 }
0x13f1   :  { %4259 = vadd.xlane.f32.xlu0 %v4258_v38 }
0x13f4   :  { %4247 = vadd.xlane.f32.xlu1 %v4246_v3 }
0x13f5   :  { %4265 = vadd.xlane.f32.xlu0 %v4264_v23 }
0x13f8   :  { %4271 = vadd.xlane.f32.xlu1 %v4270_v50 }
0x13f9   :  { %4268 = vadd.xlane.f32.xlu0 %v4267_v52 }
0x1468   :  { %v4251_v31 = vpop.xlane.xlu1 %4250 }
0x1469   :  { %v4324_v59 = vrot.slane %v4251_v31, %v12209_v56 }
0x146a   :  { %v4254_v30 = vpop.xlane.xlu0 %4253 }
0x146b   :  { %v4328_v52 = vrot.slane %v4254_v30, %v12209_v56 }
0x146d   :  { %v4227_v36 = vpop.xlane.xlu1 %4226 }
0x146e   :  { %v4257_v32 = vpop.xlane.xlu0 %4256  ;;  %v4292_v37 = vrot.slane %v4227_v36, %v12209_v56 }
0x146f   :  { %v4332_v20 = vrot.slane %v4257_v32, %v12209_v56 }
0x1471   :  { %v13665_v12 = vpop.xlane.xlu1 %4238 }
0x1472   :  { %v13663_v41 = vpop.xlane.xlu0 %4262  ;;  %v4308_v42 = vrot.slane %v13665_v12, %v12209_v56 }
0x1473   :  { %v4340_v9 = vrot.slane %v13663_v41, %v12209_v56 }
0x1475   :  { %v4236_v62 = vpop.xlane.xlu1 %4235 }
0x1476   :  { %v13667_v38 = vpop.xlane.xlu0 %4229  ;;  %v4304_v57 = vrot.slane %v4236_v62, %v12209_v56 }
0x1477   :  { %v4296_v7 = vrot.slane %v13667_v38, %v12209_v56 }
0x1479   :  { %v4353_v23 = vsel %vm859_vm1, %v4296_v7, %v4292_v37  ;;  %v13680_v3 = vpop.xlane.xlu1 %4241 }
0x147a   :  { %v13672_v51 = vpop.xlane.xlu0 %4232  ;;  %v4312_v7 = vrot.slane %v13680_v3, %v12209_v56 }
0x147b   :  { %v4300_v48 = vrot.slane %v13672_v51, %v12209_v56 }
0x147d   :  { %v4354_v46 = vsel %vm861_vm2, %v4300_v48, %v4353_v23  ;;  %v13691_v25 = vpop.xlane.xlu1 %4244  ;;  %v4360_v48 = vsel %vm859_vm1, %v4328_v52, %v4324_v59 }
0x147e   :  { %v4355_v50 = vsel %vm863_vm3, %v4304_v57, %v4354_v46  ;;  %v4260_v44 = vpop.xlane.xlu0 %4259  ;;  %v4361_v46 = vsel %vm861_vm2, %v4332_v20, %v4360_v48 }
0x147f   :  { %v4356_v55 = vsel %vm865_vm4, %v4308_v42, %v4355_v50  ;;  %v4336_v37 = vrot.slane %v4260_v44, %v12209_v56  ;;  %v4316_v42 = vrot.slane %v13691_v25, %v12209_v56 }
0x1480   :  { %v4357_v57 = vsel %vm867_vm5, %v4312_v7, %v4356_v55 }
0x1481   :  { %v4362_v50 = vsel %vm863_vm3, %v4336_v37, %v4361_v46  ;;  %v13705_v47 = vpop.xlane.xlu1 %4247  ;;  %v4358_v59 = vsel %vm869_vm6, %v4316_v42, %v4357_v57 }
0x1482   :  { %v13694_v23 = vpop.xlane.xlu0 %4265  ;;  %v4320_v55 = vrot.slane %v13705_v47, %v12209_v56  ;;  %v4363_v7 = vsel %vm865_vm4, %v4340_v9, %v4362_v50 }
0x1483   :  { %v4344_v10 = vrot.slane %v13694_v23, %v12209_v56 }
0x1484   :  { %v4359_v37 = vsel %vm871_vm7, %v4320_v55, %v4358_v59 }
0x1485   :  { %v4364_v48 = vsel %vm867_vm5, %v4344_v10, %v4363_v7  ;;  %v13717_v46 = vpop.xlane.xlu1 %4271  ;;  %v4369_v0 = vsel %vm882_vm8, %v4359_v37, -inf }
0x1486   :  { %v13710_v52 = vpop.xlane.xlu0 %4268  ;;  %v4352_v42 = vrot.slane %v13717_v46, %v12209_v56  ;;  %4370 = vmax.xlane.f32.xlu0 %v4369_v0 }
0x1487   :  { %v4348_v20 = vrot.slane %v13710_v52, %v12209_v56 }
0x1489   :  { %v4365_v57 = vsel %vm869_vm6, %v4348_v20, %v4364_v48 }
0x148a   :  { %v4366_v26 = vsel %vm871_vm7, %v4352_v42, %v4365_v57 }
0x148b   :  { %v4372_v40 = vsel %vm882_vm8, %v4366_v26, -inf }
0x148c   :  { %4373 = vmax.xlane.f32.xlu1 %v4372_v40 }
0x1513   :  { %v4371_v9 = vpop.xlane.xlu0 %4370 }
0x1514   :  { %v4380_v55 = vrot.slane %v4371_v9, %v12045_v18  ;;  %v4392_v37 = vrot.slane %v4371_v9, %v12279_v4  ;;  %v4396_v11 = vrot.slane %v4371_v9, %v12291_v58 }
0x1516   :  { %v4457_v26 = vsub.f32 %v4227_v36, %v4380_v55  ;;  %v4460_v49 = vsub.f32 %v4236_v62, %v4392_v37  ;;  %v4461_v36 = vsub.f32 %v13665_v12, %v4396_v11  ;;  %v4404_v55 = vrot.slane %v4371_v9, %v12285_v29 }
0x1518   :  { %v4473_v22 = vmul.f32 1.442695, %v4457_v26 }
0x1519   :  { %v13725_v50 = vpop.xlane.xlu1 %4373 }
0x151a   :  { %v4412_v10 = vrot.slane %v13725_v50, %v12045_v18  ;;  %v4416_v59 = vrot.slane %v13725_v50, %v12270_v2  ;;  %v4420_v20 = vrot.slane %v13725_v50, %v12273_v61  ;;  %v4424_v40 = vrot.slane %v13725_v50, %v12279_v4 }
0x151b   :  { %v4428_v15 = vrot.slane %v13725_v50, %v12291_v58 }
0x151c   :  { %v4465_v0 = vsub.f32 %v4251_v31, %v4412_v10  ;;  %v4466_v7 = vsub.f32 %v4254_v30, %v4416_v59  ;;  %v4467_v48 = vsub.f32 %v4257_v32, %v4420_v20  ;;  %v4468_v60 = vsub.f32 %v4260_v44, %v4424_v40 }
0x151d   :  { %v4400_v31 = vrot.slane %v4371_v9, %v12276_v19  ;;  %v4479_v10 = vmul.f32 1.442695, %v4460_v49  ;;  %v4384_v32 = vrot.slane %v4371_v9, %v12270_v2  ;;  %v4469_v59 = vsub.f32 %v13663_v41, %v4428_v15 }
0x151e   :  { %v4489_v57 = vmul.f32 1.442695, %v4465_v0  ;;  %v4491_v42 = vmul.f32 1.442695, %v4466_v7  ;;  %v4493_v30 = vmul.f32 1.442695, %v4467_v48  ;;  %v4388_v0 = vrot.slane %v4371_v9, %v12273_v61 }
0x151f   :  { %v4495_v62 = vmul.f32 1.442695, %v4468_v60  ;;  %v4462_v20 = vsub.f32 %v13680_v3, %v4400_v31  ;;  %v4481_v44 = vmul.f32 1.442695, %v4461_v36  ;;  %v4458_v7 = vsub.f32 %v13667_v38, %v4384_v32 }
0x1520   :  { %11257 = vpow2.f32 %v4489_v57  ;;  %v4497_v11 = vmul.f32 1.442695, %v4469_v59  ;;  %v4408_v60 = vrot.slane %v4371_v9, %v12296_v33  ;;  %v4463_v15 = vsub.f32 %v13691_v25, %v4404_v55 }
0x1521   :  { %11259 = vpow2.f32 %v4491_v42  ;;  %v4483_v41 = vmul.f32 1.442695, %v4462_v20  ;;  %v4459_v12 = vsub.f32 %v13672_v51, %v4388_v0  ;;  %v4475_v3 = vmul.f32 1.442695, %v4458_v7 }
0x1522   :  { %11261 = vpow2.f32 %v4473_v22  ;;  %v4432_v38 = vrot.slane %v13725_v50, %v12276_v19  ;;  %v4464_v9 = vsub.f32 %v13705_v47, %v4408_v60  ;;  %v4485_v25 = vmul.f32 1.442695, %v4463_v15 }
0x1523   :  { %11263 = vpow2.f32 %v4493_v30  ;;  %v4440_v40 = vrot.slane %v13725_v50, %v12296_v33  ;;  %v4477_v51 = vmul.f32 1.442695, %v4459_v12  ;;  %v4436_v48 = vrot.slane %v13725_v50, %v12285_v29 }
0x1524   :  { %11265 = vpow2.f32 %v4479_v10  ;;  %v4470_v57 = vsub.f32 %v13694_v23, %v4432_v38  ;;  %v4487_v47 = vmul.f32 1.442695, %v4464_v9 }
0x1525   :  { %11267 = vpow2.f32 %v4495_v62  ;;  %v4472_v31 = vsub.f32 %v13717_v46, %v4440_v40  ;;  %v4471_v36 = vsub.f32 %v13710_v52, %v4436_v48 }
0x1526   :  { %11269 = vpow2.f32 %v4481_v44  ;;  %v4499_v10 = vmul.f32 1.442695, %v4470_v57 }
0x1527   :  { %11271 = vpow2.f32 %v4497_v11  ;;  %v4503_v23 = vmul.f32 1.442695, %v4472_v31  ;;  %v4501_v59 = vmul.f32 1.442695, %v4471_v36 }
0x1528   :  { %11273 = vpow2.f32 %v4483_v41 }
0x1529   :  { %11275 = vpow2.f32 %v4475_v3 }
0x152a   :  { %v13748_v22 = vpop.eup %11257  ;;  %11277 = vpow2.f32 %v4485_v25 }
0x152b   :  { %v13750_v49 = vpop.eup %11259  ;;  %4546 = vperm.xlu0 %10971, %v13748_v22   ;;  %11279 = vpow2.f32 %v4477_v51 }
0x152c   :  { %4549 = vperm.xlu1 %10972, %v13750_v49   ;;  %v13759_v37 = vpop.eup %11261  ;;  %11281 = vpow2.f32 %v4487_v47 }
0x152d   :  { %v13761_v26 = vpop.eup %11263  ;;  %11283 = vpow2.f32 %v4499_v10 }
0x152e   :  { %v13771_v42 = vpop.eup %11265  ;;  %11285 = vpow2.f32 %v4503_v23 }
0x152f   :  { %4522 = vperm.xlu0 %10971, %v13759_v37   ;;  %v13773_v30 = vpop.eup %11267  ;;  %11287 = vpow2.f32 %v4501_v59 }
0x1530   :  { %4552 = vperm.xlu1 %10972, %v13761_v26   ;;  %v13779_v32 = vpop.eup %11269 }
0x1531   :  { %v13781_v50 = vpop.eup %11271 }
0x1532   :  { %v13785_v62 = vpop.eup %11273 }
0x1533   :  { %4531 = vperm.xlu0 %10971, %v13771_v42   ;;  %v13787_v46 = vpop.eup %11275 }
0x1534   :  { %4555 = vperm.xlu1 %10972, %v13773_v30   ;;  %v13791_v52 = vpop.eup %11277 }
0x1535   :  { %v13793_v55 = vpop.eup %11279 }
0x1536   :  { %v13797_v20 = vpop.eup %11281 }
0x1537   :  { %4534 = vperm.xlu0 %10971, %v13779_v32   ;;  %v13799_v44 = vpop.eup %11283 }
0x1538   :  { %4558 = vperm.xlu1 %10972, %v13781_v50   ;;  %v13803_v0 = vpop.eup %11285 }
0x1539   :  { %v13805_v7 = vpop.eup %11287 }
0x153b   :  { %4537 = vperm.xlu0 %10971, %v13785_v62  }
0x153c   :  { %4525 = vperm.xlu1 %10972, %v13787_v46  }
0x153f   :  { %4540 = vperm.xlu0 %10971, %v13791_v52  }
0x1540   :  { %4528 = vperm.xlu1 %10972, %v13793_v55  }
0x1543   :  { %4543 = vperm.xlu0 %10971, %v13797_v20  }
0x1544   :  { %4561 = vperm.xlu1 %10972, %v13799_v44  }
0x1547   :  { %4567 = vperm.xlu0 %10971, %v13803_v0  }
0x1548   :  { %4564 = vperm.xlu1 %10972, %v13805_v7  }
0x15aa   :  { %v4547_v11 = vpop.permute.xlu0 %4546 }
0x15ab   :  { %v4550_v60 = vpop.permute.xlu1 %4549  ;;  %v4604_v10 = vrot.slane %v4547_v11, %v12209_v56 }
0x15ac   :  { %v4608_v36 = vrot.slane %v4550_v60, %v12209_v56 }
0x15ae   :  { %v4523_v15 = vpop.permute.xlu0 %4522 }
0x15af   :  { %v4553_v41 = vpop.permute.xlu1 %4552  ;;  %v4572_v57 = vrot.slane %v4523_v15, %v12209_v56 }
0x15b0   :  { %v4612_v63 = vrot.slane %v4553_v41, %v12209_v56 }
0x15b2   :  { %v4532_v12 = vpop.permute.xlu0 %4531 }
0x15b3   :  { %v4556_v3 = vpop.permute.xlu1 %4555  ;;  %v4584_v23 = vrot.slane %v4532_v12, %v12209_v56 }
0x15b4   :  { %v4616_v15 = vrot.slane %v4556_v3, %v12209_v56 }
0x15b6   :  { %v4535_v38 = vpop.permute.xlu0 %4534 }
0x15b7   :  { %v4559_v9 = vpop.permute.xlu1 %4558  ;;  %v4588_v16 = vrot.slane %v4535_v38, %v12209_v56  ;;  %v4640_v38 = vsel %vm859_vm1, %v4608_v36, %v4604_v10 }
0x15b8   :  { %v4620_v12 = vrot.slane %v4559_v9, %v12209_v56  ;;  %v4641_v3 = vsel %vm861_vm2, %v4612_v63, %v4640_v38 }
0x15ba   :  { %v4538_v25 = vpop.permute.xlu0 %4537 }
0x15bb   :  { %v4526_v40 = vpop.permute.xlu1 %4525  ;;  %v4592_v1 = vrot.slane %v4538_v25, %v12209_v56 }
0x15bc   :  { %v4576_v51 = vrot.slane %v4526_v40, %v12209_v56 }
0x15be   :  { %v4541_v48 = vpop.permute.xlu0 %4540  ;;  %v4633_v59 = vsel %vm859_vm1, %v4576_v51, %v4572_v57 }
0x15bf   :  { %v4529_v47 = vpop.permute.xlu1 %4528  ;;  %v4596_v51 = vrot.slane %v4541_v48, %v12209_v56 }
0x15c0   :  { %v4580_v31 = vrot.slane %v4529_v47, %v12209_v56 }
0x15c2   :  { %v4634_v40 = vsel %vm861_vm2, %v4580_v31, %v4633_v59  ;;  %v4544_v28 = vpop.permute.xlu0 %4543  ;;  %v4642_v59 = vsel %vm863_vm3, %v4616_v15, %v4641_v3 }
0x15c3   :  { %v4635_v47 = vsel %vm863_vm3, %v4584_v23, %v4634_v40  ;;  %v4562_v60 = vpop.permute.xlu1 %4561  ;;  %v4600_v11 = vrot.slane %v4544_v28, %v12209_v56 }
0x15c4   :  { %v4636_v41 = vsel %vm865_vm4, %v4588_v16, %v4635_v47  ;;  %v4624_v57 = vrot.slane %v4562_v60, %v12209_v56  ;;  %v4643_v16 = vsel %vm865_vm4, %v4620_v12, %v4642_v59 }
0x15c5   :  { %v4637_v31 = vsel %vm867_vm5, %v4592_v1, %v4636_v41 }
0x15c6   :  { %v4568_v25 = vpop.permute.xlu0 %4567  ;;  %v4638_v23 = vsel %vm869_vm6, %v4596_v51, %v4637_v31  ;;  %v4644_v1 = vsel %vm867_vm5, %v4624_v57, %v4643_v16 }
0x15c7   :  { %v4565_v28 = vpop.permute.xlu1 %4564  ;;  %v4632_v9 = vrot.slane %v4568_v25, %v12209_v56  ;;  %v4639_v48 = vsel %vm871_vm7, %v4600_v11, %v4638_v23 }
0x15c8   :  { %v4628_v36 = vrot.slane %v4565_v28, %v12209_v56  ;;  %v4649_v10 = vsel %vm882_vm8, %v4639_v48, 0.0 }
0x15c9   :  { %4650 = vadd.xlane.f32.xlu1 %v4649_v10 }
0x15ca   :  { %v4645_v63 = vsel %vm869_vm6, %v4628_v36, %v4644_v1 }
0x15cb   :  { %v4646_v40 = vsel %vm871_vm7, %v4632_v9, %v4645_v63 }
0x15cc   :  { %v4652_v15 = vsel %vm882_vm8, %v4646_v40, 0.0 }
0x15cd   :  { %4653 = vadd.xlane.f32.xlu0 %v4652_v15 }
0x1656   :  { %v4651_v47 = vpop.xlane.xlu1 %4650 }
0x1657   :  { %11289 = vrcp.f32 %v4651_v47 }
0x165a   :  { %v4654_v60 = vpop.xlane.xlu0 %4653 }
0x165b   :  { %11291 = vrcp.f32 %v4654_v60 }
0x1661   :  { %v11290_v11 = vpop.eup %11289 }
0x1662   :  { %v4662_v51 = vrot.slane %v11290_v11, %v12045_v18  ;;  %v4674_v23 = vrot.slane %v11290_v11, %v12279_v4  ;;  %v4682_v1 = vrot.slane %v11290_v11, %v12276_v19  ;;  %v4686_v47 = vrot.slane %v11290_v11, %v12285_v29 }
0x1664   :  { %v4739_v25 = vmul.f32 %v13759_v37, %v4662_v51  ;;  %v4742_v16 = vmul.f32 %v13771_v42, %v4674_v23 }
0x1665   :  { %v11292_v12 = vpop.eup %11291 }
0x1666   :  { %v4698_v41 = vrot.slane %v11292_v12, %v12270_v2  ;;  %v4694_v38 = vrot.slane %v11292_v12, %v12045_v18  ;;  %v4702_v57 = vrot.slane %v11292_v12, %v12273_v61  ;;  %v4706_v48 = vrot.slane %v11292_v12, %v12279_v4 }
0x1667   :  { %v4758_v37 = vmul.f32 %v4739_v25, %v12465_v6  ;;  %v4710_v10 = vrot.slane %v11292_v12, %v12291_v58  ;;  %v4761_v42 = vmul.f32 %v4742_v16, %v12467_v53  ;;  %v4714_v25 = vrot.slane %v11292_v12, %v12276_v19 }
0x1668   :  { %v4748_v31 = vmul.f32 %v13750_v49, %v4698_v41  ;;  %v4747_v3 = vmul.f32 %v13748_v22, %v4694_v38  ;;  %v4749_v9 = vmul.f32 %v13761_v26, %v4702_v57  ;;  %v4678_v49 = vrot.slane %v11290_v11, %v12291_v58 }
0x1669   :  { %v4750_v36 = vmul.f32 %v13773_v30, %v4706_v48  ;;  %v4666_v26 = vrot.slane %v11290_v11, %v12270_v2  ;;  %v4751_v40 = vmul.f32 %v13781_v50, %v4710_v10  ;;  %v4670_v30 = vrot.slane %v11290_v11, %v12273_v61 }
0x166a   :  { %v4767_v59 = vmul.f32 %v4748_v31, %v12486_v39  ;;  %v4766_v28 = vmul.f32 %v4747_v3, %v12463_v45  ;;  %v4768_v22 = vmul.f32 %v4749_v9, %v12500_v24  ;;  %v4743_v15 = vmul.f32 %v13779_v32, %v4678_v49 }
0x166b   :  { %v4769_v63 = vmul.f32 %v4750_v36, %v12508_v54  ;;  %v4770_v60 = vmul.f32 %v4751_v40, %v12523_v5  ;;  %v4740_v41 = vmul.f32 %v13787_v46, %v4666_v26  ;;  %v4744_v38 = vmul.f32 %v13785_v62, %v4682_v1 }
0x166c   :  { %4818 = vperm.xlu1 %10972, %v4767_v59   ;;  %4815 = vperm.xlu0 %10971, %v4766_v28   ;;  %v4762_v51 = vmul.f32 %v4743_v15, %v12482_v43  ;;  %v4741_v50 = vmul.f32 %v13793_v55, %v4670_v30  ;;  %v4690_v32 = vrot.slane %v11290_v11, %v12296_v33 }
0x166d   :  { %v4759_v57 = vmul.f32 %v4740_v41, %v12461_v17  ;;  %v4763_v31 = vmul.f32 %v4744_v38, %v12490_v21  ;;  %v4745_v3 = vmul.f32 %v13791_v52, %v4686_v47  ;;  %v4752_v55 = vmul.f32 %v13799_v44, %v4714_v25 }
0x166e   :  { %v4760_v46 = vmul.f32 %v4741_v50, %v12476_v14  ;;  %v4746_v62 = vmul.f32 %v13797_v20, %v4690_v32  ;;  %v4718_v11 = vrot.slane %v11292_v12, %v12285_v29  ;;  %v4722_v59 = vrot.slane %v11292_v12, %v12296_v33 }
0x166f   :  { %v4764_v23 = vmul.f32 %v4745_v3, %v12497_v27  ;;  %v4771_v52 = vmul.f32 %v4752_v55, %v12531_v13 }
0x1670   :  { %4821 = vperm.xlu1 %10972, %v4768_v22   ;;  %4791 = vperm.xlu0 %10971, %v4758_v37   ;;  %v4765_v28 = vmul.f32 %v4746_v62, %v12511_v34  ;;  %v4753_v9 = vmul.f32 %v13805_v7, %v4718_v11  ;;  %v4754_v48 = vmul.f32 %v13803_v0, %v4722_v59 }
0x1672   :  { %v4772_v20 = vmul.f32 %v4753_v9, %v12537_v35  ;;  %v4773_v44 = vmul.f32 %v4754_v48, %v16007_v8 }
0x1674   :  { %4824 = vperm.xlu1 %10972, %v4769_v63   ;;  %4800 = vperm.xlu0 %10971, %v4761_v42  }
0x1678   :  { %4827 = vperm.xlu1 %10972, %v4770_v60   ;;  %4803 = vperm.xlu0 %10971, %v4762_v51  }
0x167c   :  { %4794 = vperm.xlu1 %10972, %v4759_v57   ;;  %4806 = vperm.xlu0 %10971, %v4763_v31  }
0x1680   :  { %4797 = vperm.xlu1 %10972, %v4760_v46   ;;  %4809 = vperm.xlu0 %10971, %v4764_v23  }
0x1684   :  { %4830 = vperm.xlu1 %10972, %v4771_v52   ;;  %4812 = vperm.xlu0 %10971, %v4765_v28  }
0x1688   :  { %4833 = vperm.xlu1 %10972, %v4772_v20   ;;  %4836 = vperm.xlu0 %10971, %v4773_v44  }
0x16eb   :  { %v4819_v16 = vpop.permute.xlu1 %4818  ;;  %v4816_v12 = vpop.permute.xlu0 %4815 }
0x16ec   :  { %v4877_v30 = vrot.slane %v4819_v16, %v12209_v56  ;;  %v4873_v47 = vrot.slane %v4816_v12, %v12209_v56 }
0x16ee   :  { %v4909_v11 = vsel %vm859_vm1, %v4877_v30, %v4873_v47  ;;  %v11653_v47 = vld [vmem:[#allocation3] ss:$0 sm:$0xff] }
0x16ef   :  { %v4822_v49 = vpop.permute.xlu1 %4821  ;;  %v4792_v22 = vpop.permute.xlu0 %4791 }
0x16f0   :  { %v4841_v63 = vrot.slane %v4792_v22, %v12209_v56  ;;  %v4881_v41 = vrot.slane %v4822_v49, %v12209_v56 }
0x16f2   :  { %v4910_v28 = vsel %vm861_vm2, %v4881_v41, %v4909_v11  ;;  %v16110_v11 = vld [vmem:[#allocation44_spill] sm:$0xff] }
0x16f3   :  { %v4825_v37 = vpop.permute.xlu1 %4824  ;;  %v4801_v36 = vpop.permute.xlu0 %4800 }
0x16f4   :  { %v4853_v60 = vrot.slane %v4801_v36, %v12209_v56  ;;  %v4885_v32 = vrot.slane %v4825_v37, %v12209_v56 }
0x16f6   :  { %v4911_v48 = vsel %vm863_vm3, %v4885_v32, %v4910_v28  ;;  %v16106_v32 = vld [vmem:[#allocation42_spill] sm:$0xff] }
0x16f7   :  { %v4828_v10 = vpop.permute.xlu1 %4827  ;;  %v4804_v26 = vpop.permute.xlu0 %4803 }
0x16f8   :  { %v4857_v38 = vrot.slane %v4804_v26, %v12209_v56  ;;  %v4889_v46 = vrot.slane %v4828_v10, %v12209_v56 }
0x16fa   :  { %v4912_v12 = vsel %vm865_vm4, %v4889_v46, %v4911_v48  ;;  %v16111_v48 = vld [vmem:[#allocation46_spill] sm:$0xff] }
0x16fb   :  { %v4795_v1 = vpop.permute.xlu1 %4794  ;;  %v4807_v7 = vpop.permute.xlu0 %4806 }
0x16fc   :  { %v4845_v0 = vrot.slane %v4795_v1, %v12209_v56  ;;  %v4861_v57 = vrot.slane %v4807_v7, %v12209_v56  ;;  %v10053_v7 = vld [vmem:[%s15770_s1 + $0x30] sm:$0xff] }
0x16fe   :  { %v4902_v51 = vsel %vm859_vm1, %v4845_v0, %v4841_v63  ;;  %v11652_v0 = vld [vmem:[#allocation2] ss:$0 sm:$0xff] }
0x16ff   :  { %v4798_v42 = vpop.permute.xlu1 %4797  ;;  %v4810_v40 = vpop.permute.xlu0 %4809  ;;  %v4924_v63 = vmul.f32 %v11652_v0, %v10053_v7 }
0x1700   :  { %v4849_v15 = vrot.slane %v4798_v42, %v12209_v56  ;;  %v4865_v62 = vrot.slane %v4810_v40, %v12209_v56  ;;  %v10054_v42 = vld [vmem:[%s15770_s1 + $0x38] sm:$0xff] }
0x1701   :  { %v4925_v30 = vmul.f32 %v11652_v0, %v10054_v42 }
0x1702   :  { %v4903_v50 = vsel %vm861_vm2, %v4849_v15, %v4902_v51 }
0x1703   :  { %v4904_v31 = vsel %vm863_vm3, %v4853_v60, %v4903_v50  ;;  %v4831_v3 = vpop.permute.xlu1 %4830  ;;  %v4813_v25 = vpop.permute.xlu0 %4812 }
0x1704   :  { %v4869_v23 = vrot.slane %v4813_v25, %v12209_v56  ;;  %v4905_v55 = vsel %vm865_vm4, %v4857_v38, %v4904_v31  ;;  %v4893_v59 = vrot.slane %v4831_v3, %v12209_v56  ;;  %v16107_v31 = vld [vmem:[#allocation43_spill] sm:$0xff]  ;;  %v16108_v25 = vld [vmem:[#allocation50_spill] sm:$0xff] }
0x1705   :  { %v4906_v52 = vsel %vm867_vm5, %v4861_v57, %v4905_v55 }
0x1706   :  { %v4907_v9 = vsel %vm869_vm6, %v4865_v62, %v4906_v52  ;;  %v4913_v36 = vsel %vm867_vm5, %v4893_v59, %v4912_v12  ;;  %v16109_v62 = vld [vmem:[#allocation51_spill] sm:$0xff]  ;;  %v16113_v12 = vld [vmem:[#allocation33_spill] sm:$0xff] }
0x1707   :  { %v4834_v20 = vpop.permute.xlu1 %4833  ;;  %v4837_v44 = vpop.permute.xlu0 %4836  ;;  %v4908_v16 = vsel %vm871_vm7, %v4869_v23, %v4907_v9 }
0x1708   :  { %v4897_v49 = vrot.slane %v4834_v20, %v12209_v56  ;;  %v4901_v22 = vrot.slane %v4837_v44, %v12209_v56  ;;  %v4918_v37 = vsel %vm882_vm8, %v4908_v16, 0.0  ;;  %v16112_v44 = vld [vmem:[#allocation45_spill] sm:$0xff] }
0x1709   :  { %4919 = vadd.xlane.f32.xlu1 %v4918_v37 }
0x170a   :  { %v4914_v10 = vsel %vm869_vm6, %v4897_v49, %v4913_v36 }
0x170b   :  { %v4915_v26 = vsel %vm871_vm7, %v4901_v22, %v4914_v10 }
0x170c   :  { %v4921_v1 = vsel %vm882_vm8, %v4915_v26, 0.0 }
0x170d   :  { %4922 = vadd.xlane.f32.xlu0 %v4921_v1 }
0x1796   :  { %v4920_v40 = vpop.xlane.xlu1 %4919 }
0x1797   :  { %v4926_v15 = vadd.f32 %v4924_v63, %v4920_v40 }
0x1799   :  { %v4928_v60 = vadd.f32 %v11653_v47, %v4926_v15 }
0x179a   :  { %v4923_v51 = vpop.xlane.xlu0 %4922 }
0x179b   :  { %v4927_v41 = vadd.f32 %v4925_v30, %v4923_v51  ;;  %4932 = vperm.xlu0 %10971, %v4928_v60   ;;  %v16114_v51 = vld [vmem:[#allocation47_spill] sm:$0xff] }
0x179d   :  { %v4929_v38 = vadd.f32 %v11653_v47, %v4927_v41 }
0x179f   :  { %4937 = vperm.xlu1 %10972, %v4929_v38  }
0x181a   :  { %v4933_v50 = vpop.permute.xlu0 %4932 }
0x181b   :  { %v4940_v57 = vmul.f32 %v4933_v50, %v16106_v32  ;;  %v4941_v3 = vmul.f32 %v4933_v50, %v16107_v31 }
0x181d   :  { %v5025_v46 = vadd.f32 %v16108_v25, %v4940_v57  ;;  %v5026_v23 = vadd.f32 %v16109_v62, %v4941_v3  ;;  %v16116_v57 = vld [vmem:[#allocation49_spill] sm:$0xff] }
0x181e   :  { %v4938_v55 = vpop.permute.xlu1 %4937 }
0x181f   :  { %v5029_v59 = vadd.f32 %v5025_v46, %v16110_v11  ;;  %v4942_v52 = vmul.f32 %v4938_v55, %v16106_v32  ;;  %v4943_v28 = vmul.f32 %v4938_v55, %v16107_v31  ;;  %v5030_v16 = vadd.f32 %v5026_v23, %v16112_v44 }
0x1821   :  { %v5033_v9 = vmul.f32 0.5, %v5029_v59  ;;  %v5027_v20 = vadd.f32 %v16111_v48, %v4942_v52  ;;  %v5028_v49 = vadd.f32 %v16113_v12, %v4943_v28  ;;  %v5043_v47 = vmul.f32 0.5, %v5030_v16 }
0x1823   :  { %11293 = vtanh.f32 %v5033_v9  ;;  %v5031_v22 = vadd.f32 %v5027_v20, %v16110_v11  ;;  %v5032_v36 = vadd.f32 %v5028_v49, %v16112_v44 }
0x1824   :  { %11295 = vtanh.f32 %v5030_v16 }
0x1825   :  { %v5034_v37 = vmul.f32 0.5, %v5031_v22  ;;  %v5044_v60 = vmul.f32 0.5, %v5032_v36  ;;  %v16118_v22 = vmov 0.0  }
0x1827   :  { %11297 = vtanh.f32 %v5034_v37  ;;  %v16119_v37 = vld [vmem:[#allocation8_spill] sm:$0xff] }
0x1828   :  { %11299 = vtanh.f32 %v5032_v36 }
0x1829   :  { %11301 = vtanh.f32 %v5043_v47  ;;  %v16129_v47 = vld [vmem:[#allocation40_spill] sm:$0xff] }
0x182a   :  { %11303 = vtanh.f32 %v5044_v60  ;;  %v16130_v60 = vld [vmem:[#allocation41_spill] sm:$0xff] }
0x182d   :  { %v11294_v10 = vpop.eup %11293 }
0x182e   :  { %v5037_v26 = vadd.f32 1.0, %v11294_v10  ;;  %v11296_v1 = vpop.eup %11295  ;;  %v16120_v10 = vld [vmem:[#allocation9_spill] sm:$0xff] }
0x1830   :  { %v5039_v7 = vmul.f32 0.5, %v5037_v26 }
0x1831   :  { %v11298_v0 = vpop.eup %11297 }
0x1832   :  { %v5053_v63 = vmul.f32 %v11296_v1, %v5039_v7  ;;  %v5038_v42 = vadd.f32 1.0, %v11298_v0  ;;  %v11300_v15 = vpop.eup %11299  ;;  %v5051_v41 = vmul.f32 %v5039_v7, %v16114_v51  ;;  %v16121_v1 = vld [vmem:[#allocation35_spill] sm:$0xff]  ;;  %v16122_v7 = vld [vmem:[#allocation10_spill] sm:$0xff]  ;;  %v16123_v0 = vld [vmem:[#allocation36_spill] sm:$0xff] }
0x1833   :  { %v11302_v46 = vpop.eup %11301  ;;  %v16131_v51 = vld [vmem:[#allocation13_spill] sm:$0xff] }
0x1834   :  { %5057 = vrot.lane.b32.xlu1 %v5053_v63, %s11712_s6  ;;  %v5040_v40 = vmul.f32 0.5, %v5038_v42  ;;  %v5047_v23 = vadd.f32 1.0, %v11302_v46  ;;  %v11304_v55 = vpop.eup %11303  ;;  %v16124_v63 = vld [vmem:[#allocation37_spill] sm:$0xff]  ;;  %v16125_v42 = vld [vmem:[#allocation11_spill] sm:$0xff] }
0x1835   :  { %v5048_v52 = vadd.f32 1.0, %v11304_v55 }
0x1836   :  { %v5054_v30 = vmul.f32 %v11300_v15, %v5040_v40  ;;  %v5052_v3 = vmul.f32 %v5040_v40, %v16116_v57  ;;  %v5049_v59 = vmul.f32 0.5, %v5047_v23  ;;  %v16126_v40 = vld [vmem:[#allocation38_spill] sm:$0xff]  ;;  %v16127_v15 = vld [vmem:[#allocation39_spill] sm:$0xff] }
0x1837   :  { %v5050_v48 = vmul.f32 0.5, %v5048_v52  ;;  %v16134_v57 = vld [vmem:[#allocation34_spill] sm:$0xff]  ;;  %v16139_v52 = vld [vmem:[#allocation16_spill] sm:$0xff] }
0x1838   :  { %5059 = vrot.lane.b32.xlu0 %v5054_v30, %s11712_s6  ;;  %v16128_v30 = vld [vmem:[#allocation12_spill] sm:$0xff] }
0x18a6   :  { %v5058_v38 = vpop.permute.xlu1 %5057 }
0x18a7   :  { %v13942_v50 = vadd.f32 %v5058_v38, %v5051_v41  ;;  %v16132_v41 = vld [vmem:[#allocation14_spill] sm:$0xff]  ;;  %v16133_v38 = vld [vmem:[#allocation15_spill] sm:$0xff] }
0x18a9   :  { %16115 = vst [vmem:[#allocation48_spill] sm:$0xff] %v13942_v50  ;;  %11305 = vtanh.f32 %v13942_v50 }
0x18aa   :  { %v5060_v25 = vpop.permute.xlu0 %5059 }
0x18ab   :  { %v13946_v62 = vadd.f32 %v5060_v25, %v5052_v3 }
0x18ad   :  { %16117 = vst [vmem:[#allocation50_spill] sm:$0xff] %v13946_v62  ;;  %11307 = vtanh.f32 %v13946_v62 }
0x18b3   :  { %v11306_v28 = vpop.eup %11305 }
0x18b4   :  { %v5067_v9 = vmul.f32 %v11306_v28, %v5049_v59 }
0x18b6   :  { %5071 = vrot.lane.b32.xlu1 %v5067_v9, %s11712_s6 }
0x18b7   :  { %v11308_v20 = vpop.eup %11307 }
0x18b8   :  { %v5068_v16 = vmul.f32 %v11308_v20, %v5050_v48 }
0x18ba   :  { %5073 = vrot.lane.b32.xlu0 %v5068_v16, %s11712_s6 }
0x1928   :  { %v5072_v12 = vpop.permute.xlu1 %5071 }
0x1929   :  { %10059 = vmatmul.mubr.msk.f32.vlgmr.msra.gmra.mrb[10].mxu1 %vm135_vm0, %v5072_v12  ;;  %v5077_v49 = vsel %vm135_vm0, %v5072_v12, %v13942_v50 }
0x192a   :  { %10456 = vmatprep.mubr.f32.mxu0 %v5077_v49  ;;  %6175 = vmatprep.mubr.f32.mxu1 %v16118_v22 }
0x192b   :  { %10823 = vmatpush3.bf16.msra.mxu1 %v16119_v37 }
0x192c   :  { %v5074_v36 = vpop.permute.xlu0 %5073  ;;  %10825 = vmatprep.subr.bf16.mxu1 %v16120_v10 }
0x192d   :  { %v5078_v26 = vsel %vm135_vm0, %v5074_v36, %v13946_v62  ;;  %10060 = vmatmul.mubr.msk.f32.gmra.mrb[12].mxu1 %vm135_vm0, %v5074_v36 }
0x192e   :  { %10457 = vmatmul.mubr.f32.vlgmr.msra.gmra.mrb[30].mxu0 %v5078_v26 }
0x192f   :  { %10827 = vmatpush3.bf16.msra.mxu1 %v16120_v10  ;;  %10855 = vmatpush1.bf16.msra.mxu0 %v16121_v1  ;;  %v16147_v1 = vld [vmem:[#allocation22_spill] sm:$0xff] }
0x1930   :  { %10829 = vmatprep.subr.bf16.mxu1 %v16122_v7  ;;  %10857 = vmatprep.subr.bf16.mxu0 %v16123_v0 }
0x1931   :  { %7326 = vmatprep.mubr.f32.mxu0 %v16118_v22 }
0x1933   :  { %10831 = vmatpush3.bf16.msra.mxu1 %v16122_v7  ;;  %10859 = vmatpush1.bf16.msra.mxu0 %v16124_v63 }
0x1934   :  { %10833 = vmatprep.subr.bf16.mxu1 %v16125_v42  ;;  %10861 = vmatprep.subr.bf16.mxu0 %v16126_v40  ;;  %v16142_v40 = vld [vmem:[#allocation20_spill] sm:$0xff] }
0x1937   :  { %10835 = vmatpush3.bf16.msra.mxu1 %v16125_v42  ;;  %10863 = vmatpush1.bf16.msra.mxu0 %v16127_v15  ;;  %v16141_v15 = vld [vmem:[#allocation21_spill] sm:$0xff] }
0x1938   :  { %10837 = vmatprep.subr.bf16.mxu1 %v16128_v30  ;;  %10865 = vmatprep.subr.bf16.mxu0 %v16129_v47 }
0x193b   :  { %10839 = vmatpush3.bf16.msra.mxu1 %v16128_v30  ;;  %10867 = vmatpush1.bf16.msra.mxu0 %v16130_v60 }
0x193c   :  { %10841 = vmatprep.subr.bf16.mxu1 %v16131_v51  ;;  %10869 = vmatprep.subr.bf16.mxu0 %v16119_v37 }
0x193f   :  { %10843 = vmatpush3.bf16.msra.mxu1 %v16131_v51 }
0x1940   :  { %10845 = vmatprep.subr.bf16.mxu1 %v16132_v41 }
0x1943   :  { %10847 = vmatpush3.bf16.msra.mxu1 %v16132_v41 }
0x1944   :  { %10849 = vmatprep.subr.bf16.mxu1 %v16133_v38 }
0x1947   :  { %10851 = vmatpush3.bf16.msra.mxu1 %v16133_v38 }
0x1948   :  { %10901 = vmatprep.subr.bf16.mxu1 %v16134_v57 }
0x19fc   :  { %v13983_v3 = vpop.f32.mrb[10].mxu1 }
0x19fd   :  { %16135 = vst [vmem:[#allocation51_spill] sm:$0xff] %v13983_v3  ;;  %v13985_v25 = vpop.f32.mrb[11].mxu1 }
0x19fe   :  { %16136 = vst [vmem:[#allocation46_spill] sm:$0xff] %v13985_v25 }
0x1a00   :  { %v13987_v46 = vpop.f32.mrb[12].mxu1 }
0x1a01   :  { %16137 = vst [vmem:[#allocation33_spill] sm:$0xff] %v13987_v46  ;;  %v10458_v23 = vpop.f32.mrb[30].mxu0  ;;  %v13989_v55 = vpop.f32.mrb[13].mxu1 }
0x1a02   :  { %16138 = vst [vmem:[#allocation47_spill] sm:$0xff] %v13989_v55  ;;  %v5205_v59 = vcombine.high %v10458_v23, %v10458_v23  ;;  %v5212_v28 = vrot.slane %v10458_v23, %v16139_v52  ;;  %v5145_v9 = vpop.f32.mrb[31].mxu0 }
0x1a03   :  { %v5163_v48 = vrot.slane %v5145_v9, %v16139_v52  ;;  %v5156_v49 = vcombine.high %v5145_v9, %v5145_v9  ;;  %v16140_v9 = vld [vmem:[#allocation19_spill] sm:$0xff] }
0x1a04   :  { %v5219_v20 = vrot.slane %v5205_v59, %v16139_v52  ;;  %v5220_v16 = vcombine.high %v5212_v28, %v5212_v28  ;;  %v5228_v12 = vrot.slane %v5212_v28, %v16139_v52 }
0x1a05   :  { %v5171_v36 = vcombine.high %v5163_v48, %v5163_v48  ;;  %v5170_v51 = vrot.slane %v5156_v49, %v16139_v52  ;;  %v5179_v60 = vrot.slane %v5163_v48, %v16139_v52  ;;  %v16143_v49 = vld [vmem:[#allocation28_spill] sm:$0xff] }
0x1a06   :  { %v13996_v26 = vrot.slane %v5219_v20, %v16139_v52  ;;  %v5242_v57 = vrot.slane %v5220_v16, %v16139_v52  ;;  %v5250_v38 = vcombine.high %v5228_v12, %v5228_v12  ;;  %v5289_v41 = vrot.slane %v5228_v12, %v12045_v18 }
0x1a07   :  { %v5193_v30 = vrot.slane %v5171_v36, %v16139_v52  ;;  %v5172_v12 = vcombine.high %v5170_v51, %v5170_v51  ;;  %v5186_v63 = vrot.slane %v5170_v51, %v16139_v52  ;;  %v5201_v48 = vcombine.high %v5179_v60, %v5179_v60 }
0x1a08   :  { %v5293_v23 = vrot.slane %v5242_v57, %v12045_v18  ;;  %v5297_v59 = vrot.slane %v5250_v38, %v12045_v18  ;;  %v5305_v28 = vrot.slane %v13996_v26, %v12045_v18  ;;  %v5342_v47 = vadd.f32 %v5289_v41, %v16140_v9 }
0x1a09   :  { %v5203_v38 = vcombine.high %v5193_v30, %v5193_v30  ;;  %v5257_v7 = vrot.slane %v5179_v60, %v12045_v18  ;;  %v5261_v41 = vrot.slane %v5193_v30, %v12045_v18  ;;  %v5221_v9 = vcombine.high %v5219_v20, %v5219_v20 }
0x1a0a   :  { %v5343_v16 = vadd.f32 %v5293_v23, %v16141_v15  ;;  %v5344_v42 = vadd.f32 %v5297_v59, %v16142_v40  ;;  %11309 = vtanh.f32 %v5342_v47  ;;  %v5346_v0 = vadd.f32 %v5305_v28, %v16143_v49  ;;  %v16144_v28 = vld [vmem:[#allocation17_spill] sm:$0xff]  ;;  %v16145_v49 = vld [vmem:[#allocation23_spill] sm:$0xff] }
0x1a0b   :  { %v5269_v36 = vrot.slane %v5203_v38, %v12045_v18  ;;  %v5252_v23 = vcombine.high %v5242_v57, %v5242_v57  ;;  %v5200_v59 = vrot.slane %v5172_v12, %v16139_v52  ;;  %v5273_v47 = vrot.slane %v5186_v63, %v12045_v18  ;;  %v16146_v15 = vld [vmem:[#allocation25_spill] sm:$0xff] }
0x1a0c   :  { %11311 = vtanh.f32 %v5343_v16  ;;  %v5265_v51 = vrot.slane %v5201_v48, %v12045_v18  ;;  %v5334_v16 = vadd.f32 %v5257_v7, %v16144_v28  ;;  %v5335_v40 = vadd.f32 %v5261_v41, %v16145_v49  ;;  %v14029_v7 = vld [vmem:[%s15774_s5] ss:$0 sm:$0xff] }
0x1a0d   :  { %11313 = vtanh.f32 %v5344_v42  ;;  %v5202_v42 = vcombine.high %v5186_v63, %v5186_v63  ;;  %v5337_v60 = vadd.f32 %v5269_v36, %v16146_v15  ;;  %v5277_v30 = vrot.slane %v5200_v59, %v12045_v18 }
0x1a0e   :  { %11315 = vtanh.f32 %v5346_v0  ;;  %v5338_v38 = vadd.f32 %v5273_v47, %v16147_v1  ;;  %v5249_v20 = vrot.slane %v5221_v9, %v16139_v52  ;;  %v5301_v12 = vrot.slane %v5252_v23, %v12045_v18  ;;  %v16148_v0 = vld [vmem:[#allocation18_spill] sm:$0xff]  ;;  %v16150_v1 = vld [vmem:[#allocation24_spill] sm:$0xff] }
0x1a0f   :  { %11317 = vtanh.f32 %v5334_v16  ;;  %v5336_v10 = vadd.f32 %v5265_v51, %v16148_v0  ;;  %v5204_v41 = vcombine.high %v5200_v59, %v5200_v59  ;;  %v5281_v36 = vrot.slane %v5202_v42, %v12045_v18  ;;  %v16149_v16 = vld [vmem:[#allocation27_spill] sm:$0xff] }
0x1a10   :  { %11319 = vtanh.f32 %v5335_v40  ;;  %v5339_v9 = vadd.f32 %v5277_v30, %v16149_v16  ;;  %v5251_v51 = vcombine.high %v13996_v26, %v13996_v26  ;;  %v5309_v0 = vrot.slane %v5249_v20, %v12045_v18  ;;  %v16152_v16 = vld [vmem:[#allocation26_spill] sm:$0xff] }
0x1a11   :  { %11321 = vtanh.f32 %v5337_v60  ;;  %v5253_v30 = vcombine.high %v5249_v20, %v5249_v20 }
0x1a12   :  { %11323 = vtanh.f32 %v5338_v38  ;;  %v5285_v38 = vrot.slane %v5204_v41, %v12045_v18  ;;  %v5313_v26 = vrot.slane %v5251_v51, %v12045_v18  ;;  %v5347_v15 = vadd.f32 %v5309_v0, %v16152_v16  ;;  %v16153_v41 = vld [vmem:[#allocation31_spill] sm:$0xff] }
0x1a13   :  { %11325 = vtanh.f32 %v5336_v10  ;;  %v5317_v20 = vrot.slane %v5253_v30, %v12045_v18  ;;  %v16155_v30 = vld [vmem:[#allocation32_spill] sm:$0xff] }
0x1a14   :  { %v11310_v57 = vpop.eup %11309  ;;  %11327 = vtanh.f32 %v5339_v9  ;;  %v16154_v9 = vld [vmem:[#allocation30_spill] sm:$0xff] }
0x1a15   :  { %v5374_v63 = vmul.f32 %v14029_v7, %v11310_v57  ;;  %v5345_v57 = vadd.f32 %v5301_v12, %v16150_v1  ;;  %v5348_v51 = vadd.f32 %v5313_v26, %v16154_v9 }
0x1a16   :  { %v11312_v48 = vpop.eup %11311 }
0x1a17   :  { %v11314_v47 = vpop.eup %11313  ;;  %v5406_v23 = vsel %vm135_vm0, %v5374_v63, 0.0  ;;  %v5375_v40 = vmul.f32 %v14029_v7, %v11312_v48  ;;  %v16151_v63 = vld [vmem:[#allocation29_spill] sm:$0xff]  ;;  %11329 = vtanh.f32 %v5345_v57 }
0x1a18   :  { %5407 = vadd.xlane.f32.xlu1 %v5406_v23  ;;  %v5376_v42 = vmul.f32 %v14029_v7, %v11314_v47  ;;  %v11316_v60 = vpop.eup %11315  ;;  %v5340_v48 = vadd.f32 %v5281_v36, %v16151_v63 }
0x1a19   :  { %v5409_v59 = vsel %vm135_vm0, %v5375_v40, 0.0  ;;  %v11318_v12 = vpop.eup %11317  ;;  %v5378_v23 = vmul.f32 %v14029_v7, %v11316_v60 }
0x1a1a   :  { %5410 = vadd.xlane.f32.xlu0 %v5409_v59  ;;  %v5412_v10 = vsel %vm135_vm0, %v5376_v42, 0.0  ;;  %v11320_v40 = vpop.eup %11319  ;;  %v5366_v47 = vmul.f32 %v14029_v7, %v11318_v12  ;;  %v5341_v59 = vadd.f32 %v5285_v38, %v16153_v41  ;;  %11331 = vtanh.f32 %v5340_v48 }
0x1a1b   :  { %v11322_v36 = vpop.eup %11321  ;;  %11333 = vtanh.f32 %v5347_v15  ;;  %v5418_v42 = vsel %vm135_vm0, %v5378_v23, 0.0  ;;  %v5367_v60 = vmul.f32 %v14029_v7, %v11320_v40 }
0x1a1c   :  { %v5382_v0 = vsel %vm135_vm0, %v5366_v47, 0.0  ;;  %v11324_v57 = vpop.eup %11323  ;;  %11335 = vtanh.f32 %v5341_v59  ;;  %v5369_v15 = vmul.f32 %v14029_v7, %v11322_v36 }
0x1a1d   :  { %5383 = vadd.xlane.f32.xlu1 %v5382_v0  ;;  %v11326_v16 = vpop.eup %11325  ;;  %v5370_v12 = vmul.f32 %v14029_v7, %v11324_v57  ;;  %11337 = vtanh.f32 %v5348_v51  ;;  %v5385_v26 = vsel %vm135_vm0, %v5367_v60, 0.0 }
0x1a1e   :  { %5413 = vadd.xlane.f32.xlu0 %v5412_v10  ;;  %v5349_v10 = vadd.f32 %v5317_v20, %v16155_v30  ;;  %v11328_v48 = vpop.eup %11327  ;;  %v5368_v23 = vmul.f32 %v14029_v7, %v11326_v16  ;;  %v5391_v40 = vsel %vm135_vm0, %v5369_v15, 0.0 }
0x1a1f   :  { %v5394_v38 = vsel %vm135_vm0, %v5370_v12, 0.0  ;;  %v5371_v0 = vmul.f32 %v14029_v7, %v11328_v48 }
0x1a20   :  { %11339 = vtanh.f32 %v5349_v10  ;;  %v5388_v59 = vsel %vm135_vm0, %v5368_v23, 0.0 }
0x1a21   :  { %5395 = vadd.xlane.f32.xlu1 %v5394_v38  ;;  %v11330_v47 = vpop.eup %11329  ;;  %v5397_v57 = vsel %vm135_vm0, %v5371_v0, 0.0 }
0x1a22   :  { %5419 = vadd.xlane.f32.xlu0 %v5418_v42  ;;  %v5377_v51 = vmul.f32 %v14029_v7, %v11330_v47 }
0x1a24   :  { %v11332_v20 = vpop.eup %11331  ;;  %v5415_v60 = vsel %vm135_vm0, %v5377_v51, 0.0 }
0x1a25   :  { %5392 = vadd.xlane.f32.xlu1 %v5391_v40  ;;  %v11334_v36 = vpop.eup %11333  ;;  %v5372_v42 = vmul.f32 %v14029_v7, %v11332_v20 }
0x1a26   :  { %5386 = vadd.xlane.f32.xlu0 %v5385_v26  ;;  %v11336_v16 = vpop.eup %11335  ;;  %v5379_v12 = vmul.f32 %v14029_v7, %v11334_v36 }
0x1a27   :  { %v11338_v10 = vpop.eup %11337  ;;  %v5400_v38 = vsel %vm135_vm0, %v5372_v42, 0.0  ;;  %v5373_v15 = vmul.f32 %v14029_v7, %v11336_v16 }
0x1a28   :  { %v5421_v26 = vsel %vm135_vm0, %v5379_v12, 0.0  ;;  %v5380_v23 = vmul.f32 %v14029_v7, %v11338_v10 }
0x1a29   :  { %5398 = vadd.xlane.f32.xlu1 %v5397_v57  ;;  %v5403_v47 = vsel %vm135_vm0, %v5373_v15, 0.0 }
0x1a2a   :  { %5389 = vadd.xlane.f32.xlu0 %v5388_v59  ;;  %v11340_v48 = vpop.eup %11339  ;;  %v5424_v0 = vsel %vm135_vm0, %v5380_v23, 0.0 }
0x1a2b   :  { %v5381_v40 = vmul.f32 %v14029_v7, %v11340_v48 }
0x1a2d   :  { %5401 = vadd.xlane.f32.xlu1 %v5400_v38  ;;  %v5427_v20 = vsel %vm135_vm0, %v5381_v40, 0.0 }
0x1a2e   :  { %5416 = vadd.xlane.f32.xlu0 %v5415_v60 }
0x1a31   :  { %5404 = vadd.xlane.f32.xlu1 %v5403_v47 }
0x1a32   :  { %5422 = vadd.xlane.f32.xlu0 %v5421_v26 }
0x1a35   :  { %5428 = vadd.xlane.f32.xlu1 %v5427_v20 }
0x1a36   :  { %5425 = vadd.xlane.f32.xlu0 %v5424_v0 }
0x1aa5   :  { %v5408_v51 = vpop.xlane.xlu1 %5407 }
0x1aa6   :  { %v5481_v63 = vrot.slane %v5408_v51, %v12209_v56 }
0x1aa7   :  { %v5411_v59 = vpop.xlane.xlu0 %5410 }
0x1aa8   :  { %v5485_v0 = vrot.slane %v5411_v59, %v12209_v56 }
0x1aaa   :  { %v5384_v57 = vpop.xlane.xlu1 %5383 }
0x1aab   :  { %v5414_v36 = vpop.xlane.xlu0 %5413  ;;  %v5449_v10 = vrot.slane %v5384_v57, %v12209_v56 }
0x1aac   :  { %v5489_v9 = vrot.slane %v5414_v36, %v12209_v56 }
0x1aae   :  { %v14079_v16 = vpop.xlane.xlu1 %5395 }
0x1aaf   :  { %v14077_v42 = vpop.xlane.xlu0 %5419  ;;  %v5465_v23 = vrot.slane %v14079_v16, %v12209_v56 }
0x1ab0   :  { %v5497_v28 = vrot.slane %v14077_v42, %v12209_v56 }
0x1ab2   :  { %v5393_v12 = vpop.xlane.xlu1 %5392 }
0x1ab3   :  { %v14081_v60 = vpop.xlane.xlu0 %5386  ;;  %v5461_v48 = vrot.slane %v5393_v12, %v12209_v56 }
0x1ab4   :  { %v5453_v7 = vrot.slane %v14081_v60, %v12209_v56 }
0x1ab6   :  { %v5510_v26 = vsel %vm859_vm1, %v5453_v7, %v5449_v10  ;;  %v14094_v47 = vpop.xlane.xlu1 %5398 }
0x1ab7   :  { %v14086_v38 = vpop.xlane.xlu0 %5389  ;;  %v5469_v7 = vrot.slane %v14094_v47, %v12209_v56 }
0x1ab8   :  { %v5457_v15 = vrot.slane %v14086_v38, %v12209_v56 }
0x1aba   :  { %v5511_v40 = vsel %vm861_vm2, %v5457_v15, %v5510_v26  ;;  %v14105_v1 = vpop.xlane.xlu1 %5401  ;;  %v5517_v15 = vsel %vm859_vm1, %v5485_v0, %v5481_v63 }
0x1abb   :  { %v5512_v20 = vsel %vm863_vm3, %v5461_v48, %v5511_v40  ;;  %v5417_v30 = vpop.xlane.xlu0 %5416  ;;  %v5518_v40 = vsel %vm861_vm2, %v5489_v9, %v5517_v15 }
0x1abc   :  { %v5513_v41 = vsel %vm865_vm4, %v5465_v23, %v5512_v20  ;;  %v5493_v10 = vrot.slane %v5417_v30, %v12209_v56  ;;  %v5473_v23 = vrot.slane %v14105_v1, %v12209_v56 }
0x1abd   :  { %v5514_v48 = vsel %vm867_vm5, %v5469_v7, %v5513_v41 }
0x1abe   :  { %v5519_v20 = vsel %vm863_vm3, %v5493_v10, %v5518_v40  ;;  %v14119_v52 = vpop.xlane.xlu1 %5404  ;;  %v5515_v63 = vsel %vm869_vm6, %v5473_v23, %v5514_v48 }
0x1abf   :  { %v14108_v26 = vpop.xlane.xlu0 %5422  ;;  %v5477_v41 = vrot.slane %v14119_v52, %v12209_v56  ;;  %v5520_v7 = vsel %vm865_vm4, %v5497_v28, %v5519_v20 }
0x1ac0   :  { %v5501_v49 = vrot.slane %v14108_v26, %v12209_v56 }
0x1ac1   :  { %v5516_v10 = vsel %vm871_vm7, %v5477_v41, %v5515_v63 }
0x1ac2   :  { %v5521_v15 = vsel %vm867_vm5, %v5501_v49, %v5520_v7  ;;  %v14131_v40 = vpop.xlane.xlu1 %5428  ;;  %v5526_v37 = vsel %vm882_vm8, %v5516_v10, -inf }
0x1ac3   :  { %v14124_v0 = vpop.xlane.xlu0 %5425  ;;  %v5509_v23 = vrot.slane %v14131_v40, %v12209_v56  ;;  %5527 = vmax.xlane.f32.xlu0 %v5526_v37 }
0x1ac4   :  { %v5505_v9 = vrot.slane %v14124_v0, %v12209_v56 }
0x1ac6   :  { %v5522_v48 = vsel %vm869_vm6, %v5505_v9, %v5521_v15 }
0x1ac7   :  { %v5523_v22 = vsel %vm871_vm7, %v5509_v23, %v5522_v48 }
0x1ac8   :  { %v5529_v62 = vsel %vm882_vm8, %v5523_v22, -inf }
0x1ac9   :  { %5530 = vmax.xlane.f32.xlu1 %v5529_v62 }
0x1b50   :  { %v5528_v28 = vpop.xlane.xlu0 %5527 }
0x1b51   :  { %v5537_v41 = vrot.slane %v5528_v28, %v12045_v18  ;;  %v5549_v10 = vrot.slane %v5528_v28, %v12279_v4  ;;  %v5553_v50 = vrot.slane %v5528_v28, %v12291_v58 }
0x1b53   :  { %v5614_v22 = vsub.f32 %v5384_v57, %v5537_v41  ;;  %v5617_v55 = vsub.f32 %v5393_v12, %v5549_v10  ;;  %v5618_v57 = vsub.f32 %v14079_v16, %v5553_v50  ;;  %v5561_v41 = vrot.slane %v5528_v28, %v12285_v29 }
0x1b55   :  { %v5630_v44 = vmul.f32 1.442695, %v5614_v22 }
0x1b56   :  { %v14139_v20 = vpop.xlane.xlu1 %5530 }
0x1b57   :  { %v5569_v49 = vrot.slane %v14139_v20, %v12045_v18  ;;  %v5573_v63 = vrot.slane %v14139_v20, %v12270_v2  ;;  %v5577_v9 = vrot.slane %v14139_v20, %v12273_v61  ;;  %v5581_v62 = vrot.slane %v14139_v20, %v12279_v4 }
0x1b58   :  { %v5585_v46 = vrot.slane %v14139_v20, %v12291_v58 }
0x1b59   :  { %v5622_v37 = vsub.f32 %v5408_v51, %v5569_v49  ;;  %v5623_v7 = vsub.f32 %v5411_v59, %v5573_v63  ;;  %v5624_v15 = vsub.f32 %v5414_v36, %v5577_v9  ;;  %v5625_v11 = vsub.f32 %v5417_v30, %v5581_v62 }
0x1b5a   :  { %v5557_v51 = vrot.slane %v5528_v28, %v12276_v19  ;;  %v5636_v49 = vmul.f32 1.442695, %v5617_v55  ;;  %v5541_v36 = vrot.slane %v5528_v28, %v12270_v2  ;;  %v5626_v63 = vsub.f32 %v14077_v42, %v5585_v46 }
0x1b5b   :  { %v5646_v48 = vmul.f32 1.442695, %v5622_v37  ;;  %v5648_v23 = vmul.f32 1.442695, %v5623_v7  ;;  %v5650_v59 = vmul.f32 1.442695, %v5624_v15  ;;  %v5545_v37 = vrot.slane %v5528_v28, %v12273_v61 }
0x1b5c   :  { %v5652_v12 = vmul.f32 1.442695, %v5625_v11  ;;  %v5619_v9 = vsub.f32 %v14094_v47, %v5557_v51  ;;  %v5638_v30 = vmul.f32 1.442695, %v5618_v57  ;;  %v5615_v7 = vsub.f32 %v14081_v60, %v5541_v36 }
0x1b5d   :  { %11341 = vpow2.f32 %v5646_v48  ;;  %v5654_v50 = vmul.f32 1.442695, %v5626_v63  ;;  %v5565_v11 = vrot.slane %v5528_v28, %v12296_v33  ;;  %v5620_v46 = vsub.f32 %v14105_v1, %v5561_v41 }
0x1b5e   :  { %11343 = vpow2.f32 %v5648_v23  ;;  %v5640_v42 = vmul.f32 1.442695, %v5619_v9  ;;  %v5616_v16 = vsub.f32 %v14086_v38, %v5545_v37  ;;  %v5632_v47 = vmul.f32 1.442695, %v5615_v7 }
0x1b5f   :  { %11345 = vpow2.f32 %v5630_v44  ;;  %v5589_v60 = vrot.slane %v14139_v20, %v12276_v19  ;;  %v5621_v28 = vsub.f32 %v14119_v52, %v5565_v11  ;;  %v5642_v1 = vmul.f32 1.442695, %v5620_v46 }
0x1b60   :  { %11347 = vpow2.f32 %v5650_v59  ;;  %v5597_v62 = vrot.slane %v14139_v20, %v12296_v33  ;;  %v5634_v38 = vmul.f32 1.442695, %v5616_v16  ;;  %v5593_v15 = vrot.slane %v14139_v20, %v12285_v29 }
0x1b61   :  { %11349 = vpow2.f32 %v5636_v49  ;;  %v5627_v48 = vsub.f32 %v14108_v26, %v5589_v60  ;;  %v5644_v52 = vmul.f32 1.442695, %v5621_v28 }
0x1b62   :  { %11351 = vpow2.f32 %v5652_v12  ;;  %v5629_v51 = vsub.f32 %v14131_v40, %v5597_v62  ;;  %v5628_v57 = vsub.f32 %v14124_v0, %v5593_v15 }
0x1b63   :  { %11353 = vpow2.f32 %v5638_v30  ;;  %v5656_v49 = vmul.f32 1.442695, %v5627_v48 }
0x1b64   :  { %11355 = vpow2.f32 %v5654_v50  ;;  %v5660_v26 = vmul.f32 1.442695, %v5629_v51  ;;  %v5658_v63 = vmul.f32 1.442695, %v5628_v57 }
0x1b65   :  { %11357 = vpow2.f32 %v5640_v42 }
0x1b66   :  { %11359 = vpow2.f32 %v5632_v47 }
0x1b67   :  { %v14162_v44 = vpop.eup %11341  ;;  %11361 = vpow2.f32 %v5642_v1 }
0x1b68   :  { %v14164_v55 = vpop.eup %11343  ;;  %5703 = vperm.xlu0 %10971, %v14162_v44   ;;  %11363 = vpow2.f32 %v5634_v38 }
0x1b69   :  { %5706 = vperm.xlu1 %10972, %v14164_v55   ;;  %v14173_v10 = vpop.eup %11345  ;;  %11365 = vpow2.f32 %v5644_v52 }
0x1b6a   :  { %v14175_v22 = vpop.eup %11347  ;;  %11367 = vpow2.f32 %v5656_v49 }
0x1b6b   :  { %v14185_v23 = vpop.eup %11349  ;;  %11369 = vpow2.f32 %v5660_v26 }
0x1b6c   :  { %5679 = vperm.xlu0 %10971, %v14173_v10   ;;  %v14187_v59 = vpop.eup %11351  ;;  %11371 = vpow2.f32 %v5658_v63 }
0x1b6d   :  { %5709 = vperm.xlu1 %10972, %v14175_v22   ;;  %v14193_v36 = vpop.eup %11353 }
0x1b6e   :  { %v14195_v20 = vpop.eup %11355 }
0x1b6f   :  { %v14199_v12 = vpop.eup %11357 }
0x1b70   :  { %5688 = vperm.xlu0 %10971, %v14185_v23   ;;  %v14201_v40 = vpop.eup %11359 }
0x1b71   :  { %5712 = vperm.xlu1 %10972, %v14187_v59   ;;  %v14205_v0 = vpop.eup %11361 }
0x1b72   :  { %v14207_v41 = vpop.eup %11363 }
0x1b73   :  { %v14211_v9 = vpop.eup %11365 }
0x1b74   :  { %5691 = vperm.xlu0 %10971, %v14193_v36   ;;  %v14213_v30 = vpop.eup %11367 }
0x1b75   :  { %5715 = vperm.xlu1 %10972, %v14195_v20   ;;  %v14217_v37 = vpop.eup %11369 }
0x1b76   :  { %v14219_v7 = vpop.eup %11371 }
0x1b78   :  { %5694 = vperm.xlu0 %10971, %v14199_v12  }
0x1b79   :  { %5682 = vperm.xlu1 %10972, %v14201_v40  }
0x1b7c   :  { %5697 = vperm.xlu0 %10971, %v14205_v0  }
0x1b7d   :  { %5685 = vperm.xlu1 %10972, %v14207_v41  }
0x1b80   :  { %5700 = vperm.xlu0 %10971, %v14211_v9  }
0x1b81   :  { %5718 = vperm.xlu1 %10972, %v14213_v30  }
0x1b84   :  { %5724 = vperm.xlu0 %10971, %v14217_v37  }
0x1b85   :  { %5721 = vperm.xlu1 %10972, %v14219_v7  }
0x1be7   :  { %v5704_v50 = vpop.permute.xlu0 %5703 }
0x1be8   :  { %v5707_v11 = vpop.permute.xlu1 %5706  ;;  %v5761_v49 = vrot.slane %v5704_v50, %v12209_v56 }
0x1be9   :  { %v5765_v57 = vrot.slane %v5707_v11, %v12209_v56 }
0x1beb   :  { %v5680_v46 = vpop.permute.xlu0 %5679 }
0x1bec   :  { %v5710_v42 = vpop.permute.xlu1 %5709  ;;  %v5729_v48 = vrot.slane %v5680_v46, %v12209_v56 }
0x1bed   :  { %v5769_v25 = vrot.slane %v5710_v42, %v12209_v56 }
0x1bef   :  { %v5689_v16 = vpop.permute.xlu0 %5688 }
0x1bf0   :  { %v5713_v47 = vpop.permute.xlu1 %5712  ;;  %v5741_v26 = vrot.slane %v5689_v16, %v12209_v56 }
0x1bf1   :  { %v5773_v46 = vrot.slane %v5713_v47, %v12209_v56 }
0x1bf3   :  { %v5692_v60 = vpop.permute.xlu0 %5691 }
0x1bf4   :  { %v5716_v28 = vpop.permute.xlu1 %5715  ;;  %v5745_v3 = vrot.slane %v5692_v60, %v12209_v56  ;;  %v5797_v60 = vsel %vm859_vm1, %v5765_v57, %v5761_v49 }
0x1bf5   :  { %v5777_v16 = vrot.slane %v5716_v28, %v12209_v56  ;;  %v5798_v47 = vsel %vm861_vm2, %v5769_v25, %v5797_v60 }
0x1bf7   :  { %v5695_v1 = vpop.permute.xlu0 %5694 }
0x1bf8   :  { %v5683_v62 = vpop.permute.xlu1 %5682  ;;  %v5749_v32 = vrot.slane %v5695_v1, %v12209_v56 }
0x1bf9   :  { %v5733_v38 = vrot.slane %v5683_v62, %v12209_v56 }
0x1bfb   :  { %v5698_v15 = vpop.permute.xlu0 %5697  ;;  %v5790_v63 = vsel %vm859_vm1, %v5733_v38, %v5729_v48 }
0x1bfc   :  { %v5686_v52 = vpop.permute.xlu1 %5685  ;;  %v5753_v38 = vrot.slane %v5698_v15, %v12209_v56 }
0x1bfd   :  { %v5737_v51 = vrot.slane %v5686_v52, %v12209_v56 }
0x1bff   :  { %v5791_v62 = vsel %vm861_vm2, %v5737_v51, %v5790_v63  ;;  %v5701_v31 = vpop.permute.xlu0 %5700  ;;  %v5799_v63 = vsel %vm863_vm3, %v5773_v46, %v5798_v47 }
0x1c00   :  { %v5792_v52 = vsel %vm863_vm3, %v5741_v26, %v5791_v62  ;;  %v5719_v11 = vpop.permute.xlu1 %5718  ;;  %v5757_v50 = vrot.slane %v5701_v31, %v12209_v56 }
0x1c01   :  { %v5793_v42 = vsel %vm865_vm4, %v5745_v3, %v5792_v52  ;;  %v5781_v48 = vrot.slane %v5719_v11, %v12209_v56  ;;  %v5800_v3 = vsel %vm865_vm4, %v5777_v16, %v5799_v63 }
0x1c02   :  { %v5794_v51 = vsel %vm867_vm5, %v5749_v32, %v5793_v42 }
0x1c03   :  { %v5725_v1 = vpop.permute.xlu0 %5724  ;;  %v5795_v26 = vsel %vm869_vm6, %v5753_v38, %v5794_v51  ;;  %v5801_v32 = vsel %vm867_vm5, %v5781_v48, %v5800_v3 }
0x1c04   :  { %v5722_v31 = vpop.permute.xlu1 %5721  ;;  %v5789_v28 = vrot.slane %v5725_v1, %v12209_v56  ;;  %v5796_v15 = vsel %vm871_vm7, %v5757_v50, %v5795_v26 }
0x1c05   :  { %v5785_v57 = vrot.slane %v5722_v31, %v12209_v56  ;;  %v5806_v49 = vsel %vm882_vm8, %v5796_v15, 0.0 }
0x1c06   :  { %5807 = vadd.xlane.f32.xlu1 %v5806_v49 }
0x1c07   :  { %v5802_v25 = vsel %vm869_vm6, %v5785_v57, %v5801_v32 }
0x1c08   :  { %v5803_v62 = vsel %vm871_vm7, %v5789_v28, %v5802_v25 }
0x1c09   :  { %v5809_v46 = vsel %vm882_vm8, %v5803_v62, 0.0 }
0x1c0a   :  { %5810 = vadd.xlane.f32.xlu0 %v5809_v46 }
0x1c93   :  { %v5808_v52 = vpop.xlane.xlu1 %5807 }
0x1c94   :  { %11373 = vrcp.f32 %v5808_v52 }
0x1c97   :  { %v5811_v11 = vpop.xlane.xlu0 %5810 }
0x1c98   :  { %11375 = vrcp.f32 %v5811_v11 }
0x1c9e   :  { %v11374_v50 = vpop.eup %11373 }
0x1c9f   :  { %v5819_v38 = vrot.slane %v11374_v50, %v12045_v18  ;;  %v5831_v26 = vrot.slane %v11374_v50, %v12279_v4  ;;  %v5839_v32 = vrot.slane %v11374_v50, %v12276_v19  ;;  %v5843_v52 = vrot.slane %v11374_v50, %v12285_v29 }
0x1ca1   :  { %v5896_v1 = vmul.f32 %v14173_v10, %v5819_v38  ;;  %v5899_v3 = vmul.f32 %v14185_v23, %v5831_v26 }
0x1ca2   :  { %v11376_v16 = vpop.eup %11375 }
0x1ca3   :  { %v5855_v42 = vrot.slane %v11376_v16, %v12270_v2  ;;  %v5851_v60 = vrot.slane %v11376_v16, %v12045_v18  ;;  %v5859_v48 = vrot.slane %v11376_v16, %v12273_v61  ;;  %v5863_v15 = vrot.slane %v11376_v16, %v12279_v4 }
0x1ca4   :  { %v5915_v10 = vmul.f32 %v5896_v1, %v12465_v6  ;;  %v5867_v49 = vrot.slane %v11376_v16, %v12291_v58  ;;  %v5918_v23 = vmul.f32 %v5899_v3, %v12467_v53  ;;  %v5871_v1 = vrot.slane %v11376_v16, %v12276_v19 }
0x1ca5   :  { %v5905_v51 = vmul.f32 %v14164_v55, %v5855_v42  ;;  %v5904_v47 = vmul.f32 %v14162_v44, %v5851_v60  ;;  %v5906_v28 = vmul.f32 %v14175_v22, %v5859_v48  ;;  %v5835_v55 = vrot.slane %v11374_v50, %v12291_v58 }
0x1ca6   :  { %v5907_v57 = vmul.f32 %v14187_v59, %v5863_v15  ;;  %v5823_v22 = vrot.slane %v11374_v50, %v12270_v2  ;;  %v5908_v62 = vmul.f32 %v14195_v20, %v5867_v49  ;;  %v5827_v59 = vrot.slane %v11374_v50, %v12273_v61 }
0x1ca7   :  { %v5924_v63 = vmul.f32 %v5905_v51, %v12486_v39  ;;  %v5923_v31 = vmul.f32 %v5904_v47, %v12463_v45  ;;  %v5925_v44 = vmul.f32 %v5906_v28, %v12500_v24  ;;  %v5900_v46 = vmul.f32 %v14193_v36, %v5835_v55 }
0x1ca8   :  { %v5926_v25 = vmul.f32 %v5907_v57, %v12508_v54  ;;  %v5927_v11 = vmul.f32 %v5908_v62, %v12523_v5  ;;  %v5897_v42 = vmul.f32 %v14201_v40, %v5823_v22  ;;  %v5901_v60 = vmul.f32 %v14199_v12, %v5839_v32 }
0x1ca9   :  { %5975 = vperm.xlu1 %10972, %v5924_v63   ;;  %5972 = vperm.xlu0 %10971, %v5923_v31   ;;  %v5919_v38 = vmul.f32 %v5900_v46, %v12482_v43  ;;  %v5898_v20 = vmul.f32 %v14207_v41, %v5827_v59  ;;  %v5847_v36 = vrot.slane %v11374_v50, %v12296_v33 }
0x1caa   :  { %v5916_v48 = vmul.f32 %v5897_v42, %v12461_v17  ;;  %v5920_v51 = vmul.f32 %v5901_v60, %v12490_v21  ;;  %v5902_v47 = vmul.f32 %v14205_v0, %v5843_v52  ;;  %v5909_v41 = vmul.f32 %v14213_v30, %v5871_v1 }
0x1cab   :  { %v5917_v40 = vmul.f32 %v5898_v20, %v12476_v14  ;;  %v5903_v12 = vmul.f32 %v14211_v9, %v5847_v36  ;;  %v5875_v50 = vrot.slane %v11376_v16, %v12285_v29  ;;  %v5879_v63 = vrot.slane %v11376_v16, %v12296_v33 }
0x1cac   :  { %v5921_v26 = vmul.f32 %v5902_v47, %v12497_v27  ;;  %v5928_v0 = vmul.f32 %v5909_v41, %v12531_v13 }
0x1cad   :  { %5978 = vperm.xlu1 %10972, %v5925_v44   ;;  %5948 = vperm.xlu0 %10971, %v5915_v10   ;;  %v5922_v31 = vmul.f32 %v5903_v12, %v12511_v34  ;;  %v5910_v28 = vmul.f32 %v14219_v7, %v5875_v50  ;;  %v5911_v15 = vmul.f32 %v14217_v37, %v5879_v63 }
0x1caf   :  { %v5929_v9 = vmul.f32 %v5910_v28, %v12537_v35  ;;  %v5930_v30 = vmul.f32 %v5911_v15, %v16007_v8 }
0x1cb1   :  { %5981 = vperm.xlu1 %10972, %v5926_v25   ;;  %5957 = vperm.xlu0 %10971, %v5918_v23  }
0x1cb5   :  { %5984 = vperm.xlu1 %10972, %v5927_v11   ;;  %5960 = vperm.xlu0 %10971, %v5919_v38  }
0x1cb9   :  { %5951 = vperm.xlu1 %10972, %v5916_v48   ;;  %5963 = vperm.xlu0 %10971, %v5920_v51  }
0x1cbd   :  { %5954 = vperm.xlu1 %10972, %v5917_v40   ;;  %5966 = vperm.xlu0 %10971, %v5921_v26  }
0x1cc1   :  { %5987 = vperm.xlu1 %10972, %v5928_v0   ;;  %5969 = vperm.xlu0 %10971, %v5922_v31  }
0x1cc5   :  { %5990 = vperm.xlu1 %10972, %v5929_v9   ;;  %5993 = vperm.xlu0 %10971, %v5930_v30  }
0x1d28   :  { %v5976_v3 = vpop.permute.xlu1 %5975  ;;  %v5973_v16 = vpop.permute.xlu0 %5972 }
0x1d29   :  { %v6034_v59 = vrot.slane %v5976_v3, %v12209_v56  ;;  %v6030_v52 = vrot.slane %v5973_v16, %v12209_v56 }
0x1d2b   :  { %v6066_v50 = vsel %vm859_vm1, %v6034_v59, %v6030_v52  ;;  %v11656_v52 = vld [vmem:[#allocation3] ss:$0 sm:$0xff] }
0x1d2c   :  { %v5979_v55 = vpop.permute.xlu1 %5978  ;;  %v5949_v44 = vpop.permute.xlu0 %5948 }
0x1d2d   :  { %v5998_v25 = vrot.slane %v5949_v44, %v12209_v56  ;;  %v6038_v42 = vrot.slane %v5979_v55, %v12209_v56 }
0x1d2f   :  { %v6067_v31 = vsel %vm861_vm2, %v6038_v42, %v6066_v50  ;;  %v16160_v50 = vld [vmem:[#allocation44_spill] sm:$0xff] }
0x1d30   :  { %v5982_v10 = vpop.permute.xlu1 %5981  ;;  %v5958_v57 = vpop.permute.xlu0 %5957 }
0x1d31   :  { %v6010_v11 = vrot.slane %v5958_v57, %v12209_v56  ;;  %v6042_v36 = vrot.slane %v5982_v10, %v12209_v56 }
0x1d33   :  { %v6068_v15 = vsel %vm863_vm3, %v6042_v36, %v6067_v31  ;;  %v16156_v36 = vld [vmem:[#allocation42_spill] sm:$0xff] }
0x1d34   :  { %v5985_v49 = vpop.permute.xlu1 %5984  ;;  %v5961_v22 = vpop.permute.xlu0 %5960 }
0x1d35   :  { %v6014_v60 = vrot.slane %v5961_v22, %v12209_v56  ;;  %v6046_v40 = vrot.slane %v5985_v49, %v12209_v56 }
0x1d37   :  { %v6069_v16 = vsel %vm865_vm4, %v6046_v40, %v6068_v15  ;;  %v16161_v15 = vld [vmem:[#allocation33_spill] sm:$0xff] }
0x1d38   :  { %v5952_v32 = vpop.permute.xlu1 %5951  ;;  %v5964_v7 = vpop.permute.xlu0 %5963 }
0x1d39   :  { %v6002_v37 = vrot.slane %v5952_v32, %v12209_v56  ;;  %v6018_v48 = vrot.slane %v5964_v7, %v12209_v56  ;;  %v10057_v7 = vld [vmem:[%s15770_s1 + $0x40] sm:$0xff] }
0x1d3b   :  { %v6059_v38 = vsel %vm859_vm1, %v6002_v37, %v5998_v25  ;;  %v11655_v37 = vld [vmem:[#allocation2] ss:$0 sm:$0xff] }
0x1d3c   :  { %v5955_v23 = vpop.permute.xlu1 %5954  ;;  %v5967_v62 = vpop.permute.xlu0 %5966  ;;  %v6081_v25 = vmul.f32 %v11655_v37, %v10057_v7 }
0x1d3d   :  { %v6006_v46 = vrot.slane %v5955_v23, %v12209_v56  ;;  %v6022_v12 = vrot.slane %v5967_v62, %v12209_v56  ;;  %v10058_v23 = vld [vmem:[%s15770_s1 + $0x48] sm:$0xff] }
0x1d3e   :  { %v6082_v59 = vmul.f32 %v11655_v37, %v10058_v23 }
0x1d3f   :  { %v6060_v20 = vsel %vm861_vm2, %v6006_v46, %v6059_v38 }
0x1d40   :  { %v6061_v51 = vsel %vm863_vm3, %v6010_v11, %v6060_v20  ;;  %v5988_v47 = vpop.permute.xlu1 %5987  ;;  %v5970_v1 = vpop.permute.xlu0 %5969 }
0x1d41   :  { %v6026_v26 = vrot.slane %v5970_v1, %v12209_v56  ;;  %v6062_v41 = vsel %vm865_vm4, %v6014_v60, %v6061_v51  ;;  %v6050_v63 = vrot.slane %v5988_v47, %v12209_v56  ;;  %v16157_v51 = vld [vmem:[#allocation43_spill] sm:$0xff] }
0x1d42   :  { %v6063_v0 = vsel %vm867_vm5, %v6018_v48, %v6062_v41  ;;  %v16158_v1 = vld [vmem:[#allocation51_spill] sm:$0xff] }
0x1d43   :  { %v6064_v28 = vsel %vm869_vm6, %v6022_v12, %v6063_v0  ;;  %v6070_v57 = vsel %vm867_vm5, %v6050_v63, %v6069_v16  ;;  %v16159_v12 = vld [vmem:[#allocation46_spill] sm:$0xff]  ;;  %v16163_v16 = vld [vmem:[#allocation47_spill] sm:$0xff] }
0x1d44   :  { %v5991_v9 = vpop.permute.xlu1 %5990  ;;  %v5994_v30 = vpop.permute.xlu0 %5993  ;;  %v6065_v3 = vsel %vm871_vm7, %v6026_v26, %v6064_v28 }
0x1d45   :  { %v6054_v55 = vrot.slane %v5991_v9, %v12209_v56  ;;  %v6058_v44 = vrot.slane %v5994_v30, %v12209_v56  ;;  %v6075_v10 = vsel %vm882_vm8, %v6065_v3, 0.0  ;;  %v16162_v30 = vld [vmem:[#allocation45_spill] sm:$0xff] }
0x1d46   :  { %6076 = vadd.xlane.f32.xlu1 %v6075_v10 }
0x1d47   :  { %v6071_v49 = vsel %vm869_vm6, %v6054_v55, %v6070_v57 }
0x1d48   :  { %v6072_v22 = vsel %vm871_vm7, %v6058_v44, %v6071_v49 }
0x1d49   :  { %v6078_v32 = vsel %vm882_vm8, %v6072_v22, 0.0 }
0x1d4a   :  { %6079 = vadd.xlane.f32.xlu0 %v6078_v32 }
0x1dd3   :  { %v6077_v62 = vpop.xlane.xlu1 %6076 }
0x1dd4   :  { %v6083_v46 = vadd.f32 %v6081_v25, %v6077_v62 }
0x1dd6   :  { %v6085_v11 = vadd.f32 %v11656_v52, %v6083_v46 }
0x1dd7   :  { %v6080_v38 = vpop.xlane.xlu0 %6079 }
0x1dd8   :  { %v6084_v42 = vadd.f32 %v6082_v59, %v6080_v38  ;;  %6089 = vperm.xlu0 %10971, %v6085_v11   ;;  %v16164_v38 = vld [vmem:[#allocation48_spill] sm:$0xff] }
0x1dda   :  { %v6086_v60 = vadd.f32 %v11656_v52, %v6084_v42 }
0x1ddc   :  { %6094 = vperm.xlu1 %10972, %v6086_v60  }
0x1e57   :  { %v6090_v20 = vpop.permute.xlu0 %6089 }
0x1e58   :  { %v6097_v48 = vmul.f32 %v6090_v20, %v16156_v36  ;;  %v6098_v47 = vmul.f32 %v6090_v20, %v16157_v51 }
0x1e5a   :  { %v6182_v40 = vadd.f32 %v16158_v1, %v6097_v48  ;;  %v6183_v26 = vadd.f32 %v16159_v12, %v6098_v47  ;;  %v16166_v48 = vld [vmem:[#allocation50_spill] sm:$0xff] }
0x1e5b   :  { %v6095_v41 = vpop.permute.xlu1 %6094 }
0x1e5c   :  { %v6186_v63 = vadd.f32 %v6182_v40, %v16160_v50  ;;  %v6099_v0 = vmul.f32 %v6095_v41, %v16156_v36  ;;  %v6100_v31 = vmul.f32 %v6095_v41, %v16157_v51  ;;  %v6187_v3 = vadd.f32 %v6183_v26, %v16162_v30 }
0x1e5e   :  { %v6190_v28 = vmul.f32 0.5, %v6186_v63  ;;  %v6184_v9 = vadd.f32 %v16161_v15, %v6099_v0  ;;  %v6185_v55 = vadd.f32 %v16163_v16, %v6100_v31  ;;  %v6200_v52 = vmul.f32 0.5, %v6187_v3 }
0x1e60   :  { %11377 = vtanh.f32 %v6190_v28  ;;  %v6188_v44 = vadd.f32 %v6184_v9, %v16160_v50  ;;  %v6189_v57 = vadd.f32 %v6185_v55, %v16162_v30 }
0x1e61   :  { %11379 = vtanh.f32 %v6187_v3 }
0x1e62   :  { %v6191_v10 = vmul.f32 0.5, %v6188_v44  ;;  %v6201_v11 = vmul.f32 0.5, %v6189_v57  ;;  %v16168_v44 = vmov 0.0  }
0x1e64   :  { %11381 = vtanh.f32 %v6191_v10  ;;  %v16169_v10 = vld [vmem:[#allocation8_spill] sm:$0xff] }
0x1e65   :  { %11383 = vtanh.f32 %v6189_v57 }
0x1e66   :  { %11385 = vtanh.f32 %v6200_v52  ;;  %v16179_v52 = vld [vmem:[#allocation40_spill] sm:$0xff] }
0x1e67   :  { %11387 = vtanh.f32 %v6201_v11  ;;  %v16180_v11 = vld [vmem:[#allocation41_spill] sm:$0xff] }
0x1e6a   :  { %v11378_v49 = vpop.eup %11377 }
0x1e6b   :  { %v6194_v22 = vadd.f32 1.0, %v11378_v49  ;;  %v11380_v32 = vpop.eup %11379  ;;  %v16170_v49 = vld [vmem:[#allocation9_spill] sm:$0xff] }
0x1e6d   :  { %v6196_v7 = vmul.f32 0.5, %v6194_v22 }
0x1e6e   :  { %v11382_v37 = vpop.eup %11381 }
0x1e6f   :  { %v6210_v25 = vmul.f32 %v11380_v32, %v6196_v7  ;;  %v6195_v23 = vadd.f32 1.0, %v11382_v37  ;;  %v11384_v46 = vpop.eup %11383  ;;  %v6208_v42 = vmul.f32 %v6196_v7, %v16164_v38  ;;  %v16171_v32 = vld [vmem:[#allocation35_spill] sm:$0xff]  ;;  %v16172_v7 = vld [vmem:[#allocation10_spill] sm:$0xff]  ;;  %v16173_v37 = vld [vmem:[#allocation36_spill] sm:$0xff] }
0x1e70   :  { %v11386_v40 = vpop.eup %11385  ;;  %v16181_v38 = vld [vmem:[#allocation13_spill] sm:$0xff] }
0x1e71   :  { %6214 = vrot.lane.b32.xlu1 %v6210_v25, %s11712_s6  ;;  %v6197_v62 = vmul.f32 0.5, %v6195_v23  ;;  %v6204_v26 = vadd.f32 1.0, %v11386_v40  ;;  %v11388_v41 = vpop.eup %11387  ;;  %v16174_v25 = vld [vmem:[#allocation37_spill] sm:$0xff]  ;;  %v16175_v23 = vld [vmem:[#allocation11_spill] sm:$0xff] }
0x1e72   :  { %v6205_v0 = vadd.f32 1.0, %v11388_v41 }
0x1e73   :  { %v6211_v59 = vmul.f32 %v11384_v46, %v6197_v62  ;;  %v6209_v47 = vmul.f32 %v6197_v62, %v16166_v48  ;;  %v6206_v63 = vmul.f32 0.5, %v6204_v26  ;;  %v16176_v62 = vld [vmem:[#allocation38_spill] sm:$0xff]  ;;  %v16177_v46 = vld [vmem:[#allocation39_spill] sm:$0xff] }
0x1e74   :  { %v6207_v15 = vmul.f32 0.5, %v6205_v0  ;;  %v16184_v48 = vld [vmem:[#allocation34_spill] sm:$0xff]  ;;  %v16189_v0 = vld [vmem:[#allocation16_spill] sm:$0xff] }
0x1e75   :  { %6216 = vrot.lane.b32.xlu0 %v6211_v59, %s11712_s6  ;;  %v16178_v59 = vld [vmem:[#allocation12_spill] sm:$0xff] }
0x1ee3   :  { %v6215_v60 = vpop.permute.xlu1 %6214 }
0x1ee4   :  { %v14356_v20 = vadd.f32 %v6215_v60, %v6208_v42  ;;  %v16182_v42 = vld [vmem:[#allocation14_spill] sm:$0xff]  ;;  %v16183_v60 = vld [vmem:[#allocation15_spill] sm:$0xff] }
0x1ee6   :  { %16165 = vst [vmem:[#allocation49_spill] sm:$0xff] %v14356_v20  ;;  %11389 = vtanh.f32 %v14356_v20 }
0x1ee7   :  { %v6217_v1 = vpop.permute.xlu0 %6216 }
0x1ee8   :  { %v14360_v12 = vadd.f32 %v6217_v1, %v6209_v47 }
0x1eea   :  { %16167 = vst [vmem:[#allocation51_spill] sm:$0xff] %v14360_v12  ;;  %11391 = vtanh.f32 %v14360_v12 }
0x1ef0   :  { %v11390_v31 = vpop.eup %11389 }
0x1ef1   :  { %v6224_v28 = vmul.f32 %v11390_v31, %v6206_v63 }
0x1ef3   :  { %6228 = vrot.lane.b32.xlu1 %v6224_v28, %s11712_s6 }
0x1ef4   :  { %v11392_v9 = vpop.eup %11391 }
0x1ef5   :  { %v6225_v3 = vmul.f32 %v11392_v9, %v6207_v15 }
0x1ef7   :  { %6230 = vrot.lane.b32.xlu0 %v6225_v3, %s11712_s6 }
0x1f65   :  { %v6229_v16 = vpop.permute.xlu1 %6228 }
0x1f66   :  { %10063 = vmatmul.mubr.msk.f32.vlgmr.msra.gmra.mrb[32].mxu0 %vm135_vm0, %v6229_v16  ;;  %v6234_v55 = vsel %vm135_vm0, %v6229_v16, %v14356_v20 }
0x1f67   :  { %10491 = vmatprep.mubr.f32.mxu1 %v6234_v55  ;;  %7332 = vmatprep.mubr.f32.mxu0 %v16168_v44 }
0x1f68   :  { %10871 = vmatpush3.bf16.msra.mxu0 %v16169_v10 }
0x1f69   :  { %v6231_v57 = vpop.permute.xlu0 %6230  ;;  %10873 = vmatprep.subr.bf16.mxu0 %v16170_v49 }
0x1f6a   :  { %v6235_v22 = vsel %vm135_vm0, %v6231_v57, %v14360_v12  ;;  %10064 = vmatmul.mubr.msk.f32.gmra.mrb[34].mxu0 %vm135_vm0, %v6231_v57 }
0x1f6b   :  { %10492 = vmatmul.mubr.f32.vlgmr.msra.gmra.mrb[14].mxu1 %v6235_v22 }
0x1f6c   :  { %10875 = vmatpush3.bf16.msra.mxu0 %v16170_v49  ;;  %10903 = vmatpush1.bf16.msra.mxu1 %v16171_v32  ;;  %v16197_v32 = vld [vmem:[#allocation22_spill] sm:$0xff] }
0x1f6d   :  { %10877 = vmatprep.subr.bf16.mxu0 %v16172_v7  ;;  %10905 = vmatprep.subr.bf16.mxu1 %v16173_v37 }
0x1f6e   :  { %8483 = vmatprep.mubr.f32.mxu1 %v16168_v44 }
0x1f70   :  { %10879 = vmatpush3.bf16.msra.mxu0 %v16172_v7  ;;  %10907 = vmatpush1.bf16.msra.mxu1 %v16174_v25 }
0x1f71   :  { %10881 = vmatprep.subr.bf16.mxu0 %v16175_v23  ;;  %10909 = vmatprep.subr.bf16.mxu1 %v16176_v62  ;;  %v16192_v62 = vld [vmem:[#allocation20_spill] sm:$0xff] }
0x1f74   :  { %10883 = vmatpush3.bf16.msra.mxu0 %v16175_v23  ;;  %10911 = vmatpush1.bf16.msra.mxu1 %v16177_v46  ;;  %v16191_v46 = vld [vmem:[#allocation21_spill] sm:$0xff] }
0x1f75   :  { %10885 = vmatprep.subr.bf16.mxu0 %v16178_v59  ;;  %10913 = vmatprep.subr.bf16.mxu1 %v16179_v52 }
0x1f78   :  { %10887 = vmatpush3.bf16.msra.mxu0 %v16178_v59  ;;  %10915 = vmatpush1.bf16.msra.mxu1 %v16180_v11 }
0x1f79   :  { %10889 = vmatprep.subr.bf16.mxu0 %v16181_v38  ;;  %10917 = vmatprep.subr.bf16.mxu1 %v16169_v10 }
0x1f7c   :  { %10891 = vmatpush3.bf16.msra.mxu0 %v16181_v38 }
0x1f7d   :  { %10893 = vmatprep.subr.bf16.mxu0 %v16182_v42 }
0x1f80   :  { %10895 = vmatpush3.bf16.msra.mxu0 %v16182_v42 }
0x1f81   :  { %10897 = vmatprep.subr.bf16.mxu0 %v16183_v60 }
0x1f84   :  { %10899 = vmatpush3.bf16.msra.mxu0 %v16183_v60 }
0x1f85   :  { %10949 = vmatprep.subr.bf16.mxu0 %v16184_v48 }
0x2039   :  { %v14397_v47 = vpop.f32.mrb[32].mxu0 }
0x203a   :  { %16185 = vst [vmem:[#allocation46_spill] sm:$0xff] %v14397_v47  ;;  %v14399_v1 = vpop.f32.mrb[33].mxu0 }
0x203b   :  { %16186 = vst [vmem:[#allocation33_spill] sm:$0xff] %v14399_v1 }
0x203d   :  { %v14401_v40 = vpop.f32.mrb[34].mxu0 }
0x203e   :  { %16187 = vst [vmem:[#allocation47_spill] sm:$0xff] %v14401_v40  ;;  %v10493_v26 = vpop.f32.mrb[14].mxu1  ;;  %v14403_v41 = vpop.f32.mrb[35].mxu0 }
0x203f   :  { %16188 = vst [vmem:[#allocation48_spill] sm:$0xff] %v14403_v41  ;;  %v6362_v63 = vcombine.high %v10493_v26, %v10493_v26  ;;  %v6369_v31 = vrot.slane %v10493_v26, %v16189_v0  ;;  %v6302_v28 = vpop.f32.mrb[15].mxu1 }
0x2040   :  { %v6320_v15 = vrot.slane %v6302_v28, %v16189_v0  ;;  %v6313_v55 = vcombine.high %v6302_v28, %v6302_v28  ;;  %v16190_v28 = vld [vmem:[#allocation19_spill] sm:$0xff] }
0x2041   :  { %v6376_v9 = vrot.slane %v6362_v63, %v16189_v0  ;;  %v6377_v3 = vcombine.high %v6369_v31, %v6369_v31  ;;  %v6385_v16 = vrot.slane %v6369_v31, %v16189_v0 }
0x2042   :  { %v6328_v57 = vcombine.high %v6320_v15, %v6320_v15  ;;  %v6327_v38 = vrot.slane %v6313_v55, %v16189_v0  ;;  %v6336_v11 = vrot.slane %v6320_v15, %v16189_v0  ;;  %v16193_v55 = vld [vmem:[#allocation28_spill] sm:$0xff] }
0x2043   :  { %v14410_v22 = vrot.slane %v6376_v9, %v16189_v0  ;;  %v6399_v48 = vrot.slane %v6377_v3, %v16189_v0  ;;  %v6407_v60 = vcombine.high %v6385_v16, %v6385_v16  ;;  %v6446_v42 = vrot.slane %v6385_v16, %v12045_v18 }
0x2044   :  { %v6350_v59 = vrot.slane %v6328_v57, %v16189_v0  ;;  %v6329_v16 = vcombine.high %v6327_v38, %v6327_v38  ;;  %v6343_v25 = vrot.slane %v6327_v38, %v16189_v0  ;;  %v6358_v15 = vcombine.high %v6336_v11, %v6336_v11 }
0x2045   :  { %v6450_v26 = vrot.slane %v6399_v48, %v12045_v18  ;;  %v6454_v63 = vrot.slane %v6407_v60, %v12045_v18  ;;  %v6462_v31 = vrot.slane %v14410_v22, %v12045_v18  ;;  %v6499_v52 = vadd.f32 %v6446_v42, %v16190_v28 }
0x2046   :  { %v6360_v60 = vcombine.high %v6350_v59, %v6350_v59  ;;  %v6414_v7 = vrot.slane %v6336_v11, %v12045_v18  ;;  %v6418_v42 = vrot.slane %v6350_v59, %v12045_v18  ;;  %v6378_v28 = vcombine.high %v6376_v9, %v6376_v9 }
0x2047   :  { %v6500_v3 = vadd.f32 %v6450_v26, %v16191_v46  ;;  %v6501_v23 = vadd.f32 %v6454_v63, %v16192_v62  ;;  %11393 = vtanh.f32 %v6499_v52  ;;  %v6503_v37 = vadd.f32 %v6462_v31, %v16193_v55  ;;  %v16194_v31 = vld [vmem:[#allocation17_spill] sm:$0xff]  ;;  %v16195_v55 = vld [vmem:[#allocation23_spill] sm:$0xff] }
0x2048   :  { %v6426_v57 = vrot.slane %v6360_v60, %v12045_v18  ;;  %v6409_v26 = vcombine.high %v6399_v48, %v6399_v48  ;;  %v6357_v63 = vrot.slane %v6329_v16, %v16189_v0  ;;  %v6430_v52 = vrot.slane %v6343_v25, %v12045_v18  ;;  %v16196_v46 = vld [vmem:[#allocation25_spill] sm:$0xff] }
0x2049   :  { %11395 = vtanh.f32 %v6500_v3  ;;  %v6422_v38 = vrot.slane %v6358_v15, %v12045_v18  ;;  %v6491_v3 = vadd.f32 %v6414_v7, %v16194_v31  ;;  %v6492_v62 = vadd.f32 %v6418_v42, %v16195_v55  ;;  %v14443_v7 = vld [vmem:[%s15774_s5] ss:$0 sm:$0xff] }
0x204a   :  { %11397 = vtanh.f32 %v6501_v23  ;;  %v6359_v23 = vcombine.high %v6343_v25, %v6343_v25  ;;  %v6494_v11 = vadd.f32 %v6426_v57, %v16196_v46  ;;  %v6434_v59 = vrot.slane %v6357_v63, %v12045_v18 }
0x204b   :  { %11399 = vtanh.f32 %v6503_v37  ;;  %v6495_v60 = vadd.f32 %v6430_v52, %v16197_v32  ;;  %v6406_v48 = vrot.slane %v6378_v28, %v16189_v0  ;;  %v6458_v16 = vrot.slane %v6409_v26, %v12045_v18  ;;  %v16198_v37 = vld [vmem:[#allocation18_spill] sm:$0xff]  ;;  %v16200_v32 = vld [vmem:[#allocation24_spill] sm:$0xff] }
0x204c   :  { %11401 = vtanh.f32 %v6491_v3  ;;  %v6493_v49 = vadd.f32 %v6422_v38, %v16198_v37  ;;  %v6361_v42 = vcombine.high %v6357_v63, %v6357_v63  ;;  %v6438_v57 = vrot.slane %v6359_v23, %v12045_v18  ;;  %v16199_v3 = vld [vmem:[#allocation27_spill] sm:$0xff] }
0x204d   :  { %11403 = vtanh.f32 %v6492_v62  ;;  %v6496_v28 = vadd.f32 %v6434_v59, %v16199_v3  ;;  %v6408_v38 = vcombine.high %v14410_v22, %v14410_v22  ;;  %v6466_v37 = vrot.slane %v6406_v48, %v12045_v18  ;;  %v16202_v3 = vld [vmem:[#allocation26_spill] sm:$0xff] }
0x204e   :  { %11405 = vtanh.f32 %v6494_v11  ;;  %v6410_v59 = vcombine.high %v6406_v48, %v6406_v48 }
0x204f   :  { %11407 = vtanh.f32 %v6495_v60  ;;  %v6442_v60 = vrot.slane %v6361_v42, %v12045_v18  ;;  %v6470_v22 = vrot.slane %v6408_v38, %v12045_v18  ;;  %v6504_v46 = vadd.f32 %v6466_v37, %v16202_v3  ;;  %v16203_v42 = vld [vmem:[#allocation31_spill] sm:$0xff] }
0x2050   :  { %11409 = vtanh.f32 %v6493_v49  ;;  %v6474_v48 = vrot.slane %v6410_v59, %v12045_v18  ;;  %v16205_v59 = vld [vmem:[#allocation32_spill] sm:$0xff] }
0x2051   :  { %v11394_v9 = vpop.eup %11393  ;;  %11411 = vtanh.f32 %v6496_v28  ;;  %v16204_v28 = vld [vmem:[#allocation30_spill] sm:$0xff] }
0x2052   :  { %v6531_v25 = vmul.f32 %v14443_v7, %v11394_v9  ;;  %v6502_v9 = vadd.f32 %v6458_v16, %v16200_v32  ;;  %v6505_v38 = vadd.f32 %v6470_v22, %v16204_v28 }
0x2053   :  { %v11396_v15 = vpop.eup %11395 }
0x2054   :  { %v11398_v52 = vpop.eup %11397  ;;  %v6563_v26 = vsel %vm135_vm0, %v6531_v25, 0.0  ;;  %v6532_v62 = vmul.f32 %v14443_v7, %v11396_v15  ;;  %v16201_v25 = vld [vmem:[#allocation29_spill] sm:$0xff]  ;;  %11413 = vtanh.f32 %v6502_v9 }
0x2055   :  { %6564 = vadd.xlane.f32.xlu1 %v6563_v26  ;;  %v6533_v23 = vmul.f32 %v14443_v7, %v11398_v52  ;;  %v11400_v11 = vpop.eup %11399  ;;  %v6497_v15 = vadd.f32 %v6438_v57, %v16201_v25 }
0x2056   :  { %v6566_v63 = vsel %vm135_vm0, %v6532_v62, 0.0  ;;  %v11402_v16 = vpop.eup %11401  ;;  %v6535_v26 = vmul.f32 %v14443_v7, %v11400_v11 }
0x2057   :  { %6567 = vadd.xlane.f32.xlu0 %v6566_v63  ;;  %v6569_v49 = vsel %vm135_vm0, %v6533_v23, 0.0  ;;  %v11404_v62 = vpop.eup %11403  ;;  %v6523_v52 = vmul.f32 %v14443_v7, %v11402_v16  ;;  %v6498_v63 = vadd.f32 %v6442_v60, %v16203_v42  ;;  %11415 = vtanh.f32 %v6497_v15 }
0x2058   :  { %v11406_v57 = vpop.eup %11405  ;;  %11417 = vtanh.f32 %v6504_v46  ;;  %v6575_v23 = vsel %vm135_vm0, %v6535_v26, 0.0  ;;  %v6524_v11 = vmul.f32 %v14443_v7, %v11404_v62 }
0x2059   :  { %v6539_v37 = vsel %vm135_vm0, %v6523_v52, 0.0  ;;  %v11408_v9 = vpop.eup %11407  ;;  %11419 = vtanh.f32 %v6498_v63  ;;  %v6526_v46 = vmul.f32 %v14443_v7, %v11406_v57 }
0x205a   :  { %6540 = vadd.xlane.f32.xlu1 %v6539_v37  ;;  %v11410_v3 = vpop.eup %11409  ;;  %v6527_v16 = vmul.f32 %v14443_v7, %v11408_v9  ;;  %11421 = vtanh.f32 %v6505_v38  ;;  %v6542_v22 = vsel %vm135_vm0, %v6524_v11, 0.0 }
0x205b   :  { %6570 = vadd.xlane.f32.xlu0 %v6569_v49  ;;  %v6506_v49 = vadd.f32 %v6474_v48, %v16205_v59  ;;  %v11412_v15 = vpop.eup %11411  ;;  %v6525_v26 = vmul.f32 %v14443_v7, %v11410_v3  ;;  %v6548_v62 = vsel %vm135_vm0, %v6526_v46, 0.0 }
0x205c   :  { %v6551_v60 = vsel %vm135_vm0, %v6527_v16, 0.0  ;;  %v6528_v37 = vmul.f32 %v14443_v7, %v11412_v15 }
0x205d   :  { %11423 = vtanh.f32 %v6506_v49  ;;  %v6545_v63 = vsel %vm135_vm0, %v6525_v26, 0.0 }
0x205e   :  { %6552 = vadd.xlane.f32.xlu1 %v6551_v60  ;;  %v11414_v52 = vpop.eup %11413  ;;  %v6554_v9 = vsel %vm135_vm0, %v6528_v37, 0.0 }
0x205f   :  { %6576 = vadd.xlane.f32.xlu0 %v6575_v23  ;;  %v6534_v38 = vmul.f32 %v14443_v7, %v11414_v52 }
0x2061   :  { %v11416_v48 = vpop.eup %11415  ;;  %v6572_v11 = vsel %vm135_vm0, %v6534_v38, 0.0 }
0x2062   :  { %6549 = vadd.xlane.f32.xlu1 %v6548_v62  ;;  %v11418_v57 = vpop.eup %11417  ;;  %v6529_v23 = vmul.f32 %v14443_v7, %v11416_v48 }
0x2063   :  { %6543 = vadd.xlane.f32.xlu0 %v6542_v22  ;;  %v11420_v3 = vpop.eup %11419  ;;  %v6536_v16 = vmul.f32 %v14443_v7, %v11418_v57 }
0x2064   :  { %v11422_v49 = vpop.eup %11421  ;;  %v6557_v60 = vsel %vm135_vm0, %v6529_v23, 0.0  ;;  %v6530_v46 = vmul.f32 %v14443_v7, %v11420_v3 }
0x2065   :  { %v6578_v22 = vsel %vm135_vm0, %v6536_v16, 0.0  ;;  %v6537_v26 = vmul.f32 %v14443_v7, %v11422_v49 }
0x2066   :  { %6555 = vadd.xlane.f32.xlu1 %v6554_v9  ;;  %v6560_v52 = vsel %vm135_vm0, %v6530_v46, 0.0 }
0x2067   :  { %6546 = vadd.xlane.f32.xlu0 %v6545_v63  ;;  %v11424_v15 = vpop.eup %11423  ;;  %v6581_v37 = vsel %vm135_vm0, %v6537_v26, 0.0 }
0x2068   :  { %v6538_v62 = vmul.f32 %v14443_v7, %v11424_v15 }
0x206a   :  { %6558 = vadd.xlane.f32.xlu1 %v6557_v60  ;;  %v6584_v48 = vsel %vm135_vm0, %v6538_v62, 0.0 }
0x206b   :  { %6573 = vadd.xlane.f32.xlu0 %v6572_v11 }
0x206e   :  { %6561 = vadd.xlane.f32.xlu1 %v6560_v52 }
0x206f   :  { %6579 = vadd.xlane.f32.xlu0 %v6578_v22 }
0x2072   :  { %6585 = vadd.xlane.f32.xlu1 %v6584_v48 }
0x2073   :  { %6582 = vadd.xlane.f32.xlu0 %v6581_v37 }
0x20e2   :  { %v6565_v38 = vpop.xlane.xlu1 %6564 }
0x20e3   :  { %v6638_v25 = vrot.slane %v6565_v38, %v12209_v56 }
0x20e4   :  { %v6568_v63 = vpop.xlane.xlu0 %6567 }
0x20e5   :  { %v6642_v37 = vrot.slane %v6568_v63, %v12209_v56 }
0x20e7   :  { %v6541_v9 = vpop.xlane.xlu1 %6540 }
0x20e8   :  { %v6571_v57 = vpop.xlane.xlu0 %6570  ;;  %v6606_v49 = vrot.slane %v6541_v9, %v12209_v56 }
0x20e9   :  { %v6646_v28 = vrot.slane %v6571_v57, %v12209_v56 }
0x20eb   :  { %v14493_v3 = vpop.xlane.xlu1 %6552 }
0x20ec   :  { %v14491_v23 = vpop.xlane.xlu0 %6576  ;;  %v6622_v26 = vrot.slane %v14493_v3, %v12209_v56 }
0x20ed   :  { %v6654_v31 = vrot.slane %v14491_v23, %v12209_v56 }
0x20ef   :  { %v6550_v16 = vpop.xlane.xlu1 %6549 }
0x20f0   :  { %v14495_v11 = vpop.xlane.xlu0 %6543  ;;  %v6618_v15 = vrot.slane %v6550_v16, %v12209_v56 }
0x20f1   :  { %v6610_v7 = vrot.slane %v14495_v11, %v12209_v56 }
0x20f3   :  { %v6667_v22 = vsel %vm859_vm1, %v6610_v7, %v6606_v49  ;;  %v14508_v52 = vpop.xlane.xlu1 %6555 }
0x20f4   :  { %v14500_v60 = vpop.xlane.xlu0 %6546  ;;  %v6626_v7 = vrot.slane %v14508_v52, %v12209_v56 }
0x20f5   :  { %v6614_v46 = vrot.slane %v14500_v60, %v12209_v56 }
0x20f7   :  { %v6668_v62 = vsel %vm861_vm2, %v6614_v46, %v6667_v22  ;;  %v14519_v32 = vpop.xlane.xlu1 %6558  ;;  %v6674_v46 = vsel %vm859_vm1, %v6642_v37, %v6638_v25 }
0x20f8   :  { %v6669_v48 = vsel %vm863_vm3, %v6618_v15, %v6668_v62  ;;  %v6574_v59 = vpop.xlane.xlu0 %6573  ;;  %v6675_v62 = vsel %vm861_vm2, %v6646_v28, %v6674_v46 }
0x20f9   :  { %v6670_v42 = vsel %vm865_vm4, %v6622_v26, %v6669_v48  ;;  %v6650_v49 = vrot.slane %v6574_v59, %v12209_v56  ;;  %v6630_v26 = vrot.slane %v14519_v32, %v12209_v56 }
0x20fa   :  { %v6671_v15 = vsel %vm867_vm5, %v6626_v7, %v6670_v42 }
0x20fb   :  { %v6676_v48 = vsel %vm863_vm3, %v6650_v49, %v6675_v62  ;;  %v14533_v0 = vpop.xlane.xlu1 %6561  ;;  %v6672_v25 = vsel %vm869_vm6, %v6630_v26, %v6671_v15 }
0x20fc   :  { %v14522_v22 = vpop.xlane.xlu0 %6579  ;;  %v6634_v42 = vrot.slane %v14533_v0, %v12209_v56  ;;  %v6677_v7 = vsel %vm865_vm4, %v6654_v31, %v6676_v48 }
0x20fd   :  { %v6658_v55 = vrot.slane %v14522_v22, %v12209_v56 }
0x20fe   :  { %v6673_v49 = vsel %vm871_vm7, %v6634_v42, %v6672_v25 }
0x20ff   :  { %v6678_v46 = vsel %vm867_vm5, %v6658_v55, %v6677_v7  ;;  %v14545_v62 = vpop.xlane.xlu1 %6585  ;;  %v6683_v10 = vsel %vm882_vm8, %v6673_v49, -inf }
0x2100   :  { %v14538_v37 = vpop.xlane.xlu0 %6582  ;;  %v6666_v26 = vrot.slane %v14545_v62, %v12209_v56  ;;  %6684 = vmax.xlane.f32.xlu0 %v6683_v10 }
0x2101   :  { %v6662_v28 = vrot.slane %v14538_v37, %v12209_v56 }
0x2103   :  { %v6679_v15 = vsel %vm869_vm6, %v6662_v28, %v6678_v46 }
0x2104   :  { %v6680_v44 = vsel %vm871_vm7, %v6666_v26, %v6679_v15 }
0x2105   :  { %v6686_v12 = vsel %vm882_vm8, %v6680_v44, -inf }
0x2106   :  { %6687 = vmax.xlane.f32.xlu1 %v6686_v12 }
0x218d   :  { %v6685_v31 = vpop.xlane.xlu0 %6684 }
0x218e   :  { %v6694_v42 = vrot.slane %v6685_v31, %v12045_v18  ;;  %v6706_v49 = vrot.slane %v6685_v31, %v12279_v4  ;;  %v6710_v20 = vrot.slane %v6685_v31, %v12291_v58 }
0x2190   :  { %v6771_v44 = vsub.f32 %v6541_v9, %v6694_v42  ;;  %v6774_v41 = vsub.f32 %v6550_v16, %v6706_v49  ;;  %v6775_v9 = vsub.f32 %v14493_v3, %v6710_v20  ;;  %v6718_v42 = vrot.slane %v6685_v31, %v12285_v29 }
0x2192   :  { %v6787_v30 = vmul.f32 1.442695, %v6771_v44 }
0x2193   :  { %v14553_v48 = vpop.xlane.xlu1 %6687 }
0x2194   :  { %v6726_v55 = vrot.slane %v14553_v48, %v12045_v18  ;;  %v6730_v25 = vrot.slane %v14553_v48, %v12270_v2  ;;  %v6734_v28 = vrot.slane %v14553_v48, %v12273_v61  ;;  %v6738_v12 = vrot.slane %v14553_v48, %v12279_v4 }
0x2195   :  { %v6742_v40 = vrot.slane %v14553_v48, %v12291_v58 }
0x2196   :  { %v6779_v10 = vsub.f32 %v6565_v38, %v6726_v55  ;;  %v6780_v7 = vsub.f32 %v6568_v63, %v6730_v25  ;;  %v6781_v46 = vsub.f32 %v6571_v57, %v6734_v28  ;;  %v6782_v50 = vsub.f32 %v6574_v59, %v6738_v12 }
0x2197   :  { %v6714_v38 = vrot.slane %v6685_v31, %v12276_v19  ;;  %v6793_v55 = vmul.f32 1.442695, %v6774_v41  ;;  %v6698_v57 = vrot.slane %v6685_v31, %v12270_v2  ;;  %v6783_v25 = vsub.f32 %v14491_v23, %v6742_v40 }
0x2198   :  { %v6803_v15 = vmul.f32 1.442695, %v6779_v10  ;;  %v6805_v26 = vmul.f32 1.442695, %v6780_v7  ;;  %v6807_v63 = vmul.f32 1.442695, %v6781_v46  ;;  %v6702_v10 = vrot.slane %v6685_v31, %v12273_v61 }
0x2199   :  { %v6809_v16 = vmul.f32 1.442695, %v6782_v50  ;;  %v6776_v28 = vsub.f32 %v14508_v52, %v6714_v38  ;;  %v6795_v59 = vmul.f32 1.442695, %v6775_v9  ;;  %v6772_v7 = vsub.f32 %v14495_v11, %v6698_v57 }
0x219a   :  { %11425 = vpow2.f32 %v6803_v15  ;;  %v6811_v20 = vmul.f32 1.442695, %v6783_v25  ;;  %v6722_v50 = vrot.slane %v6685_v31, %v12296_v33  ;;  %v6777_v40 = vsub.f32 %v14519_v32, %v6718_v42 }
0x219b   :  { %11427 = vpow2.f32 %v6805_v26  ;;  %v6797_v23 = vmul.f32 1.442695, %v6776_v28  ;;  %v6773_v3 = vsub.f32 %v14500_v60, %v6702_v10  ;;  %v6789_v52 = vmul.f32 1.442695, %v6772_v7 }
0x219c   :  { %11429 = vpow2.f32 %v6787_v30  ;;  %v6746_v11 = vrot.slane %v14553_v48, %v12276_v19  ;;  %v6778_v31 = vsub.f32 %v14533_v0, %v6722_v50  ;;  %v6799_v32 = vmul.f32 1.442695, %v6777_v40 }
0x219d   :  { %11431 = vpow2.f32 %v6807_v63  ;;  %v6754_v12 = vrot.slane %v14553_v48, %v12296_v33  ;;  %v6791_v60 = vmul.f32 1.442695, %v6773_v3  ;;  %v6750_v46 = vrot.slane %v14553_v48, %v12285_v29 }
0x219e   :  { %11433 = vpow2.f32 %v6793_v55  ;;  %v6784_v15 = vsub.f32 %v14522_v22, %v6746_v11  ;;  %v6801_v0 = vmul.f32 1.442695, %v6778_v31 }
0x219f   :  { %11435 = vpow2.f32 %v6809_v16  ;;  %v6786_v38 = vsub.f32 %v14545_v62, %v6754_v12  ;;  %v6785_v9 = vsub.f32 %v14538_v37, %v6750_v46 }
0x21a0   :  { %11437 = vpow2.f32 %v6795_v59  ;;  %v6813_v55 = vmul.f32 1.442695, %v6784_v15 }
0x21a1   :  { %11439 = vpow2.f32 %v6811_v20  ;;  %v6817_v22 = vmul.f32 1.442695, %v6786_v38  ;;  %v6815_v25 = vmul.f32 1.442695, %v6785_v9 }
0x21a2   :  { %11441 = vpow2.f32 %v6797_v23 }
0x21a3   :  { %11443 = vpow2.f32 %v6789_v52 }
0x21a4   :  { %v14576_v30 = vpop.eup %11425  ;;  %11445 = vpow2.f32 %v6799_v32 }
0x21a5   :  { %v14578_v41 = vpop.eup %11427  ;;  %6860 = vperm.xlu0 %10971, %v14576_v30   ;;  %11447 = vpow2.f32 %v6791_v60 }
0x21a6   :  { %6863 = vperm.xlu1 %10972, %v14578_v41   ;;  %v14587_v49 = vpop.eup %11429  ;;  %11449 = vpow2.f32 %v6801_v0 }
0x21a7   :  { %v14589_v44 = vpop.eup %11431  ;;  %11451 = vpow2.f32 %v6813_v55 }
0x21a8   :  { %v14599_v26 = vpop.eup %11433  ;;  %11453 = vpow2.f32 %v6817_v22 }
0x21a9   :  { %6836 = vperm.xlu0 %10971, %v14587_v49   ;;  %v14601_v63 = vpop.eup %11435  ;;  %11455 = vpow2.f32 %v6815_v25 }
0x21aa   :  { %6866 = vperm.xlu1 %10972, %v14589_v44   ;;  %v14607_v57 = vpop.eup %11437 }
0x21ab   :  { %v14609_v48 = vpop.eup %11439 }
0x21ac   :  { %v14613_v16 = vpop.eup %11441 }
0x21ad   :  { %6845 = vperm.xlu0 %10971, %v14599_v26   ;;  %v14615_v62 = vpop.eup %11443 }
0x21ae   :  { %6869 = vperm.xlu1 %10972, %v14601_v63   ;;  %v14619_v37 = vpop.eup %11445 }
0x21af   :  { %v14621_v42 = vpop.eup %11447 }
0x21b0   :  { %v14625_v28 = vpop.eup %11449 }
0x21b1   :  { %6848 = vperm.xlu0 %10971, %v14607_v57   ;;  %v14627_v59 = vpop.eup %11451 }
0x21b2   :  { %6872 = vperm.xlu1 %10972, %v14609_v48   ;;  %v14631_v10 = vpop.eup %11453 }
0x21b3   :  { %v14633_v7 = vpop.eup %11455 }
0x21b5   :  { %6851 = vperm.xlu0 %10971, %v14613_v16  }
0x21b6   :  { %6839 = vperm.xlu1 %10972, %v14615_v62  }
0x21b9   :  { %6854 = vperm.xlu0 %10971, %v14619_v37  }
0x21ba   :  { %6842 = vperm.xlu1 %10972, %v14621_v42  }
0x21bd   :  { %6857 = vperm.xlu0 %10971, %v14625_v28  }
0x21be   :  { %6875 = vperm.xlu1 %10972, %v14627_v59  }
0x21c1   :  { %6881 = vperm.xlu0 %10971, %v14631_v10  }
0x21c2   :  { %6878 = vperm.xlu1 %10972, %v14633_v7  }
0x2224   :  { %v6861_v20 = vpop.permute.xlu0 %6860 }
0x2225   :  { %v6864_v50 = vpop.permute.xlu1 %6863  ;;  %v6918_v55 = vrot.slane %v6861_v20, %v12209_v56 }
0x2226   :  { %v6922_v9 = vrot.slane %v6864_v50, %v12209_v56 }
0x2228   :  { %v6837_v40 = vpop.permute.xlu0 %6836 }
0x2229   :  { %v6867_v23 = vpop.permute.xlu1 %6866  ;;  %v6886_v15 = vrot.slane %v6837_v40, %v12209_v56 }
0x222a   :  { %v6926_v1 = vrot.slane %v6867_v23, %v12209_v56 }
0x222c   :  { %v6846_v3 = vpop.permute.xlu0 %6845 }
0x222d   :  { %v6870_v52 = vpop.permute.xlu1 %6869  ;;  %v6898_v22 = vrot.slane %v6846_v3, %v12209_v56 }
0x222e   :  { %v6930_v40 = vrot.slane %v6870_v52, %v12209_v56 }
0x2230   :  { %v6849_v11 = vpop.permute.xlu0 %6848 }
0x2231   :  { %v6873_v31 = vpop.permute.xlu1 %6872  ;;  %v6902_v47 = vrot.slane %v6849_v11, %v12209_v56  ;;  %v6954_v11 = vsel %vm859_vm1, %v6922_v9, %v6918_v55 }
0x2232   :  { %v6934_v3 = vrot.slane %v6873_v31, %v12209_v56  ;;  %v6955_v52 = vsel %vm861_vm2, %v6926_v1, %v6954_v11 }
0x2234   :  { %v6852_v32 = vpop.permute.xlu0 %6851 }
0x2235   :  { %v6840_v12 = vpop.permute.xlu1 %6839  ;;  %v6906_v36 = vrot.slane %v6852_v32, %v12209_v56 }
0x2236   :  { %v6890_v60 = vrot.slane %v6840_v12, %v12209_v56 }
0x2238   :  { %v6855_v46 = vpop.permute.xlu0 %6854  ;;  %v6947_v25 = vsel %vm859_vm1, %v6890_v60, %v6886_v15 }
0x2239   :  { %v6843_v0 = vpop.permute.xlu1 %6842  ;;  %v6910_v60 = vrot.slane %v6855_v46, %v12209_v56 }
0x223a   :  { %v6894_v38 = vrot.slane %v6843_v0, %v12209_v56 }
0x223c   :  { %v6948_v12 = vsel %vm861_vm2, %v6894_v38, %v6947_v25  ;;  %v6858_v51 = vpop.permute.xlu0 %6857  ;;  %v6956_v25 = vsel %vm863_vm3, %v6930_v40, %v6955_v52 }
0x223d   :  { %v6949_v0 = vsel %vm863_vm3, %v6898_v22, %v6948_v12  ;;  %v6876_v50 = vpop.permute.xlu1 %6875  ;;  %v6914_v20 = vrot.slane %v6858_v51, %v12209_v56 }
0x223e   :  { %v6950_v23 = vsel %vm865_vm4, %v6902_v47, %v6949_v0  ;;  %v6938_v15 = vrot.slane %v6876_v50, %v12209_v56  ;;  %v6957_v47 = vsel %vm865_vm4, %v6934_v3, %v6956_v25 }
0x223f   :  { %v6951_v38 = vsel %vm867_vm5, %v6906_v36, %v6950_v23 }
0x2240   :  { %v6882_v32 = vpop.permute.xlu0 %6881  ;;  %v6952_v22 = vsel %vm869_vm6, %v6910_v60, %v6951_v38  ;;  %v6958_v36 = vsel %vm867_vm5, %v6938_v15, %v6957_v47 }
0x2241   :  { %v6879_v51 = vpop.permute.xlu1 %6878  ;;  %v6946_v31 = vrot.slane %v6882_v32, %v12209_v56  ;;  %v6953_v46 = vsel %vm871_vm7, %v6914_v20, %v6952_v22 }
0x2242   :  { %v6942_v9 = vrot.slane %v6879_v51, %v12209_v56  ;;  %v6963_v55 = vsel %vm882_vm8, %v6953_v46, 0.0 }
0x2243   :  { %6964 = vadd.xlane.f32.xlu1 %v6963_v55 }
0x2244   :  { %v6959_v1 = vsel %vm869_vm6, %v6942_v9, %v6958_v36 }
0x2245   :  { %v6960_v12 = vsel %vm871_vm7, %v6946_v31, %v6959_v1 }
0x2246   :  { %v6966_v40 = vsel %vm882_vm8, %v6960_v12, 0.0 }
0x2247   :  { %6967 = vadd.xlane.f32.xlu0 %v6966_v40 }
0x22d0   :  { %v6965_v0 = vpop.xlane.xlu1 %6964 }
0x22d1   :  { %11457 = vrcp.f32 %v6965_v0 }
0x22d4   :  { %v6968_v50 = vpop.xlane.xlu0 %6967 }
0x22d5   :  { %11459 = vrcp.f32 %v6968_v50 }
0x22db   :  { %v11458_v20 = vpop.eup %11457 }
0x22dc   :  { %v6976_v60 = vrot.slane %v11458_v20, %v12045_v18  ;;  %v6988_v22 = vrot.slane %v11458_v20, %v12279_v4  ;;  %v6996_v36 = vrot.slane %v11458_v20, %v12276_v19  ;;  %v7000_v0 = vrot.slane %v11458_v20, %v12285_v29 }
0x22de   :  { %v7053_v32 = vmul.f32 %v14587_v49, %v6976_v60  ;;  %v7056_v47 = vmul.f32 %v14599_v26, %v6988_v22 }
0x22df   :  { %v11460_v3 = vpop.eup %11459 }
0x22e0   :  { %v7012_v23 = vrot.slane %v11460_v3, %v12270_v2  ;;  %v7008_v11 = vrot.slane %v11460_v3, %v12045_v18  ;;  %v7016_v15 = vrot.slane %v11460_v3, %v12273_v61  ;;  %v7020_v46 = vrot.slane %v11460_v3, %v12279_v4 }
0x22e1   :  { %v7072_v49 = vmul.f32 %v7053_v32, %v12465_v6  ;;  %v7024_v55 = vrot.slane %v11460_v3, %v12291_v58  ;;  %v7075_v26 = vmul.f32 %v7056_v47, %v12467_v53  ;;  %v7028_v32 = vrot.slane %v11460_v3, %v12276_v19 }
0x22e2   :  { %v7062_v38 = vmul.f32 %v14578_v41, %v7012_v23  ;;  %v7061_v52 = vmul.f32 %v14576_v30, %v7008_v11  ;;  %v7063_v31 = vmul.f32 %v14589_v44, %v7016_v15  ;;  %v6992_v41 = vrot.slane %v11458_v20, %v12291_v58 }
0x22e3   :  { %v7064_v9 = vmul.f32 %v14601_v63, %v7020_v46  ;;  %v6980_v44 = vrot.slane %v11458_v20, %v12270_v2  ;;  %v7065_v12 = vmul.f32 %v14609_v48, %v7024_v55  ;;  %v6984_v63 = vrot.slane %v11458_v20, %v12273_v61 }
0x22e4   :  { %v7081_v25 = vmul.f32 %v7062_v38, %v12486_v39  ;;  %v7080_v51 = vmul.f32 %v7061_v52, %v12463_v45  ;;  %v7082_v30 = vmul.f32 %v7063_v31, %v12500_v24  ;;  %v7057_v40 = vmul.f32 %v14607_v57, %v6992_v41 }
0x22e5   :  { %v7083_v1 = vmul.f32 %v7064_v9, %v12508_v54  ;;  %v7084_v50 = vmul.f32 %v7065_v12, %v12523_v5  ;;  %v7054_v23 = vmul.f32 %v14615_v62, %v6980_v44  ;;  %v7058_v11 = vmul.f32 %v14613_v16, %v6996_v36 }
0x22e6   :  { %7132 = vperm.xlu1 %10972, %v7081_v25   ;;  %7129 = vperm.xlu0 %10971, %v7080_v51   ;;  %v7076_v60 = vmul.f32 %v7057_v40, %v12482_v43  ;;  %v7055_v48 = vmul.f32 %v14621_v42, %v6984_v63  ;;  %v7004_v57 = vrot.slane %v11458_v20, %v12296_v33 }
0x22e7   :  { %v7073_v15 = vmul.f32 %v7054_v23, %v12461_v17  ;;  %v7077_v38 = vmul.f32 %v7058_v11, %v12490_v21  ;;  %v7059_v52 = vmul.f32 %v14619_v37, %v7000_v0  ;;  %v7066_v42 = vmul.f32 %v14627_v59, %v7028_v32 }
0x22e8   :  { %v7074_v62 = vmul.f32 %v7055_v48, %v12476_v14  ;;  %v7060_v16 = vmul.f32 %v14625_v28, %v7004_v57  ;;  %v7032_v20 = vrot.slane %v11460_v3, %v12285_v29  ;;  %v7036_v25 = vrot.slane %v11460_v3, %v12296_v33 }
0x22e9   :  { %v7078_v22 = vmul.f32 %v7059_v52, %v12497_v27  ;;  %v7085_v37 = vmul.f32 %v7066_v42, %v12531_v13 }
0x22ea   :  { %7135 = vperm.xlu1 %10972, %v7082_v30   ;;  %7105 = vperm.xlu0 %10971, %v7072_v49   ;;  %v7079_v51 = vmul.f32 %v7060_v16, %v12511_v34  ;;  %v7067_v31 = vmul.f32 %v14633_v7, %v7032_v20  ;;  %v7068_v46 = vmul.f32 %v14631_v10, %v7036_v25 }
0x22ec   :  { %v7086_v28 = vmul.f32 %v7067_v31, %v12537_v35  ;;  %v7087_v59 = vmul.f32 %v7068_v46, %v16007_v8 }
0x22ee   :  { %7138 = vperm.xlu1 %10972, %v7083_v1   ;;  %7114 = vperm.xlu0 %10971, %v7075_v26  }
0x22f2   :  { %7141 = vperm.xlu1 %10972, %v7084_v50   ;;  %7117 = vperm.xlu0 %10971, %v7076_v60  }
0x22f6   :  { %7108 = vperm.xlu1 %10972, %v7073_v15   ;;  %7120 = vperm.xlu0 %10971, %v7077_v38  }
0x22fa   :  { %7111 = vperm.xlu1 %10972, %v7074_v62   ;;  %7123 = vperm.xlu0 %10971, %v7078_v22  }
0x22fe   :  { %7144 = vperm.xlu1 %10972, %v7085_v37   ;;  %7126 = vperm.xlu0 %10971, %v7079_v51  }
0x2302   :  { %7147 = vperm.xlu1 %10972, %v7086_v28   ;;  %7150 = vperm.xlu0 %10971, %v7087_v59  }
0x2365   :  { %v7133_v47 = vpop.permute.xlu1 %7132  ;;  %v7130_v3 = vpop.permute.xlu0 %7129 }
0x2366   :  { %v7191_v63 = vrot.slane %v7133_v47, %v12209_v56  ;;  %v7187_v0 = vrot.slane %v7130_v3, %v12209_v56 }
0x2368   :  { %v7223_v20 = vsel %vm859_vm1, %v7191_v63, %v7187_v0  ;;  %v11659_v0 = vld [vmem:[#allocation3] ss:$0 sm:$0xff] }
0x2369   :  { %v7136_v41 = vpop.permute.xlu1 %7135  ;;  %v7106_v30 = vpop.permute.xlu0 %7105 }
0x236a   :  { %v7155_v1 = vrot.slane %v7106_v30, %v12209_v56  ;;  %v7195_v23 = vrot.slane %v7136_v41, %v12209_v56 }
0x236c   :  { %v7224_v51 = vsel %vm861_vm2, %v7195_v23, %v7223_v20  ;;  %v16210_v20 = vld [vmem:[#allocation44_spill] sm:$0xff] }
0x236d   :  { %v7139_v49 = vpop.permute.xlu1 %7138  ;;  %v7115_v9 = vpop.permute.xlu0 %7114 }
0x236e   :  { %v7167_v50 = vrot.slane %v7115_v9, %v12209_v56  ;;  %v7199_v57 = vrot.slane %v7139_v49, %v12209_v56 }
0x2370   :  { %v7225_v46 = vsel %vm863_vm3, %v7199_v57, %v7224_v51  ;;  %v16206_v57 = vld [vmem:[#allocation42_spill] sm:$0xff] }
0x2371   :  { %v7142_v55 = vpop.permute.xlu1 %7141  ;;  %v7118_v44 = vpop.permute.xlu0 %7117 }
0x2372   :  { %v7171_v11 = vrot.slane %v7118_v44, %v12209_v56  ;;  %v7203_v62 = vrot.slane %v7142_v55, %v12209_v56 }
0x2374   :  { %v7226_v3 = vsel %vm865_vm4, %v7203_v62, %v7225_v46  ;;  %v16211_v46 = vld [vmem:[#allocation47_spill] sm:$0xff] }
0x2375   :  { %v7109_v36 = vpop.permute.xlu1 %7108  ;;  %v7121_v7 = vpop.permute.xlu0 %7120 }
0x2376   :  { %v7159_v10 = vrot.slane %v7109_v36, %v12209_v56  ;;  %v7175_v15 = vrot.slane %v7121_v7, %v12209_v56  ;;  %v10061_v7 = vld [vmem:[%s15770_s1 + $0x50] sm:$0xff] }
0x2378   :  { %v7216_v60 = vsel %vm859_vm1, %v7159_v10, %v7155_v1  ;;  %v11658_v10 = vld [vmem:[#allocation2] ss:$0 sm:$0xff] }
0x2379   :  { %v7112_v26 = vpop.permute.xlu1 %7111  ;;  %v7124_v12 = vpop.permute.xlu0 %7123  ;;  %v7238_v1 = vmul.f32 %v11658_v10, %v10061_v7 }
0x237a   :  { %v7163_v40 = vrot.slane %v7112_v26, %v12209_v56  ;;  %v7179_v16 = vrot.slane %v7124_v12, %v12209_v56  ;;  %v10062_v26 = vld [vmem:[%s15770_s1 + $0x58] sm:$0xff] }
0x237b   :  { %v7239_v63 = vmul.f32 %v11658_v10, %v10062_v26 }
0x237c   :  { %v7217_v48 = vsel %vm861_vm2, %v7163_v40, %v7216_v60 }
0x237d   :  { %v7218_v38 = vsel %vm863_vm3, %v7167_v50, %v7217_v48  ;;  %v7145_v52 = vpop.permute.xlu1 %7144  ;;  %v7127_v32 = vpop.permute.xlu0 %7126 }
0x237e   :  { %v7183_v22 = vrot.slane %v7127_v32, %v12209_v56  ;;  %v7219_v42 = vsel %vm865_vm4, %v7171_v11, %v7218_v38  ;;  %v7207_v25 = vrot.slane %v7145_v52, %v12209_v56  ;;  %v16207_v38 = vld [vmem:[#allocation43_spill] sm:$0xff]  ;;  %v16208_v32 = vld [vmem:[#allocation46_spill] sm:$0xff] }
0x237f   :  { %v7220_v37 = vsel %vm867_vm5, %v7175_v15, %v7219_v42 }
0x2380   :  { %v7221_v31 = vsel %vm869_vm6, %v7179_v16, %v7220_v37  ;;  %v7227_v9 = vsel %vm867_vm5, %v7207_v25, %v7226_v3  ;;  %v16209_v16 = vld [vmem:[#allocation33_spill] sm:$0xff]  ;;  %v16213_v3 = vld [vmem:[#allocation48_spill] sm:$0xff] }
0x2381   :  { %v7148_v28 = vpop.permute.xlu1 %7147  ;;  %v7151_v59 = vpop.permute.xlu0 %7150  ;;  %v7222_v47 = vsel %vm871_vm7, %v7183_v22, %v7221_v31 }
0x2382   :  { %v7211_v41 = vrot.slane %v7148_v28, %v12209_v56  ;;  %v7215_v30 = vrot.slane %v7151_v59, %v12209_v56  ;;  %v7232_v49 = vsel %vm882_vm8, %v7222_v47, 0.0  ;;  %v16212_v59 = vld [vmem:[#allocation45_spill] sm:$0xff] }
0x2383   :  { %7233 = vadd.xlane.f32.xlu1 %v7232_v49 }
0x2384   :  { %v7228_v55 = vsel %vm869_vm6, %v7211_v41, %v7227_v9 }
0x2385   :  { %v7229_v44 = vsel %vm871_vm7, %v7215_v30, %v7228_v55 }
0x2386   :  { %v7235_v36 = vsel %vm882_vm8, %v7229_v44, 0.0 }
0x2387   :  { %7236 = vadd.xlane.f32.xlu0 %v7235_v36 }
0x2410   :  { %v7234_v12 = vpop.xlane.xlu1 %7233 }
0x2411   :  { %v7240_v40 = vadd.f32 %v7238_v1, %v7234_v12 }
0x2413   :  { %v7242_v50 = vadd.f32 %v11659_v0, %v7240_v40 }
0x2414   :  { %v7237_v60 = vpop.xlane.xlu0 %7236 }
0x2415   :  { %v7241_v23 = vadd.f32 %v7239_v63, %v7237_v60  ;;  %7246 = vperm.xlu0 %10971, %v7242_v50   ;;  %v16214_v60 = vld [vmem:[#allocation49_spill] sm:$0xff] }
0x2417   :  { %v7243_v11 = vadd.f32 %v11659_v0, %v7241_v23 }
0x2419   :  { %7251 = vperm.xlu1 %10972, %v7243_v11  }
0x2494   :  { %v7247_v48 = vpop.permute.xlu0 %7246 }
0x2495   :  { %v7254_v15 = vmul.f32 %v7247_v48, %v16206_v57  ;;  %v7255_v52 = vmul.f32 %v7247_v48, %v16207_v38 }
0x2497   :  { %v7339_v62 = vadd.f32 %v16208_v32, %v7254_v15  ;;  %v7340_v22 = vadd.f32 %v16209_v16, %v7255_v52  ;;  %v16216_v15 = vld [vmem:[#allocation51_spill] sm:$0xff] }
0x2498   :  { %v7252_v42 = vpop.permute.xlu1 %7251 }
0x2499   :  { %v7343_v25 = vadd.f32 %v7339_v62, %v16210_v20  ;;  %v7256_v37 = vmul.f32 %v7252_v42, %v16206_v57  ;;  %v7257_v51 = vmul.f32 %v7252_v42, %v16207_v38  ;;  %v7344_v47 = vadd.f32 %v7340_v22, %v16212_v59 }
0x249b   :  { %v7347_v31 = vmul.f32 0.5, %v7343_v25  ;;  %v7341_v28 = vadd.f32 %v16211_v46, %v7256_v37  ;;  %v7342_v41 = vadd.f32 %v16213_v3, %v7257_v51  ;;  %v7357_v0 = vmul.f32 0.5, %v7344_v47 }
0x249d   :  { %11461 = vtanh.f32 %v7347_v31  ;;  %v7345_v30 = vadd.f32 %v7341_v28, %v16210_v20  ;;  %v7346_v9 = vadd.f32 %v7342_v41, %v16212_v59 }
0x249e   :  { %11463 = vtanh.f32 %v7344_v47 }
0x249f   :  { %v7348_v49 = vmul.f32 0.5, %v7345_v30  ;;  %v7358_v50 = vmul.f32 0.5, %v7346_v9  ;;  %v16218_v30 = vmov 0.0  }
0x24a1   :  { %11465 = vtanh.f32 %v7348_v49  ;;  %v16219_v49 = vld [vmem:[#allocation8_spill] sm:$0xff] }
0x24a2   :  { %11467 = vtanh.f32 %v7346_v9 }
0x24a3   :  { %11469 = vtanh.f32 %v7357_v0  ;;  %v16229_v0 = vld [vmem:[#allocation40_spill] sm:$0xff] }
0x24a4   :  { %11471 = vtanh.f32 %v7358_v50  ;;  %v16230_v50 = vld [vmem:[#allocation41_spill] sm:$0xff] }
0x24a7   :  { %v11462_v55 = vpop.eup %11461 }
0x24a8   :  { %v7351_v44 = vadd.f32 1.0, %v11462_v55  ;;  %v11464_v36 = vpop.eup %11463  ;;  %v16220_v55 = vld [vmem:[#allocation9_spill] sm:$0xff] }
0x24aa   :  { %v7353_v7 = vmul.f32 0.5, %v7351_v44 }
0x24ab   :  { %v11466_v10 = vpop.eup %11465 }
0x24ac   :  { %v7367_v1 = vmul.f32 %v11464_v36, %v7353_v7  ;;  %v7352_v26 = vadd.f32 1.0, %v11466_v10  ;;  %v11468_v40 = vpop.eup %11467  ;;  %v7365_v23 = vmul.f32 %v7353_v7, %v16214_v60  ;;  %v16221_v36 = vld [vmem:[#allocation35_spill] sm:$0xff]  ;;  %v16222_v7 = vld [vmem:[#allocation10_spill] sm:$0xff]  ;;  %v16223_v10 = vld [vmem:[#allocation36_spill] sm:$0xff] }
0x24ad   :  { %v11470_v62 = vpop.eup %11469  ;;  %v16231_v60 = vld [vmem:[#allocation13_spill] sm:$0xff] }
0x24ae   :  { %7371 = vrot.lane.b32.xlu1 %v7367_v1, %s11712_s6  ;;  %v7354_v12 = vmul.f32 0.5, %v7352_v26  ;;  %v7361_v22 = vadd.f32 1.0, %v11470_v62  ;;  %v11472_v42 = vpop.eup %11471  ;;  %v16224_v1 = vld [vmem:[#allocation37_spill] sm:$0xff]  ;;  %v16225_v26 = vld [vmem:[#allocation11_spill] sm:$0xff] }
0x24af   :  { %v7362_v37 = vadd.f32 1.0, %v11472_v42 }
0x24b0   :  { %v7368_v63 = vmul.f32 %v11468_v40, %v7354_v12  ;;  %v7366_v52 = vmul.f32 %v7354_v12, %v16216_v15  ;;  %v7363_v25 = vmul.f32 0.5, %v7361_v22  ;;  %v16226_v12 = vld [vmem:[#allocation38_spill] sm:$0xff]  ;;  %v16227_v40 = vld [vmem:[#allocation39_spill] sm:$0xff] }
0x24b1   :  { %v7364_v46 = vmul.f32 0.5, %v7362_v37 }
0x24b2   :  { %7373 = vrot.lane.b32.xlu0 %v7368_v63, %s11712_s6  ;;  %v16228_v63 = vld [vmem:[#allocation12_spill] sm:$0xff] }
0x2520   :  { %v7372_v11 = vpop.permute.xlu1 %7371 }
0x2521   :  { %v14770_v48 = vadd.f32 %v7372_v11, %v7365_v23  ;;  %v16232_v23 = vld [vmem:[#allocation14_spill] sm:$0xff]  ;;  %v16233_v11 = vld [vmem:[#allocation15_spill] sm:$0xff] }
0x2523   :  { %16215 = vst [vmem:[#allocation50_spill] sm:$0xff] %v14770_v48  ;;  %11473 = vtanh.f32 %v14770_v48 }
0x2524   :  { %v7374_v32 = vpop.permute.xlu0 %7373 }
0x2525   :  { %v14774_v16 = vadd.f32 %v7374_v32, %v7366_v52 }
0x2527   :  { %16217 = vst [vmem:[#allocation34_spill] sm:$0xff] %v14774_v16  ;;  %11475 = vtanh.f32 %v14774_v16 }
0x252d   :  { %v11474_v51 = vpop.eup %11473 }
0x252e   :  { %v7381_v31 = vmul.f32 %v11474_v51, %v7363_v25  ;;  %v16238_v25 = vld [vmem:[#allocation16_spill] sm:$0xff] }
0x2530   :  { %7385 = vrot.lane.b32.xlu1 %v7381_v31, %s11712_s6 }
0x2531   :  { %v11476_v28 = vpop.eup %11475 }
0x2532   :  { %v7382_v47 = vmul.f32 %v11476_v28, %v7364_v46 }
0x2534   :  { %7387 = vrot.lane.b32.xlu0 %v7382_v47, %s11712_s6 }
0x25a2   :  { %v7386_v3 = vpop.permute.xlu1 %7385 }
0x25a3   :  { %10067 = vmatmul.mubr.msk.f32.vlgmr.msra.gmra.mrb[16].mxu1 %vm135_vm0, %v7386_v3  ;;  %v7391_v41 = vsel %vm135_vm0, %v7386_v3, %v14770_v48 }
0x25a4   :  { %10526 = vmatprep.mubr.f32.mxu0 %v7391_v41  ;;  %8489 = vmatprep.mubr.f32.mxu1 %v16218_v30 }
0x25a5   :  { %10919 = vmatpush3.bf16.msra.mxu1 %v16219_v49 }
0x25a6   :  { %v7388_v9 = vpop.permute.xlu0 %7387  ;;  %10921 = vmatprep.subr.bf16.mxu1 %v16220_v55 }
0x25a7   :  { %v7392_v44 = vsel %vm135_vm0, %v7388_v9, %v14774_v16  ;;  %10068 = vmatmul.mubr.msk.f32.gmra.mrb[18].mxu1 %vm135_vm0, %v7388_v9 }
0x25a8   :  { %10527 = vmatmul.mubr.f32.vlgmr.msra.gmra.mrb[36].mxu0 %v7392_v44 }
0x25a9   :  { %10923 = vmatpush3.bf16.msra.mxu1 %v16220_v55  ;;  %10951 = vmatpush1.bf16.msra.mxu0 %v16221_v36 }
0x25aa   :  { %10925 = vmatprep.subr.bf16.mxu1 %v16222_v7  ;;  %10953 = vmatprep.subr.bf16.mxu0 %v16223_v10 }
0x25ab   :  { %9640 = vmatprep.mubr.f32.mxu0 %v16218_v30 }
0x25ad   :  { %10927 = vmatpush3.bf16.msra.mxu1 %v16222_v7  ;;  %10955 = vmatpush1.bf16.msra.mxu0 %v16224_v1 }
0x25ae   :  { %10929 = vmatprep.subr.bf16.mxu1 %v16225_v26  ;;  %10957 = vmatprep.subr.bf16.mxu0 %v16226_v12  ;;  %v16239_v12 = vld [vmem:[#allocation19_spill] sm:$0xff] }
0x25b1   :  { %10931 = vmatpush3.bf16.msra.mxu1 %v16225_v26  ;;  %10959 = vmatpush1.bf16.msra.mxu0 %v16227_v40 }
0x25b2   :  { %10933 = vmatprep.subr.bf16.mxu1 %v16228_v63  ;;  %10961 = vmatprep.subr.bf16.mxu0 %v16229_v0  ;;  %v16240_v0 = vld [vmem:[#allocation21_spill] sm:$0xff] }
0x25b5   :  { %10935 = vmatpush3.bf16.msra.mxu1 %v16228_v63  ;;  %10963 = vmatpush1.bf16.msra.mxu0 %v16230_v50 }
0x25b6   :  { %10937 = vmatprep.subr.bf16.mxu1 %v16231_v60 }
0x25b9   :  { %10939 = vmatpush3.bf16.msra.mxu1 %v16231_v60  ;;  %v16241_v60 = vld [vmem:[#allocation20_spill] sm:$0xff] }
0x25ba   :  { %10941 = vmatprep.subr.bf16.mxu1 %v16232_v23 }
0x25bd   :  { %10943 = vmatpush3.bf16.msra.mxu1 %v16232_v23 }
0x25be   :  { %10945 = vmatprep.subr.bf16.mxu1 %v16233_v11 }
0x25c1   :  { %10947 = vmatpush3.bf16.msra.mxu1 %v16233_v11 }
0x2676   :  { %v14809_v15 = vpop.f32.mrb[16].mxu1 }
0x2677   :  { %16234 = vst [vmem:[#allocation46_spill] sm:$0xff] %v14809_v15  ;;  %v14811_v52 = vpop.f32.mrb[17].mxu1 }
0x2678   :  { %16235 = vst [vmem:[#allocation33_spill] sm:$0xff] %v14811_v52 }
0x267a   :  { %v14813_v32 = vpop.f32.mrb[18].mxu1 }
0x267b   :  { %16236 = vst [vmem:[#allocation47_spill] sm:$0xff] %v14813_v32  ;;  %v10528_v62 = vpop.f32.mrb[36].mxu0  ;;  %v14815_v22 = vpop.f32.mrb[19].mxu1 }
0x267c   :  { %16237 = vst [vmem:[#allocation48_spill] sm:$0xff] %v14815_v22  ;;  %v7519_v42 = vcombine.high %v10528_v62, %v10528_v62  ;;  %v7526_v37 = vrot.slane %v10528_v62, %v16238_v25  ;;  %v7459_v51 = vpop.f32.mrb[37].mxu0 }
0x267d   :  { %v7477_v31 = vrot.slane %v7459_v51, %v16238_v25  ;;  %v7470_v3 = vcombine.high %v7459_v51, %v7459_v51 }
0x267e   :  { %v7533_v46 = vrot.slane %v7519_v42, %v16238_v25  ;;  %v7534_v28 = vcombine.high %v7526_v37, %v7526_v37  ;;  %v7542_v47 = vrot.slane %v7526_v37, %v16238_v25  ;;  %v16242_v42 = vld [vmem:[#allocation28_spill] sm:$0xff] }
0x267f   :  { %v7485_v41 = vcombine.high %v7477_v31, %v7477_v31  ;;  %v7484_v7 = vrot.slane %v7470_v3, %v16238_v25  ;;  %v7493_v10 = vrot.slane %v7477_v31, %v16238_v25 }
0x2680   :  { %v14822_v49 = vrot.slane %v7533_v46, %v16238_v25  ;;  %v7556_v9 = vrot.slane %v7534_v28, %v16238_v25  ;;  %v7564_v55 = vcombine.high %v7542_v47, %v7542_v47  ;;  %v7603_v44 = vrot.slane %v7542_v47, %v12045_v18 }
0x2681   :  { %v7507_v63 = vrot.slane %v7485_v41, %v16238_v25  ;;  %v7486_v11 = vcombine.high %v7484_v7, %v7484_v7  ;;  %v7500_v62 = vrot.slane %v7484_v7, %v16238_v25  ;;  %v7515_v51 = vcombine.high %v7493_v10, %v7493_v10 }
0x2682   :  { %v7607_v36 = vrot.slane %v7556_v9, %v12045_v18  ;;  %v7611_v1 = vrot.slane %v7564_v55, %v12045_v18  ;;  %v7619_v26 = vrot.slane %v14822_v49, %v12045_v18  ;;  %v7656_v40 = vadd.f32 %v7603_v44, %v16239_v12 }
0x2683   :  { %v7517_v31 = vcombine.high %v7507_v63, %v7507_v63  ;;  %v7571_v28 = vrot.slane %v7493_v10, %v12045_v18  ;;  %v7575_v47 = vrot.slane %v7507_v63, %v12045_v18  ;;  %v7535_v41 = vcombine.high %v7533_v46, %v7533_v46 }
0x2684   :  { %v7657_v50 = vadd.f32 %v7607_v36, %v16240_v0  ;;  %v7658_v23 = vadd.f32 %v7611_v1, %v16241_v60  ;;  %11477 = vtanh.f32 %v7656_v40  ;;  %v7660_v37 = vadd.f32 %v7619_v26, %v16242_v42  ;;  %v16243_v1 = vld [vmem:[#allocation17_spill] sm:$0xff]  ;;  %v16244_v40 = vld [vmem:[#allocation23_spill] sm:$0xff]  ;;  %v16246_v60 = vld [vmem:[#allocation22_spill] sm:$0xff] }
0x2685   :  { %v7583_v3 = vrot.slane %v7517_v31, %v12045_v18  ;;  %v7566_v55 = vcombine.high %v7556_v9, %v7556_v9  ;;  %v7514_v44 = vrot.slane %v7486_v11, %v16238_v25  ;;  %v7587_v36 = vrot.slane %v7500_v62, %v12045_v18  ;;  %v16245_v42 = vld [vmem:[#allocation25_spill] sm:$0xff] }
0x2686   :  { %11479 = vtanh.f32 %v7657_v50  ;;  %v7579_v7 = vrot.slane %v7515_v51, %v12045_v18  ;;  %v7648_v26 = vadd.f32 %v7571_v28, %v16243_v1  ;;  %v7649_v50 = vadd.f32 %v7575_v47, %v16244_v40  ;;  %v14855_v51 = vld [vmem:[%s15774_s5] ss:$0 sm:$0xff] }
0x2687   :  { %11481 = vtanh.f32 %v7658_v23  ;;  %v7516_v23 = vcombine.high %v7500_v62, %v7500_v62  ;;  %v7651_v10 = vadd.f32 %v7583_v3, %v16245_v42  ;;  %v7591_v63 = vrot.slane %v7514_v44, %v12045_v18 }
0x2688   :  { %11483 = vtanh.f32 %v7660_v37  ;;  %v7652_v31 = vadd.f32 %v7587_v36, %v16246_v60  ;;  %v7563_v9 = vrot.slane %v7535_v41, %v16238_v25  ;;  %v7615_v11 = vrot.slane %v7566_v55, %v12045_v18  ;;  %v16247_v37 = vld [vmem:[#allocation18_spill] sm:$0xff]  ;;  %v16249_v60 = vld [vmem:[#allocation24_spill] sm:$0xff] }
0x2689   :  { %11485 = vtanh.f32 %v7648_v26  ;;  %v7650_v0 = vadd.f32 %v7579_v7, %v16247_v37  ;;  %v7518_v47 = vcombine.high %v7514_v44, %v7514_v44  ;;  %v7595_v3 = vrot.slane %v7516_v23, %v12045_v18  ;;  %v16248_v26 = vld [vmem:[#allocation27_spill] sm:$0xff] }
0x268a   :  { %11487 = vtanh.f32 %v7649_v50  ;;  %v7653_v41 = vadd.f32 %v7591_v63, %v16248_v26  ;;  %v7565_v50 = vcombine.high %v14822_v49, %v14822_v49  ;;  %v7623_v42 = vrot.slane %v7563_v9, %v12045_v18  ;;  %v16251_v26 = vld [vmem:[#allocation26_spill] sm:$0xff] }
0x268b   :  { %11489 = vtanh.f32 %v7651_v10  ;;  %v7567_v63 = vcombine.high %v7563_v9, %v7563_v9 }
0x268c   :  { %11491 = vtanh.f32 %v7652_v31  ;;  %v7599_v31 = vrot.slane %v7518_v47, %v12045_v18  ;;  %v7627_v49 = vrot.slane %v7565_v50, %v12045_v18  ;;  %v7661_v37 = vadd.f32 %v7623_v42, %v16251_v26  ;;  %v16252_v47 = vld [vmem:[#allocation31_spill] sm:$0xff] }
0x268d   :  { %11493 = vtanh.f32 %v7650_v0  ;;  %v7631_v9 = vrot.slane %v7567_v63, %v12045_v18  ;;  %v16254_v63 = vld [vmem:[#allocation32_spill] sm:$0xff] }
0x268e   :  { %v11478_v46 = vpop.eup %11477  ;;  %11495 = vtanh.f32 %v7653_v41  ;;  %v16253_v41 = vld [vmem:[#allocation30_spill] sm:$0xff] }
0x268f   :  { %v7688_v62 = vmul.f32 %v14855_v51, %v11478_v46  ;;  %v7659_v46 = vadd.f32 %v7615_v11, %v16249_v60  ;;  %v7662_v50 = vadd.f32 %v7627_v49, %v16253_v41 }
0x2690   :  { %v11480_v28 = vpop.eup %11479 }
0x2691   :  { %v11482_v36 = vpop.eup %11481  ;;  %v7720_v55 = vsel %vm135_vm0, %v7688_v62, 0.0  ;;  %v7689_v7 = vmul.f32 %v14855_v51, %v11480_v28  ;;  %v16250_v62 = vld [vmem:[#allocation29_spill] sm:$0xff]  ;;  %11497 = vtanh.f32 %v7659_v46 }
0x2692   :  { %7721 = vadd.xlane.f32.xlu1 %v7720_v55  ;;  %v7690_v23 = vmul.f32 %v14855_v51, %v11482_v36  ;;  %v11484_v10 = vpop.eup %11483  ;;  %v7654_v28 = vadd.f32 %v7595_v3, %v16250_v62 }
0x2693   :  { %v7723_v44 = vsel %vm135_vm0, %v7689_v7, 0.0  ;;  %v11486_v11 = vpop.eup %11485  ;;  %v7692_v55 = vmul.f32 %v14855_v51, %v11484_v10 }
0x2694   :  { %7724 = vadd.xlane.f32.xlu0 %v7723_v44  ;;  %v7726_v0 = vsel %vm135_vm0, %v7690_v23, 0.0  ;;  %v11488_v7 = vpop.eup %11487  ;;  %v7680_v36 = vmul.f32 %v14855_v51, %v11486_v11  ;;  %v7655_v44 = vadd.f32 %v7599_v31, %v16252_v47  ;;  %11499 = vtanh.f32 %v7654_v28 }
0x2695   :  { %v11490_v3 = vpop.eup %11489  ;;  %11501 = vtanh.f32 %v7661_v37  ;;  %v7732_v23 = vsel %vm135_vm0, %v7692_v55, 0.0  ;;  %v7681_v10 = vmul.f32 %v14855_v51, %v11488_v7 }
0x2696   :  { %v7696_v42 = vsel %vm135_vm0, %v7680_v36, 0.0  ;;  %v11492_v46 = vpop.eup %11491  ;;  %11503 = vtanh.f32 %v7655_v44  ;;  %v7683_v37 = vmul.f32 %v14855_v51, %v11490_v3 }
0x2697   :  { %7697 = vadd.xlane.f32.xlu1 %v7696_v42  ;;  %v11494_v62 = vpop.eup %11493  ;;  %v7684_v11 = vmul.f32 %v14855_v51, %v11492_v46  ;;  %11505 = vtanh.f32 %v7662_v50  ;;  %v7699_v49 = vsel %vm135_vm0, %v7681_v10, 0.0 }
0x2698   :  { %7727 = vadd.xlane.f32.xlu0 %v7726_v0  ;;  %v7663_v0 = vadd.f32 %v7631_v9, %v16254_v63  ;;  %v11496_v28 = vpop.eup %11495  ;;  %v7682_v55 = vmul.f32 %v14855_v51, %v11494_v62  ;;  %v7705_v7 = vsel %vm135_vm0, %v7683_v37, 0.0 }
0x2699   :  { %v7708_v31 = vsel %vm135_vm0, %v7684_v11, 0.0  ;;  %v7685_v42 = vmul.f32 %v14855_v51, %v11496_v28 }
0x269a   :  { %11507 = vtanh.f32 %v7663_v0  ;;  %v7702_v44 = vsel %vm135_vm0, %v7682_v55, 0.0 }
0x269b   :  { %7709 = vadd.xlane.f32.xlu1 %v7708_v31  ;;  %v11498_v36 = vpop.eup %11497  ;;  %v7711_v46 = vsel %vm135_vm0, %v7685_v42, 0.0 }
0x269c   :  { %7733 = vadd.xlane.f32.xlu0 %v7732_v23  ;;  %v7691_v50 = vmul.f32 %v14855_v51, %v11498_v36 }
0x269e   :  { %v11500_v9 = vpop.eup %11499  ;;  %v7729_v10 = vsel %vm135_vm0, %v7691_v50, 0.0 }
0x269f   :  { %7706 = vadd.xlane.f32.xlu1 %v7705_v7  ;;  %v11502_v3 = vpop.eup %11501  ;;  %v7686_v23 = vmul.f32 %v14855_v51, %v11500_v9 }
0x26a0   :  { %7700 = vadd.xlane.f32.xlu0 %v7699_v49  ;;  %v11504_v62 = vpop.eup %11503  ;;  %v7693_v11 = vmul.f32 %v14855_v51, %v11502_v3 }
0x26a1   :  { %v11506_v0 = vpop.eup %11505  ;;  %v7714_v31 = vsel %vm135_vm0, %v7686_v23, 0.0  ;;  %v7687_v37 = vmul.f32 %v14855_v51, %v11504_v62 }
0x26a2   :  { %v7735_v49 = vsel %vm135_vm0, %v7693_v11, 0.0  ;;  %v7694_v55 = vmul.f32 %v14855_v51, %v11506_v0 }
0x26a3   :  { %7712 = vadd.xlane.f32.xlu1 %v7711_v46  ;;  %v7717_v36 = vsel %vm135_vm0, %v7687_v37, 0.0 }
0x26a4   :  { %7703 = vadd.xlane.f32.xlu0 %v7702_v44  ;;  %v11508_v28 = vpop.eup %11507  ;;  %v7738_v42 = vsel %vm135_vm0, %v7694_v55, 0.0 }
0x26a5   :  { %v7695_v7 = vmul.f32 %v14855_v51, %v11508_v28 }
0x26a7   :  { %7715 = vadd.xlane.f32.xlu1 %v7714_v31  ;;  %v7741_v9 = vsel %vm135_vm0, %v7695_v7, 0.0 }
0x26a8   :  { %7730 = vadd.xlane.f32.xlu0 %v7729_v10 }
0x26ab   :  { %7718 = vadd.xlane.f32.xlu1 %v7717_v36 }
0x26ac   :  { %7736 = vadd.xlane.f32.xlu0 %v7735_v49 }
0x26af   :  { %7742 = vadd.xlane.f32.xlu1 %v7741_v9 }
0x26b0   :  { %7739 = vadd.xlane.f32.xlu0 %v7738_v42 }
0x271f   :  { %v7722_v50 = vpop.xlane.xlu1 %7721 }
0x2720   :  { %v7795_v26 = vrot.slane %v7722_v50, %v12209_v56 }
0x2721   :  { %v7725_v44 = vpop.xlane.xlu0 %7724 }
0x2722   :  { %v7799_v42 = vrot.slane %v7725_v44, %v12209_v56 }
0x2724   :  { %v7698_v46 = vpop.xlane.xlu1 %7697 }
0x2725   :  { %v7728_v3 = vpop.xlane.xlu0 %7727  ;;  %v7763_v0 = vrot.slane %v7698_v46, %v12209_v56 }
0x2726   :  { %v7803_v47 = vrot.slane %v7728_v3, %v12209_v56 }
0x2728   :  { %v14905_v62 = vpop.xlane.xlu1 %7709 }
0x2729   :  { %v14903_v23 = vpop.xlane.xlu0 %7733  ;;  %v7779_v55 = vrot.slane %v14905_v62, %v12209_v56 }
0x272a   :  { %v7811_v1 = vrot.slane %v14903_v23, %v12209_v56 }
0x272c   :  { %v7707_v11 = vpop.xlane.xlu1 %7706 }
0x272d   :  { %v14907_v10 = vpop.xlane.xlu0 %7700  ;;  %v7775_v28 = vrot.slane %v7707_v11, %v12209_v56 }
0x272e   :  { %v7767_v51 = vrot.slane %v14907_v10, %v12209_v56 }
0x2730   :  { %v7824_v49 = vsel %vm859_vm1, %v7767_v51, %v7763_v0  ;;  %v14920_v36 = vpop.xlane.xlu1 %7712 }
0x2731   :  { %v14912_v31 = vpop.xlane.xlu0 %7703  ;;  %v7783_v51 = vrot.slane %v14920_v36, %v12209_v56 }
0x2732   :  { %v7771_v37 = vrot.slane %v14912_v31, %v12209_v56 }
0x2734   :  { %v7825_v7 = vsel %vm861_vm2, %v7771_v37, %v7824_v49  ;;  %v14931_v60 = vpop.xlane.xlu1 %7715  ;;  %v7831_v37 = vsel %vm859_vm1, %v7799_v42, %v7795_v26 }
0x2735   :  { %v7826_v9 = vsel %vm863_vm3, %v7775_v28, %v7825_v7  ;;  %v7731_v63 = vpop.xlane.xlu0 %7730  ;;  %v7832_v7 = vsel %vm861_vm2, %v7803_v47, %v7831_v37 }
0x2736   :  { %v7827_v41 = vsel %vm865_vm4, %v7779_v55, %v7826_v9  ;;  %v7807_v0 = vrot.slane %v7731_v63, %v12209_v56  ;;  %v7787_v55 = vrot.slane %v14931_v60, %v12209_v56 }
0x2737   :  { %v7828_v28 = vsel %vm867_vm5, %v7783_v51, %v7827_v41 }
0x2738   :  { %v7833_v9 = vsel %vm863_vm3, %v7807_v0, %v7832_v7  ;;  %v14945_v12 = vpop.xlane.xlu1 %7718  ;;  %v7829_v26 = vsel %vm869_vm6, %v7787_v55, %v7828_v28 }
0x2739   :  { %v14934_v49 = vpop.xlane.xlu0 %7736  ;;  %v7791_v41 = vrot.slane %v14945_v12, %v12209_v56  ;;  %v7834_v51 = vsel %vm865_vm4, %v7811_v1, %v7833_v9 }
0x273a   :  { %v7815_v40 = vrot.slane %v14934_v49, %v12209_v56 }
0x273b   :  { %v7830_v0 = vsel %vm871_vm7, %v7791_v41, %v7829_v26 }
0x273c   :  { %v7835_v37 = vsel %vm867_vm5, %v7815_v40, %v7834_v51  ;;  %v14957_v7 = vpop.xlane.xlu1 %7742  ;;  %v7840_v25 = vsel %vm882_vm8, %v7830_v0, -inf }
0x273d   :  { %v14950_v42 = vpop.xlane.xlu0 %7739  ;;  %v7823_v55 = vrot.slane %v14957_v7, %v12209_v56  ;;  %7841 = vmax.xlane.f32.xlu0 %v7840_v25 }
0x273e   :  { %v7819_v47 = vrot.slane %v14950_v42, %v12209_v56 }
0x2740   :  { %v7836_v28 = vsel %vm869_vm6, %v7819_v47, %v7835_v37 }
0x2741   :  { %v7837_v30 = vsel %vm871_vm7, %v7823_v55, %v7836_v28 }
0x2742   :  { %v7843_v16 = vsel %vm882_vm8, %v7837_v30, -inf }
0x2743   :  { %7844 = vmax.xlane.f32.xlu1 %v7843_v16 }
0x27ca   :  { %v7842_v1 = vpop.xlane.xlu0 %7841 }
0x27cb   :  { %v7851_v41 = vrot.slane %v7842_v1, %v12045_v18  ;;  %v7863_v0 = vrot.slane %v7842_v1, %v12279_v4  ;;  %v7867_v48 = vrot.slane %v7842_v1, %v12291_v58 }
0x27cd   :  { %v7928_v30 = vsub.f32 %v7698_v46, %v7851_v41  ;;  %v7931_v22 = vsub.f32 %v7707_v11, %v7863_v0  ;;  %v7932_v46 = vsub.f32 %v14905_v62, %v7867_v48  ;;  %v7875_v41 = vrot.slane %v7842_v1, %v12285_v29 }
0x27cf   :  { %v7944_v59 = vmul.f32 1.442695, %v7928_v30 }
0x27d0   :  { %v14965_v9 = vpop.xlane.xlu1 %7844 }
0x27d1   :  { %v7883_v40 = vrot.slane %v14965_v9, %v12045_v18  ;;  %v7887_v26 = vrot.slane %v14965_v9, %v12270_v2  ;;  %v7891_v47 = vrot.slane %v14965_v9, %v12273_v61  ;;  %v7895_v16 = vrot.slane %v14965_v9, %v12279_v4 }
0x27d2   :  { %v7899_v32 = vrot.slane %v14965_v9, %v12291_v58 }
0x27d3   :  { %v7936_v25 = vsub.f32 %v7722_v50, %v7883_v40  ;;  %v7937_v51 = vsub.f32 %v7725_v44, %v7887_v26  ;;  %v7938_v37 = vsub.f32 %v7728_v3, %v7891_v47  ;;  %v7939_v20 = vsub.f32 %v7731_v63, %v7895_v16 }
0x27d4   :  { %v7871_v50 = vrot.slane %v7842_v1, %v12276_v19  ;;  %v7950_v40 = vmul.f32 1.442695, %v7931_v22  ;;  %v7855_v3 = vrot.slane %v7842_v1, %v12270_v2  ;;  %v7940_v26 = vsub.f32 %v14903_v23, %v7899_v32 }
0x27d5   :  { %v7960_v28 = vmul.f32 1.442695, %v7936_v25  ;;  %v7962_v55 = vmul.f32 1.442695, %v7937_v51  ;;  %v7964_v44 = vmul.f32 1.442695, %v7938_v37  ;;  %v7859_v25 = vrot.slane %v7842_v1, %v12273_v61 }
0x27d6   :  { %v7966_v11 = vmul.f32 1.442695, %v7939_v20  ;;  %v7933_v47 = vsub.f32 %v14920_v36, %v7871_v50  ;;  %v7952_v63 = vmul.f32 1.442695, %v7932_v46  ;;  %v7929_v51 = vsub.f32 %v14907_v10, %v7855_v3 }
0x27d7   :  { %11509 = vpow2.f32 %v7960_v28  ;;  %v7968_v48 = vmul.f32 1.442695, %v7940_v26  ;;  %v7879_v20 = vrot.slane %v7842_v1, %v12296_v33  ;;  %v7934_v32 = vsub.f32 %v14931_v60, %v7875_v41 }
0x27d8   :  { %11511 = vpow2.f32 %v7962_v55  ;;  %v7954_v23 = vmul.f32 1.442695, %v7933_v47  ;;  %v7930_v62 = vsub.f32 %v14912_v31, %v7859_v25  ;;  %v7946_v36 = vmul.f32 1.442695, %v7929_v51 }
0x27d9   :  { %11513 = vpow2.f32 %v7944_v59  ;;  %v7903_v10 = vrot.slane %v14965_v9, %v12276_v19  ;;  %v7935_v1 = vsub.f32 %v14945_v12, %v7879_v20  ;;  %v7956_v60 = vmul.f32 1.442695, %v7934_v32 }
0x27da   :  { %11515 = vpow2.f32 %v7964_v44  ;;  %v7911_v16 = vrot.slane %v14965_v9, %v12296_v33  ;;  %v7948_v31 = vmul.f32 1.442695, %v7930_v62  ;;  %v7907_v37 = vrot.slane %v14965_v9, %v12285_v29 }
0x27db   :  { %11517 = vpow2.f32 %v7950_v40  ;;  %v7941_v28 = vsub.f32 %v14934_v49, %v7903_v10  ;;  %v7958_v12 = vmul.f32 1.442695, %v7935_v1 }
0x27dc   :  { %11519 = vpow2.f32 %v7966_v11  ;;  %v7943_v50 = vsub.f32 %v14957_v7, %v7911_v16  ;;  %v7942_v46 = vsub.f32 %v14950_v42, %v7907_v37 }
0x27dd   :  { %11521 = vpow2.f32 %v7952_v63  ;;  %v7970_v40 = vmul.f32 1.442695, %v7941_v28 }
0x27de   :  { %11523 = vpow2.f32 %v7968_v48  ;;  %v7974_v49 = vmul.f32 1.442695, %v7943_v50  ;;  %v7972_v26 = vmul.f32 1.442695, %v7942_v46 }
0x27df   :  { %11525 = vpow2.f32 %v7954_v23 }
0x27e0   :  { %11527 = vpow2.f32 %v7946_v36 }
0x27e1   :  { %v14988_v59 = vpop.eup %11509  ;;  %11529 = vpow2.f32 %v7956_v60 }
0x27e2   :  { %v14990_v22 = vpop.eup %11511  ;;  %8017 = vperm.xlu0 %10971, %v14988_v59   ;;  %11531 = vpow2.f32 %v7948_v31 }
0x27e3   :  { %8020 = vperm.xlu1 %10972, %v14990_v22   ;;  %v14999_v0 = vpop.eup %11513  ;;  %11533 = vpow2.f32 %v7958_v12 }
0x27e4   :  { %v15001_v30 = vpop.eup %11515  ;;  %11535 = vpow2.f32 %v7970_v40 }
0x27e5   :  { %v15011_v55 = vpop.eup %11517  ;;  %11537 = vpow2.f32 %v7974_v49 }
0x27e6   :  { %7993 = vperm.xlu0 %10971, %v14999_v0   ;;  %v15013_v44 = vpop.eup %11519  ;;  %11539 = vpow2.f32 %v7972_v26 }
0x27e7   :  { %8023 = vperm.xlu1 %10972, %v15001_v30   ;;  %v15019_v3 = vpop.eup %11521 }
0x27e8   :  { %v15021_v9 = vpop.eup %11523 }
0x27e9   :  { %v15025_v11 = vpop.eup %11525 }
0x27ea   :  { %8002 = vperm.xlu0 %10971, %v15011_v55   ;;  %v15027_v7 = vpop.eup %11527 }
0x27eb   :  { %8026 = vperm.xlu1 %10972, %v15013_v44   ;;  %v15031_v42 = vpop.eup %11529 }
0x27ec   :  { %v15033_v41 = vpop.eup %11531 }
0x27ed   :  { %v15037_v47 = vpop.eup %11533 }
0x27ee   :  { %8005 = vperm.xlu0 %10971, %v15019_v3   ;;  %v15039_v63 = vpop.eup %11535 }
0x27ef   :  { %8029 = vperm.xlu1 %10972, %v15021_v9   ;;  %v15043_v25 = vpop.eup %11537 }
0x27f0   :  { %v15045_v51 = vpop.eup %11539 }
0x27f2   :  { %8008 = vperm.xlu0 %10971, %v15025_v11  }
0x27f3   :  { %7996 = vperm.xlu1 %10972, %v15027_v7  }
0x27f6   :  { %8011 = vperm.xlu0 %10971, %v15031_v42  }
0x27f7   :  { %7999 = vperm.xlu1 %10972, %v15033_v41  }
0x27fa   :  { %8014 = vperm.xlu0 %10971, %v15037_v47  }
0x27fb   :  { %8032 = vperm.xlu1 %10972, %v15039_v63  }
0x27fe   :  { %8038 = vperm.xlu0 %10971, %v15043_v25  }
0x27ff   :  { %8035 = vperm.xlu1 %10972, %v15045_v51  }
0x2861   :  { %v8018_v48 = vpop.permute.xlu0 %8017 }
0x2862   :  { %v8021_v20 = vpop.permute.xlu1 %8020  ;;  %v8075_v40 = vrot.slane %v8018_v48, %v12209_v56 }
0x2863   :  { %v8079_v46 = vrot.slane %v8021_v20, %v12209_v56 }
0x2865   :  { %v7994_v32 = vpop.permute.xlu0 %7993 }
0x2866   :  { %v8024_v23 = vpop.permute.xlu1 %8023  ;;  %v8043_v28 = vrot.slane %v7994_v32, %v12209_v56 }
0x2867   :  { %v8083_v52 = vrot.slane %v8024_v23, %v12209_v56 }
0x2869   :  { %v8003_v62 = vpop.permute.xlu0 %8002 }
0x286a   :  { %v8027_v36 = vpop.permute.xlu1 %8026  ;;  %v8055_v49 = vrot.slane %v8003_v62, %v12209_v56 }
0x286b   :  { %v8087_v32 = vrot.slane %v8027_v36, %v12209_v56 }
0x286d   :  { %v8006_v10 = vpop.permute.xlu0 %8005 }
0x286e   :  { %v8030_v1 = vpop.permute.xlu1 %8029  ;;  %v8059_v15 = vrot.slane %v8006_v10, %v12209_v56  ;;  %v8111_v10 = vsel %vm859_vm1, %v8079_v46, %v8075_v40 }
0x286f   :  { %v8091_v62 = vrot.slane %v8030_v1, %v12209_v56  ;;  %v8112_v36 = vsel %vm861_vm2, %v8083_v52, %v8111_v10 }
0x2871   :  { %v8009_v60 = vpop.permute.xlu0 %8008 }
0x2872   :  { %v7997_v16 = vpop.permute.xlu1 %7996  ;;  %v8063_v57 = vrot.slane %v8009_v60, %v12209_v56 }
0x2873   :  { %v8047_v31 = vrot.slane %v7997_v16, %v12209_v56 }
0x2875   :  { %v8012_v37 = vpop.permute.xlu0 %8011  ;;  %v8104_v26 = vsel %vm859_vm1, %v8047_v31, %v8043_v28 }
0x2876   :  { %v8000_v12 = vpop.permute.xlu1 %7999  ;;  %v8067_v31 = vrot.slane %v8012_v37, %v12209_v56 }
0x2877   :  { %v8051_v50 = vrot.slane %v8000_v12, %v12209_v56 }
0x2879   :  { %v8105_v16 = vsel %vm861_vm2, %v8051_v50, %v8104_v26  ;;  %v8015_v38 = vpop.permute.xlu0 %8014  ;;  %v8113_v26 = vsel %vm863_vm3, %v8087_v32, %v8112_v36 }
0x287a   :  { %v8106_v12 = vsel %vm863_vm3, %v8055_v49, %v8105_v16  ;;  %v8033_v20 = vpop.permute.xlu1 %8032  ;;  %v8071_v48 = vrot.slane %v8015_v38, %v12209_v56 }
0x287b   :  { %v8107_v23 = vsel %vm865_vm4, %v8059_v15, %v8106_v12  ;;  %v8095_v28 = vrot.slane %v8033_v20, %v12209_v56  ;;  %v8114_v15 = vsel %vm865_vm4, %v8091_v62, %v8113_v26 }
0x287c   :  { %v8108_v50 = vsel %vm867_vm5, %v8063_v57, %v8107_v23 }
0x287d   :  { %v8039_v60 = vpop.permute.xlu0 %8038  ;;  %v8109_v49 = vsel %vm869_vm6, %v8067_v31, %v8108_v50  ;;  %v8115_v57 = vsel %vm867_vm5, %v8095_v28, %v8114_v15 }
0x287e   :  { %v8036_v38 = vpop.permute.xlu1 %8035  ;;  %v8103_v1 = vrot.slane %v8039_v60, %v12209_v56  ;;  %v8110_v37 = vsel %vm871_vm7, %v8071_v48, %v8109_v49 }
0x287f   :  { %v8099_v46 = vrot.slane %v8036_v38, %v12209_v56  ;;  %v8120_v40 = vsel %vm882_vm8, %v8110_v37, 0.0 }
0x2880   :  { %8121 = vadd.xlane.f32.xlu1 %v8120_v40 }
0x2881   :  { %v8116_v52 = vsel %vm869_vm6, %v8099_v46, %v8115_v57 }
0x2882   :  { %v8117_v16 = vsel %vm871_vm7, %v8103_v1, %v8116_v52 }
0x2883   :  { %v8123_v32 = vsel %vm882_vm8, %v8117_v16, 0.0 }
0x2884   :  { %8124 = vadd.xlane.f32.xlu0 %v8123_v32 }
0x290d   :  { %v8122_v12 = vpop.xlane.xlu1 %8121 }
0x290e   :  { %11541 = vrcp.f32 %v8122_v12 }
0x2911   :  { %v8125_v20 = vpop.xlane.xlu0 %8124 }
0x2912   :  { %11543 = vrcp.f32 %v8125_v20 }
0x2918   :  { %v11542_v48 = vpop.eup %11541 }
0x2919   :  { %v8133_v31 = vrot.slane %v11542_v48, %v12045_v18  ;;  %v8145_v49 = vrot.slane %v11542_v48, %v12279_v4  ;;  %v8153_v57 = vrot.slane %v11542_v48, %v12276_v19  ;;  %v8157_v12 = vrot.slane %v11542_v48, %v12285_v29 }
0x291b   :  { %v8210_v60 = vmul.f32 %v14999_v0, %v8133_v31  ;;  %v8213_v15 = vmul.f32 %v15011_v55, %v8145_v49 }
0x291c   :  { %v11544_v62 = vpop.eup %11543 }
0x291d   :  { %v8169_v23 = vrot.slane %v11544_v62, %v12270_v2  ;;  %v8165_v10 = vrot.slane %v11544_v62, %v12045_v18  ;;  %v8173_v28 = vrot.slane %v11544_v62, %v12273_v61  ;;  %v8177_v37 = vrot.slane %v11544_v62, %v12279_v4 }
0x291e   :  { %v8229_v0 = vmul.f32 %v8210_v60, %v12465_v6  ;;  %v8181_v40 = vrot.slane %v11544_v62, %v12291_v58  ;;  %v8232_v55 = vmul.f32 %v8213_v15, %v12467_v53  ;;  %v8185_v60 = vrot.slane %v11544_v62, %v12276_v19 }
0x291f   :  { %v8219_v50 = vmul.f32 %v14990_v22, %v8169_v23  ;;  %v8218_v36 = vmul.f32 %v14988_v59, %v8165_v10  ;;  %v8220_v1 = vmul.f32 %v15001_v30, %v8173_v28  ;;  %v8149_v22 = vrot.slane %v11542_v48, %v12291_v58 }
0x2920   :  { %v8221_v46 = vmul.f32 %v15013_v44, %v8177_v37  ;;  %v8137_v30 = vrot.slane %v11542_v48, %v12270_v2  ;;  %v8222_v16 = vmul.f32 %v15021_v9, %v8181_v40  ;;  %v8141_v44 = vrot.slane %v11542_v48, %v12273_v61 }
0x2921   :  { %v8238_v26 = vmul.f32 %v8219_v50, %v12486_v39  ;;  %v8237_v38 = vmul.f32 %v8218_v36, %v12463_v45  ;;  %v8239_v59 = vmul.f32 %v8220_v1, %v12500_v24  ;;  %v8214_v32 = vmul.f32 %v15019_v3, %v8149_v22 }
0x2922   :  { %v8240_v52 = vmul.f32 %v8221_v46, %v12508_v54  ;;  %v8241_v20 = vmul.f32 %v8222_v16, %v12523_v5  ;;  %v8211_v23 = vmul.f32 %v15027_v7, %v8137_v30  ;;  %v8215_v10 = vmul.f32 %v15025_v11, %v8153_v57 }
0x2923   :  { %8289 = vperm.xlu1 %10972, %v8238_v26   ;;  %8286 = vperm.xlu0 %10971, %v8237_v38   ;;  %v8233_v31 = vmul.f32 %v8214_v32, %v12482_v43  ;;  %v8212_v9 = vmul.f32 %v15033_v41, %v8141_v44  ;;  %v8161_v3 = vrot.slane %v11542_v48, %v12296_v33 }
0x2924   :  { %v8230_v28 = vmul.f32 %v8211_v23, %v12461_v17  ;;  %v8234_v50 = vmul.f32 %v8215_v10, %v12490_v21  ;;  %v8216_v36 = vmul.f32 %v15031_v42, %v8157_v12  ;;  %v8223_v41 = vmul.f32 %v15039_v63, %v8185_v60 }
0x2925   :  { %v8231_v7 = vmul.f32 %v8212_v9, %v12476_v14  ;;  %v8217_v11 = vmul.f32 %v15037_v47, %v8161_v3  ;;  %v8189_v48 = vrot.slane %v11544_v62, %v12285_v29  ;;  %v8193_v26 = vrot.slane %v11544_v62, %v12296_v33 }
0x2926   :  { %v8235_v49 = vmul.f32 %v8216_v36, %v12497_v27  ;;  %v8242_v42 = vmul.f32 %v8223_v41, %v12531_v13 }
0x2927   :  { %8292 = vperm.xlu1 %10972, %v8239_v59   ;;  %8262 = vperm.xlu0 %10971, %v8229_v0   ;;  %v8236_v38 = vmul.f32 %v8217_v11, %v12511_v34  ;;  %v8224_v1 = vmul.f32 %v15045_v51, %v8189_v48  ;;  %v8225_v37 = vmul.f32 %v15043_v25, %v8193_v26 }
0x2929   :  { %v8243_v47 = vmul.f32 %v8224_v1, %v12537_v35  ;;  %v8244_v63 = vmul.f32 %v8225_v37, %v16007_v8 }
0x292b   :  { %8295 = vperm.xlu1 %10972, %v8240_v52   ;;  %8271 = vperm.xlu0 %10971, %v8232_v55  }
0x292f   :  { %8298 = vperm.xlu1 %10972, %v8241_v20   ;;  %8274 = vperm.xlu0 %10971, %v8233_v31  }
0x2933   :  { %8265 = vperm.xlu1 %10972, %v8230_v28   ;;  %8277 = vperm.xlu0 %10971, %v8234_v50  }
0x2937   :  { %8268 = vperm.xlu1 %10972, %v8231_v7   ;;  %8280 = vperm.xlu0 %10971, %v8235_v49  }
0x293b   :  { %8301 = vperm.xlu1 %10972, %v8242_v42   ;;  %8283 = vperm.xlu0 %10971, %v8236_v38  }
0x293f   :  { %8304 = vperm.xlu1 %10972, %v8243_v47   ;;  %8307 = vperm.xlu0 %10971, %v8244_v63  }
0x29a2   :  { %v8290_v15 = vpop.permute.xlu1 %8289  ;;  %v8287_v62 = vpop.permute.xlu0 %8286 }
0x29a3   :  { %v8348_v44 = vrot.slane %v8290_v15, %v12209_v56  ;;  %v8344_v12 = vrot.slane %v8287_v62, %v12209_v56 }
0x29a5   :  { %v8380_v48 = vsel %vm859_vm1, %v8348_v44, %v8344_v12  ;;  %v11662_v12 = vld [vmem:[#allocation3] ss:$0 sm:$0xff] }
0x29a6   :  { %v8293_v22 = vpop.permute.xlu1 %8292  ;;  %v8263_v59 = vpop.permute.xlu0 %8262 }
0x29a7   :  { %v8312_v52 = vrot.slane %v8263_v59, %v12209_v56  ;;  %v8352_v23 = vrot.slane %v8293_v22, %v12209_v56 }
0x29a9   :  { %v8381_v38 = vsel %vm861_vm2, %v8352_v23, %v8380_v48  ;;  %v16259_v48 = vld [vmem:[#allocation44_spill] sm:$0xff] }
0x29aa   :  { %v8296_v0 = vpop.permute.xlu1 %8295  ;;  %v8272_v46 = vpop.permute.xlu0 %8271 }
0x29ab   :  { %v8324_v20 = vrot.slane %v8272_v46, %v12209_v56  ;;  %v8356_v3 = vrot.slane %v8296_v0, %v12209_v56 }
0x29ad   :  { %v8382_v37 = vsel %vm863_vm3, %v8356_v3, %v8381_v38  ;;  %v16255_v3 = vld [vmem:[#allocation42_spill] sm:$0xff] }
0x29ae   :  { %v8299_v40 = vpop.permute.xlu1 %8298  ;;  %v8275_v30 = vpop.permute.xlu0 %8274 }
0x29af   :  { %v8328_v10 = vrot.slane %v8275_v30, %v12209_v56  ;;  %v8360_v7 = vrot.slane %v8299_v40, %v12209_v56 }
0x29b1   :  { %v8383_v62 = vsel %vm865_vm4, %v8360_v7, %v8382_v37  ;;  %v16260_v37 = vld [vmem:[#allocation47_spill] sm:$0xff] }
0x29b2   :  { %v8266_v57 = vpop.permute.xlu1 %8265  ;;  %v8278_v51 = vpop.permute.xlu0 %8277 }
0x29b3   :  { %v8316_v25 = vrot.slane %v8266_v57, %v12209_v56  ;;  %v8332_v28 = vrot.slane %v8278_v51, %v12209_v56  ;;  %v10065_v51 = vld [vmem:[%s15770_s1 + $0x60] sm:$0xff] }
0x29b5   :  { %v8373_v31 = vsel %vm859_vm1, %v8316_v25, %v8312_v52  ;;  %v11661_v25 = vld [vmem:[#allocation2] ss:$0 sm:$0xff] }
0x29b6   :  { %v8269_v55 = vpop.permute.xlu1 %8268  ;;  %v8281_v16 = vpop.permute.xlu0 %8280  ;;  %v8395_v52 = vmul.f32 %v11661_v25, %v10065_v51 }
0x29b7   :  { %v8320_v32 = vrot.slane %v8269_v55, %v12209_v56  ;;  %v8336_v11 = vrot.slane %v8281_v16, %v12209_v56  ;;  %v10066_v55 = vld [vmem:[%s15770_s1 + $0x68] sm:$0xff] }
0x29b8   :  { %v8396_v44 = vmul.f32 %v11661_v25, %v10066_v55 }
0x29b9   :  { %v8374_v9 = vsel %vm861_vm2, %v8320_v32, %v8373_v31 }
0x29ba   :  { %v8375_v50 = vsel %vm863_vm3, %v8324_v20, %v8374_v9  ;;  %v8302_v36 = vpop.permute.xlu1 %8301  ;;  %v8284_v60 = vpop.permute.xlu0 %8283 }
0x29bb   :  { %v8340_v49 = vrot.slane %v8284_v60, %v12209_v56  ;;  %v8376_v41 = vsel %vm865_vm4, %v8328_v10, %v8375_v50  ;;  %v8364_v26 = vrot.slane %v8302_v36, %v12209_v56  ;;  %v16256_v50 = vld [vmem:[#allocation43_spill] sm:$0xff]  ;;  %v16257_v60 = vld [vmem:[#allocation46_spill] sm:$0xff] }
0x29bc   :  { %v8377_v42 = vsel %vm867_vm5, %v8332_v28, %v8376_v41 }
0x29bd   :  { %v8378_v1 = vsel %vm869_vm6, %v8336_v11, %v8377_v42  ;;  %v8384_v46 = vsel %vm867_vm5, %v8364_v26, %v8383_v62  ;;  %v16258_v11 = vld [vmem:[#allocation33_spill] sm:$0xff]  ;;  %v16262_v62 = vld [vmem:[#allocation48_spill] sm:$0xff] }
0x29be   :  { %v8305_v47 = vpop.permute.xlu1 %8304  ;;  %v8308_v63 = vpop.permute.xlu0 %8307  ;;  %v8379_v15 = vsel %vm871_vm7, %v8340_v49, %v8378_v1 }
0x29bf   :  { %v8368_v22 = vrot.slane %v8305_v47, %v12209_v56  ;;  %v8372_v59 = vrot.slane %v8308_v63, %v12209_v56  ;;  %v8389_v0 = vsel %vm882_vm8, %v8379_v15, 0.0  ;;  %v16261_v63 = vld [vmem:[#allocation45_spill] sm:$0xff] }
0x29c0   :  { %8390 = vadd.xlane.f32.xlu1 %v8389_v0 }
0x29c1   :  { %v8385_v40 = vsel %vm869_vm6, %v8368_v22, %v8384_v46 }
0x29c2   :  { %v8386_v30 = vsel %vm871_vm7, %v8372_v59, %v8385_v40 }
0x29c3   :  { %v8392_v57 = vsel %vm882_vm8, %v8386_v30, 0.0 }
0x29c4   :  { %8393 = vadd.xlane.f32.xlu0 %v8392_v57 }
0x2a4d   :  { %v8391_v16 = vpop.xlane.xlu1 %8390 }
0x2a4e   :  { %v8397_v32 = vadd.f32 %v8395_v52, %v8391_v16 }
0x2a50   :  { %v8399_v20 = vadd.f32 %v11662_v12, %v8397_v32 }
0x2a51   :  { %v8394_v31 = vpop.xlane.xlu0 %8393 }
0x2a52   :  { %v8398_v23 = vadd.f32 %v8396_v44, %v8394_v31  ;;  %8403 = vperm.xlu0 %10971, %v8399_v20   ;;  %v16263_v31 = vld [vmem:[#allocation50_spill] sm:$0xff] }
0x2a54   :  { %v8400_v10 = vadd.f32 %v11662_v12, %v8398_v23 }
0x2a56   :  { %8408 = vperm.xlu1 %10972, %v8400_v10  }
0x2ad1   :  { %v8404_v9 = vpop.permute.xlu0 %8403 }
0x2ad2   :  { %v8411_v28 = vmul.f32 %v8404_v9, %v16255_v3  ;;  %v8412_v36 = vmul.f32 %v8404_v9, %v16256_v50 }
0x2ad4   :  { %v8496_v7 = vadd.f32 %v16257_v60, %v8411_v28  ;;  %v8497_v49 = vadd.f32 %v16258_v11, %v8412_v36  ;;  %v16265_v28 = vld [vmem:[#allocation34_spill] sm:$0xff] }
0x2ad5   :  { %v8409_v41 = vpop.permute.xlu1 %8408 }
0x2ad6   :  { %v8500_v26 = vadd.f32 %v8496_v7, %v16259_v48  ;;  %v8413_v42 = vmul.f32 %v8409_v41, %v16255_v3  ;;  %v8414_v38 = vmul.f32 %v8409_v41, %v16256_v50  ;;  %v8501_v15 = vadd.f32 %v8497_v49, %v16261_v63 }
0x2ad8   :  { %v8504_v1 = vmul.f32 0.5, %v8500_v26  ;;  %v8498_v47 = vadd.f32 %v16260_v37, %v8413_v42  ;;  %v8499_v22 = vadd.f32 %v16262_v62, %v8414_v38  ;;  %v8514_v12 = vmul.f32 0.5, %v8501_v15 }
0x2ada   :  { %11545 = vtanh.f32 %v8504_v1  ;;  %v8502_v59 = vadd.f32 %v8498_v47, %v16259_v48  ;;  %v8503_v46 = vadd.f32 %v8499_v22, %v16261_v63 }
0x2adb   :  { %11547 = vtanh.f32 %v8501_v15 }
0x2adc   :  { %v8505_v0 = vmul.f32 0.5, %v8502_v59  ;;  %v8515_v20 = vmul.f32 0.5, %v8503_v46  ;;  %v16267_v59 = vmov 0.0  }
0x2ade   :  { %11549 = vtanh.f32 %v8505_v0 }
0x2adf   :  { %11551 = vtanh.f32 %v8503_v46 }
0x2ae0   :  { %11553 = vtanh.f32 %v8514_v12 }
0x2ae1   :  { %11555 = vtanh.f32 %v8515_v20 }
0x2ae4   :  { %v11546_v40 = vpop.eup %11545 }
0x2ae5   :  { %v8508_v30 = vadd.f32 1.0, %v11546_v40  ;;  %v11548_v57 = vpop.eup %11547 }
0x2ae7   :  { %v8510_v51 = vmul.f32 0.5, %v8508_v30 }
0x2ae8   :  { %v11550_v25 = vpop.eup %11549 }
0x2ae9   :  { %v8509_v52 = vadd.f32 1.0, %v11550_v25  ;;  %v8524_v55 = vmul.f32 %v11548_v57, %v8510_v51  ;;  %v11552_v32 = vpop.eup %11551  ;;  %v8522_v23 = vmul.f32 %v8510_v51, %v16263_v31 }
0x2aea   :  { %v11554_v7 = vpop.eup %11553 }
0x2aeb   :  { %8528 = vrot.lane.b32.xlu1 %v8524_v55, %s11712_s6  ;;  %v8511_v16 = vmul.f32 0.5, %v8509_v52  ;;  %v8518_v49 = vadd.f32 1.0, %v11554_v7  ;;  %v11556_v41 = vpop.eup %11555  ;;  %v16272_v52 = vld [vmem:[#allocation16_spill] sm:$0xff] }
0x2aec   :  { %v8519_v42 = vadd.f32 1.0, %v11556_v41 }
0x2aed   :  { %v8525_v44 = vmul.f32 %v11552_v32, %v8511_v16  ;;  %v8523_v36 = vmul.f32 %v8511_v16, %v16265_v28  ;;  %v8520_v26 = vmul.f32 0.5, %v8518_v49 }
0x2aee   :  { %v8521_v37 = vmul.f32 0.5, %v8519_v42 }
0x2aef   :  { %8530 = vrot.lane.b32.xlu0 %v8525_v44, %s11712_s6 }
0x2b5d   :  { %v8529_v10 = vpop.permute.xlu1 %8528 }
0x2b5e   :  { %v15182_v9 = vadd.f32 %v8529_v10, %v8522_v23 }
0x2b60   :  { %16264 = vst [vmem:[#allocation49_spill] sm:$0xff] %v15182_v9  ;;  %11557 = vtanh.f32 %v15182_v9 }
0x2b61   :  { %v8531_v60 = vpop.permute.xlu0 %8530 }
0x2b62   :  { %v15186_v11 = vadd.f32 %v8531_v60, %v8523_v36  ;;  %v16273_v36 = vld [vmem:[#allocation19_spill] sm:$0xff] }
0x2b64   :  { %16266 = vst [vmem:[#allocation51_spill] sm:$0xff] %v15186_v11  ;;  %11559 = vtanh.f32 %v15186_v11 }
0x2b6a   :  { %v11558_v38 = vpop.eup %11557 }
0x2b6b   :  { %v8538_v1 = vmul.f32 %v11558_v38, %v8520_v26 }
0x2b6d   :  { %8542 = vrot.lane.b32.xlu1 %v8538_v1, %s11712_s6 }
0x2b6e   :  { %v11560_v47 = vpop.eup %11559 }
0x2b6f   :  { %v8539_v15 = vmul.f32 %v11560_v47, %v8521_v37 }
0x2b71   :  { %8544 = vrot.lane.b32.xlu0 %v8539_v15, %s11712_s6  ;;  %v16274_v15 = vld [vmem:[#allocation21_spill] sm:$0xff] }
0x2bdf   :  { %v8543_v62 = vpop.permute.xlu1 %8542 }
0x2be0   :  { %10071 = vmatmul.mubr.msk.f32.vlgmr.msra.gmra.mrb[38].mxu0 %vm135_vm0, %v8543_v62  ;;  %v8548_v22 = vsel %vm135_vm0, %v8543_v62, %v15182_v9 }
0x2be1   :  { %10561 = vmatprep.mubr.f32.mxu1 %v8548_v22  ;;  %9646 = vmatprep.mubr.f32.mxu0 %v16267_v59 }
0x2be3   :  { %v8545_v0 = vpop.permute.xlu0 %8544 }
0x2be4   :  { %v8549_v46 = vsel %vm135_vm0, %v8545_v0, %v15186_v11  ;;  %10072 = vmatmul.mubr.msk.f32.gmra.mrb[40].mxu0 %vm135_vm0, %v8545_v0 }
0x2be5   :  { %10562 = vmatmul.mubr.f32.vlgmr.msra.gmra.mrb[20].mxu1 %v8549_v46 }
0x2cb3   :  { %v15198_v40 = vpop.f32.mrb[38].mxu0 }
0x2cb4   :  { %16268 = vst [vmem:[#allocation8_spill] sm:$0xff] %v15198_v40  ;;  %v15200_v30 = vpop.f32.mrb[39].mxu0 }
0x2cb5   :  { %16269 = vst [vmem:[#allocation9_spill] sm:$0xff] %v15200_v30 }
0x2cb7   :  { %v15202_v57 = vpop.f32.mrb[40].mxu0 }
0x2cb8   :  { %16270 = vst [vmem:[#allocation35_spill] sm:$0xff] %v15202_v57  ;;  %v10563_v51 = vpop.f32.mrb[20].mxu1  ;;  %v15204_v25 = vpop.f32.mrb[41].mxu0 }
0x2cb9   :  { %16271 = vst [vmem:[#allocation10_spill] sm:$0xff] %v15204_v25  ;;  %v8683_v55 = vrot.slane %v10563_v51, %v16272_v52  ;;  %v8616_v16 = vpop.f32.mrb[21].mxu1  ;;  %v8676_v28 = vcombine.high %v10563_v51, %v10563_v51 }
0x2cba   :  { %v8634_v32 = vrot.slane %v8616_v16, %v16272_v52  ;;  %v8627_v20 = vcombine.high %v8616_v16, %v8616_v16 }
0x2cbb   :  { %v8691_v44 = vcombine.high %v8683_v55, %v8683_v55  ;;  %v8699_v12 = vrot.slane %v8683_v55, %v16272_v52  ;;  %v8690_v42 = vrot.slane %v8676_v28, %v16272_v52 }
0x2cbc   :  { %v8642_v10 = vcombine.high %v8634_v32, %v8634_v32  ;;  %v8641_v7 = vrot.slane %v8627_v20, %v16272_v52  ;;  %v8650_v49 = vrot.slane %v8634_v32, %v16272_v52  ;;  %v16275_v32 = vld [vmem:[#allocation17_spill] sm:$0xff] }
0x2cbd   :  { %v8713_v31 = vrot.slane %v8691_v44, %v16272_v52  ;;  %v8760_v23 = vrot.slane %v8699_v12, %v12045_v18  ;;  %v8721_v38 = vcombine.high %v8699_v12, %v8699_v12  ;;  %v8706_v0 = vrot.slane %v8690_v42, %v16272_v52  ;;  %v16276_v12 = vld [vmem:[#allocation23_spill] sm:$0xff] }
0x2cbe   :  { %v8664_v26 = vrot.slane %v8642_v10, %v16272_v52  ;;  %v8657_v1 = vrot.slane %v8641_v7, %v16272_v52  ;;  %v8672_v37 = vcombine.high %v8650_v49, %v8650_v49  ;;  %v8728_v47 = vrot.slane %v8650_v49, %v12045_v18  ;;  %v16278_v49 = vld [vmem:[#allocation20_spill] sm:$0xff] }
0x2cbf   :  { %v8813_v60 = vadd.f32 %v8760_v23, %v16273_v36  ;;  %v8764_v41 = vrot.slane %v8713_v31, %v12045_v18  ;;  %v8768_v46 = vrot.slane %v8721_v38, %v12045_v18  ;;  %v8643_v51 = vcombine.high %v8641_v7, %v8641_v7  ;;  %v16277_v23 = vld [vmem:[#allocation18_spill] sm:$0xff] }
0x2cc0   :  { %v8732_v22 = vrot.slane %v8664_v26, %v12045_v18  ;;  %v8736_v59 = vrot.slane %v8672_v37, %v12045_v18  ;;  %v8674_v55 = vcombine.high %v8664_v26, %v8664_v26  ;;  %v8744_v16 = vrot.slane %v8657_v1, %v12045_v18  ;;  %v16279_v38 = vld [vmem:[#allocation22_spill] sm:$0xff] }
0x2cc1   :  { %11561 = vtanh.f32 %v8813_v60  ;;  %v8814_v62 = vadd.f32 %v8764_v41, %v16274_v15  ;;  %v8805_v44 = vadd.f32 %v8728_v47, %v16275_v32  ;;  %v8692_v28 = vcombine.high %v8690_v42, %v8690_v42  ;;  %v15236_v42 = vld [vmem:[%s15774_s5] ss:$0 sm:$0xff] }
0x2cc2   :  { %v8806_v20 = vadd.f32 %v8732_v22, %v16276_v12  ;;  %v8807_v10 = vadd.f32 %v8736_v59, %v16277_v23  ;;  %v8723_v36 = vcombine.high %v8713_v31, %v8713_v31  ;;  %v8776_v60 = vrot.slane %v8706_v0, %v12045_v18  ;;  %v16280_v22 = vld [vmem:[#allocation28_spill] sm:$0xff] }
0x2cc3   :  { %11563 = vtanh.f32 %v8814_v62  ;;  %v8815_v41 = vadd.f32 %v8768_v46, %v16278_v49  ;;  %v8671_v7 = vrot.slane %v8643_v51, %v16272_v52  ;;  %v8740_v26 = vrot.slane %v8674_v55, %v12045_v18 }
0x2cc4   :  { %11565 = vtanh.f32 %v8805_v44  ;;  %v8809_v15 = vadd.f32 %v8744_v16, %v16279_v38  ;;  %v8720_v47 = vrot.slane %v8692_v28, %v16272_v52  ;;  %v8772_v62 = vrot.slane %v8723_v36, %v12045_v18  ;;  %v16281_v16 = vld [vmem:[#allocation25_spill] sm:$0xff]  ;;  %v16283_v36 = vld [vmem:[#allocation27_spill] sm:$0xff]  ;;  %v16284_v38 = vld [vmem:[#allocation26_spill] sm:$0xff] }
0x2cc5   :  { %11567 = vtanh.f32 %v8806_v20  ;;  %v8817_v59 = vadd.f32 %v8776_v60, %v16280_v22  ;;  %v8673_v51 = vcombine.high %v8657_v1, %v8657_v1  ;;  %v8748_v55 = vrot.slane %v8671_v7, %v12045_v18  ;;  %v16282_v20 = vld [vmem:[#allocation24_spill] sm:$0xff] }
0x2cc6   :  { %11569 = vtanh.f32 %v8807_v10  ;;  %v8808_v32 = vadd.f32 %v8740_v26, %v16281_v16  ;;  %v8722_v44 = vcombine.high %v8706_v0, %v8706_v0  ;;  %v8780_v12 = vrot.slane %v8720_v47, %v12045_v18 }
0x2cc7   :  { %11571 = vtanh.f32 %v8815_v41  ;;  %v8816_v23 = vadd.f32 %v8772_v62, %v16282_v20  ;;  %v8675_v52 = vcombine.high %v8671_v7, %v8671_v7  ;;  %v8752_v28 = vrot.slane %v8673_v51, %v12045_v18  ;;  %v16285_v62 = vld [vmem:[#allocation29_spill] sm:$0xff]  ;;  %v16287_v20 = vld [vmem:[#allocation31_spill] sm:$0xff] }
0x2cc8   :  { %11573 = vtanh.f32 %v8809_v15  ;;  %v8810_v60 = vadd.f32 %v8748_v55, %v16283_v36  ;;  %v8724_v41 = vcombine.high %v8720_v47, %v8720_v47  ;;  %v8818_v15 = vadd.f32 %v8780_v12, %v16284_v38 }
0x2cc9   :  { %11575 = vtanh.f32 %v8817_v59  ;;  %v8811_v22 = vadd.f32 %v8752_v28, %v16285_v62 }
0x2cca   :  { %11577 = vtanh.f32 %v8808_v32  ;;  %v8788_v32 = vrot.slane %v8724_v41, %v12045_v18 }
0x2ccb   :  { %v11562_v37 = vpop.eup %11561  ;;  %11579 = vtanh.f32 %v8816_v23 }
0x2ccc   :  { %v8845_v31 = vmul.f32 %v15236_v42, %v11562_v37  ;;  %v8784_v37 = vrot.slane %v8722_v44, %v12045_v18  ;;  %11581 = vtanh.f32 %v8810_v60  ;;  %v16286_v44 = vld [vmem:[#allocation30_spill] sm:$0xff] }
0x2ccd   :  { %v11564_v10 = vpop.eup %11563  ;;  %11583 = vtanh.f32 %v8818_v15 }
0x2cce   :  { %v8877_v46 = vsel %vm135_vm0, %v8845_v31, 0.0  ;;  %v11566_v1 = vpop.eup %11565  ;;  %v8756_v31 = vrot.slane %v8675_v52, %v12045_v18  ;;  %v8819_v12 = vadd.f32 %v8784_v37, %v16286_v44  ;;  %11585 = vtanh.f32 %v8811_v22 }
0x2ccf   :  { %8878 = vadd.xlane.f32.xlu0 %v8877_v46  ;;  %v11568_v49 = vpop.eup %11567  ;;  %v8837_v26 = vmul.f32 %v15236_v42, %v11566_v1  ;;  %v8846_v46 = vmul.f32 %v15236_v42, %v11564_v10 }
0x2cd0   :  { %v11570_v0 = vpop.eup %11569  ;;  %v8838_v7 = vmul.f32 %v15236_v42, %v11568_v49  ;;  %v8812_v23 = vadd.f32 %v8756_v31, %v16287_v20  ;;  %v16288_v49 = vld [vmem:[#allocation32_spill] sm:$0xff]  ;;  %11587 = vtanh.f32 %v8819_v12 }
0x2cd1   :  { %v8853_v59 = vsel %vm135_vm0, %v8837_v26, 0.0  ;;  %v11572_v47 = vpop.eup %11571  ;;  %v8839_v55 = vmul.f32 %v15236_v42, %v11570_v0  ;;  %v8880_v52 = vsel %vm135_vm0, %v8846_v46, 0.0  ;;  %v8820_v41 = vadd.f32 %v8788_v32, %v16288_v49 }
0x2cd2   :  { %8854 = vadd.xlane.f32.xlu1 %v8853_v59  ;;  %v8856_v51 = vsel %vm135_vm0, %v8838_v7, 0.0  ;;  %v11574_v16 = vpop.eup %11573  ;;  %v8847_v10 = vmul.f32 %v15236_v42, %v11572_v47  ;;  %11589 = vtanh.f32 %v8812_v23 }
0x2cd3   :  { %8857 = vadd.xlane.f32.xlu0 %v8856_v51  ;;  %v11576_v28 = vpop.eup %11575  ;;  %v8859_v36 = vsel %vm135_vm0, %v8839_v55, 0.0  ;;  %v8841_v60 = vmul.f32 %v15236_v42, %v11574_v16  ;;  %11591 = vtanh.f32 %v8820_v41 }
0x2cd4   :  { %v11578_v1 = vpop.eup %11577  ;;  %v8883_v37 = vsel %vm135_vm0, %v8847_v10, 0.0  ;;  %v8849_v26 = vmul.f32 %v15236_v42, %v11576_v28 }
0x2cd5   :  { %v11580_v0 = vpop.eup %11579  ;;  %v8865_v38 = vsel %vm135_vm0, %v8841_v60, 0.0  ;;  %v8840_v15 = vmul.f32 %v15236_v42, %v11578_v1 }
0x2cd6   :  { %8881 = vadd.xlane.f32.xlu1 %v8880_v52  ;;  %v11582_v31 = vpop.eup %11581  ;;  %v8889_v7 = vsel %vm135_vm0, %v8849_v26, 0.0  ;;  %v8848_v62 = vmul.f32 %v15236_v42, %v11580_v0 }
0x2cd7   :  { %8860 = vadd.xlane.f32.xlu0 %v8859_v36  ;;  %v11584_v22 = vpop.eup %11583  ;;  %v8862_v59 = vsel %vm135_vm0, %v8840_v15, 0.0  ;;  %v8842_v46 = vmul.f32 %v15236_v42, %v11582_v31 }
0x2cd8   :  { %v11586_v47 = vpop.eup %11585  ;;  %v8886_v51 = vsel %vm135_vm0, %v8848_v62, 0.0  ;;  %v8850_v55 = vmul.f32 %v15236_v42, %v11584_v22 }
0x2cd9   :  { %v8868_v32 = vsel %vm135_vm0, %v8842_v46, 0.0  ;;  %v8843_v44 = vmul.f32 %v15236_v42, %v11586_v47 }
0x2cda   :  { %8884 = vadd.xlane.f32.xlu1 %v8883_v37  ;;  %v11588_v16 = vpop.eup %11587  ;;  %v8892_v20 = vsel %vm135_vm0, %v8850_v55, 0.0 }
0x2cdb   :  { %8866 = vadd.xlane.f32.xlu0 %v8865_v38  ;;  %v8851_v23 = vmul.f32 %v15236_v42, %v11588_v16  ;;  %v8871_v10 = vsel %vm135_vm0, %v8843_v44, 0.0 }
0x2cdc   :  { %v11590_v12 = vpop.eup %11589 }
0x2cdd   :  { %v11592_v52 = vpop.eup %11591  ;;  %v8844_v28 = vmul.f32 %v15236_v42, %v11590_v12  ;;  %v8895_v36 = vsel %vm135_vm0, %v8851_v23, 0.0 }
0x2cde   :  { %8890 = vadd.xlane.f32.xlu1 %v8889_v7  ;;  %v8852_v60 = vmul.f32 %v15236_v42, %v11592_v52 }
0x2cdf   :  { %8863 = vadd.xlane.f32.xlu0 %v8862_v59  ;;  %v8874_v1 = vsel %vm135_vm0, %v8844_v28, 0.0 }
0x2ce0   :  { %v8898_v49 = vsel %vm135_vm0, %v8852_v60, 0.0 }
0x2ce2   :  { %8887 = vadd.xlane.f32.xlu1 %v8886_v51 }
0x2ce3   :  { %8869 = vadd.xlane.f32.xlu0 %v8868_v32 }
0x2ce6   :  { %8893 = vadd.xlane.f32.xlu1 %v8892_v20 }
0x2ce7   :  { %8872 = vadd.xlane.f32.xlu0 %v8871_v10 }
0x2cea   :  { %8896 = vadd.xlane.f32.xlu1 %v8895_v36 }
0x2ceb   :  { %8875 = vadd.xlane.f32.xlu0 %v8874_v1 }
0x2cee   :  { %8899 = vadd.xlane.f32.xlu1 %v8898_v49 }
0x2d5c   :  { %v8879_v41 = vpop.xlane.xlu0 %8878 }
0x2d5d   :  { %v8952_v12 = vrot.slane %v8879_v41, %v12209_v56 }
0x2d5f   :  { %v15287_v37 = vpop.xlane.xlu1 %8854 }
0x2d60   :  { %v8858_v26 = vpop.xlane.xlu0 %8857  ;;  %v8920_v47 = vrot.slane %v15287_v37, %v12209_v56 }
0x2d61   :  { %v8924_v42 = vrot.slane %v8858_v26, %v12209_v56 }
0x2d63   :  { %v8882_v0 = vpop.xlane.xlu1 %8881  ;;  %v8981_v16 = vsel %vm859_vm1, %v8924_v42, %v8920_v47 }
0x2d64   :  { %v8861_v38 = vpop.xlane.xlu0 %8860  ;;  %v8956_v55 = vrot.slane %v8882_v0, %v12209_v56 }
0x2d65   :  { %v8928_v59 = vrot.slane %v8861_v38, %v12209_v56 }
0x2d66   :  { %v8988_v36 = vsel %vm859_vm1, %v8956_v55, %v8952_v12 }
0x2d67   :  { %v8885_v15 = vpop.xlane.xlu1 %8884  ;;  %v8982_v20 = vsel %vm861_vm2, %v8928_v59, %v8981_v16 }
0x2d68   :  { %v15289_v31 = vpop.xlane.xlu0 %8866  ;;  %v8960_v32 = vrot.slane %v8885_v15, %v12209_v56 }
0x2d69   :  { %v8936_v60 = vrot.slane %v15289_v31, %v12209_v56 }
0x2d6a   :  { %v8989_v49 = vsel %vm861_vm2, %v8960_v32, %v8988_v36 }
0x2d6b   :  { %v15291_v7 = vpop.xlane.xlu1 %8890 }
0x2d6c   :  { %v15293_v62 = vpop.xlane.xlu0 %8863  ;;  %v8968_v55 = vrot.slane %v15291_v7, %v12209_v56 }
0x2d6d   :  { %v8932_v51 = vrot.slane %v15293_v62, %v12209_v56 }
0x2d6f   :  { %v8888_v22 = vpop.xlane.xlu1 %8887  ;;  %v8983_v10 = vsel %vm863_vm3, %v8932_v51, %v8982_v20 }
0x2d70   :  { %v15297_v46 = vpop.xlane.xlu0 %8869  ;;  %v8964_v23 = vrot.slane %v8888_v22, %v12209_v56  ;;  %v8984_v47 = vsel %vm865_vm4, %v8936_v60, %v8983_v10 }
0x2d71   :  { %v8940_v28 = vrot.slane %v15297_v46, %v12209_v56 }
0x2d72   :  { %v8990_v59 = vsel %vm863_vm3, %v8964_v23, %v8989_v49 }
0x2d73   :  { %v15306_v44 = vpop.xlane.xlu1 %8893  ;;  %v8985_v12 = vsel %vm867_vm5, %v8940_v28, %v8984_v47  ;;  %v8991_v10 = vsel %vm865_vm4, %v8968_v55, %v8990_v59 }
0x2d74   :  { %v15311_v52 = vpop.xlane.xlu0 %8872  ;;  %v8972_v51 = vrot.slane %v15306_v44, %v12209_v56 }
0x2d75   :  { %v8944_v1 = vrot.slane %v15311_v52, %v12209_v56 }
0x2d76   :  { %v8992_v49 = vsel %vm867_vm5, %v8972_v51, %v8991_v10 }
0x2d77   :  { %v15322_v42 = vpop.xlane.xlu1 %8896  ;;  %v8986_v23 = vsel %vm869_vm6, %v8944_v1, %v8985_v12 }
0x2d78   :  { %v15328_v16 = vpop.xlane.xlu0 %8875  ;;  %v8976_v20 = vrot.slane %v15322_v42, %v12209_v56 }
0x2d79   :  { %v8948_v32 = vrot.slane %v15328_v16, %v12209_v56 }
0x2d7a   :  { %v8993_v47 = vsel %vm869_vm6, %v8976_v20, %v8992_v49 }
0x2d7b   :  { %v15339_v36 = vpop.xlane.xlu1 %8899  ;;  %v8987_v60 = vsel %vm871_vm7, %v8948_v32, %v8986_v23 }
0x2d7c   :  { %v8980_v11 = vrot.slane %v15339_v36, %v12209_v56  ;;  %v8997_v28 = vsel %vm882_vm8, %v8987_v60, -inf }
0x2d7d   :  { %8998 = vmax.xlane.f32.xlu0 %v8997_v28 }
0x2d7e   :  { %v8994_v9 = vsel %vm871_vm7, %v8980_v11, %v8993_v47 }
0x2d7f   :  { %v9000_v1 = vsel %vm882_vm8, %v8994_v9, -inf }
0x2d80   :  { %9001 = vmax.xlane.f32.xlu1 %v9000_v1 }
0x2e0a   :  { %v15351_v55 = vpop.xlane.xlu0 %8998 }
0x2e0b   :  { %v9012_v32 = vrot.slane %v15351_v55, %v12270_v2  ;;  %v9016_v9 = vrot.slane %v15351_v55, %v12273_v61  ;;  %v9020_v1 = vrot.slane %v15351_v55, %v12279_v4 }
0x2e0d   :  { %v15349_v59 = vpop.xlane.xlu1 %9001  ;;  %v9086_v10 = vsub.f32 %v8858_v26, %v9012_v32  ;;  %v9087_v63 = vsub.f32 %v8861_v38, %v9016_v9  ;;  %v9024_v26 = vrot.slane %v15351_v55, %v12291_v58  ;;  %v9008_v9 = vrot.slane %v15351_v55, %v12045_v18 }
0x2e0e   :  { %v9040_v51 = vrot.slane %v15349_v59, %v12045_v18  ;;  %v9044_v12 = vrot.slane %v15349_v59, %v12270_v2  ;;  %v9048_v20 = vrot.slane %v15349_v59, %v12273_v61  ;;  %v9052_v60 = vrot.slane %v15349_v59, %v12279_v4 }
0x2e0f   :  { %v9103_v25 = vmul.f32 1.442695, %v9086_v10  ;;  %v9060_v32 = vrot.slane %v15349_v59, %v12276_v19 }
0x2e10   :  { %v9093_v11 = vsub.f32 %v8879_v41, %v9040_v51  ;;  %v9094_v23 = vsub.f32 %v8882_v0, %v9044_v12  ;;  %v9095_v49 = vsub.f32 %v8885_v15, %v9048_v20  ;;  %v9056_v41 = vrot.slane %v15349_v59, %v12291_v58 }
0x2e11   :  { %v9096_v0 = vsub.f32 %v8888_v22, %v9052_v60  ;;  %v9088_v12 = vsub.f32 %v15293_v62, %v9020_v1  ;;  %v9105_v15 = vmul.f32 1.442695, %v9087_v63  ;;  %v9089_v22 = vsub.f32 %v15289_v31, %v9024_v26 }
0x2e12   :  { %v9117_v28 = vmul.f32 1.442695, %v9093_v11  ;;  %v9119_v47 = vmul.f32 1.442695, %v9094_v23  ;;  %v9121_v51 = vmul.f32 1.442695, %v9095_v49  ;;  %v9097_v38 = vsub.f32 %v15291_v7, %v9056_v41 }
0x2e13   :  { %v9123_v20 = vmul.f32 1.442695, %v9096_v0  ;;  %v9028_v11 = vrot.slane %v15351_v55, %v12276_v19  ;;  %v9107_v23 = vmul.f32 1.442695, %v9088_v12  ;;  %v9032_v7 = vrot.slane %v15351_v55, %v12285_v29 }
0x2e14   :  { %11593 = vpow2.f32 %v9117_v28  ;;  %v9125_v63 = vmul.f32 1.442695, %v9097_v38  ;;  %v9109_v60 = vmul.f32 1.442695, %v9089_v22  ;;  %v9085_v49 = vsub.f32 %v15287_v37, %v9008_v9 }
0x2e15   :  { %11595 = vpow2.f32 %v9119_v47  ;;  %v9090_v31 = vsub.f32 %v15297_v46, %v9028_v11  ;;  %v9036_v46 = vrot.slane %v15351_v55, %v12296_v33  ;;  %v9091_v41 = vsub.f32 %v15311_v52, %v9032_v7 }
0x2e16   :  { %11597 = vpow2.f32 %v9103_v25  ;;  %v9098_v25 = vsub.f32 %v15306_v44, %v9060_v32  ;;  %v9064_v44 = vrot.slane %v15349_v59, %v12285_v29  ;;  %v9101_v37 = vmul.f32 1.442695, %v9085_v49 }
0x2e17   :  { %11599 = vpow2.f32 %v9121_v51  ;;  %v9111_v0 = vmul.f32 1.442695, %v9090_v31  ;;  %v9068_v51 = vrot.slane %v15349_v59, %v12296_v33  ;;  %v9092_v55 = vsub.f32 %v15328_v16, %v9036_v46 }
0x2e18   :  { %11601 = vpow2.f32 %v9105_v15  ;;  %v9127_v28 = vmul.f32 1.442695, %v9098_v25  ;;  %v9099_v26 = vsub.f32 %v15322_v42, %v9064_v44  ;;  %v9113_v52 = vmul.f32 1.442695, %v9091_v41 }
0x2e19   :  { %11603 = vpow2.f32 %v9123_v20  ;;  %v9100_v32 = vsub.f32 %v15339_v36, %v9068_v51  ;;  %v9115_v20 = vmul.f32 1.442695, %v9092_v55 }
0x2e1a   :  { %11605 = vpow2.f32 %v9107_v23  ;;  %v9129_v38 = vmul.f32 1.442695, %v9099_v26 }
0x2e1b   :  { %11607 = vpow2.f32 %v9125_v63  ;;  %v9131_v16 = vmul.f32 1.442695, %v9100_v32 }
0x2e1c   :  { %11609 = vpow2.f32 %v9109_v60 }
0x2e1d   :  { %11611 = vpow2.f32 %v9127_v28 }
0x2e1e   :  { %v15381_v62 = vpop.eup %11593  ;;  %11613 = vpow2.f32 %v9111_v0 }
0x2e1f   :  { %v15383_v10 = vpop.eup %11595  ;;  %9174 = vperm.xlu1 %10972, %v15381_v62   ;;  %11615 = vpow2.f32 %v9101_v37 }
0x2e20   :  { %9177 = vperm.xlu0 %10971, %v15383_v10   ;;  %v15393_v47 = vpop.eup %11597  ;;  %11617 = vpow2.f32 %v9113_v52 }
0x2e21   :  { %v15395_v1 = vpop.eup %11599  ;;  %11619 = vpow2.f32 %v9129_v38 }
0x2e22   :  { %v15405_v12 = vpop.eup %11601  ;;  %11621 = vpow2.f32 %v9115_v20 }
0x2e23   :  { %9153 = vperm.xlu1 %10972, %v15393_v47   ;;  %v15407_v15 = vpop.eup %11603  ;;  %11623 = vpow2.f32 %v9131_v16 }
0x2e24   :  { %9180 = vperm.xlu0 %10971, %v15395_v1   ;;  %v15413_v59 = vpop.eup %11605 }
0x2e25   :  { %v15415_v42 = vpop.eup %11607 }
0x2e26   :  { %v15419_v11 = vpop.eup %11609 }
0x2e27   :  { %9156 = vperm.xlu1 %10972, %v15405_v12   ;;  %v15421_v22 = vpop.eup %11611 }
0x2e28   :  { %9183 = vperm.xlu0 %10971, %v15407_v15   ;;  %v15425_v36 = vpop.eup %11613 }
0x2e29   :  { %v15427_v23 = vpop.eup %11615 }
0x2e2a   :  { %v15431_v9 = vpop.eup %11617 }
0x2e2b   :  { %9159 = vperm.xlu1 %10972, %v15413_v59   ;;  %v15433_v25 = vpop.eup %11619 }
0x2e2c   :  { %9186 = vperm.xlu0 %10971, %v15415_v42   ;;  %v15437_v63 = vpop.eup %11621 }
0x2e2d   :  { %v15439_v7 = vpop.eup %11623 }
0x2e2f   :  { %9162 = vperm.xlu1 %10972, %v15419_v11  }
0x2e30   :  { %9189 = vperm.xlu0 %10971, %v15421_v22  }
0x2e33   :  { %9165 = vperm.xlu1 %10972, %v15425_v36  }
0x2e34   :  { %9150 = vperm.xlu0 %10971, %v15427_v23  }
0x2e37   :  { %9168 = vperm.xlu1 %10972, %v15431_v9  }
0x2e38   :  { %9192 = vperm.xlu0 %10971, %v15433_v25  }
0x2e3b   :  { %9171 = vperm.xlu1 %10972, %v15437_v63  }
0x2e3c   :  { %9195 = vperm.xlu0 %10971, %v15439_v7  }
0x2e9e   :  { %v9175_v31 = vpop.permute.xlu1 %9174 }
0x2e9f   :  { %v9178_v60 = vpop.permute.xlu0 %9177  ;;  %v9232_v55 = vrot.slane %v9175_v31, %v12209_v56 }
0x2ea0   :  { %v9236_v52 = vrot.slane %v9178_v60, %v12209_v56 }
0x2ea2   :  { %v9154_v49 = vpop.permute.xlu1 %9153  ;;  %v9268_v31 = vsel %vm859_vm1, %v9236_v52, %v9232_v55 }
0x2ea3   :  { %v9181_v44 = vpop.permute.xlu0 %9180  ;;  %v9204_v38 = vrot.slane %v9154_v49, %v12209_v56 }
0x2ea4   :  { %v9240_v16 = vrot.slane %v9181_v44, %v12209_v56 }
0x2ea6   :  { %v9157_v28 = vpop.permute.xlu1 %9156 }
0x2ea7   :  { %v9184_v46 = vpop.permute.xlu0 %9183  ;;  %v9208_v48 = vrot.slane %v9157_v28, %v12209_v56 }
0x2ea8   :  { %v9244_v30 = vrot.slane %v9184_v46, %v12209_v56 }
0x2eaa   :  { %v9160_v41 = vpop.permute.xlu1 %9159 }
0x2eab   :  { %v9187_v0 = vpop.permute.xlu0 %9186  ;;  %v9212_v57 = vrot.slane %v9160_v41, %v12209_v56 }
0x2eac   :  { %v9248_v60 = vrot.slane %v9187_v0, %v12209_v56 }
0x2eae   :  { %v9163_v37 = vpop.permute.xlu1 %9162 }
0x2eaf   :  { %v9190_v51 = vpop.permute.xlu0 %9189  ;;  %v9216_v3 = vrot.slane %v9163_v37, %v12209_v56 }
0x2eb0   :  { %v9252_v44 = vrot.slane %v9190_v51, %v12209_v56 }
0x2eb2   :  { %v9166_v26 = vpop.permute.xlu1 %9165 }
0x2eb3   :  { %v9151_v32 = vpop.permute.xlu0 %9150  ;;  %v9220_v28 = vrot.slane %v9166_v26, %v12209_v56 }
0x2eb4   :  { %v9200_v20 = vrot.slane %v9151_v32, %v12209_v56 }
0x2eb6   :  { %v9261_v40 = vsel %vm859_vm1, %v9204_v38, %v9200_v20  ;;  %v9169_v50 = vpop.permute.xlu1 %9168  ;;  %v9269_v38 = vsel %vm861_vm2, %v9240_v16, %v9268_v31 }
0x2eb7   :  { %v9262_v49 = vsel %vm861_vm2, %v9208_v48, %v9261_v40  ;;  %v9193_v32 = vpop.permute.xlu0 %9192  ;;  %v9224_v41 = vrot.slane %v9169_v50, %v12209_v56  ;;  %v9270_v0 = vsel %vm863_vm3, %v9244_v30, %v9269_v38 }
0x2eb8   :  { %v9263_v46 = vsel %vm863_vm3, %v9212_v57, %v9262_v49  ;;  %v9256_v20 = vrot.slane %v9193_v32, %v12209_v56  ;;  %v9271_v40 = vsel %vm865_vm4, %v9248_v60, %v9270_v0 }
0x2eb9   :  { %v9264_v55 = vsel %vm865_vm4, %v9216_v3, %v9263_v46  ;;  %v9272_v57 = vsel %vm867_vm5, %v9252_v44, %v9271_v40 }
0x2eba   :  { %v9172_v37 = vpop.permute.xlu1 %9171  ;;  %v9265_v48 = vsel %vm867_vm5, %v9220_v28, %v9264_v55  ;;  %v9273_v3 = vsel %vm869_vm6, %v9256_v20, %v9272_v57 }
0x2ebb   :  { %v9228_v51 = vrot.slane %v9172_v37, %v12209_v56  ;;  %v9196_v26 = vpop.permute.xlu0 %9195  ;;  %v9266_v52 = vsel %vm869_vm6, %v9224_v41, %v9265_v48 }
0x2ebc   :  { %v9260_v50 = vrot.slane %v9196_v26, %v12209_v56 }
0x2ebd   :  { %v9267_v16 = vsel %vm871_vm7, %v9228_v51, %v9266_v52 }
0x2ebe   :  { %v9277_v30 = vsel %vm882_vm8, %v9267_v16, 0.0  ;;  %v9274_v31 = vsel %vm871_vm7, %v9260_v50, %v9273_v3 }
0x2ebf   :  { %9278 = vadd.xlane.f32.xlu1 %v9277_v30  ;;  %v9280_v60 = vsel %vm882_vm8, %v9274_v31, 0.0 }
0x2ec0   :  { %9281 = vadd.xlane.f32.xlu0 %v9280_v60 }
0x2f4c   :  { %v9279_v49 = vpop.xlane.xlu1 %9278 }
0x2f4d   :  { %11625 = vrcp.f32 %v9279_v49  ;;  %v9282_v32 = vpop.xlane.xlu0 %9281 }
0x2f4e   :  { %11627 = vrcp.f32 %v9282_v32 }
0x2f57   :  { %v11626_v44 = vpop.eup %11625 }
0x2f58   :  { %v11628_v28 = vpop.eup %11627  ;;  %v9294_v20 = vrot.slane %v11626_v44, %v12270_v2  ;;  %v9298_v48 = vrot.slane %v11626_v44, %v12273_v61  ;;  %v9310_v50 = vrot.slane %v11626_v44, %v12276_v19  ;;  %v9314_v52 = vrot.slane %v11626_v44, %v12285_v29 }
0x2f59   :  { %v9326_v46 = vrot.slane %v11628_v28, %v12270_v2  ;;  %v9322_v41 = vrot.slane %v11628_v28, %v12045_v18  ;;  %v9330_v38 = vrot.slane %v11628_v28, %v12273_v61  ;;  %v9334_v37 = vrot.slane %v11628_v28, %v12279_v4 }
0x2f5a   :  { %v15495_v2 = vmul.f32 %v15393_v47, %v9294_v20 }
0x2f5b   :  { %v15480_v55 = vmul.f32 %v15383_v10, %v9326_v46  ;;  %v15483_v0 = vmul.f32 %v15381_v62, %v9322_v41  ;;  %v15492_v26 = vmul.f32 %v15395_v1, %v9330_v38  ;;  %v9338_v62 = vrot.slane %v11628_v28, %v12291_v58 }
0x2f5c   :  { %v9302_v10 = vrot.slane %v11626_v44, %v12279_v4  ;;  %v15507_v1 = vmul.f32 %v15405_v12, %v9298_v48 }
0x2f5d   :  { %v9395_v40 = vmul.f32 %v15480_v55, %v12486_v39  ;;  %v9394_v51 = vmul.f32 %v15483_v0, %v12463_v45  ;;  %v9396_v61 = vmul.f32 %v15492_v26, %v12500_v24  ;;  %v9387_v39 = vmul.f32 %v15495_v2, %v12461_v17 }
0x2f5e   :  { %v15504_v45 = vmul.f32 %v15407_v15, %v9334_v37  ;;  %v15510_v47 = vmul.f32 %v15415_v42, %v9338_v62  ;;  %v15513_v57 = vmul.f32 %v15413_v59, %v9302_v10  ;;  %v9388_v17 = vmul.f32 %v15507_v1, %v12476_v14 }
0x2f5f   :  { %9446 = vperm.xlu0 %10971, %v9395_v40   ;;  %9443 = vperm.xlu1 %10972, %v9394_v51   ;;  %v9342_v24 = vrot.slane %v11628_v28, %v12276_v19  ;;  %v9306_v15 = vrot.slane %v11626_v44, %v12291_v58  ;;  %v9290_v14 = vrot.slane %v11626_v44, %v12045_v18 }
0x2f60   :  { %v9397_v4 = vmul.f32 %v15504_v45, %v12508_v54  ;;  %v9398_v12 = vmul.f32 %v15510_v47, %v12523_v5  ;;  %v9389_v42 = vmul.f32 %v15513_v57, %v12467_v53  ;;  %v9346_v58 = vrot.slane %v11628_v28, %v12285_v29 }
0x2f61   :  { %v15526_v59 = vmul.f32 %v15421_v22, %v9342_v24  ;;  %v15529_v54 = vmul.f32 %v15419_v11, %v9306_v15  ;;  %v15540_v22 = vmul.f32 %v15427_v23, %v9290_v14  ;;  %v15543_v11 = vmul.f32 %v15425_v36, %v9310_v50 }
0x2f62   :  { %v15546_v18 = vmul.f32 %v15433_v25, %v9346_v58  ;;  %v9350_v19 = vrot.slane %v11628_v28, %v12296_v33  ;;  %v9318_v23 = vrot.slane %v11626_v44, %v12296_v33 }
0x2f63   :  { %9449 = vperm.xlu0 %10971, %v9396_v61   ;;  %9422 = vperm.xlu1 %10972, %v9387_v39   ;;  %v9399_v5 = vmul.f32 %v15526_v59, %v12531_v13  ;;  %v9390_v53 = vmul.f32 %v15529_v54, %v12482_v43  ;;  %v9386_v29 = vmul.f32 %v15540_v22, %v12465_v6 }
0x2f64   :  { %v9391_v13 = vmul.f32 %v15543_v11, %v12490_v21  ;;  %v15554_v43 = vmul.f32 %v15431_v9, %v9314_v52  ;;  %v9400_v36 = vmul.f32 %v15546_v18, %v12537_v35  ;;  %v15562_v16 = vmul.f32 %v15439_v7, %v9350_v19 }
0x2f65   :  { %v15565_v6 = vmul.f32 %v15437_v63, %v9318_v23 }
0x2f66   :  { %v9392_v25 = vmul.f32 %v15554_v43, %v12497_v27  ;;  %v9401_v21 = vmul.f32 %v15562_v16, %v16007_v8 }
0x2f67   :  { %9452 = vperm.xlu0 %10971, %v9397_v4   ;;  %9425 = vperm.xlu1 %10972, %v9388_v17   ;;  %v9393_v33 = vmul.f32 %v15565_v6, %v12511_v34 }
0x2f6b   :  { %9455 = vperm.xlu0 %10971, %v9398_v12   ;;  %9428 = vperm.xlu1 %10972, %v9389_v42  }
0x2f6f   :  { %9458 = vperm.xlu0 %10971, %v9399_v5   ;;  %9431 = vperm.xlu1 %10972, %v9390_v53  }
0x2f73   :  { %9419 = vperm.xlu0 %10971, %v9386_v29   ;;  %9434 = vperm.xlu1 %10972, %v9391_v13  }
0x2f77   :  { %9461 = vperm.xlu0 %10971, %v9400_v36   ;;  %9437 = vperm.xlu1 %10972, %v9392_v25  }
0x2f7b   :  { %9464 = vperm.xlu0 %10971, %v9401_v21   ;;  %9440 = vperm.xlu1 %10972, %v9393_v33  }
0x2fde   :  { %v9447_v35 = vpop.permute.xlu0 %9446  ;;  %v9444_v9 = vpop.permute.xlu1 %9443 }
0x2fdf   :  { %v9505_v28 = vrot.slane %v9447_v35, %v12209_v56  ;;  %v9501_v8 = vrot.slane %v9444_v9, %v12209_v56  ;;  %v10070_v9 = vld [vmem:[%s15770_s1 + $0x78] sm:$0xff] }
0x2fe1   :  { %v9537_v39 = vsel %vm859_vm1, %v9505_v28, %v9501_v8 }
0x2fe2   :  { %v9450_v3 = vpop.permute.xlu0 %9449  ;;  %v9423_v27 = vpop.permute.xlu1 %9422 }
0x2fe3   :  { %v9473_v34 = vrot.slane %v9423_v27, %v12209_v56  ;;  %v9509_v41 = vrot.slane %v9450_v3, %v12209_v56  ;;  %v11664_v3 = vld [vmem:[#allocation2] ss:$0 sm:$0xff] }
0x2fe4   :  { %v9553_v27 = vmul.f32 %v11664_v3, %v10070_v9 }
0x2fe5   :  { %v9538_v15 = vsel %vm861_vm2, %v9509_v41, %v9537_v39  ;;  %v16290_v41 = vld [vmem:[#allocation43_spill] sm:$0xff]  ;;  %v16294_v39 = vld [vmem:[#allocation44_spill] sm:$0xff] }
0x2fe6   :  { %v9453_v30 = vpop.permute.xlu0 %9452  ;;  %v9426_v7 = vpop.permute.xlu1 %9425 }
0x2fe7   :  { %v9477_v38 = vrot.slane %v9426_v7, %v12209_v56  ;;  %v9513_v20 = vrot.slane %v9453_v30, %v12209_v56 }
0x2fe9   :  { %v9539_v50 = vsel %vm863_vm3, %v9513_v20, %v9538_v15  ;;  %v16295_v15 = vld [vmem:[#allocation10_spill] sm:$0xff] }
0x2fea   :  { %v9456_v31 = vpop.permute.xlu0 %9455  ;;  %v9429_v60 = vpop.permute.xlu1 %9428 }
0x2feb   :  { %v9481_v37 = vrot.slane %v9429_v60, %v12209_v56  ;;  %v9517_v40 = vrot.slane %v9456_v31, %v12209_v56 }
0x2fed   :  { %v9540_v52 = vsel %vm865_vm4, %v9517_v40, %v9539_v50 }
0x2fee   :  { %v9459_v63 = vpop.permute.xlu0 %9458  ;;  %v9432_v49 = vpop.permute.xlu1 %9431 }
0x2fef   :  { %v9485_v51 = vrot.slane %v9432_v49, %v12209_v56  ;;  %v9521_v4 = vrot.slane %v9459_v63, %v12209_v56  ;;  %v11665_v49 = vld [vmem:[#allocation3] ss:$0 sm:$0xff] }
0x2ff1   :  { %v9541_v19 = vsel %vm867_vm5, %v9521_v4, %v9540_v52 }
0x2ff2   :  { %v9420_v32 = vpop.permute.xlu0 %9419  ;;  %v9435_v44 = vpop.permute.xlu1 %9434 }
0x2ff3   :  { %v9469_v46 = vrot.slane %v9420_v32, %v12209_v56  ;;  %v9489_v24 = vrot.slane %v9435_v44, %v12209_v56 }
0x2ff5   :  { %v9530_v48 = vsel %vm859_vm1, %v9473_v34, %v9469_v46  ;;  %v16289_v34 = vld [vmem:[#allocation42_spill] sm:$0xff] }
0x2ff6   :  { %v9531_v62 = vsel %vm861_vm2, %v9477_v38, %v9530_v48  ;;  %v9462_v10 = vpop.permute.xlu0 %9461  ;;  %v9438_v61 = vpop.permute.xlu1 %9437 }
0x2ff7   :  { %v9532_v17 = vsel %vm863_vm3, %v9481_v37, %v9531_v62  ;;  %v9525_v42 = vrot.slane %v9462_v10, %v12209_v56  ;;  %v9493_v14 = vrot.slane %v9438_v61, %v12209_v56  ;;  %v16291_v37 = vld [vmem:[#allocation8_spill] sm:$0xff]  ;;  %v16293_v10 = vld [vmem:[#allocation9_spill] sm:$0xff] }
0x2ff8   :  { %v9533_v12 = vsel %vm865_vm4, %v9485_v51, %v9532_v17  ;;  %v16292_v51 = vld [vmem:[#allocation35_spill] sm:$0xff] }
0x2ff9   :  { %v9534_v58 = vsel %vm867_vm5, %v9489_v24, %v9533_v12  ;;  %v9542_v23 = vsel %vm869_vm6, %v9525_v42, %v9541_v19 }
0x2ffa   :  { %v9465_v5 = vpop.permute.xlu0 %9464  ;;  %v9441_v53 = vpop.permute.xlu1 %9440  ;;  %v9535_v36 = vsel %vm869_vm6, %v9493_v14, %v9534_v58  ;;  %v16296_v14 = vld [vmem:[#allocation45_spill] sm:$0xff] }
0x2ffb   :  { %v9529_v29 = vrot.slane %v9465_v5, %v12209_v56  ;;  %v9497_v13 = vrot.slane %v9441_v53, %v12209_v56  ;;  %v10069_v56 = vld [vmem:[%s15770_s1 + $0x70] sm:$0xff] }
0x2ffc   :  { %v9552_v30 = vmul.f32 %v11664_v3, %v10069_v56 }
0x2ffd   :  { %v9543_v25 = vsel %vm871_vm7, %v9529_v29, %v9542_v23  ;;  %v9536_v21 = vsel %vm871_vm7, %v9497_v13, %v9535_v36 }
0x2ffe   :  { %v9549_v33 = vsel %vm882_vm8, %v9543_v25, 0.0  ;;  %v9546_v35 = vsel %vm882_vm8, %v9536_v21, 0.0 }
0x2fff   :  { %9550 = vadd.xlane.f32.xlu0 %v9549_v33  ;;  %9547 = vadd.xlane.f32.xlu1 %v9546_v35  ;;  %v10073_v33 = vld [vmem:[%s15780_s12] ss:$0 sm:$0xff] }
0x308c   :  { %v9551_v7 = vpop.xlane.xlu0 %9550  ;;  %v9548_v31 = vpop.xlane.xlu1 %9547 }
0x308d   :  { %v9555_v60 = vadd.f32 %v9553_v27, %v9551_v7  ;;  %v9554_v63 = vadd.f32 %v9552_v30, %v9548_v31 }
0x308f   :  { %v9557_v32 = vadd.f32 %v11665_v49, %v9555_v60  ;;  %v9556_v44 = vadd.f32 %v11665_v49, %v9554_v63  ;;  %v11666_v60 = vld [vmem:[%s15769_s0 + $0x8] sm:$0xff] }
0x3091   :  { %9565 = vperm.xlu1 %10972, %v9557_v32   ;;  %9560 = vperm.xlu0 %10971, %v9556_v44   ;;  %v11667_v44 = vld [vmem:[%s15769_s0 + $0x48] sm:$0xff] }
0x3110   :  { %v9561_v28 = vpop.permute.xlu0 %9560  ;;  %v9566_v8 = vpop.permute.xlu1 %9565 }
0x3111   :  { %v9568_v46 = vmul.f32 %v9561_v28, %v16289_v34  ;;  %v9569_v38 = vmul.f32 %v9561_v28, %v16290_v41  ;;  %v9570_v20 = vmul.f32 %v9566_v8, %v16289_v34  ;;  %v9571_v40 = vmul.f32 %v9566_v8, %v16290_v41 }
0x3113   :  { %v9653_v48 = vadd.f32 %v16291_v37, %v9568_v46  ;;  %v9655_v62 = vadd.f32 %v16292_v51, %v9570_v20  ;;  %v9654_v61 = vadd.f32 %v16293_v10, %v9569_v38  ;;  %v9656_v12 = vadd.f32 %v16295_v15, %v9571_v40  ;;  %v11668_v46 = vld [vmem:[%s15769_s0 + $0x10] sm:$0xff] }
0x3114   :  { %v11669_v51 = vld [vmem:[%s15769_s0 + $0x50] sm:$0xff] }
0x3115   :  { %v9657_v4 = vadd.f32 %v9653_v48, %v16294_v39  ;;  %v9659_v17 = vadd.f32 %v9655_v62, %v16294_v39  ;;  %v9658_v50 = vadd.f32 %v9654_v61, %v16296_v14  ;;  %v9660_v58 = vadd.f32 %v9656_v12, %v16296_v14 }
0x3117   :  { %v9661_v24 = vmul.f32 0.5, %v9657_v4  ;;  %v9662_v42 = vmul.f32 0.5, %v9659_v17  ;;  %v11670_v17 = vld [vmem:[%s15769_s0] sm:$0xff] }
0x3119   :  { %11629 = vtanh.f32 %v9661_v24 }
0x311a   :  { %11631 = vtanh.f32 %v9662_v42 }
0x311b   :  { %11633 = vtanh.f32 %v9658_v50 }
0x311c   :  { %11635 = vtanh.f32 %v9660_v58 }
0x3123   :  { %v11630_v52 = vpop.eup %11629 }
0x3124   :  { %v9665_v5 = vadd.f32 1.0, %v11630_v52  ;;  %v11632_v53 = vpop.eup %11631 }
0x3125   :  { %v9666_v19 = vadd.f32 1.0, %v11632_v53  ;;  %v11634_v13 = vpop.eup %11633 }
0x3126   :  { %v9667_v29 = vmul.f32 0.5, %v9665_v5  ;;  %v11636_v25 = vpop.eup %11635  ;;  %v11671_v5 = vld [vmem:[%s15769_s0 + $0x18] sm:$0xff] }
0x3127   :  { %v9668_v36 = vmul.f32 0.5, %v9666_v19 }
0x3128   :  { %v9681_v23 = vmul.f32 %v11634_v13, %v9667_v29 }
0x3129   :  { %v9682_v21 = vmul.f32 %v11636_v25, %v9668_v36 }
0x312a   :  { %9685 = vrot.lane.b32.xlu1 %v9681_v23, %s11712_s6 }
0x312b   :  { %9687 = vrot.lane.b32.xlu0 %v9682_v21, %s11712_s6  ;;  %v11672_v21 = vld [vmem:[%s15769_s0 + $0x40] sm:$0xff] }
0x312e   :  { %9911 = vrot.lane.b32.xlu1 %v10073_v33, %s11712_s6 }
0x312f   :  { %9704 = vperm.xlu0 %10971, %v15495_v2  }
0x3132   :  { %9744 = vperm.xlu1 %10972, %v15480_v55   ;;  %v9671_v55 = vmul.f32 0.5, %v9658_v50 }
0x3133   :  { %9709 = vperm.xlu0 %10971, %v15507_v1   ;;  %v16298_v1 = vld [vmem:[#allocation51_spill] sm:$0xff] }
0x3134   :  { %11637 = vtanh.f32 %v9671_v55 }
0x3136   :  { %9749 = vperm.xlu1 %10972, %v15492_v26   ;;  %v16297_v26 = vld [vmem:[#allocation49_spill] sm:$0xff] }
0x3137   :  { %9699 = vperm.xlu0 %10971, %v15540_v22   ;;  %v9679_v2 = vmul.f32 %v9667_v29, %v16297_v26 }
0x313a   :  { %9714 = vperm.xlu1 %10972, %v15513_v57  }
0x313b   :  { %9739 = vperm.xlu0 %10971, %v15483_v0   ;;  %v9672_v0 = vmul.f32 0.5, %v9660_v58 }
0x313d   :  { %11639 = vtanh.f32 %v9672_v0 }
0x313e   :  { %9754 = vperm.xlu1 %10972, %v15504_v45   ;;  %v11638_v22 = vpop.eup %11637 }
0x313f   :  { %9719 = vperm.xlu0 %10971, %v15529_v54  }
0x3142   :  { %9759 = vperm.xlu1 %10972, %v15510_v47   ;;  %v9680_v47 = vmul.f32 %v9668_v36, %v16298_v1 }
0x3143   :  { %9724 = vperm.xlu0 %10971, %v15543_v11  }
0x3146   :  { %9764 = vperm.xlu1 %10972, %v15526_v59  }
0x3147   :  { %9729 = vperm.xlu0 %10971, %v15554_v43   ;;  %v11640_v11 = vpop.eup %11639 }
0x3148   :  { %v9676_v43 = vadd.f32 1.0, %v11640_v11 }
0x314a   :  { %9769 = vperm.xlu1 %10972, %v15546_v18   ;;  %v9675_v18 = vadd.f32 1.0, %v11638_v22  ;;  %v9678_v9 = vmul.f32 0.5, %v9676_v43  ;;  %v11673_v43 = vld [vmem:[%s15769_s0 + $0x58] sm:$0xff] }
0x314b   :  { %9734 = vperm.xlu0 %10971, %v15565_v6  }
0x314c   :  { %v9677_v6 = vmul.f32 0.5, %v9675_v18 }
0x314e   :  { %9774 = vperm.xlu1 %10972, %v15562_v16  }
0x319c   :  { %v9686_v45 = vpop.permute.xlu1 %9685 }
0x319d   :  { %v9691_v57 = vadd.f32 %v9686_v45, %v9679_v2  ;;  %v9688_v54 = vpop.permute.xlu0 %9687 }
0x319e   :  { %v9692_v59 = vadd.f32 %v9688_v54, %v9680_v47 }
0x319f   :  { %11641 = vtanh.f32 %v9691_v57 }
0x31a0   :  { %11643 = vtanh.f32 %v9692_v59  ;;  %v9912_v35 = vpop.permute.xlu1 %9911 }
0x31a9   :  { %v11642_v16 = vpop.eup %11641 }
0x31aa   :  { %v9695_v56 = vmul.f32 %v11642_v16, %v9677_v6  ;;  %v11644_v3 = vpop.eup %11643  ;;  %v15681_v16 = vld [vmem:[%s15781_s13] ss:$0 sm:$0xff] }
0x31ab   :  { %v9696_v27 = vmul.f32 %v11644_v3, %v9678_v9  ;;  %v11674_v3 = vld [vmem:[%s15769_s0 + $0x20] sm:$0xff] }
0x31ac   :  { %v9914_v30 = vmul.f32 %v9912_v35, %v9695_v56 }
0x31ad   :  { %v9915_v7 = vmul.f32 %v9912_v35, %v9696_v27 }
0x31ae   :  { %9918 = vrot.lane.b32.xlu0 %v9914_v30, %s11712_s6  ;;  %v9705_v31 = vpop.permute.xlu0 %9704 }
0x31af   :  { %v9778_v63 = vmul.f32 %v11666_v60, %v9705_v31  ;;  %9920 = vrot.lane.b32.xlu1 %v9915_v7, %s11712_s6 }
0x31b1   :  { %v9745_v49 = vpop.permute.xlu1 %9744  ;;  %v9800_v32 = vsel %vm135_vm0, %v9778_v63, 0.0 }
0x31b2   :  { %v9786_v28 = vmul.f32 %v11667_v44, %v9745_v49  ;;  %v9801_v8 = vrot.slane %v9800_v32, 4  ;;  %v9710_v34 = vpop.permute.xlu0 %9709 }
0x31b3   :  { %v9779_v41 = vmul.f32 %v11668_v46, %v9710_v34 }
0x31b4   :  { %v9856_v38 = vsel %vm135_vm0, %v9786_v28, 0.0  ;;  %v9802_v20 = vadd.f32 %v9801_v8, %v9800_v32 }
0x31b5   :  { %v9857_v37 = vrot.slane %v9856_v38, 4  ;;  %v9750_v48 = vpop.permute.xlu1 %9749  ;;  %v9807_v40 = vsel %vm135_vm0, %v9779_v41, 0.0 }
0x31b6   :  { %v9787_v62 = vmul.f32 %v11669_v51, %v9750_v48  ;;  %v9803_v10 = vrot.slane %v9802_v20, 2  ;;  %v9808_v61 = vrot.slane %v9807_v40, 4  ;;  %v9700_v4 = vpop.permute.xlu0 %9699 }
0x31b7   :  { %v9858_v39 = vadd.f32 %v9857_v37, %v9856_v38  ;;  %v9777_v24 = vmul.f32 %v11670_v17, %v9700_v4 }
0x31b8   :  { %v9863_v15 = vsel %vm135_vm0, %v9787_v62, 0.0  ;;  %v9804_v12 = vadd.f32 %v9803_v10, %v9802_v20  ;;  %v9809_v42 = vadd.f32 %v9808_v61, %v9807_v40 }
0x31b9   :  { %v9859_v14 = vrot.slane %v9858_v39, 2  ;;  %v9864_v50 = vrot.slane %v9863_v15, 4  ;;  %v9715_v58 = vpop.permute.xlu1 %9714  ;;  %v9793_v52 = vsel %vm135_vm0, %v9777_v24, 0.0 }
0x31ba   :  { %v9780_v53 = vmul.f32 %v11671_v5, %v9715_v58  ;;  %v9805_v19 = vrot.slane %v9804_v12, 1  ;;  %v9810_v29 = vrot.slane %v9809_v42, 2  ;;  %v9794_v23 = vrot.slane %v9793_v52, 4  ;;  %v9740_v36 = vpop.permute.xlu0 %9739 }
0x31bb   :  { %v9860_v13 = vadd.f32 %v9859_v14, %v9858_v39  ;;  %v9865_v25 = vadd.f32 %v9864_v50, %v9863_v15  ;;  %v9785_v33 = vmul.f32 %v11672_v21, %v9740_v36  ;;  %v11675_v39 = vld [vmem:[%s15769_s0 + $0x28] sm:$0xff]  ;;  %v11677_v21 = vld [vmem:[%s15769_s0 + $0x30] sm:$0xff] }
0x31bc   :  { %v9814_v55 = vsel %vm135_vm0, %v9780_v53, 0.0  ;;  %v9811_v0 = vadd.f32 %v9810_v29, %v9809_v42  ;;  %v9795_v2 = vadd.f32 %v9794_v23, %v9793_v52  ;;  %v9806_v1 = vadd.f32 %v9805_v19, %v9804_v12  ;;  %v11676_v12 = vld [vmem:[%s15769_s0 + $0x60] sm:$0xff] }
0x31bd   :  { %v9861_v26 = vrot.slane %v9860_v13, 1  ;;  %v9755_v45 = vpop.permute.xlu1 %9754  ;;  %v9866_v47 = vrot.slane %v9865_v25, 2  ;;  %v9849_v57 = vsel %vm135_vm0, %v9785_v33, 0.0  ;;  %v9815_v54 = vrot.slane %v9814_v55, 4 }
0x31be   :  { %v9812_v59 = vrot.slane %v9811_v0, 1  ;;  %v9796_v11 = vrot.slane %v9795_v2, 2  ;;  %v9720_v18 = vpop.permute.xlu0 %9719  ;;  %v9788_v6 = vmul.f32 %v11673_v43, %v9755_v45  ;;  %v9850_v9 = vrot.slane %v9849_v57, 4 }
0x31bf   :  { %v9862_v22 = vadd.f32 %v9861_v26, %v9860_v13  ;;  %v9867_v35 = vadd.f32 %v9866_v47, %v9865_v25  ;;  %v9816_v56 = vadd.f32 %v9815_v54, %v9814_v55  ;;  %v9781_v27 = vmul.f32 %v11674_v3, %v9720_v18  ;;  %v11679_v3 = vld [vmem:[%s15769_s0 + $0x38] sm:$0xff] }
0x31c0   :  { %v9813_v30 = vadd.f32 %v9812_v59, %v9811_v0  ;;  %v9797_v31 = vadd.f32 %v9796_v11, %v9795_v2  ;;  %v9851_v49 = vadd.f32 %v9850_v9, %v9849_v57  ;;  %v15689_v46 = vmul.f32 %v15681_v16, %v9806_v1  ;;  %v11678_v59 = vld [vmem:[%s15769_s0 + $0x68] sm:$0xff] }
0x31c1   :  { %v9946_v7 = vmul.f32 %v15681_v16, %v9862_v22  ;;  %v9760_v60 = vpop.permute.xlu1 %9759  ;;  %v9868_v63 = vrot.slane %v9867_v35, 1  ;;  %v9817_v32 = vrot.slane %v9816_v56, 2  ;;  %v9821_v44 = vsel %vm135_vm0, %v9781_v27, 0.0 }
0x31c2   :  { %v9798_v28 = vrot.slane %v9797_v31, 1  ;;  %v9822_v8 = vrot.slane %v9821_v44, 4  ;;  %v9725_v34 = vpop.permute.xlu0 %9724  ;;  %v9852_v38 = vrot.slane %v9851_v49, 2  ;;  %v9870_v20 = vsel %vm135_vm0, %v9788_v6, 0.0 }
0x31c3   :  { %v9869_v41 = vadd.f32 %v9868_v63, %v9867_v35  ;;  %v15693_v37 = vmul.f32 %v15681_v16, %v9813_v30  ;;  %v9871_v40 = vrot.slane %v9870_v20, 4  ;;  %v9818_v61 = vadd.f32 %v9817_v32, %v9816_v56 }
0x31c4   :  { %v9823_v48 = vadd.f32 %v9822_v8, %v9821_v44  ;;  %v9853_v10 = vadd.f32 %v9852_v38, %v9851_v49  ;;  %v9782_v4 = vmul.f32 %v11675_v39, %v9725_v34  ;;  %v9799_v17 = vadd.f32 %v9798_v28, %v9797_v31  ;;  %v11680_v44 = vld [vmem:[%s15769_s0 + $0x70] sm:$0xff] }
0x31c5   :  { %v9765_v51 = vpop.permute.xlu1 %9764  ;;  %v15696_v62 = vmul.f32 %v15681_v16, %v9869_v41  ;;  %v9872_v15 = vadd.f32 %v9871_v40, %v9870_v20  ;;  %v9789_v42 = vmul.f32 %v11676_v12, %v9760_v60  ;;  %v9969_v50 = vrot.slane %v15689_v46, 7  ;;  %v11681_v12 = vld [vmem:[%s15769_s0 + $0x78] sm:$0xff] }
0x31c6   :  { %v9824_v24 = vrot.slane %v9823_v48, 2  ;;  %v9730_v14 = vpop.permute.xlu0 %9729  ;;  %v9983_v58 = vrot.slane %v9946_v7, 7  ;;  %v9854_v52 = vrot.slane %v9853_v10, 1  ;;  %v9828_v5 = vsel %vm135_vm0, %v9782_v4, 0.0 }
0x31c7   :  { %v9971_v53 = vrot.slane %v15693_v37, 6  ;;  %v9873_v29 = vrot.slane %v9872_v15, 2  ;;  %v9829_v13 = vrot.slane %v9828_v5, 4  ;;  %v9819_v36 = vrot.slane %v9818_v61, 1 }
0x31c8   :  { %v9825_v19 = vadd.f32 %v9824_v24, %v9823_v48  ;;  %v9855_v23 = vadd.f32 %v9854_v52, %v9853_v10  ;;  %v9877_v25 = vsel %vm135_vm0, %v9789_v42, 0.0  ;;  %v9783_v33 = vmul.f32 %v11677_v21, %v9730_v14 }
0x31c9   :  { %v9937_v55 = vmul.f32 %v15681_v16, %v9799_v17  ;;  %v9874_v0 = vadd.f32 %v9873_v29, %v9872_v15  ;;  %v9830_v26 = vadd.f32 %v9829_v13, %v9828_v5  ;;  %v9878_v2 = vrot.slane %v9877_v25, 4  ;;  %v9770_v1 = vpop.permute.xlu1 %9769 }
0x31ca   :  { %v9735_v45 = vpop.permute.xlu0 %9734  ;;  %v9985_v47 = vrot.slane %v15696_v62, 6  ;;  %v9945_v57 = vmul.f32 %v15681_v16, %v9855_v23  ;;  %v9835_v54 = vsel %vm135_vm0, %v9783_v33, 0.0  ;;  %v9790_v22 = vmul.f32 %v11678_v59, %v9765_v51 }
0x31cb   :  { %v9826_v11 = vrot.slane %v9825_v19, 1  ;;  %v9875_v18 = vrot.slane %v9874_v0, 1  ;;  %v9831_v43 = vrot.slane %v9830_v26, 2  ;;  %v9879_v6 = vadd.f32 %v9878_v2, %v9877_v25 }
0x31cc   :  { %v9984_v35 = vsel %vm859_vm1, %v9983_v58, %v9945_v57  ;;  %v9836_v9 = vrot.slane %v9835_v54, 4  ;;  %v9884_v56 = vsel %vm135_vm0, %v9790_v22, 0.0  ;;  %v9784_v27 = vmul.f32 %v11679_v3, %v9735_v45 }
0x31cd   :  { %v9820_v30 = vadd.f32 %v9819_v36, %v9818_v61  ;;  %v9876_v7 = vadd.f32 %v9875_v18, %v9874_v0  ;;  %v9832_v31 = vadd.f32 %v9831_v43, %v9830_v26  ;;  %v9880_v60 = vrot.slane %v9879_v6, 2  ;;  %v9775_v38 = vpop.permute.xlu1 %9774 }
0x31ce   :  { %v9837_v63 = vadd.f32 %v9836_v9, %v9835_v54  ;;  %v9885_v49 = vrot.slane %v9884_v56, 4  ;;  %v9842_v32 = vsel %vm135_vm0, %v9784_v27, 0.0  ;;  %v9791_v28 = vmul.f32 %v11680_v44, %v9770_v1 }
0x31cf   :  { %v9970_v8 = vsel %vm859_vm1, %v9969_v50, %v9937_v55  ;;  %v9827_v34 = vadd.f32 %v9826_v11, %v9825_v19  ;;  %v9833_v46 = vrot.slane %v9832_v31, 1  ;;  %v9881_v41 = vadd.f32 %v9880_v60, %v9879_v6 }
0x31d0   :  { %v9838_v20 = vrot.slane %v9837_v63, 2  ;;  %v9886_v48 = vadd.f32 %v9885_v49, %v9884_v56  ;;  %v9843_v40 = vrot.slane %v9842_v32, 4  ;;  %v9891_v51 = vsel %vm135_vm0, %v9791_v28, 0.0 }
0x31d1   :  { %v9948_v10 = vmul.f32 %v15681_v16, %v9876_v7  ;;  %v9834_v61 = vadd.f32 %v9833_v46, %v9832_v31  ;;  %v9882_v39 = vrot.slane %v9881_v41, 1  ;;  %v9892_v4 = vrot.slane %v9891_v51, 4 }
0x31d2   :  { %v9839_v17 = vadd.f32 %v9838_v20, %v9837_v63  ;;  %v9887_v24 = vrot.slane %v9886_v48, 2  ;;  %v9844_v15 = vadd.f32 %v9843_v40, %v9842_v32  ;;  %v9792_v42 = vmul.f32 %v11681_v12, %v9775_v38 }
0x31d3   :  { %v9940_v14 = vmul.f32 %v15681_v16, %v9820_v30  ;;  %v9941_v50 = vmul.f32 %v15681_v16, %v9827_v34  ;;  %v9883_v58 = vadd.f32 %v9882_v39, %v9881_v41  ;;  %v9893_v52 = vadd.f32 %v9892_v4, %v9891_v51 }
0x31d4   :  { %v9840_v5 = vrot.slane %v9839_v17, 1  ;;  %v9888_v19 = vadd.f32 %v9887_v24, %v9886_v48  ;;  %v9845_v29 = vrot.slane %v9844_v15, 2  ;;  %v9898_v13 = vsel %vm135_vm0, %v9792_v42, 0.0 }
0x31d5   :  { %v9987_v23 = vrot.slane %v9948_v10, 5  ;;  %v9949_v36 = vmul.f32 %v15681_v16, %v9883_v58  ;;  %v9894_v25 = vrot.slane %v9893_v52, 2  ;;  %v9899_v21 = vrot.slane %v9898_v13, 4 }
0x31d6   :  { %v9942_v33 = vmul.f32 %v15681_v16, %v9834_v61  ;;  %v9841_v55 = vadd.f32 %v9840_v5, %v9839_v17  ;;  %v9889_v0 = vrot.slane %v9888_v19, 1  ;;  %v9846_v26 = vadd.f32 %v9845_v29, %v9844_v15  ;;  %v10075_v15 = vld [vmem:[#allocation4] ss:$0 sm:$0xff] }
0x31d7   :  { %v9973_v2 = vrot.slane %v9940_v14, 5  ;;  %v9989_v45 = vrot.slane %v9949_v36, 4  ;;  %v9895_v1 = vadd.f32 %v9894_v25, %v9893_v52  ;;  %v9900_v57 = vadd.f32 %v9899_v21, %v9898_v13 }
0x31d8   :  { %v9975_v54 = vrot.slane %v9941_v50, 4  ;;  %v9943_v59 = vmul.f32 %v15681_v16, %v9841_v55  ;;  %v9890_v22 = vadd.f32 %v9889_v0, %v9888_v19  ;;  %v9847_v11 = vrot.slane %v9846_v26, 1 }
0x31d9   :  { %v9896_v18 = vrot.slane %v9895_v1, 1  ;;  %v9901_v43 = vrot.slane %v9900_v57, 2  ;;  %v9972_v6 = vsel %vm861_vm2, %v9971_v53, %v9970_v8  ;;  %v9986_v9 = vsel %vm861_vm2, %v9985_v47, %v9984_v35 }
0x31da   :  { %v9977_v56 = vrot.slane %v9942_v33, 3  ;;  %v9950_v3 = vmul.f32 %v15681_v16, %v9890_v22  ;;  %v9848_v27 = vadd.f32 %v9847_v11, %v9846_v26  ;;  %v9988_v30 = vsel %vm863_vm3, %v9987_v23, %v9986_v9 }
0x31db   :  { %v9897_v7 = vadd.f32 %v9896_v18, %v9895_v1  ;;  %v9902_v31 = vadd.f32 %v9901_v43, %v9900_v57  ;;  %v9979_v60 = vrot.slane %v9943_v59, 2  ;;  %v9990_v63 = vsel %vm865_vm4, %v9989_v45, %v9988_v30 }
0x31dc   :  { %v9991_v49 = vrot.slane %v9950_v3, 3  ;;  %v9944_v37 = vmul.f32 %v15681_v16, %v9848_v27  ;;  %v9974_v53 = vsel %vm863_vm3, %v9973_v2, %v9972_v6 }
0x31dd   :  { %v9951_v62 = vmul.f32 %v15681_v16, %v9897_v7  ;;  %v9903_v32 = vrot.slane %v9902_v31, 1  ;;  %v9976_v47 = vsel %vm865_vm4, %v9975_v54, %v9974_v53 }
0x31de   :  { %v9978_v35 = vsel %vm867_vm5, %v9977_v56, %v9976_v47  ;;  %v9981_v44 = vrot.slane %v9944_v37, 1  ;;  %v9992_v28 = vsel %vm867_vm5, %v9991_v49, %v9990_v63 }
0x31df   :  { %v9904_v8 = vadd.f32 %v9903_v32, %v9902_v31  ;;  %v9980_v34 = vsel %vm869_vm6, %v9979_v60, %v9978_v35  ;;  %v9993_v46 = vrot.slane %v9951_v62, 2 }
0x31e0   :  { %v9982_v41 = vsel %vm871_vm7, %v9981_v44, %v9980_v34 }
0x31e1   :  { %v9999_v38 = vsel %vm135_vm0, %v9982_v41, 0.0  ;;  %v9952_v20 = vmul.f32 %v15681_v16, %v9904_v8  ;;  %v9994_v48 = vsel %vm869_vm6, %v9993_v46, %v9992_v28 }
0x31e2   :  { %10000 = vadd.xlane.f32.xlu0 %v9999_v38 }
0x31e3   :  { %v9995_v40 = vrot.slane %v9952_v20, 1 }
0x31e5   :  { %v9996_v51 = vsel %vm871_vm7, %v9995_v40, %v9994_v48 }
0x31e6   :  { %v10002_v17 = vsel %vm135_vm0, %v9996_v51, 0.0 }
0x3220   :  { %v9919_v10 = vpop.permute.xlu0 %9918 }
0x3221   :  { %v9924_v61 = vsel %vm135_vm0, %v9919_v10, 0.0  ;;  %v9921_v39 = vpop.permute.xlu1 %9920 }
0x3222   :  { %9925 = vadd.xlane.f32.xlu0 %v9924_v61  ;;  %v9927_v4 = vsel %vm135_vm0, %v9921_v39, 0.0 }
0x3223   :  { %9928 = vadd.xlane.f32.xlu1 %v9927_v4 }
0x3226   :  { %10003 = vadd.xlane.f32.xlu0 %v10002_v17 }
0x326f   :  { %v10001_v24 = vpop.xlane.xlu0 %10000 }
0x32af   :  { %v9926_v16 = vpop.xlane.xlu0 %9925 }
0x32b0   :  { %v10005_v12 = vadd.f32 %v10001_v24, %v9926_v16  ;;  %v9929_v14 = vpop.xlane.xlu1 %9928 }
0x32b2   :  { %v10014_v42 = vadd.f32 %v10075_v15, %v10005_v12 }
0x32b3   :  { %v10004_v50 = vpop.xlane.xlu0 %10003 }
0x32b4   :  { %10017 = vst.msk [vmem:[%s15782_s15] sm:$0xff] %vm10016_vm9, %v10014_v42  ;;  %v10006_v58 = vadd.f32 %v10004_v50, %v9929_v14 }
0x32b6   :  { %v10015_v52 = vadd.f32 %v10075_v15, %v10006_v58 }
0x32b8   :  { %10018 = vst.msk [vmem:[%s15782_s15 + $0x8] sm:$0xff] %vm10016_vm9, %v10015_v52 }
0x32b9   :  { %10023 = vsyncpa [#allocation6], 1 }

</bundles_post_ra>
